<compile_context>
chip_gen: v5e
topology: v5e:2x2
jax: 0.10.0
libtpu: 0.0.40
codegen_flags: <defaults>
</compile_context>

<pallas_src>
import jax
import jax.numpy as jnp
from jax import lax
from jax.experimental import pallas as pl
from jax.experimental.pallas import tpu as pltpu


C1 = 48        # fused hidden width of layers 1 & 3 (3 branches x 16)
C2 = 96        # fused hidden width of layer 2      (3 branches x 32)
C_OUT = 7      # illumination(1) + reflectance(3) + noise(3)
C_OUT_PAD = 8  # zero-padded output channel count (lane-dense stores)


def _rrdnet_fused_kernel(x_ref, w1_ref, b1_ref, w2_ref, b2_ref,
                         w3_ref, b3_ref, w4_ref, b4_ref,
                         o_ref, buf_a, buf_b):
    """Entire RRDNet forward for one batch element, fully VMEM-resident.

    x_ref : (1, H*W, 27)       bf16 layer-1 im2col slab (built in the wrapper)
    w*_ref: (9*Cin, Cout)      bf16 fused, im2col-flattened HWIO weights
    b*_ref: (1, Cout)          f32 fused bias
    o_ref : (1, 8, H*W)        f32 channel-major output (channel 7 = padding)
    buf_a : (H+2, W, 48) bf16  scratch, H-haloed activations (layers 1 & 3)
    buf_b : (H+2, W, 96) bf16  scratch, H-haloed activations (layer 2)
    """
    H = buf_a.shape[0] - 2
    W = buf_a.shape[1]
    HW = H * W

    # Zero only the 1-row top/bottom halos (interiors are fully overwritten
    # every layer).  Done every grid step so correctness holds under any
    # megacore / core-parallel sharding of the batch axis.
    zero_a = jnp.zeros((1, W, C1), jnp.bfloat16)
    zero_b = jnp.zeros((1, W, C2), jnp.bfloat16)
    buf_a[0:1, :, :] = zero_a
    buf_a[H + 1:H + 2, :, :] = zero_a
    buf_b[0:1, :, :] = zero_b
    buf_b[H + 1:H + 2, :, :] = zero_b

    def im2col(buf, cin):
        """(H+2, W, cin) H-haloed bf16 buffer -> (H*W, 9*cin) patch matrix.

        The +/-1 W shifts are folded into the gather with an explicit zero
        column (buffers carry no W halo), keeping all scratch stores aligned.
        """
        # TODO(synk): realize the W shifts with pltpu.roll on the sublane axis
        # (rides the otherwise-idle XLU slot) if this gather becomes the
        # binding slot at large H, W.
        zcol = jnp.zeros((H, 1, cin), jnp.bfloat16)
        taps = []
        for dh in range(3):
            rows = buf[dh:dh + H, :, :]                                       # (H, W, cin)
            taps.append(jnp.concatenate([zcol, rows[:, :W - 1, :]], axis=1))  # dw=0: x[., w-1]
            taps.append(rows)                                                 # dw=1: x[., w]
            taps.append(jnp.concatenate([rows[:, 1:, :], zcol], axis=1))      # dw=2: x[., w+1]
        return jnp.concatenate(taps, axis=-1).reshape(HW, 9 * cin)

    def dense(lhs, w_ref, b_ref):
        # One K-concatenated MXU matmul (bf16 operands, f32 accumulation)
        # plus fused f32 bias add.
        acc = jnp.dot(lhs, w_ref[...], preferred_element_type=jnp.float32)
        return acc + b_ref[...]

    # ---- layer 1: K=27 -> 48, ReLU ----
    a = jnp.maximum(dense(x_ref[0], w1_ref, b1_ref), 0.0)
    buf_a[1:H + 1, :, :] = a.reshape(H, W, C1).astype(jnp.bfloat16)

    # ---- layer 2: K=432 -> 96, ReLU ----
    a = jnp.maximum(dense(im2col(buf_a, C1), w2_ref, b2_ref), 0.0)
    buf_b[1:H + 1, :, :] = a.reshape(H, W, C2).astype(jnp.bfloat16)

    # ---- layer 3: K=864 -> 48, ReLU ----
    a = jnp.maximum(dense(im2col(buf_b, C2), w3_ref, b3_ref), 0.0)
    buf_a[1:H + 1, :, :] = a.reshape(H, W, C1).astype(jnp.bfloat16)

    # ---- layer 4: K=432 -> 8 (col 7 is zero padding) ----
    a = dense(im2col(buf_a, C1), w4_ref, b4_ref)          # (HW, 8) f32
    logits = a.T                                          # (8, HW): lane-dense

    # sigmoid on ch 0..3, tanh on ch 4..6, paying only ONE exp per element:
    # tanh(x) = 2*sigmoid(2x) - 1.
    ch = lax.broadcasted_iota(jnp.int32, logits.shape, 0)
    is_sig = ch < 4
    z = jnp.where(is_sig, logits, 2.0 * logits)
    s = 1.0 / (1.0 + jnp.exp(-z))
    out = jnp.where(is_sig, s, 2.0 * s - 1.0)
    o_ref[...] = out.reshape(1, C_OUT_PAD, HW).astype(o_ref.dtype)


# ------------------------------- wrapper ------------------------------------

def _input_im2col(x_nhwc):
    """(N, H, W, 3) f32 -> (N, H*W, 27) bf16 layer-1 patch slab.

    Tap order is (dh, dw, c), matching the (3,3,Cin,Cout)->(9*Cin,Cout) weight
    reshape.  Packing host-side avoids DMAing a last-dim-3 tensor (3/128 lane
    utilization) into VMEM.
    """
    N, H, W, C = x_nhwc.shape
    xp = jnp.pad(x_nhwc, ((0, 0), (1, 1), (1, 1), (0, 0)))
    taps = [xp[:, dh:dh + H, dw:dw + W, :] for dh in range(3) for dw in range(3)]
    slab = jnp.concatenate(taps, axis=-1)                  # (N, H, W, 27)
    return slab.reshape(N, H * W, 9 * C).astype(jnp.bfloat16)


def rrdnet_forward_fused(x_nhwc, packed_params):
    """Fused RRDNet forward.  x_nhwc: (N, H, W, 3) f32 -> (N, 8, H*W) f32."""
    (w1, b1), (w2, b2), (w3, b3), (w4, b4) = packed_params
    N, H, W, _ = x_nhwc.shape
    x_cols = _input_im2col(x_nhwc)
    k1 = x_cols.shape[-1]

    # TODO(synk): single-buffer these constant-index weight/bias specs with
    # pipeline_mode=pl.Buffered(1) once buffer_count=1 is confirmed on the
    # target jax build (saves ~180 KiB of double-buffered VMEM).
    def const_spec(arr):
        nd = arr.ndim
        return pl.BlockSpec(arr.shape, lambda n, _nd=nd: (0,) * _nd)

    return pl.pallas_call(
        _rrdnet_fused_kernel,
        out_shape=jax.ShapeDtypeStruct((N, C_OUT_PAD, H * W), jnp.float32),
        grid=(N,),
        in_specs=[
            pl.BlockSpec((1, H * W, k1), lambda n: (n, 0, 0)),
            const_spec(w1), const_spec(b1),
            const_spec(w2), const_spec(b2),
            const_spec(w3), const_spec(b3),
            const_spec(w4), const_spec(b4),
        ],
        out_specs=pl.BlockSpec((1, C_OUT_PAD, H * W), lambda n: (n, 0, 0)),
        scratch_shapes=[
            pltpu.VMEM((H + 2, W, C1), jnp.bfloat16),
            pltpu.VMEM((H + 2, W, C2), jnp.bfloat16),
        ],
        # TODO(synk): strip-mine H (grid=(N, H//TH), recompute halos) so scratch
        # and im2col temporaries stay bounded at large images (v7x: 64 MiB VMEM).
        # TODO(synk): use pltpu.CORE_PARALLEL / pl.core_map on the batch axis to
        # guarantee the 2-TensorCore split on v7x; "parallel" kept for portability.
        compiler_params=pltpu.CompilerParams(
            dimension_semantics=("parallel",),
            vmem_limit_bytes=32 * 1024 * 1024,
        ),
    )(x_cols, w1, b1, w2, b2, w3, b3, w4, b4)


# ----------------------------- parameters -----------------------------------

def _init_branch_params(key, channels):
    """Deterministic synthetic init (PyTorch-Conv2d-like fan-in scaling), f32 HWIO."""
    params = []
    for i in range(len(channels) - 1):
        cin, cout = channels[i], channels[i + 1]
        key, kw, kb = jax.random.split(key, 3)
        bound = 1.0 / ((cin * 9) ** 0.5)
        w = jax.random.uniform(kw, (3, 3, cin, cout), jnp.float32,
                               minval=-bound, maxval=bound)
        b = jax.random.uniform(kb, (cout,), jnp.float32,
                               minval=-bound, maxval=bound)
        params.append((w, b))
    return params


def _fuse_and_pack_params(branch_params_list):
    """Pack the 3 branches into 4 fused layers in kernel-ready layout.

    Layer 1 shares the network input -> weights concatenated along Cout.
    Layers 2-4 are per-branch        -> block-diagonal over (Cin, Cout).
    Layer 4 Cout is zero-padded 7->8 for lane-dense output stores.
    Weights are flattened (3,3,Cin,Cout) -> (9*Cin, Cout) to match the im2col
    tap order and cast to bf16; biases stay f32 as (1, Cout).
    """
    n_layers = len(branch_params_list[0])
    packed = []
    for layer in range(n_layers):
        ws = [bp[layer][0] for bp in branch_params_list]
        bs = [bp[layer][1] for bp in branch_params_list]
        b = jnp.concatenate(bs, axis=0)
        if layer == 0:
            w = jnp.concatenate(ws, axis=3)
        else:
            cin_tot = sum(wi.shape[2] for wi in ws)
            cout_tot = sum(wi.shape[3] for wi in ws)
            w = jnp.zeros((3, 3, cin_tot, cout_tot), jnp.float32)
            ci = co = 0
            for wi in ws:
                w = w.at[:, :, ci:ci + wi.shape[2], co:co + wi.shape[3]].set(wi)
                ci += wi.shape[2]
                co += wi.shape[3]
        if layer == n_layers - 1:
            w = jnp.pad(w, ((0, 0), (0, 0), (0, 0), (0, C_OUT_PAD - w.shape[3])))
            b = jnp.pad(b, ((0, C_OUT_PAD - b.shape[0]),))
        cout = w.shape[3]
        w_flat = w.reshape(9 * w.shape[2], cout).astype(jnp.bfloat16)
        packed.append((w_flat, b.reshape(1, cout).astype(jnp.float32)))
    return packed


class RRDNetPallas:
    def __init__(self, key):
        k1, k2, k3 = jax.random.split(key, 3)
        # Branch order fixes output channels: illum[0:1], refl[1:4], noise[4:7].
        self.branch_params = [
            _init_branch_params(k1, (3, 16, 32, 16, 1)),   # illumination
            _init_branch_params(k2, (3, 16, 32, 16, 3)),   # reflectance
            _init_branch_params(k3, (3, 16, 32, 16, 3)),   # noise
        ]
        self.packed_params = _fuse_and_pack_params(self.branch_params)

    def __call__(self, x_nchw):
        N, _, H, W = x_nchw.shape
        x = jnp.transpose(x_nchw, (0, 2, 3, 1))                 # NCHW -> NHWC
        out = rrdnet_forward_fused(x, self.packed_params)       # (N, 8, H*W)
        out = out.reshape(N, C_OUT_PAD, H, W)                   # already channel-major
        illumination = out[:, 0:1]
        reflectance = out[:, 1:4]
        noise = out[:, 4:7]
        return illumination, reflectance, noise


# -------------------------- pure-JAX reference -------------------------------

def _reference_branch(x_nhwc, params, final_act):
    """Reference mirroring the kernel numerics: bf16 conv operands with f32
    accumulation, f32 bias/ReLU, bf16 inter-layer activations."""
    h = x_nhwc
    for i, (w, b) in enumerate(params):
        y = lax.conv_general_dilated(
            h.astype(jnp.bfloat16), w.astype(jnp.bfloat16),
            window_strides=(1, 1), padding="SAME",
            dimension_numbers=("NHWC", "HWIO", "NHWC"),
            preferred_element_type=jnp.float32)
        y = y + b
        if i < len(params) - 1:
            h = jnp.maximum(y, 0.0).astype(jnp.bfloat16).astype(jnp.float32)
        else:
            h = y
    return jax.nn.sigmoid(h) if final_act == "sigmoid" else jnp.tanh(h)


if __name__ == "__main__":
    key = jax.random.PRNGKey(0)
    k_params, k_input = jax.random.split(key)

    model = RRDNetPallas(k_params)

    # Small NCHW input consistent with the module (3 input channels).
    x = jax.random.uniform(k_input, (2, 3, 16, 16), jnp.float32)

    fwd = jax.jit(lambda inp: model(inp))
    illumination, reflectance, noise = fwd(x)
    jax.block_until_ready((illumination, reflectance, noise))

    assert illumination.shape == (2, 1, 16, 16)
    assert reflectance.shape == (2, 3, 16, 16)
    assert noise.shape == (2, 3, 16, 16)

    # Correctness vs. a pure-JAX per-branch reference with matching numerics.
    x_nhwc = jnp.transpose(x, (0, 2, 3, 1))
    to_nchw = lambda y: jnp.transpose(y, (0, 3, 1, 2))
    ref_i = to_nchw(_reference_branch(x_nhwc, model.branch_params[0], "sigmoid"))
    ref_r = to_nchw(_reference_branch(x_nhwc, model.branch_params[1], "sigmoid"))
    ref_n = to_nchw(_reference_branch(x_nhwc, model.branch_params[2], "tanh"))
    assert float(jnp.max(jnp.abs(illumination - ref_i))) < 5e-3
    assert float(jnp.max(jnp.abs(reflectance - ref_r))) < 5e-3
    assert float(jnp.max(jnp.abs(noise - ref_n))) < 5e-3

    print("KERNEL_OK")
</pallas_src>

<mosaic_0001>
module attributes {stable_mosaic.version = 11 : i64} {
  func.func @_rrdnet_fused_kernel(%arg0: i32, %arg1: memref<1x256x27xbf16, #tpu.memory_space<vmem>>, %arg2: memref<27x48xbf16, #tpu.memory_space<vmem>>, %arg3: memref<1x48xf32, #tpu.memory_space<vmem>>, %arg4: memref<432x96xbf16, #tpu.memory_space<vmem>>, %arg5: memref<1x96xf32, #tpu.memory_space<vmem>>, %arg6: memref<864x48xbf16, #tpu.memory_space<vmem>>, %arg7: memref<1x48xf32, #tpu.memory_space<vmem>>, %arg8: memref<432x8xbf16, #tpu.memory_space<vmem>>, %arg9: memref<1x8xf32, #tpu.memory_space<vmem>>, %arg10: memref<1x8x256xf32, #tpu.memory_space<vmem>>, %arg11: memref<18x16x48xbf16, #tpu.memory_space<vmem>>, %arg12: memref<18x16x96xbf16, #tpu.memory_space<vmem>>) attributes {dimension_semantics = [#tpu.dimension_semantics<parallel>], iteration_bounds = array<i64: 2>, scalar_prefetch = 0 : i64, scratch_operands = 2 : i64, tpu.core_type = #tpu.core_type<tc>, window_params = [{transform_indices = @transform_0, window_bounds = array<i64: 1, 256, 27>}, {pipeline_mode = #tpu.pipeline_mode<synchronous>, transform_indices = @transform_1, window_bounds = array<i64: 27, 48>}, {pipeline_mode = #tpu.pipeline_mode<synchronous>, transform_indices = @transform_2, window_bounds = array<i64: 1, 48>}, {pipeline_mode = #tpu.pipeline_mode<synchronous>, transform_indices = @transform_3, window_bounds = array<i64: 432, 96>}, {pipeline_mode = #tpu.pipeline_mode<synchronous>, transform_indices = @transform_4, window_bounds = array<i64: 1, 96>}, {pipeline_mode = #tpu.pipeline_mode<synchronous>, transform_indices = @transform_5, window_bounds = array<i64: 864, 48>}, {pipeline_mode = #tpu.pipeline_mode<synchronous>, transform_indices = @transform_6, window_bounds = array<i64: 1, 48>}, {pipeline_mode = #tpu.pipeline_mode<synchronous>, transform_indices = @transform_7, window_bounds = array<i64: 432, 8>}, {pipeline_mode = #tpu.pipeline_mode<synchronous>, transform_indices = @transform_8, window_bounds = array<i64: 1, 8>}, {transform_indices = @transform_9, window_bounds = array<i64: 1, 8, 256>}]} {
    %cst = arith.constant 0.000000e+00 : bf16
    %0 = vector.broadcast %cst : bf16 to vector<1x16x48xbf16>
    %cst_0 = arith.constant 0.000000e+00 : bf16
    %1 = vector.broadcast %cst_0 : bf16 to vector<1x16x96xbf16>
    %c0 = arith.constant 0 : index
    %c0_1 = arith.constant 0 : index
    %c0_2 = arith.constant 0 : index
    %2 = vector.load %arg11[%c0, %c0_1, %c0_2] : memref<18x16x48xbf16, #tpu.memory_space<vmem>>, vector<1x16x48xbf16>
    tpu.vector_store %arg11[%c0, %c0_1, %c0_2], %0 {strides = array<i32>} : memref<18x16x48xbf16, #tpu.memory_space<vmem>>, vector<1x16x48xbf16>,
    %c17 = arith.constant 17 : index
    %c0_3 = arith.constant 0 : index
    %c0_4 = arith.constant 0 : index
    %3 = vector.load %arg11[%c17, %c0_3, %c0_4] : memref<18x16x48xbf16, #tpu.memory_space<vmem>>, vector<1x16x48xbf16>
    tpu.vector_store %arg11[%c17, %c0_3, %c0_4], %0 {strides = array<i32>} : memref<18x16x48xbf16, #tpu.memory_space<vmem>>, vector<1x16x48xbf16>,
    %c0_5 = arith.constant 0 : index
    %c0_6 = arith.constant 0 : index
    %c0_7 = arith.constant 0 : index
    %4 = vector.load %arg12[%c0_5, %c0_6, %c0_7] : memref<18x16x96xbf16, #tpu.memory_space<vmem>>, vector<1x16x96xbf16>
    tpu.vector_store %arg12[%c0_5, %c0_6, %c0_7], %1 {strides = array<i32>} : memref<18x16x96xbf16, #tpu.memory_space<vmem>>, vector<1x16x96xbf16>,
    %c17_8 = arith.constant 17 : index
    %c0_9 = arith.constant 0 : index
    %c0_10 = arith.constant 0 : index
    %5 = vector.load %arg12[%c17_8, %c0_9, %c0_10] : memref<18x16x96xbf16, #tpu.memory_space<vmem>>, vector<1x16x96xbf16>
    tpu.vector_store %arg12[%c17_8, %c0_9, %c0_10], %1 {strides = array<i32>} : memref<18x16x96xbf16, #tpu.memory_space<vmem>>, vector<1x16x96xbf16>,
    %c0_11 = arith.constant 0 : index
    %c0_12 = arith.constant 0 : index
    %c0_13 = arith.constant 0 : index
    %6 = vector.load %arg1[%c0_11, %c0_12, %c0_13] : memref<1x256x27xbf16, #tpu.memory_space<vmem>>, vector<1x256x27xbf16>
    %7 = vector.shape_cast %6 : vector<1x256x27xbf16> to vector<256x27xbf16>
    %c0_14 = arith.constant 0 : index
    %c0_15 = arith.constant 0 : index
    %8 = vector.load %arg2[%c0_14, %c0_15] : memref<27x48xbf16, #tpu.memory_space<vmem>>, vector<27x48xbf16>
    %cst_16 = arith.constant dense<0.000000e+00> : vector<256x48xf32>
    %9 = tpu.matmul %7, %8, %cst_16 {dimension_numbers = #tpu.dot_dimension_numbers<[1], [0], [0], [1], [0, 0, 1, 1], [], []>} : vector<256x27xbf16>, vector<27x48xbf16>, vector<256x48xf32> -> vector<256x48xf32>
    %c0_17 = arith.constant 0 : index
    %c0_18 = arith.constant 0 : index
    %10 = vector.load %arg3[%c0_17, %c0_18] : memref<1x48xf32, #tpu.memory_space<vmem>>, vector<1x48xf32>
    %11 = vector.broadcast %10 : vector<1x48xf32> to vector<256x48xf32>
    %12 = arith.addf %9, %11 : vector<256x48xf32>
    %cst_19 = arith.constant 0.000000e+00 : f32
    %13 = vector.broadcast %cst_19 : f32 to vector<256x48xf32>
    %14 = arith.maximumf %12, %13 : vector<256x48xf32>
    %15 = vector.shape_cast %14 : vector<256x48xf32> to vector<16x16x48xf32>
    %16 = arith.truncf %15 : vector<16x16x48xf32> to vector<16x16x48xbf16>
    %c1 = arith.constant 1 : index
    %c0_20 = arith.constant 0 : index
    %c0_21 = arith.constant 0 : index
    %17 = vector.load %arg11[%c1, %c0_20, %c0_21] : memref<18x16x48xbf16, #tpu.memory_space<vmem>>, vector<16x16x48xbf16>
    tpu.vector_store %arg11[%c1, %c0_20, %c0_21], %16 {strides = array<i32>} : memref<18x16x48xbf16, #tpu.memory_space<vmem>>, vector<16x16x48xbf16>,
    %cst_22 = arith.constant 0.000000e+00 : bf16
    %18 = vector.broadcast %cst_22 : bf16 to vector<16x1x48xbf16>
    %c0_23 = arith.constant 0 : index
    %c0_24 = arith.constant 0 : index
    %c0_25 = arith.constant 0 : index
    %19 = vector.load %arg11[%c0_23, %c0_24, %c0_25] : memref<18x16x48xbf16, #tpu.memory_space<vmem>>, vector<16x16x48xbf16>
    %20 = vector.extract_strided_slice %19 {offsets = [0, 0, 0], sizes = [16, 15, 48], strides = [1, 1, 1]} : vector<16x16x48xbf16> to vector<16x15x48xbf16>
    %21 = tpu.concatenate %18, %20 in 1 : vector<16x1x48xbf16>, vector<16x15x48xbf16> -> vector<16x16x48xbf16>
    %22 = vector.extract_strided_slice %19 {offsets = [0, 1, 0], sizes = [16, 15, 48], strides = [1, 1, 1]} : vector<16x16x48xbf16> to vector<16x15x48xbf16>
    %23 = tpu.concatenate %22, %18 in 1 : vector<16x15x48xbf16>, vector<16x1x48xbf16> -> vector<16x16x48xbf16>
    %c1_26 = arith.constant 1 : index
    %c0_27 = arith.constant 0 : index
    %c0_28 = arith.constant 0 : index
    %24 = vector.load %arg11[%c1_26, %c0_27, %c0_28] : memref<18x16x48xbf16, #tpu.memory_space<vmem>>, vector<16x16x48xbf16>
    %25 = vector.extract_strided_slice %24 {offsets = [0, 0, 0], sizes = [16, 15, 48], strides = [1, 1, 1]} : vector<16x16x48xbf16> to vector<16x15x48xbf16>
    %26 = tpu.concatenate %18, %25 in 1 : vector<16x1x48xbf16>, vector<16x15x48xbf16> -> vector<16x16x48xbf16>
    %27 = vector.extract_strided_slice %24 {offsets = [0, 1, 0], sizes = [16, 15, 48], strides = [1, 1, 1]} : vector<16x16x48xbf16> to vector<16x15x48xbf16>
    %28 = tpu.concatenate %27, %18 in 1 : vector<16x15x48xbf16>, vector<16x1x48xbf16> -> vector<16x16x48xbf16>
    %c2 = arith.constant 2 : index
    %c0_29 = arith.constant 0 : index
    %c0_30 = arith.constant 0 : index
    %29 = vector.load %arg11[%c2, %c0_29, %c0_30] : memref<18x16x48xbf16, #tpu.memory_space<vmem>>, vector<16x16x48xbf16>
    %30 = vector.extract_strided_slice %29 {offsets = [0, 0, 0], sizes = [16, 15, 48], strides = [1, 1, 1]} : vector<16x16x48xbf16> to vector<16x15x48xbf16>
    %31 = tpu.concatenate %18, %30 in 1 : vector<16x1x48xbf16>, vector<16x15x48xbf16> -> vector<16x16x48xbf16>
    %32 = vector.extract_strided_slice %29 {offsets = [0, 1, 0], sizes = [16, 15, 48], strides = [1, 1, 1]} : vector<16x16x48xbf16> to vector<16x15x48xbf16>
    %33 = tpu.concatenate %32, %18 in 1 : vector<16x15x48xbf16>, vector<16x1x48xbf16> -> vector<16x16x48xbf16>
    %34 = tpu.concatenate %21, %19, %23, %26, %24, %28, %31, %29, %33 in 2 : vector<16x16x48xbf16>, vector<16x16x48xbf16>, vector<16x16x48xbf16>, vector<16x16x48xbf16>, vector<16x16x48xbf16>, vector<16x16x48xbf16>, vector<16x16x48xbf16>, vector<16x16x48xbf16>, vector<16x16x48xbf16> -> vector<16x16x432xbf16>
    %35 = vector.shape_cast %34 : vector<16x16x432xbf16> to vector<256x432xbf16>
    %c0_31 = arith.constant 0 : index
    %c0_32 = arith.constant 0 : index
    %36 = vector.load %arg4[%c0_31, %c0_32] : memref<432x96xbf16, #tpu.memory_space<vmem>>, vector<432x96xbf16>
    %cst_33 = arith.constant dense<0.000000e+00> : vector<256x96xf32>
    %37 = tpu.matmul %35, %36, %cst_33 {dimension_numbers = #tpu.dot_dimension_numbers<[1], [0], [0], [1], [0, 0, 1, 1], [], []>} : vector<256x432xbf16>, vector<432x96xbf16>, vector<256x96xf32> -> vector<256x96xf32>
    %c0_34 = arith.constant 0 : index
    %c0_35 = arith.constant 0 : index
    %38 = vector.load %arg5[%c0_34, %c0_35] : memref<1x96xf32, #tpu.memory_space<vmem>>, vector<1x96xf32>
    %39 = vector.broadcast %38 : vector<1x96xf32> to vector<256x96xf32>
    %40 = arith.addf %37, %39 : vector<256x96xf32>
    %cst_36 = arith.constant 0.000000e+00 : f32
    %41 = vector.broadcast %cst_36 : f32 to vector<256x96xf32>
    %42 = arith.maximumf %40, %41 : vector<256x96xf32>
    %43 = vector.shape_cast %42 : vector<256x96xf32> to vector<16x16x96xf32>
    %44 = arith.truncf %43 : vector<16x16x96xf32> to vector<16x16x96xbf16>
    %c1_37 = arith.constant 1 : index
    %c0_38 = arith.constant 0 : index
    %c0_39 = arith.constant 0 : index
    %45 = vector.load %arg12[%c1_37, %c0_38, %c0_39] : memref<18x16x96xbf16, #tpu.memory_space<vmem>>, vector<16x16x96xbf16>
    tpu.vector_store %arg12[%c1_37, %c0_38, %c0_39], %44 {strides = array<i32>} : memref<18x16x96xbf16, #tpu.memory_space<vmem>>, vector<16x16x96xbf16>,
    %cst_40 = arith.constant 0.000000e+00 : bf16
    %46 = vector.broadcast %cst_40 : bf16 to vector<16x1x96xbf16>
    %c0_41 = arith.constant 0 : index
    %c0_42 = arith.constant 0 : index
    %c0_43 = arith.constant 0 : index
    %47 = vector.load %arg12[%c0_41, %c0_42, %c0_43] : memref<18x16x96xbf16, #tpu.memory_space<vmem>>, vector<16x16x96xbf16>
    %48 = vector.extract_strided_slice %47 {offsets = [0, 0, 0], sizes = [16, 15, 96], strides = [1, 1, 1]} : vector<16x16x96xbf16> to vector<16x15x96xbf16>
    %49 = tpu.concatenate %46, %48 in 1 : vector<16x1x96xbf16>, vector<16x15x96xbf16> -> vector<16x16x96xbf16>
    %50 = vector.extract_strided_slice %47 {offsets = [0, 1, 0], sizes = [16, 15, 96], strides = [1, 1, 1]} : vector<16x16x96xbf16> to vector<16x15x96xbf16>
    %51 = tpu.concatenate %50, %46 in 1 : vector<16x15x96xbf16>, vector<16x1x96xbf16> -> vector<16x16x96xbf16>
    %c1_44 = arith.constant 1 : index
    %c0_45 = arith.constant 0 : index
    %c0_46 = arith.constant 0 : index
    %52 = vector.load %arg12[%c1_44, %c0_45, %c0_46] : memref<18x16x96xbf16, #tpu.memory_space<vmem>>, vector<16x16x96xbf16>
    %53 = vector.extract_strided_slice %52 {offsets = [0, 0, 0], sizes = [16, 15, 96], strides = [1, 1, 1]} : vector<16x16x96xbf16> to vector<16x15x96xbf16>
    %54 = tpu.concatenate %46, %53 in 1 : vector<16x1x96xbf16>, vector<16x15x96xbf16> -> vector<16x16x96xbf16>
    %55 = vector.extract_strided_slice %52 {offsets = [0, 1, 0], sizes = [16, 15, 96], strides = [1, 1, 1]} : vector<16x16x96xbf16> to vector<16x15x96xbf16>
    %56 = tpu.concatenate %55, %46 in 1 : vector<16x15x96xbf16>, vector<16x1x96xbf16> -> vector<16x16x96xbf16>
    %c2_47 = arith.constant 2 : index
    %c0_48 = arith.constant 0 : index
    %c0_49 = arith.constant 0 : index
    %57 = vector.load %arg12[%c2_47, %c0_48, %c0_49] : memref<18x16x96xbf16, #tpu.memory_space<vmem>>, vector<16x16x96xbf16>
    %58 = vector.extract_strided_slice %57 {offsets = [0, 0, 0], sizes = [16, 15, 96], strides = [1, 1, 1]} : vector<16x16x96xbf16> to vector<16x15x96xbf16>
    %59 = tpu.concatenate %46, %58 in 1 : vector<16x1x96xbf16>, vector<16x15x96xbf16> -> vector<16x16x96xbf16>
    %60 = vector.extract_strided_slice %57 {offsets = [0, 1, 0], sizes = [16, 15, 96], strides = [1, 1, 1]} : vector<16x16x96xbf16> to vector<16x15x96xbf16>
    %61 = tpu.concatenate %60, %46 in 1 : vector<16x15x96xbf16>, vector<16x1x96xbf16> -> vector<16x16x96xbf16>
    %62 = tpu.concatenate %49, %47, %51, %54, %52, %56, %59, %57, %61 in 2 : vector<16x16x96xbf16>, vector<16x16x96xbf16>, vector<16x16x96xbf16>, vector<16x16x96xbf16>, vector<16x16x96xbf16>, vector<16x16x96xbf16>, vector<16x16x96xbf16>, vector<16x16x96xbf16>, vector<16x16x96xbf16> -> vector<16x16x864xbf16>
    %63 = vector.shape_cast %62 : vector<16x16x864xbf16> to vector<256x864xbf16>
    %c0_50 = arith.constant 0 : index
    %c0_51 = arith.constant 0 : index
    %64 = vector.load %arg6[%c0_50, %c0_51] : memref<864x48xbf16, #tpu.memory_space<vmem>>, vector<864x48xbf16>
    %cst_52 = arith.constant dense<0.000000e+00> : vector<256x48xf32>
    %65 = tpu.matmul %63, %64, %cst_52 {dimension_numbers = #tpu.dot_dimension_numbers<[1], [0], [0], [1], [0, 0, 1, 1], [], []>} : vector<256x864xbf16>, vector<864x48xbf16>, vector<256x48xf32> -> vector<256x48xf32>
    %c0_53 = arith.constant 0 : index
    %c0_54 = arith.constant 0 : index
    %66 = vector.load %arg7[%c0_53, %c0_54] : memref<1x48xf32, #tpu.memory_space<vmem>>, vector<1x48xf32>
    %67 = vector.broadcast %66 : vector<1x48xf32> to vector<256x48xf32>
    %68 = arith.addf %65, %67 : vector<256x48xf32>
    %cst_55 = arith.constant 0.000000e+00 : f32
    %69 = vector.broadcast %cst_55 : f32 to vector<256x48xf32>
    %70 = arith.maximumf %68, %69 : vector<256x48xf32>
    %71 = vector.shape_cast %70 : vector<256x48xf32> to vector<16x16x48xf32>
    %72 = arith.truncf %71 : vector<16x16x48xf32> to vector<16x16x48xbf16>
    %c1_56 = arith.constant 1 : index
    %c0_57 = arith.constant 0 : index
    %c0_58 = arith.constant 0 : index
    %73 = vector.load %arg11[%c1_56, %c0_57, %c0_58] : memref<18x16x48xbf16, #tpu.memory_space<vmem>>, vector<16x16x48xbf16>
    tpu.vector_store %arg11[%c1_56, %c0_57, %c0_58], %72 {strides = array<i32>} : memref<18x16x48xbf16, #tpu.memory_space<vmem>>, vector<16x16x48xbf16>,
    %cst_59 = arith.constant 0.000000e+00 : bf16
    %74 = vector.broadcast %cst_59 : bf16 to vector<16x1x48xbf16>
    %c0_60 = arith.constant 0 : index
    %c0_61 = arith.constant 0 : index
    %c0_62 = arith.constant 0 : index
    %75 = vector.load %arg11[%c0_60, %c0_61, %c0_62] : memref<18x16x48xbf16, #tpu.memory_space<vmem>>, vector<16x16x48xbf16>
    %76 = vector.extract_strided_slice %75 {offsets = [0, 0, 0], sizes = [16, 15, 48], strides = [1, 1, 1]} : vector<16x16x48xbf16> to vector<16x15x48xbf16>
    %77 = tpu.concatenate %74, %76 in 1 : vector<16x1x48xbf16>, vector<16x15x48xbf16> -> vector<16x16x48xbf16>
    %78 = vector.extract_strided_slice %75 {offsets = [0, 1, 0], sizes = [16, 15, 48], strides = [1, 1, 1]} : vector<16x16x48xbf16> to vector<16x15x48xbf16>
    %79 = tpu.concatenate %78, %74 in 1 : vector<16x15x48xbf16>, vector<16x1x48xbf16> -> vector<16x16x48xbf16>
    %c1_63 = arith.constant 1 : index
    %c0_64 = arith.constant 0 : index
    %c0_65 = arith.constant 0 : index
    %80 = vector.load %arg11[%c1_63, %c0_64, %c0_65] : memref<18x16x48xbf16, #tpu.memory_space<vmem>>, vector<16x16x48xbf16>
    %81 = vector.extract_strided_slice %80 {offsets = [0, 0, 0], sizes = [16, 15, 48], strides = [1, 1, 1]} : vector<16x16x48xbf16> to vector<16x15x48xbf16>
    %82 = tpu.concatenate %74, %81 in 1 : vector<16x1x48xbf16>, vector<16x15x48xbf16> -> vector<16x16x48xbf16>
    %83 = vector.extract_strided_slice %80 {offsets = [0, 1, 0], sizes = [16, 15, 48], strides = [1, 1, 1]} : vector<16x16x48xbf16> to vector<16x15x48xbf16>
    %84 = tpu.concatenate %83, %74 in 1 : vector<16x15x48xbf16>, vector<16x1x48xbf16> -> vector<16x16x48xbf16>
    %c2_66 = arith.constant 2 : index
    %c0_67 = arith.constant 0 : index
    %c0_68 = arith.constant 0 : index
    %85 = vector.load %arg11[%c2_66, %c0_67, %c0_68] : memref<18x16x48xbf16, #tpu.memory_space<vmem>>, vector<16x16x48xbf16>
    %86 = vector.extract_strided_slice %85 {offsets = [0, 0, 0], sizes = [16, 15, 48], strides = [1, 1, 1]} : vector<16x16x48xbf16> to vector<16x15x48xbf16>
    %87 = tpu.concatenate %74, %86 in 1 : vector<16x1x48xbf16>, vector<16x15x48xbf16> -> vector<16x16x48xbf16>
    %88 = vector.extract_strided_slice %85 {offsets = [0, 1, 0], sizes = [16, 15, 48], strides = [1, 1, 1]} : vector<16x16x48xbf16> to vector<16x15x48xbf16>
    %89 = tpu.concatenate %88, %74 in 1 : vector<16x15x48xbf16>, vector<16x1x48xbf16> -> vector<16x16x48xbf16>
    %90 = tpu.concatenate %77, %75, %79, %82, %80, %84, %87, %85, %89 in 2 : vector<16x16x48xbf16>, vector<16x16x48xbf16>, vector<16x16x48xbf16>, vector<16x16x48xbf16>, vector<16x16x48xbf16>, vector<16x16x48xbf16>, vector<16x16x48xbf16>, vector<16x16x48xbf16>, vector<16x16x48xbf16> -> vector<16x16x432xbf16>
    %91 = vector.shape_cast %90 : vector<16x16x432xbf16> to vector<256x432xbf16>
    %c0_69 = arith.constant 0 : index
    %c0_70 = arith.constant 0 : index
    %92 = vector.load %arg8[%c0_69, %c0_70] : memref<432x8xbf16, #tpu.memory_space<vmem>>, vector<432x8xbf16>
    %cst_71 = arith.constant dense<0.000000e+00> : vector<256x8xf32>
    %93 = tpu.matmul %91, %92, %cst_71 {dimension_numbers = #tpu.dot_dimension_numbers<[1], [0], [0], [1], [0, 0, 1, 1], [], []>} : vector<256x432xbf16>, vector<432x8xbf16>, vector<256x8xf32> -> vector<256x8xf32>
    %c0_72 = arith.constant 0 : index
    %c0_73 = arith.constant 0 : index
    %94 = vector.load %arg9[%c0_72, %c0_73] : memref<1x8xf32, #tpu.memory_space<vmem>>, vector<1x8xf32>
    %95 = vector.broadcast %94 : vector<1x8xf32> to vector<256x8xf32>
    %96 = arith.addf %93, %95 : vector<256x8xf32>
    %97 = tpu.transpose %96, [1, 0] : vector<256x8xf32> -> vector<8x256xf32>
    %98 = tpu.iota {dimensions = array<i32: 0>} : vector<8x256xi32>
    %c4_i32 = arith.constant 4 : i32
    %99 = vector.broadcast %c4_i32 : i32 to vector<8x256xi32>
    %100 = arith.cmpi slt, %98, %99 : vector<8x256xi32>
    %cst_74 = arith.constant 2.000000e+00 : f32
    %101 = vector.broadcast %cst_74 : f32 to vector<8x256xf32>
    %102 = arith.mulf %101, %97 : vector<8x256xf32>
    %103 = arith.select %100, %97, %102 : vector<8x256xi1>, vector<8x256xf32>
    %cst_75 = arith.constant 0.000000e+00 : f32
    %104 = vector.broadcast %cst_75 : f32 to vector<8x256xf32>
    %105 = arith.subf %104, %103 : vector<8x256xf32>
    %106 = math.exp %105 : vector<8x256xf32>
    %cst_76 = arith.constant 1.000000e+00 : f32
    %107 = vector.broadcast %cst_76 : f32 to vector<8x256xf32>
    %108 = arith.addf %107, %106 : vector<8x256xf32>
    %cst_77 = arith.constant 1.000000e+00 : f32
    %109 = vector.broadcast %cst_77 : f32 to vector<8x256xf32>
    %110 = arith.divf %109, %108 : vector<8x256xf32>
    %cst_78 = arith.constant 2.000000e+00 : f32
    %111 = vector.broadcast %cst_78 : f32 to vector<8x256xf32>
    %112 = arith.mulf %111, %110 : vector<8x256xf32>
    %cst_79 = arith.constant 1.000000e+00 : f32
    %113 = vector.broadcast %cst_79 : f32 to vector<8x256xf32>
    %114 = arith.subf %112, %113 : vector<8x256xf32>
    %115 = arith.select %100, %110, %114 : vector<8x256xi1>, vector<8x256xf32>
    %116 = vector.shape_cast %115 : vector<8x256xf32> to vector<1x8x256xf32>
    %c0_80 = arith.constant 0 : index
    %c0_81 = arith.constant 0 : index
    %c0_82 = arith.constant 0 : index
    %117 = vector.load %arg10[%c0_80, %c0_81, %c0_82] : memref<1x8x256xf32, #tpu.memory_space<vmem>>, vector<1x8x256xf32>
    tpu.vector_store %arg10[%c0_80, %c0_81, %c0_82], %116 {strides = array<i32>} : memref<1x8x256xf32, #tpu.memory_space<vmem>>, vector<1x8x256xf32>,
    return
  }
  func.func @transform_0(%arg0: i32) -> (i32, i32, i32) {
    %c0_i32 = arith.constant 0 : i32
    %c0_i32_0 = arith.constant 0 : i32
    %c0_i32_1 = arith.constant 0 : i32
    return %arg0, %c0_i32, %c0_i32_0 : i32, i32, i32
  }
  func.func @transform_1(%arg0: i32) -> (i32, i32) {
    %c0_i32 = arith.constant 0 : i32
    %c0_i32_0 = arith.constant 0 : i32
    %c0_i32_1 = arith.constant 0 : i32
    return %c0_i32, %c0_i32_0 : i32, i32
  }
  func.func @transform_2(%arg0: i32) -> (i32, i32) {
    %c0_i32 = arith.constant 0 : i32
    %c0_i32_0 = arith.constant 0 : i32
    %c0_i32_1 = arith.constant 0 : i32
    return %c0_i32, %c0_i32_0 : i32, i32
  }
  func.func @transform_3(%arg0: i32) -> (i32, i32) {
    %c0_i32 = arith.constant 0 : i32
    %c0_i32_0 = arith.constant 0 : i32
    %c0_i32_1 = arith.constant 0 : i32
    return %c0_i32, %c0_i32_0 : i32, i32
  }
  func.func @transform_4(%arg0: i32) -> (i32, i32) {
    %c0_i32 = arith.constant 0 : i32
    %c0_i32_0 = arith.constant 0 : i32
    %c0_i32_1 = arith.constant 0 : i32
    return %c0_i32, %c0_i32_0 : i32, i32
  }
  func.func @transform_5(%arg0: i32) -> (i32, i32) {
    %c0_i32 = arith.constant 0 : i32
    %c0_i32_0 = arith.constant 0 : i32
    %c0_i32_1 = arith.constant 0 : i32
    return %c0_i32, %c0_i32_0 : i32, i32
  }
  func.func @transform_6(%arg0: i32) -> (i32, i32) {
    %c0_i32 = arith.constant 0 : i32
    %c0_i32_0 = arith.constant 0 : i32
    %c0_i32_1 = arith.constant 0 : i32
    return %c0_i32, %c0_i32_0 : i32, i32
  }
  func.func @transform_7(%arg0: i32) -> (i32, i32) {
    %c0_i32 = arith.constant 0 : i32
    %c0_i32_0 = arith.constant 0 : i32
    %c0_i32_1 = arith.constant 0 : i32
    return %c0_i32, %c0_i32_0 : i32, i32
  }
  func.func @transform_8(%arg0: i32) -> (i32, i32) {
    %c0_i32 = arith.constant 0 : i32
    %c0_i32_0 = arith.constant 0 : i32
    %c0_i32_1 = arith.constant 0 : i32
    return %c0_i32, %c0_i32_0 : i32, i32
  }
  func.func @transform_9(%arg0: i32) -> (i32, i32, i32) {
    %c0_i32 = arith.constant 0 : i32
    %c0_i32_0 = arith.constant 0 : i32
    %c0_i32_1 = arith.constant 0 : i32
    return %arg0, %c0_i32, %c0_i32_0 : i32, i32, i32
  }
}

</mosaic_0001>

<bundles_post_ra>
// kernel: _lambda_.1
= control target key start
LH: loop header
LB: loop body
LE: loop exit
PB: predicated region body
PF: predicated region fallthrough
CT: control target
= control target key end

     0   :  { %s9600_s30 = smov 0   ;;  %s13614_s0 = inlined_call_operand.vmem [shape: bf16[2,256,27], index: 0, kind: input, shape index: {}]   ;;  %s13615_s1 = inlined_call_operand.vmem [shape: bf16[27,48], index: 1, kind: input, shape index: {}]   ;;  %s13616_s2 = inlined_call_operand.vmem [shape: f32[1,48], index: 2, kind: input, shape index: {}]   ;;  %s13617_s3 = inlined_call_operand.vmem [shape: bf16[432,96], index: 3, kind: input, shape index: {}]   ;;  %s13618_s4 = inlined_call_operand.vmem [shape: f32[1,96], index: 4, kind: input, shape index: {}]   ;;  %s13619_s5 = inlined_call_operand.vmem [shape: bf16[864,48], index: 5, kind: input, shape index: {}]   ;;  %s13620_s6 = inlined_call_operand.vmem [shape: f32[1,48], index: 6, kind: input, shape index: {}]   ;;  %s13621_s7 = inlined_call_operand.vmem [shape: bf16[432,8], index: 7, kind: input, shape index: {}]   ;;  %s13622_s8 = inlined_call_operand.vmem [shape: f32[1,8], index: 8, kind: input, shape index: {}]   ;;  %s13623_s9 = inlined_call_operand.vmem [shape: f32[2,8,256], index: 9, kind: output, shape index: {}]  }
   0x1 LB: > { %s8046_s10 = sadd.s32 4294967295, %s9539_s30   ;;  %p8050_p0 = scmp.ge.s32.totalorder %s9539_s30, 1  ;;  %s9539_s30 = sphi %s9600_s30, %s19_s30  }
   0x2   : > { %p287_p1 = scmp.lt.s32.totalorder %s9539_s30, 3 }
   0x4   : > { %p288_p2 = pnand %p8050_p0, %p287_p1 }
   0x6   : > { %291 = sbr.rel (%p288_p2) target bundleno = 1670 (0x686), region = 56 }
   0xb   : > { %v8125_v0 = vld [vmem:[%s13615_s1 + $0x8] sm:$0xf]  ;;  %v9222_v1 = vld [vmem:[%s13615_s1 + $0x8] sm:$0x30]  ;;  %vm526_vm0 = vcmask 1044480   ;;  %vm527_vm1 = vcmask 1045504  }
   0xc   : > { %v8126_v2 = vor.u32 %v9222_v1, %v8125_v0  ;;  %p323_p3 = scmp.lt.s32.totalorder %s8046_s10, 1  ;;  %v9541_v3 = vmov 65535   ;;  %v9221_v7 = vld [vmem:[%s13615_s1] sm:$0xff]  ;;  %vm477_vm2 = vcmask 220160   ;;  %v9297_v11 = vld [vmem:[%s13617_s3 + $0xd0] sm:$0xff]  ;;  %vm334_vm3 = vcmask 388096  }
   0xd   : > { %v528_v4 = vsel %vm526_vm0, 4294967295, %v9541_v3  ;;  %v9542_v16 = vmov 0   ;;  %s9543_s23 = smov 48   ;;  %vm1026_vm4 = vcmask 1047552   ;;  %vm1027_vm5 = vsmask.f32 7424 }
   0xe   : > { %v529_v5 = vsel %vm527_vm1, %v528_v4, 0  ;;  %s13743_s10 = smov (!%p323_p3, %s8046_s10), 1  ;;  %335 = vst.msk [vmem:[#allocation2] sm:$0xf] %vm334_vm3, %v9542_v16  ;;  %vm9661_vm6 = vmand %vm1026_vm4, %vm1027_vm5  ;;  %s9544_s24 = smov 96   ;;  %v9296_v31 = vld [vmem:[%s13617_s3 + $0xc8] sm:$0xff] }
   0xf   : > { %v531_v6 = vand.u32 %v8126_v2, %v529_v5  ;;  %s9203_s15 = sshll.u32 %s13743_s10, 7  ;;  %336 = vst.msk [vmem:[#allocation2 + $0x4] sm:$0xf] %vm334_vm3, %v9542_v16  ;;  %v9672_v25 = vld [vmem:[%s13616_s2] ss:$0 sm:$0xff]  ;;  %s9545_s29 = smov 64  }
  0x10   : > { %s9623_s20 = scalar_lea.vmem %s13614_s0, %s9203_s15  ;;  %338 = vst.msk [vmem:[#allocation2 + $0x88] sm:$0xf] %vm334_vm3, %v9542_v16  ;;  %vm959_vm7 = vcmask 1040384   ;;  %vm960_vm8 = vsmask.f32 256  ;;  %s9546_s11 = smov 16  }
  0x11   : > { %539 = vmatpush.bf16.msra.mxu0 %v531_v6  ;;  %v9205_v8 = vld [vmem:[%s9623_s20] sm:$0xff]  ;;  %v9206_v9 = vld [vmem:[%s9623_s20 + $0x8] sm:$0xff]  ;;  %v9207_v10 = vld [vmem:[%s9623_s20 + $0x10] sm:$0xff]  ;;  %339 = vst.msk [vmem:[#allocation2 + $0x8c] sm:$0xf] %vm334_vm3, %v9542_v16  ;;  %s9547_s12 = smov 80  }
  0x12   : > { %v9208_v12 = vld [vmem:[%s9623_s20 + $0x18] sm:$0xff]  ;;  %v9209_v13 = vld [vmem:[%s9623_s20 + $0x20] sm:$0xff]  ;;  %v9210_v14 = vld [vmem:[%s9623_s20 + $0x28] sm:$0xff]  ;;  %s9548_s13 = smov 112   ;;  %s9549_s14 = smov 32   ;;  %vm1974_vm10 = vcmask 392192  }
  0x13   : > { %v9211_v15 = vld [vmem:[%s9623_s20 + $0x30] sm:$0xff]  ;;  %v9212_v22 = vld [vmem:[%s9623_s20 + $0x38] sm:$0xff]  ;;  %v9213_v26 = vld [vmem:[%s9623_s20 + $0x40] sm:$0xff]  ;;  %vm2023_vm11 = vcmask 785408   ;;  %vm2072_vm12 = vcmask 130048   ;;  %vm2105_vm13 = vcmask 523264  }
  0x14   : > { %v9214_v36 = vld [vmem:[%s9623_s20 + $0x48] sm:$0xff]  ;;  %vm9689_vm9 = vmand %vm959_vm7, %vm960_vm8  ;;  %v9215_v57 = vld [vmem:[%s9623_s20 + $0x50] sm:$0xff]  ;;  %vm2138_vm14 = vcmask 916480   ;;  %vm2187_vm15 = vcmask 261120   ;;  %vm2220_vm0 = vcmask 654336   ;;  %vm340_vm1 = vcmask 781312  }
  0x15   : > { %540 = vmatpush.bf16.msra.mxu0 %v9221_v7  ;;  %341 = vst.msk [vmem:[#allocation3] sm:$0xf] %vm340_vm1, %v9542_v16 }
  0x16   : > { %v9650_v17 = vld [vmem:[#allocation2] sm:$0xff]  ;;  %342 = vst.msk [vmem:[#allocation3 + $0x4] sm:$0xf] %vm340_vm1, %v9542_v16 }
  0x17   : > { %1686 = vrot.lane.b32.xlu0 %v9650_v17, %s9543_s23  ;;  %v835_v18 = vshll.u32 %v9650_v17, 16  ;;  %v832_v19 = vshrl.u32 %v9650_v17, 16  ;;  %344 = vst.msk [vmem:[#allocation3 + $0x88] sm:$0xf] %vm340_vm1, %v9542_v16 }
  0x18   : > { %8127 = vmatmul.msk.bf16.vlgmr.msra.gmra.mxu0 %vm477_vm2, %v9205_v8  ;;  %345 = vst.msk [vmem:[#allocation3 + $0x8c] sm:$0xf] %vm340_vm1, %v9542_v16 }
  0x19   : > { %2809 = vmatpush.bf16.msrb.mxu0 %v9297_v11  ;;  %v978_v20 = vrot.slane %v835_v18, 1 }
  0x1b   : > { %v979_v21 = vor.u32 %v978_v20, %v832_v19 }
  0x1d   : > { %v1029_v24 = vsel %vm9661_vm6, %v979_v21, 0  ;;  %2810 = vmatpush.bf16.msrb.mxu0 %v9296_v31 }
  0x1f   : > { %1734 = vrot.lane.b32.xlu0 %v1029_v24, %s9544_s24  ;;  %v9216_v24 = vld [vmem:[%s9623_s20 + $0x58] sm:$0xff] }
  0x28   : > { %8128 = vmatmul.msk.bf16.gmra.mxu0 %vm477_vm2, %v9206_v9 }
  0x38   : > { %8129 = vmatmul.msk.bf16.gmra.mxu0 %vm477_vm2, %v9207_v10 }
  0x48   : > { %8130 = vmatmul.msk.bf16.gmra.mxu0 %vm477_vm2, %v9208_v12 }
  0x58   : > { %8131 = vmatmul.msk.bf16.gmra.mxu0 %vm477_vm2, %v9209_v13 }
  0x68   : > { %8132 = vmatmul.msk.bf16.gmra.mxu0 %vm477_vm2, %v9210_v14 }
  0x78   : > { %8133 = vmatmul.msk.bf16.gmra.mxu0 %vm477_vm2, %v9211_v15 }
  0x88   : > { %8134 = vmatmul.msk.bf16.gmra.mxu0 %vm477_vm2, %v9212_v22 }
  0x95   : > { %v542_v27 = vpop.f32.mrf.mxu0 }
  0x96   : > { %v543_v28 = vadd.f32 %v9672_v25, %v542_v27 }
  0x98   : > { %v622_v29 = vmax.f32 %v543_v28, 0.0  ;;  %8135 = vmatmul.msk.bf16.gmra.mxu0 %vm477_vm2, %v9213_v26 }
  0x9a   : > { %v654_v30 = vpack.c.bf16 %v622_v29, %v622_v29 }
  0x9c   : > { %687 = vst.msk [vmem:[#allocation2 + $0x8] sm:$0xf] %vm334_vm3, %v654_v30 }
  0x9d   : > { %v544_v32 = vpop.f32.mrf.mxu0 }
  0x9e   : > { %v545_v33 = vadd.f32 %v9672_v25, %v544_v32 }
  0xa0   : > { %v623_v34 = vmax.f32 %v545_v33, 0.0 }
  0xa2   : > { %v655_v35 = vpack.c.bf16 %v623_v34, %v623_v34 }
  0xa4   : > { %688 = vst.msk [vmem:[#allocation2 + $0xc] sm:$0xf] %vm334_vm3, %v655_v35 }
  0xa5   : > { %v547_v37 = vpop.f32.mrf.mxu0 }
  0xa6   : > { %v548_v38 = vadd.f32 %v9672_v25, %v547_v37 }
  0xa8   : > { %v624_v39 = vmax.f32 %v548_v38, 0.0  ;;  %8136 = vmatmul.msk.bf16.gmra.mxu0 %vm477_vm2, %v9214_v36 }
  0xaa   : > { %v656_v40 = vpack.c.bf16 %v624_v39, %v624_v39 }
  0xab   : > { %v9239_v41 = vld [vmem:[#allocation2 + $0x8] sm:$0xff] }
  0xac   : > { %v9224_v42 = vld [vmem:[#allocation2 + $0x8] sm:$0xff]  ;;  %689 = vst.msk [vmem:[#allocation2 + $0x10] sm:$0xf] %vm334_vm3, %v656_v40  ;;  %1814 = vrot.lane.b32.xlu1 %v9239_v41, %s9545_s29  ;;  %v1158_v44 = vshrl.u32 %v9239_v41, 16  ;;  %v1161_v48 = vshll.u32 %v9239_v41, 16 }
  0xad   : > { %v549_v43 = vpop.f32.mrf.mxu0  ;;  %v839_v45 = vshrl.u32 %v9224_v42, 16  ;;  %v842_v49 = vshll.u32 %v9224_v42, 16 }
  0xae   : > { %v550_v46 = vadd.f32 %v9672_v25, %v549_v43  ;;  %v1160_v47 = vrot.slane %v1158_v44, 7  ;;  %v1301_v59 = vrot.slane %v1161_v48, 1 }
  0xaf   : > { %v841_v50 = vrot.slane %v839_v45, 7  ;;  %v980_v5 = vrot.slane %v842_v49, 1 }
  0xb0   : > { %v625_v51 = vmax.f32 %v550_v46, 0.0  ;;  %v1163_v53 = vor.u32 %v1161_v48, %v1160_v47  ;;  %v1302_v62 = vor.u32 %v1301_v59, %v1158_v44  ;;  %v9217_v59 = vld [vmem:[%s9623_s20 + $0x60] sm:$0xff] }
  0xb1   : > { %v9693_v54 = vor.u32 %v842_v49, %v841_v50  ;;  %v981_v14 = vor.u32 %v980_v5, %v839_v45 }
  0xb2   : > { %v657_v55 = vpack.c.bf16 %v625_v51, %v625_v51  ;;  %v1285_v56 = vsel %vm9689_vm9, 0, %v1163_v53  ;;  %v1349_v4 = vsel %vm9661_vm6, %v1302_v62, 0 }
  0xb3   : > { %1782 = vrot.lane.b32.xlu0 %v1285_v56, %s9546_s11  ;;  %v1030_v28 = vsel %vm9661_vm6, %v981_v14, 0 }
  0xb4   : > { %690 = vst.msk [vmem:[#allocation2 + $0x14] sm:$0xf] %vm334_vm3, %v657_v55  ;;  %1688 = vrot.lane.b32.xlu1 %v9224_v42, %s9543_s23 }
  0xb5   : > { %v552_v58 = vpop.f32.mrf.mxu0 }
  0xb6   : > { %v553_v60 = vadd.f32 %v9672_v25, %v552_v58 }
  0xb8   : > { %v626_v61 = vmax.f32 %v553_v60, 0.0  ;;  %8137 = vmatmul.msk.bf16.gmra.mxu0 %vm477_vm2, %v9215_v57 }
  0xba   : > { %v658_v63 = vpack.c.bf16 %v626_v61, %v626_v61 }
  0xbb   : > { %v9255_v0 = vld [vmem:[#allocation2 + $0x10] sm:$0xff] }
  0xbc   : > { %v9240_v1 = vld [vmem:[#allocation2 + $0x10] sm:$0xff]  ;;  %691 = vst.msk [vmem:[#allocation2 + $0x18] sm:$0xf] %vm334_vm3, %v658_v63  ;;  %1942 = vrot.lane.b32.xlu2 %v9255_v0, %s9547_s12  ;;  %v1482_v6 = vshll.u32 %v9255_v0, 16  ;;  %1862 = vrot.lane.b32.xlu1 %v1349_v4, %s9548_s13  ;;  %v1479_v9 = vshrl.u32 %v9255_v0, 16 }
  0xbd   : > { %v9703_v2 = vld [vmem:[#allocation2 + $0x10] sm:$0xff]  ;;  %v554_v3 = vpop.f32.mrf.mxu0  ;;  %1816 = vrot.lane.b32.xlu0 %v9240_v1, %s9545_s29  ;;  %v1168_v15 = vshll.u32 %v9240_v1, 16  ;;  %v1165_v31 = vshrl.u32 %v9240_v1, 16 }
  0xbe   : > { %v555_v7 = vadd.f32 %v9672_v25, %v554_v3  ;;  %v846_v8 = vshrl.u32 %v9703_v2, 16  ;;  %v1622_v10 = vrot.slane %v1482_v6, 1  ;;  %v849_v12 = vshll.u32 %v9703_v2, 16 }
  0xbf   : > { %v1481_v26 = vrot.slane %v1479_v9, 7  ;;  %v1303_v29 = vrot.slane %v1168_v15, 1  ;;  %v1167_v37 = vrot.slane %v1165_v31, 7 }
  0xc0   : > { %v627_v11 = vmax.f32 %v555_v7, 0.0  ;;  %v848_v13 = vrot.slane %v846_v8, 7  ;;  %v9716_v20 = vor.u32 %v1622_v10, %v1479_v9  ;;  %v982_v60 = vrot.slane %v849_v12, 1 }
  0xc1   : > { %v1484_v33 = vor.u32 %v1482_v6, %v1481_v26  ;;  %v1304_v34 = vor.u32 %v1303_v29, %v1165_v31  ;;  %v1170_v46 = vor.u32 %v1168_v15, %v1167_v37  ;;  %v9278_v6 = vld [vmem:[%s13617_s3 + $0x38] sm:$0xff] }
  0xc2   : > { %v659_v21 = vpack.c.bf16 %v627_v11, %v627_v11  ;;  %v9718_v22 = vor.u32 %v849_v12, %v848_v13  ;;  %v983_v3 = vor.u32 %v982_v60, %v846_v8  ;;  %2537 = vmatpush.bf16.msra.mxu1 %v9278_v6  ;;  %v9273_v6 = vld [vmem:[%s13617_s3 + $0x10] sm:$0xff] }
  0xc3   : > { %v1606_v39 = vsel %vm9689_vm9, 0, %v1484_v33  ;;  %v1350_v42 = vsel %vm9661_vm6, %v1304_v34, 0  ;;  %v1286_v58 = vsel %vm9689_vm9, 0, %v1170_v46 }
  0xc4   : > { %692 = vst.msk [vmem:[#allocation2 + $0x1c] sm:$0xf] %vm334_vm3, %v659_v21  ;;  %1690 = vrot.lane.b32.xlu2 %v9703_v2, %s9543_s23  ;;  %1736 = vrot.lane.b32.xlu1 %v1030_v28, %s9544_s24  ;;  %v1031_v11 = vsel %vm9661_vm6, %v983_v3, 0 }
  0xc5   : > { %v557_v27 = vpop.f32.mrf.mxu0 }
  0xc6   : > { %v558_v30 = vadd.f32 %v9672_v25, %v557_v27 }
  0xc8   : > { %v628_v32 = vmax.f32 %v558_v30, 0.0  ;;  %8138 = vmatmul.msk.bf16.gmra.mxu0 %vm477_vm2, %v9216_v24  ;;  %v9277_v24 = vld [vmem:[%s13617_s3 + $0x30] sm:$0xff] }
  0xc9   : > { %2538 = vmatpush.bf16.msra.mxu1 %v9277_v24 }
  0xca   : > { %v660_v35 = vpack.c.bf16 %v628_v32, %v628_v32 }
  0xcb   : > { %v9256_v36 = vld [vmem:[#allocation2 + $0x18] sm:$0xff] }
  0xcc   : > { %v9226_v38 = vld [vmem:[#allocation2 + $0x18] sm:$0xff]  ;;  %693 = vst.msk [vmem:[#allocation2 + $0x20] sm:$0xf] %vm334_vm3, %v660_v35  ;;  %1910 = vrot.lane.b32.xlu2 %v1606_v39, %s9549_s14  ;;  %1944 = vrot.lane.b32.xlu0 %v9256_v36, %s9547_s12  ;;  %v1489_v43 = vshll.u32 %v9256_v36, 16  ;;  %v1486_v47 = vshrl.u32 %v9256_v36, 16  ;;  %v9276_v36 = vld [vmem:[%s13617_s3 + $0x28] sm:$0xff] }
  0xcd   : > { %v9732_v40 = vld [vmem:[#allocation2 + $0x18] sm:$0xff]  ;;  %v559_v41 = vpop.f32.mrf.mxu0  ;;  %1864 = vrot.lane.b32.xlu1 %v1350_v42, %s9548_s13  ;;  %v853_v45 = vshrl.u32 %v9226_v38, 16  ;;  %v856_v53 = vshll.u32 %v9226_v38, 16  ;;  %2539 = vmatpush.bf16.msra.mxu1 %v9276_v36 }
  0xce   : > { %v560_v44 = vadd.f32 %v9672_v25, %v559_v41  ;;  %v1624_v48 = vrot.slane %v1489_v43, 1  ;;  %v1172_v50 = vshrl.u32 %v9732_v40, 16  ;;  %v1175_v0 = vshll.u32 %v9732_v40, 16 }
  0xcf   : > { %v855_v51 = vrot.slane %v853_v45, 7  ;;  %v1488_v9 = vrot.slane %v1486_v47, 7  ;;  %v984_v2 = vrot.slane %v856_v53, 1 }
  0xd0   : > { %v629_v49 = vmax.f32 %v560_v44, 0.0  ;;  %v9741_v55 = vor.u32 %v1624_v48, %v1486_v47  ;;  %v1174_v61 = vrot.slane %v1172_v50, 7  ;;  %v1305_v42 = vrot.slane %v1175_v0, 1  ;;  %v9275_v47 = vld [vmem:[%s13617_s3 + $0x20] sm:$0xff] }
  0xd1   : > { %v9743_v57 = vor.u32 %v856_v53, %v855_v51  ;;  %v1491_v26 = vor.u32 %v1489_v43, %v1488_v9  ;;  %v985_v30 = vor.u32 %v984_v2, %v853_v45  ;;  %2540 = vmatpush.bf16.msra.mxu1 %v9275_v47  ;;  %v834_v9 = vrot.slane %v832_v19, 7  ;;  %v9286_v19 = vld [vmem:[%s13617_s3 + $0x78] sm:$0xff]  ;;  %v9284_v47 = vld [vmem:[%s13617_s3 + $0x68] sm:$0xff] }
  0xd2   : > { %v661_v56 = vpack.c.bf16 %v629_v49, %v629_v49  ;;  %v1177_v4 = vor.u32 %v1175_v0, %v1174_v61  ;;  %v1306_v51 = vor.u32 %v1305_v42, %v1172_v50  ;;  %2626 = vmatpush.bf16.msra.mxu2 %v9286_v19  ;;  %v9281_v19 = vld [vmem:[%s13617_s3 + $0x50] sm:$0xff] }
  0xd3   : > { %v1607_v39 = vsel %vm9689_vm9, 0, %v1491_v26  ;;  %v1032_v41 = vsel %vm9661_vm6, %v985_v30, 0  ;;  %v1687_v26 = vpop.permute.xlu0 %1686  ;;  %v9294_v30 = vld [vmem:[%s13617_s3 + $0xb8] sm:$0xff] }
  0xd4   : > { %694 = vst.msk [vmem:[#allocation2 + $0x24] sm:$0xf] %vm334_vm3, %v661_v56  ;;  %1784 = vrot.lane.b32.xlu2 %v1286_v58, %s9546_s11  ;;  %1692 = vrot.lane.b32.xlu0 %v9226_v38, %s9543_s23  ;;  %v1287_v12 = vsel %vm9689_vm9, 0, %v1177_v4  ;;  %v9218_v38 = vld [vmem:[%s9623_s20 + $0x68] sm:$0xff] }
  0xd5   : > { %v562_v62 = vpop.f32.mrf.mxu0  ;;  %1818 = vrot.lane.b32.xlu1 %v9732_v40, %s9545_s29  ;;  %2715 = vmatpush.bf16.msra.mxu3 %v9294_v30 }
  0xd6   : > { %v563_v63 = vadd.f32 %v9672_v25, %v562_v62  ;;  %v1351_v62 = vsel %vm9661_vm6, %v1306_v51, 0  ;;  %v9292_v51 = vld [vmem:[%s13617_s3 + $0xa8] sm:$0xff] }
  0xd8   : > { %v630_v1 = vmax.f32 %v563_v63, 0.0  ;;  %8139 = vmatmul.msk.bf16.gmra.mxu0 %vm477_vm2, %v9217_v59  ;;  %v9274_v59 = vld [vmem:[%s13617_s3 + $0x18] sm:$0xff]  ;;  %v9295_v63 = vld [vmem:[%s13617_s3 + $0xc0] sm:$0xff] }
  0xd9   : > { %2541 = vmatpush.bf16.msra.mxu1 %v9274_v59  ;;  %2811 = vmatpush.bf16.msrb.mxu0 %v9295_v63 }
  0xda   : > { %v662_v5 = vpack.c.bf16 %v630_v1, %v630_v1 }
  0xdb   : > { %v9257_v7 = vld [vmem:[#allocation2 + $0x20] sm:$0xff] }
  0xdc   : > { %v9763_v10 = vld [vmem:[#allocation2 + $0x20] sm:$0xff]  ;;  %695 = vst.msk [vmem:[#allocation2 + $0x28] sm:$0xf] %vm334_vm3, %v662_v5  ;;  %1738 = vrot.lane.b32.xlu2 %v1031_v11, %s9544_s24  ;;  %1786 = vrot.lane.b32.xlu0 %v1287_v12, %s9546_s11  ;;  %v1496_v13 = vshll.u32 %v9257_v7, 16  ;;  %v1493_v27 = vshrl.u32 %v9257_v7, 16 }
  0xdd   : > { %v564_v8 = vpop.f32.mrf.mxu0  ;;  %v9772_v14 = vld [vmem:[#allocation2 + $0x20] sm:$0xff]  ;;  %1946 = vrot.lane.b32.xlu1 %v9257_v7, %s9547_s12  ;;  %v860_v21 = vshrl.u32 %v9763_v10, 16  ;;  %v863_v32 = vshll.u32 %v9763_v10, 16  ;;  %2542 = vmatpush.bf16.msra.mxu1 %v9273_v6 }
  0xde   : > { %v565_v15 = vadd.f32 %v9672_v25, %v564_v8  ;;  %v1626_v28 = vrot.slane %v1496_v13, 1  ;;  %v1179_v33 = vshrl.u32 %v9772_v14, 16  ;;  %v1495_v43 = vrot.slane %v1493_v27, 7 }
  0xdf   : > { %v862_v31 = vrot.slane %v860_v21, 7  ;;  %v1182_v48 = vshll.u32 %v9772_v14, 16  ;;  %v986_v3 = vrot.slane %v863_v32, 1 }
  0xe0   : > { %v631_v29 = vmax.f32 %v565_v15, 0.0  ;;  %v9784_v34 = vor.u32 %v1626_v28, %v1493_v27  ;;  %v1181_v45 = vrot.slane %v1179_v33, 7  ;;  %v1498_v53 = vor.u32 %v1496_v13, %v1495_v43 }
  0xe1   : > { %v9789_v37 = vor.u32 %v863_v32, %v862_v31  ;;  %v1307_v50 = vrot.slane %v1182_v48, 1  ;;  %v987_v24 = vor.u32 %v986_v3, %v860_v21  ;;  %v9219_v31 = vld [vmem:[%s9623_s20 + $0x70] sm:$0xff]  ;;  %v837_v32 = vor.u32 %v835_v18, %v834_v9  ;;  %v9290_v9 = vld [vmem:[%s13617_s3 + $0x98] sm:$0xff] }
  0xe2   : > { %v663_v35 = vpack.c.bf16 %v631_v29, %v631_v29  ;;  %v1184_v56 = vor.u32 %v1182_v48, %v1181_v45  ;;  %v1608_v40 = vsel %vm9689_vm9, 0, %v1498_v53  ;;  %v9272_v29 = vld [vmem:[%s13617_s3 + $0x8] sm:$0xff] }
  0xe3   : > { %v1308_v8 = vor.u32 %v1307_v50, %v1179_v33  ;;  %2543 = vmatpush.bf16.msra.mxu1 %v9272_v29  ;;  %v962_v18 = vsel %vm9689_vm9, 0, %v837_v32  ;;  %v9289_v29 = vld [vmem:[%s13617_s3 + $0x90] sm:$0xff]  ;;  %v9280_v32 = vld [vmem:[%s13617_s3 + $0x48] sm:$0xff] }
  0xe4   : > { %696 = vst.msk [vmem:[#allocation2 + $0x2c] sm:$0xf] %vm334_vm3, %v663_v35  ;;  %1912 = vrot.lane.b32.xlu2 %v1607_v39, %s9549_s14  ;;  %1740 = vrot.lane.b32.xlu0 %v1032_v41, %s9544_s24  ;;  %v1288_v1 = vsel %vm9689_vm9, 0, %v1184_v56  ;;  %v1033_v35 = vsel %vm9661_vm6, %v987_v24, 0  ;;  %v9285_v39 = vld [vmem:[%s13617_s3 + $0x70] sm:$0xff]  ;;  %v1977_v42 = vsel %vm1974_vm10, %v962_v18, %v1687_v26 }
  0xe5   : > { %v567_v44 = vpop.f32.mrf.mxu0  ;;  %1694 = vrot.lane.b32.xlu1 %v9763_v10, %s9543_s23  ;;  %v1352_v21 = vsel %vm9661_vm6, %v1308_v8, 0  ;;  %v9293_v41 = vld [vmem:[%s13617_s3 + $0xb0] sm:$0xff]  ;;  %2627 = vmatpush.bf16.msra.mxu2 %v9285_v39 }
  0xe6   : > { %v568_v46 = vadd.f32 %v9672_v25, %v567_v44  ;;  %2716 = vmatpush.bf16.msra.mxu3 %v9293_v41  ;;  %v9279_v41 = vld [vmem:[%s13617_s3 + $0x40] sm:$0xff] }
  0xe8   : > { %v632_v49 = vmax.f32 %v568_v46, 0.0  ;;  %8140 = vmatmul.msk.bf16.gmra.mxu0 %vm477_vm2, %v9218_v38  ;;  %v9887_v46 = vpop.permute.xlu0 %1734 }
  0xe9   : > { %2628 = vmatpush.bf16.msra.mxu2 %v9284_v47 }
  0xea   : > { %v664_v58 = vpack.c.bf16 %v632_v49, %v632_v49  ;;  %v2025_v49 = vsel %vm2023_vm11, %v1977_v42, %v9887_v46  ;;  %2717 = vmatpush.bf16.msra.mxu3 %v9292_v51 }
  0xeb   : > { %v9812_v60 = vld [vmem:[#allocation2 + $0x28] sm:$0xff] }
  0xec   : > { %v9814_v61 = vld [vmem:[#allocation2 + $0x28] sm:$0xff]  ;;  %697 = vst.msk [vmem:[#allocation2 + $0x30] sm:$0xf] %vm334_vm3, %v664_v58  ;;  %1866 = vrot.lane.b32.xlu2 %v1351_v62, %s9548_s13  ;;  %1914 = vrot.lane.b32.xlu0 %v1608_v40, %s9549_s14  ;;  %v1503_v4 = vshll.u32 %v9812_v60, 16  ;;  %v1500_v11 = vshrl.u32 %v9812_v60, 16  ;;  %v9283_v62 = vld [vmem:[%s13617_s3 + $0x60] sm:$0xff] }
  0xed   : > { %v569_v0 = vpop.f32.mrf.mxu0  ;;  %1788 = vrot.lane.b32.xlu1 %v1288_v1, %s9546_s11  ;;  %v867_v7 = vshrl.u32 %v9814_v61, 16  ;;  %v870_v15 = vshll.u32 %v9814_v61, 16  ;;  %v9869_v36 = vld [vmem:[#allocation2 + $0x28] sm:$0xff]  ;;  %2629 = vmatpush.bf16.msra.mxu2 %v9283_v62 }
  0xee   : > { %v570_v5 = vadd.f32 %v9672_v25, %v569_v0  ;;  %v1628_v12 = vrot.slane %v1503_v4, 1  ;;  %v1502_v38 = vrot.slane %v1500_v11, 7  ;;  %v1189_v45 = vshll.u32 %v9869_v36, 16 }
  0xef   : > { %v869_v13 = vrot.slane %v867_v7, 7  ;;  %v1186_v63 = vshrl.u32 %v9869_v36, 16 }
  0xf0   : > { %v633_v2 = vmax.f32 %v570_v5, 0.0  ;;  %v9846_v27 = vor.u32 %v1628_v12, %v1500_v11  ;;  %v1505_v44 = vor.u32 %v1503_v4, %v1502_v38  ;;  %v1309_v59 = vrot.slane %v1189_v45, 1  ;;  %v9282_v5 = vld [vmem:[%s13617_s3 + $0x58] sm:$0xff] }
  0xf1   : > { %v9856_v10 = vor.u32 %v870_v15, %v869_v13  ;;  %2630 = vmatpush.bf16.msra.mxu2 %v9282_v5  ;;  %v1188_v8 = vrot.slane %v1186_v63, 7 }
  0xf2   : > { %v665_v28 = vpack.c.bf16 %v633_v2, %v633_v2  ;;  %v1609_v58 = vsel %vm9689_vm9, 0, %v1505_v44  ;;  %v1310_v4 = vor.u32 %v1309_v59, %v1186_v63  ;;  %v9220_v2 = vld [vmem:[%s9623_s20 + $0x78] sm:$0xff] }
  0xf4   : > { %698 = vst.msk [vmem:[#allocation2 + $0x34] sm:$0xf] %vm334_vm3, %v665_v28  ;;  %1820 = vrot.lane.b32.xlu2 %v9772_v14, %s9545_s29  ;;  %1868 = vrot.lane.b32.xlu0 %v1352_v21, %s9548_s13  ;;  %v9271_v14 = vld [vmem:[%s13617_s3] sm:$0xff]  ;;  %v1353_v26 = vsel %vm9661_vm6, %v1310_v4, 0  ;;  %v1191_v21 = vor.u32 %v1189_v45, %v1188_v8 }
  0xf5   : > { %v572_v33 = vpop.f32.mrf.mxu0  ;;  %1742 = vrot.lane.b32.xlu1 %v1033_v35, %s9544_s24  ;;  %2544 = vmatpush.bf16.msra.mxu1 %v9271_v14  ;;  %v9288_v35 = vld [vmem:[%s13617_s3 + $0x88] sm:$0xff]  ;;  %v9287_v45 = vld [vmem:[%s13617_s3 + $0x80] sm:$0xff] }
  0xf6   : > { %v573_v17 = vadd.f32 %v9672_v25, %v572_v33  ;;  %2631 = vmatpush.bf16.msra.mxu2 %v9281_v19 }
  0xf8   : > { %v634_v43 = vmax.f32 %v573_v17, 0.0  ;;  %8141 = vmatmul.msk.bf16.gmra.mxu0 %vm477_vm2, %v9219_v31  ;;  %2545 = vmatmul.bf16.vlgmr.msra.gmra.mxu1 %v2025_v49  ;;  %v1289_v17 = vsel %vm9689_vm9, 0, %v1191_v21 }
  0xfa   : > { %v666_v48 = vpack.c.bf16 %v634_v43, %v634_v43  ;;  %2632 = vmatpush.bf16.msra.mxu2 %v9280_v32 }
  0xfb   : > { %v9897_v53 = vld [vmem:[#allocation2 + $0x30] sm:$0xff] }
  0xfc   : > { %699 = vst.msk [vmem:[#allocation2 + $0x38] sm:$0xf] %vm334_vm3, %v666_v48  ;;  %1948 = vrot.lane.b32.xlu2 %v9812_v60, %s9547_s12  ;;  %1822 = vrot.lane.b32.xlu0 %v9869_v36, %s9545_s29  ;;  %v874_v50 = vshrl.u32 %v9897_v53, 16  ;;  %v9291_v60 = vld [vmem:[%s13617_s3 + $0xa0] sm:$0xff]  ;;  %v877_v3 = vshll.u32 %v9897_v53, 16  ;;  %v9929_v12 = vld [vmem:[#allocation2 + $0x30] sm:$0xff] }
  0xfd   : > { %v574_v56 = vpop.f32.mrf.mxu0  ;;  %1916 = vrot.lane.b32.xlu1 %v1609_v58, %s9549_s14  ;;  %2718 = vmatpush.bf16.msra.mxu3 %v9291_v60  ;;  %v9933_v13 = vld [vmem:[#allocation2 + $0x30] sm:$0xff]  ;;  %v988_v36 = vrot.slane %v870_v15, 1  ;;  %v1507_v48 = vshrl.u32 %v9929_v12, 16 }
  0xfe   : > { %v575_v40 = vadd.f32 %v9672_v25, %v574_v56  ;;  %v876_v1 = vrot.slane %v874_v50, 7  ;;  %v1193_v31 = vshrl.u32 %v9933_v13, 16  ;;  %v1196_v43 = vshll.u32 %v9933_v13, 16  ;;  %2633 = vmatpush.bf16.msra.mxu2 %v9279_v41 }
  0xff   : > { %v989_v47 = vor.u32 %v988_v36, %v867_v7 }
 0x100   : > { %v635_v0 = vmax.f32 %v575_v40, 0.0  ;;  %v9927_v11 = vor.u32 %v877_v3, %v876_v1  ;;  %v1195_v18 = vrot.slane %v1193_v31, 7  ;;  %v990_v1 = vrot.slane %v877_v3, 1 }
 0x101   : > { %2719 = vmatpush.bf16.msra.mxu3 %v9290_v9  ;;  %v1034_v7 = vsel %vm9661_vm6, %v989_v47, 0  ;;  %v1510_v9 = vshll.u32 %v9929_v12, 16  ;;  %v1670_v3 = vsel %vm9661_vm6, %v9716_v20, 0 }
 0x102   : > { %v667_v6 = vpack.c.bf16 %v635_v0, %v635_v0  ;;  %v1198_v56 = vor.u32 %v1196_v43, %v1195_v18  ;;  %v1509_v0 = vrot.slane %v1507_v48, 7 }
 0x104   : > { %700 = vst.msk [vmem:[#allocation2 + $0x3c] sm:$0xf] %vm334_vm3, %v667_v6  ;;  %1696 = vrot.lane.b32.xlu2 %v9814_v61, %s9543_s23  ;;  %1950 = vrot.lane.b32.xlu0 %v9929_v12, %s9547_s12  ;;  %v1290_v63 = vsel %vm9689_vm9, 0, %v1198_v56  ;;  %v9361_v12 = vld [vmem:[%s13619_s5 + $0x78] sm:$0xff] }
 0x105   : > { %v577_v24 = vpop.f32.mrf.mxu0  ;;  %1870 = vrot.lane.b32.xlu1 %v1353_v26, %s9548_s13  ;;  %2720 = vmatpush.bf16.msra.mxu3 %v9289_v29  ;;  %v991_v26 = vor.u32 %v990_v1, %v874_v50  ;;  %v1311_v29 = vrot.slane %v1196_v43, 1 }
 0x106   : > { %v578_v28 = vadd.f32 %v9672_v25, %v577_v24  ;;  %v1512_v24 = vor.u32 %v1510_v9, %v1509_v0  ;;  %5084 = vmatpush.bf16.msrb.mxu2 %v9361_v12 }
 0x107   : > { %v1035_v32 = vsel %vm9661_vm6, %v991_v26, 0  ;;  %v1312_v41 = vor.u32 %v1311_v29, %v1193_v31 }
 0x108   : > { %v636_v30 = vmax.f32 %v578_v28, 0.0  ;;  %8142 = vmatmul.msk.bf16.gmra.mxu0 %vm477_vm2, %v9220_v2  ;;  %v1610_v20 = vsel %vm9689_vm9, 0, %v1512_v24 }
 0x109   : > { %2721 = vmatpush.bf16.msra.mxu3 %v9288_v35 }
 0x10a   : > { %v668_v33 = vpack.c.bf16 %v636_v30, %v636_v30 }
 0x10b   : > { %v9959_v38 = vld [vmem:[#allocation2 + $0x38] sm:$0xff] }
 0x10c   : > { %v9961_v39 = vld [vmem:[#allocation2 + $0x38] sm:$0xff]  ;;  %701 = vst.msk [vmem:[#allocation2 + $0x40] sm:$0xf] %vm334_vm3, %v668_v33  ;;  %1790 = vrot.lane.b32.xlu2 %v1289_v17, %s9546_s11  ;;  %1698 = vrot.lane.b32.xlu0 %v9897_v53, %s9543_s23  ;;  %v1517_v15 = vshll.u32 %v9959_v38, 16  ;;  %v1514_v58 = vshrl.u32 %v9959_v38, 16 }
 0x10d   : > { %v579_v14 = vpop.f32.mrf.mxu0  ;;  %1824 = vrot.lane.b32.xlu1 %v9933_v13, %s9545_s29  ;;  %v881_v44 = vshrl.u32 %v9961_v39, 16  ;;  %v884_v62 = vshll.u32 %v9961_v39, 16  ;;  %2722 = vmatpush.bf16.msra.mxu3 %v9287_v45  ;;  %v10007_v5 = vld [vmem:[#allocation2 + $0x38] sm:$0xff] }
 0x10e   : > { %v580_v42 = vadd.f32 %v9672_v25, %v579_v14  ;;  %v1632_v49 = vrot.slane %v1517_v15, 1  ;;  %v1200_v19 = vshrl.u32 %v10007_v5, 16  ;;  %v1516_v33 = vrot.slane %v1514_v58, 7 }
 0x10f   : > { %v883_v59 = vrot.slane %v881_v44, 7  ;;  %v992_v0 = vrot.slane %v884_v62, 1 }
 0x110   : > { %v637_v51 = vmax.f32 %v580_v42, 0.0  ;;  %v9992_v60 = vor.u32 %v1632_v49, %v1514_v58  ;;  %v1202_v53 = vrot.slane %v1200_v19, 7  ;;  %v1203_v42 = vshll.u32 %v10007_v5, 16 }
 0x111   : > { %v9994_v61 = vor.u32 %v884_v62, %v883_v59  ;;  %v1519_v49 = vor.u32 %v1517_v15, %v1516_v33  ;;  %v993_v26 = vor.u32 %v992_v0, %v881_v44 }
 0x112   : > { %v669_v40 = vpack.c.bf16 %v637_v51, %v637_v51  ;;  %v1205_v58 = vor.u32 %v1203_v42, %v1202_v53  ;;  %v1313_v15 = vrot.slane %v1203_v42, 1 }
 0x113   : > { %v969_v16 = vsel %vm9689_vm9, 0, %v9994_v61 }
 0x114   : > { %702 = vst.msk [vmem:[#allocation2 + $0x44] sm:$0xf] %vm334_vm3, %v669_v40  ;;  %1744 = vrot.lane.b32.xlu2 %v1034_v7, %s9544_s24  ;;  %1792 = vrot.lane.b32.xlu0 %v1290_v63, %s9546_s11  ;;  %v1354_v40 = vsel %vm9661_vm6, %v1312_v41, 0  ;;  %v1291_v63 = vsel %vm9689_vm9, 0, %v1205_v58  ;;  %v1314_v24 = vor.u32 %v1313_v15, %v1200_v19 }
 0x115   : > { %v582_v4 = vpop.f32.mrf.mxu0  ;;  %1952 = vrot.lane.b32.xlu1 %v9959_v38, %s9547_s12  ;;  %v1611_v38 = vsel %vm9689_vm9, 0, %v1519_v49 }
 0x116   : > { %v583_v6 = vadd.f32 %v9672_v25, %v582_v4  ;;  %v10013_v2 = vpop.permute.xlu2 %1942  ;;  %v1671_v4 = vsel %vm9661_vm6, %v9741_v55, 0 }
 0x118   : > { %v638_v8 = vmax.f32 %v583_v6, 0.0  ;;  %8443 = vmatmul.msk.bf16.vlgmr.msrb.gmra.mxu0 %vm1974_vm10, %v1670_v3 }
 0x11a   : > { %v670_v28 = vpack.c.bf16 %v638_v8, %v638_v8 }
 0x11b   : > { %v10024_v30 = vld [vmem:[#allocation2 + $0x40] sm:$0xff] }
 0x11c   : > { %v10026_v21 = vld [vmem:[#allocation2 + $0x40] sm:$0xff]  ;;  %703 = vst.msk [vmem:[#allocation2 + $0x48] sm:$0xf] %vm334_vm3, %v670_v28  ;;  %1918 = vrot.lane.b32.xlu2 %v1610_v20, %s9549_s14  ;;  %1746 = vrot.lane.b32.xlu0 %v1035_v32, %s9544_s24  ;;  %v1524_v50 = vshll.u32 %v10024_v30, 16  ;;  %v1521_v43 = vshrl.u32 %v10024_v30, 16  ;;  %v1355_v20 = vsel %vm9661_vm6, %v1314_v24, 0 }
 0x11d   : > { %v584_v35 = vpop.f32.mrf.mxu0  ;;  %1700 = vrot.lane.b32.xlu1 %v9961_v39, %s9543_s23  ;;  %v888_v17 = vshrl.u32 %v10026_v21, 16  ;;  %v891_v56 = vshll.u32 %v10026_v21, 16  ;;  %v10081_v55 = vld [vmem:[#allocation2 + $0x40] sm:$0xff]  ;;  %v1036_v39 = vsel %vm9661_vm6, %v993_v26, 0 }
 0x11e   : > { %v585_v36 = vadd.f32 %v9672_v25, %v584_v35  ;;  %v10040_v18 = vpop.permute.xlu2 %1690  ;;  %v1815_v14 = vpop.permute.xlu1 %1814  ;;  %v1634_v45 = vrot.slane %v1524_v50, 1  ;;  %v1523_v44 = vrot.slane %v1521_v43, 7  ;;  %v1210_v41 = vshll.u32 %v10081_v55, 16 }
 0x11f   : > { %v890_v51 = vrot.slane %v888_v17, 7 }
 0x120   : > { %v639_v47 = vmax.f32 %v585_v36, 0.0  ;;  %v10053_v59 = vor.u32 %v1634_v45, %v1521_v43 }
 0x121   : > { %v10057_v31 = vor.u32 %v891_v56, %v890_v51 }
 0x122   : > { %v671_v13 = vpack.c.bf16 %v639_v47, %v639_v47  ;;  %v1526_v47 = vor.u32 %v1524_v50, %v1523_v44 }
 0x124   : > { %704 = vst.msk [vmem:[#allocation2 + $0x4c] sm:$0xf] %vm334_vm3, %v671_v13  ;;  %1872 = vrot.lane.b32.xlu2 %v1354_v40, %s9548_s13  ;;  %1920 = vrot.lane.b32.xlu0 %v1611_v38, %s9549_s14  ;;  %v1612_v50 = vsel %vm9689_vm9, 0, %v1526_v47  ;;  %v1315_v40 = vrot.slane %v1210_v41, 1  ;;  %v963_v38 = vsel %vm9689_vm9, 0, %v9693_v54 }
 0x125   : > { %v587_v7 = vpop.f32.mrf.mxu0  ;;  %1794 = vrot.lane.b32.xlu1 %v1291_v63, %s9546_s11  ;;  %v1783_v62 = vpop.permute.xlu0 %1782  ;;  %v1207_v63 = vshrl.u32 %v10081_v55, 16 }
 0x126   : > { %v588_v1 = vadd.f32 %v9672_v25, %v587_v7  ;;  %v1911_v6 = vpop.permute.xlu2 %1910  ;;  %v1689_v3 = vpop.permute.xlu1 %1688  ;;  %v2074_v32 = vsel %vm2072_vm12, %v9887_v46, %v1783_v62 }
 0x127   : > { %v1980_v0 = vsel %vm1974_vm10, %v963_v38, %v1689_v3  ;;  %v1209_v26 = vrot.slane %v1207_v63, 7 }
 0x128   : > { %v640_v8 = vmax.f32 %v588_v1, 0.0  ;;  %8444 = vmatmul.msk.bf16.gmra.mxu0 %vm1974_vm10, %v1671_v4 }
 0x129   : > { %v1212_v44 = vor.u32 %v1210_v41, %v1209_v26 }
 0x12a   : > { %v672_v28 = vpack.c.bf16 %v640_v8, %v640_v8  ;;  %v1316_v8 = vor.u32 %v1315_v40, %v1207_v63 }
 0x12b   : > { %v10076_v29 = vld [vmem:[#allocation2 + $0x48] sm:$0xff] }
 0x12c   : > { %705 = vst.msk [vmem:[#allocation2 + $0x50] sm:$0xf] %vm334_vm3, %v672_v28  ;;  %1826 = vrot.lane.b32.xlu2 %v10007_v5, %s9545_s29  ;;  %1874 = vrot.lane.b32.xlu0 %v1355_v20, %s9548_s13  ;;  %v895_v35 = vshrl.u32 %v10076_v29, 16  ;;  %v2107_v5 = vsel %vm2105_vm13, %v2074_v32, %v1815_v14  ;;  %v898_v49 = vshll.u32 %v10076_v29, 16  ;;  %v10129_v54 = vld [vmem:[#allocation2 + $0x48] sm:$0xff]  ;;  %v1356_v20 = vsel %vm9661_vm6, %v1316_v8, 0 }
 0x12d   : > { %v589_v33 = vpop.f32.mrf.mxu0  ;;  %1748 = vrot.lane.b32.xlu1 %v1036_v39, %s9544_s24 }
 0x12e   : > { %v590_v19 = vadd.f32 %v9672_v25, %v589_v33  ;;  %v1785_v46 = vpop.permute.xlu2 %1784  ;;  %v1863_v36 = vpop.permute.xlu1 %1862  ;;  %v897_v42 = vrot.slane %v895_v35, 7  ;;  %v996_v26 = vrot.slane %v898_v49, 1 }
 0x12f   : > { %v2140_v43 = vsel %vm2138_vm14, %v2107_v5, %v1863_v36  ;;  %v2189_v45 = vsel %vm2187_vm15, %v1863_v36, %v1911_v6  ;;  %v1817_v15 = vpop.permute.xlu0 %1816 }
 0x130   : > { %v641_v53 = vmax.f32 %v590_v19, 0.0  ;;  %2634 = vmatmul.bf16.vlgmr.msra.gmra.mxu2 %v2140_v43  ;;  %v2222_v58 = vsel %vm2220_vm0, %v2189_v45, %v10013_v2  ;;  %v10106_v14 = vor.u32 %v898_v49, %v897_v42 }
 0x131   : > { %2723 = vmatmul.bf16.vlgmr.msra.gmra.mxu3 %v2222_v58  ;;  %v1292_v58 = vsel %vm9689_vm9, 0, %v1212_v44 }
 0x132   : > { %v673_v51 = vpack.c.bf16 %v641_v53, %v641_v53 }
 0x134   : > { %706 = vst.msk [vmem:[#allocation2 + $0x54] sm:$0xf] %vm334_vm3, %v673_v51  ;;  %1954 = vrot.lane.b32.xlu2 %v10024_v30, %s9547_s12  ;;  %1828 = vrot.lane.b32.xlu0 %v10081_v55, %s9545_s29  ;;  %v1672_v30 = vsel %vm9661_vm6, %v9784_v34, 0  ;;  %v10134_v34 = vld [vmem:[#allocation2 + $0x48] sm:$0xff] }
 0x135   : > { %v592_v13 = vpop.f32.mrf.mxu0  ;;  %1922 = vrot.lane.b32.xlu1 %v1612_v50, %s9549_s14  ;;  %v1214_v36 = vshrl.u32 %v10134_v34, 16  ;;  %v1217_v38 = vshll.u32 %v10134_v34, 16 }
 0x136   : > { %v593_v2 = vadd.f32 %v9672_v25, %v592_v13  ;;  %v10123_v7 = vpop.permute.xlu2 %1738  ;;  %v1737_v4 = vpop.permute.xlu1 %1736  ;;  %v994_v13 = vrot.slane %v891_v56, 1  ;;  %v964_v56 = vsel %vm9689_vm9, 0, %v9718_v22 }
 0x137   : > { %v2028_v6 = vsel %vm2023_vm11, %v1980_v0, %v1737_v4  ;;  %v2076_v3 = vsel %vm2072_vm12, %v1737_v4, %v1785_v46  ;;  %v1216_v50 = vrot.slane %v1214_v36, 7  ;;  %v1528_v0 = vshrl.u32 %v10129_v54, 16 }
 0x138   : > { %v642_v1 = vmax.f32 %v593_v2, 0.0  ;;  %8445 = vmatmul.msk.bf16.gmra.mxu0 %vm1974_vm10, %v1672_v30  ;;  %2550 = vmatmul.bf16.gmra.mxu1 %v2028_v6  ;;  %v2109_v53 = vsel %vm2105_vm13, %v2076_v3, %v1817_v15  ;;  %v1673_v15 = vsel %vm9661_vm6, %v9846_v27, 0  ;;  %v995_v22 = vor.u32 %v994_v13, %v888_v17 }
 0x139   : > { %v1219_v6 = vor.u32 %v1217_v38, %v1216_v50 }
 0x13a   : > { %v674_v24 = vpack.c.bf16 %v642_v1, %v642_v1 }
 0x13b   : > { %v10131_v28 = vld [vmem:[#allocation2 + $0x50] sm:$0xff]  ;;  %v1293_v17 = vsel %vm9689_vm9, 0, %v1219_v6 }
 0x13c   : > { %707 = vst.msk [vmem:[#allocation2 + $0x58] sm:$0xf] %vm334_vm3, %v674_v24  ;;  %1702 = vrot.lane.b32.xlu2 %v10026_v21, %s9543_s23  ;;  %1956 = vrot.lane.b32.xlu0 %v10129_v54, %s9547_s12  ;;  %v902_v32 = vshrl.u32 %v10131_v28, 16  ;;  %v905_v45 = vshll.u32 %v10131_v28, 16  ;;  %v1530_v24 = vrot.slane %v1528_v0, 7  ;;  %v1037_v21 = vsel %vm9661_vm6, %v995_v22, 0 }
 0x13d   : > { %v594_v62 = vpop.f32.mrf.mxu0  ;;  %1876 = vrot.lane.b32.xlu1 %v1356_v20, %s9548_s13  ;;  %v10201_v3 = vld [vmem:[#allocation2 + $0x50] sm:$0xff]  ;;  %v1531_v20 = vshll.u32 %v10129_v54, 16  ;;  %v965_v22 = vsel %vm9689_vm9, 0, %v9743_v57 }
 0x13e   : > { %v595_v55 = vadd.f32 %v9672_v25, %v594_v62  ;;  %v1913_v33 = vpop.permute.xlu2 %1912  ;;  %v1945_v39 = vpop.permute.xlu0 %1944  ;;  %v904_v5 = vrot.slane %v902_v32, 7  ;;  %v10206_v49 = vld [vmem:[#allocation2 + $0x50] sm:$0xff] }
 0x13f   : > { %v1865_v46 = vpop.permute.xlu1 %1864  ;;  %v1221_v13 = vshrl.u32 %v10206_v49, 16 }
 0x140   : > { %v643_v19 = vmax.f32 %v595_v55, 0.0  ;;  %v2143_v42 = vsel %vm2138_vm14, %v2109_v53, %v1865_v46  ;;  %v2191_v43 = vsel %vm2187_vm15, %v1865_v46, %v1913_v33  ;;  %v10156_v41 = vor.u32 %v905_v45, %v904_v5  ;;  %v10211_v55 = vld [vmem:[%s13616_s2] ss:$0 sm:$0xff] }
 0x141   : > { %2639 = vmatmul.bf16.gmra.mxu2 %v2143_v42  ;;  %v2225_v51 = vsel %vm2220_vm0, %v2191_v43, %v1945_v39  ;;  %v1630_v39 = vrot.slane %v1510_v9, 1  ;;  %v1533_v53 = vor.u32 %v1531_v20, %v1530_v24  ;;  %v997_v5 = vor.u32 %v996_v26, %v895_v35 }
 0x142   : > { %v675_v47 = vpack.c.bf16 %v643_v19, %v643_v19  ;;  %2728 = vmatmul.bf16.gmra.mxu3 %v2225_v51  ;;  %v1535_v51 = vshrl.u32 %v10201_v3, 16 }
 0x143   : > { %v1631_v35 = vor.u32 %v1630_v39, %v1507_v48  ;;  %v9369_v48 = vld [vmem:[%s13619_s5 + $0xb8] sm:$0xff] }
 0x144   : > { %708 = vst.msk [vmem:[#allocation2 + $0x5c] sm:$0xf] %vm334_vm3, %v675_v47  ;;  %1796 = vrot.lane.b32.xlu2 %v1292_v58, %s9546_s11  ;;  %1704 = vrot.lane.b32.xlu0 %v10076_v29, %s9543_s23 }
 0x145   : > { %v597_v40 = vpop.f32.mrf.mxu0  ;;  %1830 = vrot.lane.b32.xlu1 %v10134_v34, %s9545_s29  ;;  %v1674_v24 = vsel %vm9661_vm6, %v1631_v35, 0  ;;  %5173 = vmatpush.bf16.msrb.mxu3 %v9369_v48 }
 0x146   : > { %v598_v2 = vadd.f32 %v9672_v25, %v597_v40  ;;  %v10178_v30 = vpop.permute.xlu2 %1866  ;;  %v10180_v63 = vpop.permute.xlu0 %1692  ;;  %v1983_v25 = vsel %vm1974_vm10, %v964_v56, %v10040_v18  ;;  %v1317_v56 = vrot.slane %v1217_v38, 1  ;;  %v9353_v38 = vld [vmem:[%s13619_s5 + $0x38] sm:$0xff] }
 0x147   : > { %v1819_v4 = vpop.permute.xlu1 %1818  ;;  %v2031_v27 = vsel %vm2023_vm11, %v1983_v25, %v10123_v7  ;;  %v1537_v25 = vrot.slane %v1535_v51, 7  ;;  %4995 = vmatpush.bf16.msrb.mxu1 %v9353_v38 }
 0x148   : > { %v644_v1 = vmax.f32 %v598_v2, 0.0  ;;  %8446 = vmatmul.msk.bf16.gmra.mxu0 %vm1974_vm10, %v1673_v15  ;;  %2555 = vmatmul.bf16.gmra.mxu1 %v2031_v27  ;;  %v1038_v2 = vsel %vm9661_vm6, %v997_v5, 0  ;;  %v1538_v27 = vshll.u32 %v10201_v3, 16  ;;  %v1318_v39 = vor.u32 %v1317_v56, %v1214_v36 }
 0x149   : > { %v998_v36 = vrot.slane %v905_v45, 1 }
 0x14a   : > { %v676_v8 = vpack.c.bf16 %v644_v1, %v644_v1 }
 0x14b   : > { %v10194_v18 = vld [vmem:[#allocation2 + $0x58] sm:$0xff] }
 0x14c   : > { %709 = vst.msk [vmem:[#allocation2 + $0x60] sm:$0xf] %vm334_vm3, %v676_v8  ;;  %1750 = vrot.lane.b32.xlu2 %v1037_v21, %s9544_s24  ;;  %1798 = vrot.lane.b32.xlu0 %v1293_v17, %s9546_s11  ;;  %v909_v44 = vshrl.u32 %v10194_v18, 16  ;;  %v912_v50 = vshll.u32 %v10194_v18, 16  ;;  %v1986_v8 = vsel %vm1974_vm10, %v965_v22, %v10180_v63  ;;  %v1224_v17 = vshll.u32 %v10206_v49, 16 }
 0x14d   : > { %v599_v62 = vpop.f32.mrf.mxu0  ;;  %1958 = vrot.lane.b32.xlu1 %v10201_v3, %s9547_s12  ;;  %v1540_v63 = vor.u32 %v1538_v27, %v1537_v25 }
 0x14e   : > { %v600_v33 = vadd.f32 %v10211_v55, %v599_v62  ;;  %v10219_v19 = vpop.permute.xlu2 %1820  ;;  %v1787_v46 = vpop.permute.xlu0 %1786  ;;  %v911_v9 = vrot.slane %v909_v44, 7 }
 0x14f   : > { %v2078_v43 = vsel %vm2072_vm12, %v10123_v7, %v1787_v46  ;;  %v10227_v47 = vpop.permute.xlu1 %1946  ;;  %v1613_v7 = vsel %vm9689_vm9, 0, %v1533_v53 }
 0x150   : > { %v645_v42 = vmax.f32 %v600_v33, 0.0  ;;  %v2111_v58 = vsel %vm2105_vm13, %v2078_v43, %v1819_v4  ;;  %v10245_v15 = vor.u32 %v912_v50, %v911_v9  ;;  %v1223_v4 = vrot.slane %v1221_v13, 7 }
 0x151   : > { %v2146_v29 = vsel %vm2138_vm14, %v2111_v58, %v10178_v30  ;;  %v1614_v43 = vsel %vm9689_vm9, 0, %v1540_v63  ;;  %v1319_v9 = vrot.slane %v1224_v17, 1 }
 0x152   : > { %v677_v40 = vpack.c.bf16 %v645_v42, %v645_v42  ;;  %2644 = vmatmul.bf16.gmra.mxu2 %v2146_v29  ;;  %v1226_v46 = vor.u32 %v1224_v17, %v1223_v4  ;;  %v1357_v42 = vsel %vm9661_vm6, %v1318_v39, 0  ;;  %v966_v17 = vsel %vm9689_vm9, 0, %v9789_v37 }
 0x153   : > { %v1320_v48 = vor.u32 %v1319_v9, %v1221_v13 }
 0x154   : > { %710 = vst.msk [vmem:[#allocation2 + $0x64] sm:$0xf] %vm334_vm3, %v677_v40  ;;  %1924 = vrot.lane.b32.xlu2 %v1613_v7, %s9549_s14  ;;  %1752 = vrot.lane.b32.xlu0 %v1038_v2, %s9544_s24  ;;  %v1294_v34 = vsel %vm9689_vm9, 0, %v1226_v46  ;;  %v10294_v40 = vld [vmem:[#allocation2 + $0x58] sm:$0xff] }
 0x155   : > { %v602_v1 = vpop.f32.mrf.mxu0  ;;  %1706 = vrot.lane.b32.xlu1 %v10131_v28, %s9543_s23  ;;  %v1542_v4 = vshrl.u32 %v10294_v40, 16  ;;  %v1545_v63 = vshll.u32 %v10294_v40, 16 }
 0x156   : > { %v603_v6 = vadd.f32 %v10211_v55, %v602_v1  ;;  %v10272_v26 = vpop.permute.xlu2 %1948  ;;  %v1741_v21 = vpop.permute.xlu0 %1740  ;;  %v999_v1 = vor.u32 %v998_v36, %v902_v32 }
 0x157   : > { %v1695_v62 = vpop.permute.xlu1 %1694  ;;  %v2034_v33 = vsel %vm2023_vm11, %v1986_v8, %v1741_v21  ;;  %v9249_v8 = vld [vmem:[#allocation2 + $0x58] sm:$0xff] }
 0x158   : > { %v646_v57 = vmax.f32 %v603_v6, 0.0  ;;  %8447 = vmatmul.msk.bf16.gmra.mxu0 %vm1974_vm10, %v1674_v24  ;;  %2560 = vmatmul.bf16.gmra.mxu1 %v2034_v33  ;;  %v1039_v32 = vsel %vm9661_vm6, %v999_v1, 0  ;;  %v1544_v24 = vrot.slane %v1542_v4, 7  ;;  %v1228_v46 = vshrl.u32 %v9249_v8, 16 }
 0x15a   : > { %v678_v53 = vpack.c.bf16 %v646_v57, %v646_v57 }
 0x15b   : > { %v10281_v5 = vld [vmem:[#allocation2 + $0x60] sm:$0xff] }
 0x15c   : > { %711 = vst.msk [vmem:[#allocation2 + $0x68] sm:$0xf] %vm334_vm3, %v678_v53  ;;  %1878 = vrot.lane.b32.xlu2 %v1357_v42, %s9548_s13  ;;  %1926 = vrot.lane.b32.xlu0 %v1614_v43, %s9549_s14  ;;  %v916_v35 = vshrl.u32 %v10281_v5, 16  ;;  %v919_v22 = vshll.u32 %v10281_v5, 16  ;;  %v1989_v53 = vsel %vm1974_vm10, %v966_v17, %v1695_v62  ;;  %v10346_v62 = vld [vmem:[#allocation2 + $0x60] sm:$0xff] }
 0x15d   : > { %v604_v58 = vpop.f32.mrf.mxu0  ;;  %1800 = vrot.lane.b32.xlu1 %v1294_v34, %s9546_s11 }
 0x15e   : > { %v605_v29 = vadd.f32 %v10211_v55, %v604_v58  ;;  %v10299_v7 = vpop.permute.xlu2 %1696  ;;  %v1915_v2 = vpop.permute.xlu0 %1914  ;;  %v918_v45 = vrot.slane %v916_v35, 7  ;;  %v1231_v58 = vshll.u32 %v9249_v8, 16 }
 0x15f   : > { %v2193_v25 = vsel %vm2187_vm15, %v10178_v30, %v1915_v2  ;;  %v1789_v12 = vpop.permute.xlu1 %1788 }
 0x160   : > { %v647_v56 = vmax.f32 %v605_v29, 0.0  ;;  %v2228_v38 = vsel %vm2220_vm0, %v2193_v25, %v10227_v47  ;;  %v10313_v30 = vor.u32 %v919_v22, %v918_v45  ;;  %v2080_v13 = vsel %vm2072_vm12, %v1741_v21, %v1789_v12 }
 0x161   : > { %2733 = vmatmul.bf16.gmra.mxu3 %v2228_v38  ;;  %v1358_v47 = vsel %vm9661_vm6, %v1320_v48, 0  ;;  %v2113_v39 = vsel %vm2105_vm13, %v2080_v13, %v10219_v19  ;;  %v1230_v19 = vrot.slane %v1228_v46, 7  ;;  %v1235_v13 = vshrl.u32 %v10346_v62, 16 }
 0x162   : > { %v679_v6 = vpack.c.bf16 %v647_v56, %v647_v56  ;;  %v1321_v56 = vrot.slane %v1231_v58, 1 }
 0x163   : > { %v1233_v38 = vor.u32 %v1231_v58, %v1230_v19  ;;  %v1238_v58 = vshll.u32 %v10346_v62, 16  ;;  %v1676_v19 = vsel %vm9661_vm6, %v10053_v59, 0 }
 0x164   : > { %712 = vst.msk [vmem:[#allocation2 + $0x6c] sm:$0xf] %vm334_vm3, %v679_v6  ;;  %1832 = vrot.lane.b32.xlu2 %v10206_v49, %s9545_s29  ;;  %1880 = vrot.lane.b32.xlu0 %v1358_v47, %s9548_s13  ;;  %v1675_v49 = vsel %vm9661_vm6, %v9992_v60, 0  ;;  %v1547_v60 = vor.u32 %v1545_v63, %v1544_v24 }
 0x165   : > { %v607_v28 = vpop.f32.mrf.mxu0  ;;  %1754 = vrot.lane.b32.xlu1 %v1039_v32, %s9544_s24 }
 0x166   : > { %v608_v21 = vadd.f32 %v10211_v55, %v607_v28  ;;  %v1791_v57 = vpop.permute.xlu2 %1790  ;;  %v1869_v33 = vpop.permute.xlu0 %1868  ;;  %v1615_v2 = vsel %vm9689_vm9, 0, %v1547_v60  ;;  %v1322_v28 = vor.u32 %v1321_v56, %v1228_v46  ;;  %v9368_v46 = vld [vmem:[%s13619_s5 + $0xb0] sm:$0xff] }
 0x167   : > { %v1743_v37 = vpop.permute.xlu1 %1742  ;;  %v2149_v43 = vsel %vm2138_vm14, %v2113_v39, %v1869_v33  ;;  %v1000_v39 = vrot.slane %v912_v50, 1  ;;  %v9352_v50 = vld [vmem:[%s13619_s5 + $0x30] sm:$0xff]  ;;  %5174 = vmatpush.bf16.msrb.mxu3 %v9368_v46 }
 0x168   : > { %v648_v42 = vmax.f32 %v608_v21, 0.0  ;;  %8448 = vmatmul.msk.bf16.gmra.mxu0 %vm1974_vm10, %v1675_v49  ;;  %v2037_v9 = vsel %vm2023_vm11, %v1989_v53, %v1743_v37  ;;  %2649 = vmatmul.bf16.gmra.mxu2 %v2149_v43  ;;  %v1295_v21 = vsel %vm9689_vm9, 0, %v1233_v38  ;;  %v10367_v49 = vld [vmem:[#allocation2 + $0x60] sm:$0xff]  ;;  %v1359_v43 = vsel %vm9661_vm6, %v1322_v28, 0 }
 0x169   : > { %2565 = vmatmul.bf16.gmra.mxu1 %v2037_v9  ;;  %v967_v9 = vsel %vm9689_vm9, 0, %v9856_v10  ;;  %v1001_v56 = vor.u32 %v1000_v39, %v909_v44  ;;  %v1549_v10 = vshrl.u32 %v10367_v49, 16 }
 0x16a   : > { %v680_v34 = vpack.c.bf16 %v648_v42, %v648_v42  ;;  %4996 = vmatpush.bf16.msrb.mxu1 %v9352_v50 }
 0x16b   : > { %v10343_v36 = vld [vmem:[#allocation2 + $0x68] sm:$0xff] }
 0x16c   : > { %713 = vst.msk [vmem:[#allocation2 + $0x70] sm:$0xf] %vm334_vm3, %v680_v34  ;;  %1960 = vrot.lane.b32.xlu2 %v10294_v40, %s9547_s12  ;;  %1834 = vrot.lane.b32.xlu0 %v9249_v8, %s9545_s29  ;;  %v923_v12 = vshrl.u32 %v10343_v36, 16  ;;  %v926_v32 = vshll.u32 %v10343_v36, 16  ;;  %v2082_v34 = vsel %vm2072_vm12, %v1743_v37, %v1791_v57 }
 0x16d   : > { %v609_v29 = vpop.f32.mrf.mxu0  ;;  %1928 = vrot.lane.b32.xlu1 %v1615_v2, %s9549_s14 }
 0x16e   : > { %v610_v25 = vadd.f32 %v10211_v55, %v609_v29  ;;  %v10356_v48 = vpop.permute.xlu2 %1744  ;;  %v1823_v45 = vpop.permute.xlu0 %1822  ;;  %v925_v8 = vrot.slane %v923_v12, 7 }
 0x16f   : > { %v1917_v6 = vpop.permute.xlu1 %1916  ;;  %v2115_v38 = vsel %vm2105_vm13, %v2082_v34, %v1823_v45  ;;  %v1002_v45 = vrot.slane %v919_v22, 1  ;;  %v10430_v22 = vld [vmem:[#allocation2 + $0x68] sm:$0xff] }
 0x170   : > { %v649_v1 = vmax.f32 %v610_v25, 0.0  ;;  %v2195_v47 = vsel %vm2187_vm15, %v1869_v33, %v1917_v6  ;;  %v10373_v53 = vor.u32 %v926_v32, %v925_v8  ;;  %v1237_v33 = vrot.slane %v1235_v13, 7 }
 0x171   : > { %v2231_v17 = vsel %vm2220_vm0, %v2195_v47, %v10272_v26  ;;  %v9360_v26 = vld [vmem:[%s13619_s5 + $0x70] sm:$0xff]  ;;  %v1992_v25 = vsel %vm1974_vm10, %v967_v9, %v10299_v7  ;;  %v1551_v7 = vrot.slane %v1549_v10, 7  ;;  %v1040_v47 = vsel %vm9661_vm6, %v1001_v56, 0 }
 0x172   : > { %v681_v24 = vpack.c.bf16 %v649_v1, %v649_v1  ;;  %2738 = vmatmul.bf16.gmra.mxu3 %v2231_v17  ;;  %5085 = vmatpush.bf16.msrb.mxu2 %v9360_v26  ;;  %v1240_v59 = vor.u32 %v1238_v58, %v1237_v33  ;;  %v2040_v37 = vsel %vm2023_vm11, %v1992_v25, %v10356_v48  ;;  %v1636_v9 = vrot.slane %v1531_v20, 1 }
 0x174   : > { %714 = vst.msk [vmem:[#allocation2 + $0x74] sm:$0xf] %vm334_vm3, %v681_v24  ;;  %1802 = vrot.lane.b32.xlu2 %v1295_v21, %s9546_s11  ;;  %1962 = vrot.lane.b32.xlu0 %v10367_v49, %s9547_s12  ;;  %v1296_v28 = vsel %vm9689_vm9, 0, %v1240_v59  ;;  %v10425_v24 = vld [vmem:[#allocation2 + $0x68] sm:$0xff]  ;;  %v1552_v21 = vshll.u32 %v10367_v49, 16  ;;  %v1637_v20 = vor.u32 %v1636_v9, %v1528_v0 }
 0x175   : > { %v612_v42 = vpop.f32.mrf.mxu0  ;;  %1882 = vrot.lane.b32.xlu1 %v1359_v43, %s9548_s13  ;;  %v1003_v43 = vor.u32 %v1002_v45, %v916_v35 }
 0x176   : > { %v613_v60 = vadd.f32 %v10211_v55, %v612_v42  ;;  %v1919_v29 = vpop.permute.xlu2 %1918  ;;  %v1951_v2 = vpop.permute.xlu0 %1950  ;;  %v1554_v42 = vor.u32 %v1552_v21, %v1551_v7 }
 0x177   : > { %v1871_v57 = vpop.permute.xlu1 %1870  ;;  %v1041_v59 = vsel %vm9661_vm6, %v1003_v43, 0 }
 0x178   : > { %v650_v1 = vmax.f32 %v613_v60, 0.0  ;;  %8449 = vmatmul.msk.bf16.gmra.mxu0 %vm1974_vm10, %v1676_v19  ;;  %v2152_v44 = vsel %vm2138_vm14, %v2115_v38, %v1871_v57  ;;  %v2197_v50 = vsel %vm2187_vm15, %v1871_v57, %v1919_v29  ;;  %v1556_v19 = vshrl.u32 %v10425_v24, 16 }
 0x179   : > { %2570 = vmatmul.bf16.gmra.mxu1 %v2040_v37  ;;  %2654 = vmatmul.bf16.gmra.mxu2 %v2152_v44  ;;  %v1242_v29 = vshrl.u32 %v10430_v22, 16  ;;  %v1616_v57 = vsel %vm9689_vm9, 0, %v1554_v42  ;;  %v1559_v44 = vshll.u32 %v10425_v24, 16 }
 0x17a   : > { %v682_v6 = vpack.c.bf16 %v650_v1, %v650_v1  ;;  %v2234_v1 = vsel %vm2220_vm0, %v2197_v50, %v1951_v2  ;;  %v1558_v37 = vrot.slane %v1556_v19, 7 }
 0x17b   : > { %v10418_v8 = vld [vmem:[#allocation2 + $0x70] sm:$0xff]  ;;  %v1244_v54 = vrot.slane %v1242_v29, 7 }
 0x17c   : > { %715 = vst.msk [vmem:[#allocation2 + $0x78] sm:$0xf] %vm334_vm3, %v682_v6  ;;  %1756 = vrot.lane.b32.xlu2 %v1040_v47, %s9544_s24  ;;  %1804 = vrot.lane.b32.xlu0 %v1296_v28, %s9546_s11  ;;  %v930_v33 = vshrl.u32 %v10418_v8, 16  ;;  %v933_v25 = vshll.u32 %v10418_v8, 16  ;;  %v1677_v6 = vsel %vm9661_vm6, %v1637_v20, 0  ;;  %v1245_v47 = vshll.u32 %v10430_v22, 16 }
 0x17d   : > { %v614_v17 = vpop.f32.mrf.mxu0  ;;  %1836 = vrot.lane.b32.xlu1 %v10346_v62, %s9545_s29  ;;  %v1561_v50 = vor.u32 %v1559_v44, %v1558_v37  ;;  %v1004_v20 = vrot.slane %v926_v32, 1 }
 0x17e   : > { %v615_v39 = vadd.f32 %v10211_v55, %v614_v17  ;;  %v10436_v26 = vpop.permute.xlu2 %1872  ;;  %v1699_v46 = vpop.permute.xlu0 %1698  ;;  %v932_v56 = vrot.slane %v930_v33, 7  ;;  %v1247_v43 = vor.u32 %v1245_v47, %v1244_v54 }
 0x17f   : > { %v1825_v34 = vpop.permute.xlu1 %1824 }
 0x180   : > { %v651_v60 = vmax.f32 %v615_v39, 0.0  ;;  %v10453_v35 = vor.u32 %v933_v25, %v932_v56  ;;  %v1323_v56 = vrot.slane %v1238_v58, 1  ;;  %v10501_v58 = vld [vmem:[#allocation2 + $0x70] sm:$0xff] }
 0x181   : > { %v1563_v62 = vshrl.u32 %v10501_v58, 16 }
 0x182   : > { %v683_v38 = vpack.c.bf16 %v651_v60, %v651_v60  ;;  %2743 = vmatmul.bf16.gmra.mxu3 %v2234_v1 }
 0x183   : > { %v1565_v3 = vrot.slane %v1563_v62, 7 }
 0x184   : > { %716 = vst.msk [vmem:[#allocation2 + $0x7c] sm:$0xf] %vm334_vm3, %v683_v38  ;;  %1930 = vrot.lane.b32.xlu2 %v1616_v57, %s9549_s14  ;;  %1758 = vrot.lane.b32.xlu0 %v1041_v59, %s9544_s24  ;;  %v968_v57 = vsel %vm9689_vm9, 0, %v9927_v11  ;;  %v1638_v11 = vrot.slane %v1538_v27, 1  ;;  %v9367_v27 = vld [vmem:[%s13619_s5 + $0xa8] sm:$0xff] }
 0x185   : > { %v617_v2 = vpop.f32.mrf.mxu0  ;;  %1964 = vrot.lane.b32.xlu1 %v10425_v24, %s9547_s12  ;;  %5175 = vmatpush.bf16.msrb.mxu3 %v9367_v27 }
 0x186   : > { %v618_v0 = vadd.f32 %v10211_v55, %v617_v2  ;;  %v10474_v7 = vpop.permute.xlu2 %1826  ;;  %v1793_v45 = vpop.permute.xlu0 %1792  ;;  %v1995_v2 = vsel %vm1974_vm10, %v968_v57, %v1699_v46  ;;  %v1005_v46 = vor.u32 %v1004_v20, %v923_v12 }
 0x187   : > { %v2084_v17 = vsel %vm2072_vm12, %v10356_v48, %v1793_v45  ;;  %v10480_v39 = vpop.permute.xlu1 %1952  ;;  %v1617_v48 = vsel %vm9689_vm9, 0, %v1561_v50  ;;  %v9351_v50 = vld [vmem:[%s13619_s5 + $0x28] sm:$0xff] }
 0x188   : > { %v652_v28 = vmax.f32 %v618_v0, 0.0  ;;  %8450 = vmatmul.msk.bf16.gmra.mxu0 %vm1974_vm10, %v1677_v6  ;;  %v2117_v42 = vsel %vm2105_vm13, %v2084_v17, %v1825_v34  ;;  %v1297_v34 = vsel %vm9689_vm9, 0, %v1247_v43  ;;  %v1324_v0 = vor.u32 %v1323_v56, %v1235_v13  ;;  %4997 = vmatpush.bf16.msrb.mxu1 %v9351_v50 }
 0x189   : > { %v2155_v60 = vsel %vm2138_vm14, %v2117_v42, %v10436_v26  ;;  %v1639_v43 = vor.u32 %v1638_v11, %v1535_v51  ;;  %v9252_v51 = vld [vmem:[#allocation2 + $0x70] sm:$0xff] }
 0x18a   : > { %v684_v9 = vpack.c.bf16 %v652_v28, %v652_v28  ;;  %2659 = vmatmul.bf16.gmra.mxu2 %v2155_v60  ;;  %v1360_v12 = vsel %vm9661_vm6, %v1324_v0, 0  ;;  %v1042_v60 = vsel %vm9661_vm6, %v1005_v46, 0 }
 0x18b   : > { %v10489_v38 = vld [vmem:[#allocation2 + $0x78] sm:$0xff] }
 0x18c   : > { %717 = vst.msk [vmem:[#allocation2 + $0x80] sm:$0xf] %vm334_vm3, %v684_v9  ;;  %1708 = vrot.lane.b32.xlu2 %v10194_v18, %s9543_s23  ;;  %1932 = vrot.lane.b32.xlu0 %v1617_v48, %s9549_s14  ;;  %v9359_v18 = vld [vmem:[%s13619_s5 + $0x68] sm:$0xff]  ;;  %v937_v37 = vshrl.u32 %v10489_v38, 16  ;;  %v940_v17 = vshll.u32 %v10489_v38, 16  ;;  %v1325_v9 = vrot.slane %v1245_v47, 1 }
 0x18d   : > { %v619_v1 = vpop.f32.mrf.mxu0  ;;  %1806 = vrot.lane.b32.xlu1 %v1297_v34, %s9546_s11  ;;  %5086 = vmatpush.bf16.msrb.mxu2 %v9359_v18  ;;  %v1678_v47 = vsel %vm9661_vm6, %v1639_v43, 0  ;;  %v1252_v18 = vshll.u32 %v9252_v51, 16  ;;  %v10594_v43 = vld [vmem:[#allocation2 + $0x78] sm:$0xff] }
 0x18e   : > { %v620_v59 = vadd.f32 %v10211_v55, %v619_v1  ;;  %v10513_v54 = vpop.permute.xlu2 %1954  ;;  %v1747_v32 = vpop.permute.xlu0 %1746  ;;  %v939_v28 = vrot.slane %v937_v37, 7  ;;  %v1566_v1 = vshll.u32 %v10501_v58, 16  ;;  %v1326_v20 = vor.u32 %v1325_v9, %v1242_v29  ;;  %v10596_v9 = vld [vmem:[#allocation2 + $0x78] sm:$0xff] }
 0x18f   : > { %v1701_v6 = vpop.permute.xlu1 %1700  ;;  %v2043_v45 = vsel %vm2023_vm11, %v1995_v2, %v1747_v32  ;;  %v1327_v0 = vrot.slane %v1252_v18, 1 }
 0x190   : > { %v653_v55 = vmax.f32 %v620_v59, 0.0  ;;  %2575 = vmatmul.bf16.gmra.mxu1 %v2043_v45  ;;  %v10534_v42 = vor.u32 %v940_v17, %v939_v28  ;;  %v1568_v59 = vor.u32 %v1566_v1, %v1565_v3  ;;  %v1361_v2 = vsel %vm9661_vm6, %v1326_v20, 0 }
 0x191   : > { %v1249_v45 = vshrl.u32 %v9252_v51, 16  ;;  %v1998_v28 = vsel %vm1974_vm10, %v969_v16, %v1701_v6  ;;  %v1570_v3 = vshrl.u32 %v10594_v43, 16 }
 0x192   : > { %v685_v13 = vpack.c.bf16 %v653_v55, %v653_v55 }
 0x193   : > { %v1328_v50 = vor.u32 %v1327_v0, %v1249_v45  ;;  %v1572_v20 = vrot.slane %v1570_v3, 7  ;;  %v970_v0 = vsel %vm9689_vm9, 0, %v10057_v31 }
 0x194   : > { %718 = vst.msk [vmem:[#allocation2 + $0x84] sm:$0xf] %vm334_vm3, %v685_v13  ;;  %1884 = vrot.lane.b32.xlu2 %v1360_v12, %s9548_s13  ;;  %1710 = vrot.lane.b32.xlu0 %v10281_v5, %s9543_s23  ;;  %v1251_v12 = vrot.slane %v1249_v45, 7 }
 0x195   : > { %1760 = vrot.lane.b32.xlu1 %v1042_v60, %s9544_s24 }
 0x196   : > { %v10551_v56 = vpop.permute.xlu2 %1702  ;;  %v1921_v48 = vpop.permute.xlu0 %1920 }
 0x197   : > { %v2199_v5 = vsel %vm2187_vm15, %v10436_v26, %v1921_v48  ;;  %v1795_v34 = vpop.permute.xlu1 %1794  ;;  %v10571_v26 = vpop.f32.mrf.mxu0  ;;  %v1254_v48 = vor.u32 %v1252_v18, %v1251_v12  ;;  %v1573_v18 = vshll.u32 %v10594_v43, 16 }
 0x198   : > { %8451 = vmatmul.msk.bf16.gmra.mxu0 %vm1974_vm10, %v1678_v47  ;;  %v2237_v57 = vsel %vm2220_vm0, %v2199_v5, %v10480_v39  ;;  %v2086_v29 = vsel %vm2072_vm12, %v1747_v32, %v1795_v34  ;;  %v1618_v39 = vsel %vm9689_vm9, 0, %v1568_v59 }
 0x199   : > { %2748 = vmatmul.bf16.gmra.mxu3 %v2237_v57  ;;  %v2119_v55 = vsel %vm2105_vm13, %v2086_v29, %v10474_v7  ;;  %v2546_v7 = vpop.f32.mrf.mxu1  ;;  %v1298_v57 = vsel %vm9689_vm9, 0, %v1254_v48  ;;  %v1575_v45 = vor.u32 %v1573_v18, %v1572_v20 }
 0x19b   : > { %v10622_v29 = vld [vmem:[#allocation2 + $0x80] sm:$0xff] }
 0x19c   : > { %1838 = vrot.lane.b32.xlu2 %v10430_v22, %s9545_s29  ;;  %1886 = vrot.lane.b32.xlu0 %v1361_v2, %s9548_s13  ;;  %v1640_v22 = vrot.slane %v1545_v63, 1  ;;  %v1362_v63 = vsel %vm9661_vm6, %v1328_v50, 0  ;;  %v1259_v2 = vshll.u32 %v10596_v9, 16  ;;  %v1577_v50 = vshrl.u32 %v10622_v29, 16 }
 0x19d   : > { %1934 = vrot.lane.b32.xlu1 %v1618_v39, %s9549_s14  ;;  %v10634_v39 = vld [vmem:[%s13618_s4] ss:$0 sm:$0xff] }
 0x19e   : > { %v1797_v11 = vpop.permute.xlu2 %1796  ;;  %v1875_v32 = vpop.permute.xlu0 %1874  ;;  %v1641_v61 = vor.u32 %v1640_v22, %v1542_v4  ;;  %v2001_v22 = vsel %vm1974_vm10, %v970_v0, %v10551_v56 }
 0x19f   : > { %v1749_v46 = vpop.permute.xlu1 %1748  ;;  %v2158_v13 = vsel %vm2138_vm14, %v2119_v55, %v1875_v32  ;;  %v10603_v6 = vpop.f32.mrf.mxu0 }
 0x1a0   : > { %v2046_v27 = vsel %vm2023_vm11, %v1998_v28, %v1749_v46  ;;  %2664 = vmatmul.bf16.gmra.mxu2 %v2158_v13  ;;  %v1679_v40 = vsel %vm9661_vm6, %v1641_v61, 0  ;;  %v2088_v16 = vsel %vm2072_vm12, %v1749_v46, %v1797_v11  ;;  %v1619_v61 = vsel %vm9689_vm9, 0, %v1575_v45  ;;  %v9358_v45 = vld [vmem:[%s13619_s5 + $0x60] sm:$0xff] }
 0x1a1   : > { %2580 = vmatmul.bf16.gmra.mxu1 %v2046_v27  ;;  %5087 = vmatpush.bf16.msrb.mxu2 %v9358_v45 }
 0x1a4   : > { %1966 = vrot.lane.b32.xlu2 %v10501_v58, %s9547_s12  ;;  %1840 = vrot.lane.b32.xlu0 %v9252_v51, %s9545_s29  ;;  %v1256_v51 = vshrl.u32 %v10596_v9, 16 }
 0x1a5   : > { %1888 = vrot.lane.b32.xlu1 %v1362_v63, %s9548_s13  ;;  %v1006_v63 = vrot.slane %v933_v25, 1 }
 0x1a6   : > { %v10608_v4 = vpop.permute.xlu2 %1750  ;;  %v1829_v60 = vpop.permute.xlu0 %1828  ;;  %v1258_v59 = vrot.slane %v1256_v51, 7 }
 0x1a7   : > { %v1923_v47 = vpop.permute.xlu1 %1922  ;;  %v2121_v28 = vsel %vm2105_vm13, %v2088_v16, %v1829_v60  ;;  %v10648_v31 = vpop.f32.mrf.mxu0  ;;  %v2049_v11 = vsel %vm2023_vm11, %v2001_v22, %v10608_v4  ;;  %v1007_v0 = vor.u32 %v1006_v63, %v930_v33 }
 0x1a8   : > { %8452 = vmatmul.msk.bf16.gmra.mxu0 %vm1974_vm10, %v1679_v40  ;;  %v2201_v5 = vsel %vm2187_vm15, %v1875_v32, %v1923_v47  ;;  %v1261_v27 = vor.u32 %v1259_v2, %v1258_v59  ;;  %v1579_v40 = vrot.slane %v1577_v50, 7  ;;  %v1580_v47 = vshll.u32 %v10622_v29, 16 }
 0x1a9   : > { %v2240_v34 = vsel %vm2220_vm0, %v2201_v5, %v10513_v54  ;;  %v2548_v54 = vpop.f32.mrf.mxu1 }
 0x1aa   : > { %2753 = vmatmul.bf16.gmra.mxu3 %v2240_v34  ;;  %v1299_v12 = vsel %vm9689_vm9, 0, %v1261_v27  ;;  %v1582_v16 = vor.u32 %v1580_v47, %v1579_v40  ;;  %v1644_v40 = vrot.slane %v1559_v44, 1 }
 0x1ac   : > { %1808 = vrot.lane.b32.xlu2 %v1298_v57, %s9546_s11  ;;  %1968 = vrot.lane.b32.xlu0 %v10594_v43, %s9547_s12 }
 0x1ad   : > { %1712 = vrot.lane.b32.xlu1 %v10343_v36, %s9543_s23  ;;  %v1642_v36 = vrot.slane %v1552_v21, 1  ;;  %v2547_v21 = vadd.f32 %v10634_v39, %v2546_v7  ;;  %v10666_v7 = vld [vmem:[#allocation2 + $0x80] sm:$0xff] }
 0x1ae   : > { %v1925_v32 = vpop.permute.xlu2 %1924  ;;  %v1957_v55 = vpop.permute.xlu0 %1956  ;;  %v1263_v22 = vshrl.u32 %v10666_v7, 16 }
 0x1af   : > { %v1877_v13 = vpop.permute.xlu1 %1876  ;;  %v1643_v56 = vor.u32 %v1642_v36, %v1549_v10  ;;  %v9350_v36 = vld [vmem:[%s13619_s5 + $0x20] sm:$0xff]  ;;  %v10696_v27 = vpop.f32.mrf.mxu0 }
 0x1b0   : > { %v2161_v46 = vsel %vm2138_vm14, %v2121_v28, %v1877_v13  ;;  %v2203_v34 = vsel %vm2187_vm15, %v1877_v13, %v1925_v32  ;;  %v9366_v32 = vld [vmem:[%s13619_s5 + $0xa0] sm:$0xff]  ;;  %v2549_v13 = vadd.f32 %v10634_v39, %v2548_v54  ;;  %4998 = vmatpush.bf16.msrb.mxu1 %v9350_v36  ;;  %v1265_v54 = vrot.slane %v1263_v22, 7 }
 0x1b1   : > { %2585 = vmatmul.bf16.gmra.mxu1 %v2049_v11  ;;  %2669 = vmatmul.bf16.gmra.mxu2 %v2161_v46  ;;  %v1680_v25 = vsel %vm9661_vm6, %v1643_v56, 0  ;;  %v2243_v33 = vsel %vm2220_vm0, %v2203_v34, %v1957_v55  ;;  %v1329_v11 = vrot.slane %v1259_v2, 1  ;;  %v10698_v46 = vld [vmem:[#allocation2 + $0x88] sm:$0xff]  ;;  %v1043_v56 = vsel %vm9661_vm6, %v1007_v0, 0 }
 0x1b2   : > { %5176 = vmatpush.bf16.msrb.mxu3 %v9366_v32  ;;  %v1008_v55 = vrot.slane %v940_v17, 1  ;;  %v1645_v32 = vor.u32 %v1644_v40, %v1556_v19 }
 0x1b3   : > { %v2635_v60 = vpop.f32.mrf.mxu2  ;;  %v1330_v17 = vor.u32 %v1329_v11, %v1256_v51 }
 0x1b4   : > { %1936 = vrot.lane.b32.xlu2 %v1619_v61, %s9549_s14  ;;  %1810 = vrot.lane.b32.xlu0 %v1299_v12, %s9546_s11  ;;  %v2636_v49 = vadd.f32 %v2635_v60, %v2547_v21  ;;  %v2724_v10 = vpop.f32.mrf.mxu3 }
 0x1b5   : > { %1842 = vrot.lane.b32.xlu1 %v10596_v9, %s9545_s29  ;;  %v2551_v48 = vpop.f32.mrf.mxu1 }
 0x1b6   : > { %v10673_v5 = vpop.permute.xlu2 %1878  ;;  %v2725_v20 = vadd.f32 %v2724_v10, %v2636_v49  ;;  %v10677_v57 = vpop.permute.xlu0 %1704  ;;  %v1266_v10 = vshll.u32 %v10666_v7, 16 }
 0x1b7   : > { %v1831_v59 = vpop.permute.xlu1 %1830  ;;  %v10741_v19 = vpop.f32.mrf.mxu0 }
 0x1b8   : > { %8453 = vmatmul.msk.bf16.gmra.mxu0 %vm1974_vm10, %v1680_v25  ;;  %v2814_v28 = vadd.f32 %v10571_v26, %v2725_v20  ;;  %v1620_v26 = vsel %vm9689_vm9, 0, %v1582_v16  ;;  %v1584_v25 = vshrl.u32 %v10698_v46, 16  ;;  %v1009_v16 = vor.u32 %v1008_v55, %v937_v37 }
 0x1b9   : > { %v1268_v45 = vor.u32 %v1266_v10, %v1265_v54  ;;  %v1331_v24 = vrot.slane %v1266_v10, 1  ;;  %v1681_v55 = vsel %vm9661_vm6, %v1645_v32, 0 }
 0x1ba   : > { %2758 = vmatmul.bf16.gmra.mxu3 %v2243_v33  ;;  %v2893_v21 = vmax.f32 %v2814_v28, 0.0  ;;  %v1363_v28 = vsel %vm9661_vm6, %v1330_v17, 0  ;;  %v1586_v37 = vrot.slane %v1584_v25, 7  ;;  %v1587_v33 = vshll.u32 %v10698_v46, 16 }
 0x1bb   : > { %v2637_v61 = vpop.f32.mrf.mxu2  ;;  %v1300_v11 = vsel %vm9689_vm9, 0, %v1268_v45 }
 0x1bc   : > { %1762 = vrot.lane.b32.xlu2 %v1043_v56, %s9544_s24  ;;  %1938 = vrot.lane.b32.xlu0 %v1620_v26, %s9549_s14  ;;  %v2925_v2 = vpack.c.bf16 %v2893_v21, %v2893_v21  ;;  %v2638_v12 = vadd.f32 %v2637_v61, %v2549_v13  ;;  %v2726_v63 = vpop.f32.mrf.mxu3  ;;  %v971_v26 = vsel %vm9689_vm9, 0, %v10106_v14  ;;  %v1589_v54 = vor.u32 %v1587_v33, %v1586_v37 }
 0x1bd   : > { %1970 = vrot.lane.b32.xlu1 %v10622_v29, %s9547_s12  ;;  %v2553_v60 = vpop.f32.mrf.mxu1  ;;  %v1332_v14 = vor.u32 %v1331_v24, %v1263_v22 }
 0x1be   : > { %v10714_v49 = vpop.permute.xlu2 %1832  ;;  %2958 = vst.msk [vmem:[#allocation3 + $0x8] sm:$0xf] %vm340_vm1, %v2925_v2  ;;  %v2727_v34 = vadd.f32 %v2726_v63, %v2638_v12  ;;  %v1799_v20 = vpop.permute.xlu0 %1798  ;;  %v2004_v2 = vsel %vm1974_vm10, %v971_v26, %v10677_v57  ;;  %v1621_v57 = vsel %vm9689_vm9, 0, %v1589_v54 }
 0x1bf   : > { %v10721_v0 = vpop.permute.xlu1 %1958  ;;  %v2090_v44 = vsel %vm2072_vm12, %v10608_v4, %v1799_v20  ;;  %v2552_v4 = vadd.f32 %v10634_v39, %v2551_v48  ;;  %v2554_v20 = vadd.f32 %v10634_v39, %v2553_v60  ;;  %v1646_v60 = vrot.slane %v1566_v1, 1 }
 0x1c0   : > { %v2816_v9 = vadd.f32 %v10603_v6, %v2727_v34  ;;  %v2123_v51 = vsel %vm2105_vm13, %v2090_v44, %v1831_v59  ;;  %v1044_v6 = vsel %vm9661_vm6, %v1009_v16, 0  ;;  %v1364_v44 = vsel %vm9661_vm6, %v1332_v14, 0 }
 0x1c1   : > { %v2164_v36 = vsel %vm2138_vm14, %v2123_v51, %v10673_v5  ;;  %v10776_v51 = vpop.f32.mrf.mxu0  ;;  %v972_v14 = vsel %vm9689_vm9, 0, %v10156_v41 }
 0x1c2   : > { %v2894_v13 = vmax.f32 %v2816_v9, 0.0  ;;  %2674 = vmatmul.bf16.gmra.mxu2 %v2164_v36 }
 0x1c4   : > { %v2640_v59 = vpop.f32.mrf.mxu2  ;;  %1890 = vrot.lane.b32.xlu2 %v1363_v28, %s9548_s13  ;;  %1764 = vrot.lane.b32.xlu0 %v1044_v6, %s9544_s24  ;;  %v2926_v21 = vpack.c.bf16 %v2894_v13, %v2894_v13 }
 0x1c5   : > { %v2641_v56 = vadd.f32 %v2640_v59, %v2552_v4  ;;  %1812 = vrot.lane.b32.xlu1 %v1300_v11, %s9546_s11  ;;  %v2729_v48 = vpop.f32.mrf.mxu3  ;;  %v10763_v17 = vpop.f32.mrf.mxu1 }
 0x1c6   : > { %v10753_v61 = vpop.permute.xlu2 %1960  ;;  %2959 = vst.msk [vmem:[#allocation3 + $0xc] sm:$0xf] %vm340_vm1, %v2926_v21  ;;  %v1753_v63 = vpop.permute.xlu0 %1752  ;;  %v10790_v21 = vld [vmem:[#allocation3] sm:$0xff] }
 0x1c7   : > { %v2730_v12 = vadd.f32 %v2729_v48, %v2641_v56  ;;  %v1707_v40 = vpop.permute.xlu1 %1706  ;;  %v2052_v10 = vsel %vm2023_vm11, %v2004_v2, %v1753_v63  ;;  %v1647_v48 = vor.u32 %v1646_v60, %v1563_v62  ;;  %v3106_v62 = vshll.u32 %v10790_v21, 16 }
 0x1c8   : > { %8454 = vmatmul.msk.bf16.gmra.mxu0 %vm1974_vm10, %v1681_v55  ;;  %2590 = vmatmul.bf16.gmra.mxu1 %v2052_v10 }
 0x1c9   : > { %v2819_v34 = vadd.f32 %v10648_v31, %v2730_v12  ;;  %v9357_v12 = vld [vmem:[%s13619_s5 + $0x58] sm:$0xff]  ;;  %v1682_v10 = vsel %vm9661_vm6, %v1647_v48, 0  ;;  %v3246_v60 = vrot.slane %v3106_v62, 1 }
 0x1ca   : > { %5088 = vmatpush.bf16.msrb.mxu2 %v9357_v12 }
 0x1cb   : > { %v2895_v16 = vmax.f32 %v2819_v34, 0.0 }
 0x1cc   : > { %v2642_v45 = vpop.f32.mrf.mxu2  ;;  %1714 = vrot.lane.b32.xlu2 %v10418_v8, %s9543_s23  ;;  %1892 = vrot.lane.b32.xlu0 %v1364_v44, %s9548_s13 }
 0x1cd   : > { %v2927_v22 = vpack.c.bf16 %v2895_v16, %v2895_v16  ;;  %v2643_v9 = vadd.f32 %v2642_v45, %v2554_v20  ;;  %1940 = vrot.lane.b32.xlu1 %v1621_v57, %s9549_s14  ;;  %v2731_v31 = vpop.f32.mrf.mxu3  ;;  %v9314_v36 = vld [vmem:[#allocation3 + $0x8] sm:$0xff]  ;;  %v10793_v56 = vpop.f32.mrf.mxu1  ;;  %v2007_v57 = vsel %vm1974_vm10, %v972_v14, %v1707_v40 }
 0x1ce   : > { %v10778_v32 = vpop.permute.xlu2 %1802  ;;  %v10782_v28 = vld [vmem:[#allocation3 + $0x8] sm:$0xff]  ;;  %v1927_v37 = vpop.permute.xlu0 %1926  ;;  %v3423_v6 = vshrl.u32 %v9314_v36, 16  ;;  %v3426_v24 = vshll.u32 %v9314_v36, 16 }
 0x1cf   : > { %2960 = vst.msk [vmem:[#allocation3 + $0x10] sm:$0xf] %vm340_vm1, %v2927_v22  ;;  %v2732_v8 = vadd.f32 %v2731_v31, %v2643_v9  ;;  %v1801_v4 = vpop.permute.xlu1 %1800  ;;  %v2205_v13 = vsel %vm2187_vm15, %v10673_v5, %v1927_v37  ;;  %v3110_v1 = vshrl.u32 %v10782_v28, 16  ;;  %v3113_v54 = vshll.u32 %v10782_v28, 16  ;;  %v10833_v22 = vpop.f32.mrf.mxu0 }
 0x1d0   : > { %v2246_v11 = vsel %vm2220_vm0, %v2205_v13, %v10721_v0  ;;  %v3566_v26 = vrot.slane %v3426_v24, 1  ;;  %v3425_v5 = vrot.slane %v3423_v6, 7  ;;  %v2092_v0 = vsel %vm2072_vm12, %v1753_v63, %v1801_v4  ;;  %v9365_v63 = vld [vmem:[%s13619_s5 + $0x98] sm:$0xff] }
 0x1d1   : > { %v2821_v59 = vadd.f32 %v10696_v27, %v2732_v8  ;;  %2763 = vmatmul.bf16.gmra.mxu3 %v2246_v11  ;;  %v3112_v27 = vrot.slane %v3110_v1, 7  ;;  %v2125_v44 = vsel %vm2105_vm13, %v2092_v0, %v10714_v49  ;;  %v3103_v31 = vshrl.u32 %v10790_v21, 16 }
 0x1d2   : > { %v10805_v2 = vor.u32 %v3566_v26, %v3423_v6  ;;  %v3428_v45 = vor.u32 %v3426_v24, %v3425_v5  ;;  %5177 = vmatpush.bf16.msrb.mxu3 %v9365_v63  ;;  %v1648_v8 = vrot.slane %v1573_v18, 1  ;;  %v2557_v5 = vadd.f32 %v10634_v39, %v10763_v17 }
 0x1d3   : > { %v2896_v55 = vmax.f32 %v2821_v59, 0.0  ;;  %v3247_v37 = vor.u32 %v3246_v60, %v3103_v31 }
 0x1d4   : > { %1844 = vrot.lane.b32.xlu2 %v10666_v7, %s9545_s29  ;;  %1716 = vrot.lane.b32.xlu0 %v10489_v38, %s9543_s23  ;;  %v9349_v38 = vld [vmem:[%s13619_s5 + $0x18] sm:$0xff]  ;;  %v10819_v7 = vor.u32 %v3113_v54, %v3112_v27  ;;  %v3550_v49 = vsel %vm9689_vm9, 0, %v3428_v45  ;;  %v1649_v18 = vor.u32 %v1648_v8, %v1570_v3 }
 0x1d5   : > { %v2928_v58 = vpack.c.bf16 %v2896_v55, %v2896_v55  ;;  %3951 = vrot.lane.b32.xlu1 %v10790_v21, %s9544_s24  ;;  %4999 = vmatpush.bf16.msrb.mxu1 %v9349_v38  ;;  %v2645_v40 = vpop.f32.mrf.mxu2  ;;  %v10842_v36 = vpop.f32.mrf.mxu1  ;;  %v3294_v0 = vsel %vm9661_vm6, %v3247_v37, 0  ;;  %v3248_v38 = vrot.slane %v3113_v54, 1  ;;  %v9393_v21 = vld [vmem:[%s13619_s5 + $0x178] sm:$0xff] }
 0x1d6   : > { %v10826_v34 = vpop.permute.xlu2 %1756  ;;  %v1881_v20 = vpop.permute.xlu0 %1880  ;;  %v2646_v14 = vadd.f32 %v2645_v40, %v2557_v5  ;;  %v973_v40 = vsel %vm9689_vm9, 0, %v10245_v15 }
 0x1d7   : > { %2961 = vst.msk [vmem:[#allocation3 + $0x14] sm:$0xf] %vm340_vm1, %v2928_v58  ;;  %v1755_v16 = vpop.permute.xlu1 %1754  ;;  %v2167_v9 = vsel %vm2138_vm14, %v2125_v44, %v1881_v20  ;;  %v10869_v12 = vpop.f32.mrf.mxu0 }
 0x1d8   : > { %8455 = vmatmul.msk.bf16.gmra.mxu0 %vm1974_vm10, %v1682_v10  ;;  %v2055_v41 = vsel %vm2023_vm11, %v2007_v57, %v1755_v16  ;;  %2679 = vmatmul.bf16.gmra.mxu2 %v2167_v9  ;;  %v1683_v9 = vsel %vm9661_vm6, %v1649_v18, 0 }
 0x1d9   : > { %2595 = vmatmul.bf16.gmra.mxu1 %v2055_v41 }
 0x1dc   : > { %1972 = vrot.lane.b32.xlu2 %v10698_v46, %s9547_s12  ;;  %4047 = vrot.lane.b32.xlu0 %v3550_v49, %s9549_s14  ;;  %v2094_v49 = vsel %vm2072_vm12, %v1755_v16, %v10778_v32 }
 0x1dd   : > { %3953 = vrot.lane.b32.xlu1 %v10782_v28, %s9544_s24  ;;  %v2647_v10 = vpop.f32.mrf.mxu2  ;;  %v10890_v8 = vpop.f32.mrf.mxu1 }
 0x1de   : > { %v10853_v4 = vpop.permute.xlu2 %1930  ;;  %v10855_v13 = vld [vmem:[#allocation3 + $0x10] sm:$0xff]  ;;  %v1835_v59 = vpop.permute.xlu0 %1834 }
 0x1df   : > { %v9315_v6 = vld [vmem:[#allocation3 + $0x10] sm:$0xff]  ;;  %v1929_v11 = vpop.permute.xlu1 %1928  ;;  %v3117_v58 = vshrl.u32 %v10855_v13, 16  ;;  %v3120_v17 = vshll.u32 %v10855_v13, 16  ;;  %v2127_v15 = vsel %vm2105_vm13, %v2094_v49, %v1835_v59 }
 0x1e0   : > { %v10857_v24 = vld [vmem:[#allocation3 + $0x10] sm:$0xff]  ;;  %v2207_v48 = vsel %vm2187_vm15, %v1881_v20, %v1929_v11  ;;  %v3430_v26 = vshrl.u32 %v9315_v6, 16  ;;  %v3433_v55 = vshll.u32 %v9315_v6, 16 }
 0x1e1   : > { %v2249_v27 = vsel %vm2220_vm0, %v2207_v48, %v10753_v61  ;;  %v13638_v43 = vshll.u32 %v10857_v24, 16  ;;  %v3119_v57 = vrot.slane %v3117_v58, 7  ;;  %v13639_v44 = vshrl.u32 %v10857_v24, 16 }
 0x1e2   : > { %2768 = vmatmul.bf16.gmra.mxu3 %v2249_v27  ;;  %v3432_v63 = vrot.slane %v3430_v26, 7  ;;  %v3568_v3 = vrot.slane %v3433_v55, 1 }
 0x1e3   : > { %v3887_v45 = vrot.slane %v13638_v43, 1  ;;  %v10886_v60 = vor.u32 %v3120_v17, %v3119_v57 }
 0x1e4   : > { %3999 = vrot.lane.b32.xlu2 %v3294_v0, %s9545_s29  ;;  %v2734_v61 = vpop.f32.mrf.mxu3  ;;  %v3435_v20 = vor.u32 %v3433_v55, %v3432_v63  ;;  %v10877_v41 = vor.u32 %v3568_v3, %v3430_v26  ;;  %v3250_v0 = vrot.slane %v3120_v17, 1  ;;  %v10912_v63 = vpop.f32.mrf.mxu0 }
 0x1e5   : > { %v2735_v54 = vadd.f32 %v2734_v61, %v2646_v14  ;;  %3955 = vrot.lane.b32.xlu1 %v10855_v13, %s9544_s24  ;;  %v3249_v13 = vor.u32 %v3248_v38, %v3110_v1  ;;  %v10898_v11 = vor.u32 %v3887_v45, %v13639_v44  ;;  %v2559_v1 = vadd.f32 %v10634_v39, %v10793_v56 }
 0x1e6   : > { %v1709_v37 = vpop.permute.xlu2 %1708  ;;  %v3551_v6 = vsel %vm9689_vm9, 0, %v3435_v20  ;;  %v1963_v16 = vpop.permute.xlu0 %1962  ;;  %v3251_v17 = vor.u32 %v3250_v0, %v3117_v58 }
 0x1e7   : > { %13658 = vst [vmem:[#allocation4_spill] sm:$0xff] %v10898_v11  ;;  %v2824_v48 = vadd.f32 %v10741_v19, %v2735_v54  ;;  %v2010_v32 = vsel %vm1974_vm10, %v973_v40, %v1709_v37  ;;  %v1883_v18 = vpop.permute.xlu1 %1882  ;;  %4049 = vrot.lane.b32.xlu0 %v3551_v6, %s9549_s14  ;;  %v2648_v19 = vadd.f32 %v2647_v10, %v2559_v1  ;;  %v3295_v27 = vsel %vm9661_vm6, %v3249_v13, 0  ;;  %v2566_v45 = vpop.f32.mrf.mxu1 }
 0x1e8   : > { %8456 = vmatmul.msk.bf16.gmra.mxu0 %vm1974_vm10, %v1683_v9  ;;  %v2170_v26 = vsel %vm2138_vm14, %v2127_v15, %v1883_v18  ;;  %v2058_v28 = vsel %vm2023_vm11, %v2010_v32, %v10826_v34  ;;  %v2209_v56 = vsel %vm2187_vm15, %v1883_v18, %v10853_v4  ;;  %v1650_v10 = vrot.slane %v1580_v47, 1  ;;  %v9356_v15 = vld [vmem:[%s13619_s5 + $0x50] sm:$0xff] }
 0x1e9   : > { %v2897_v55 = vmax.f32 %v2824_v48, 0.0  ;;  %2684 = vmatmul.bf16.gmra.mxu2 %v2170_v26  ;;  %2600 = vmatmul.bf16.gmra.mxu1 %v2058_v28  ;;  %v2252_v9 = vsel %vm2220_vm0, %v2209_v56, %v1963_v16  ;;  %v2562_v40 = vadd.f32 %v10634_v39, %v10842_v36  ;;  %v9364_v48 = vld [vmem:[%s13619_s5 + $0x90] sm:$0xff]  ;;  %v2564_v1 = vadd.f32 %v10634_v39, %v10890_v8 }
 0x1ea   : > { %v1651_v4 = vor.u32 %v1650_v10, %v1577_v50  ;;  %v9348_v32 = vld [vmem:[%s13619_s5 + $0x10] sm:$0xff]  ;;  %5089 = vmatpush.bf16.msrb.mxu2 %v9356_v15  ;;  %5178 = vmatpush.bf16.msrb.mxu3 %v9364_v48 }
 0x1eb   : > { %v2929_v59 = vpack.c.bf16 %v2897_v55, %v2897_v55  ;;  %v2650_v5 = vpop.f32.mrf.mxu2  ;;  %5000 = vmatpush.bf16.msrb.mxu1 %v9348_v32 }
 0x1ec   : > { %4001 = vrot.lane.b32.xlu2 %v3295_v27, %s9545_s29  ;;  %v2736_v38 = vpop.f32.mrf.mxu3  ;;  %v2651_v37 = vadd.f32 %v2650_v5, %v2562_v40  ;;  %v10933_v13 = vpop.f32.mrf.mxu0  ;;  %v1684_v29 = vsel %vm9661_vm6, %v1651_v4, 0 }
 0x1ed   : > { %2962 = vst.msk [vmem:[#allocation3 + $0x18] sm:$0xf] %vm340_vm1, %v2929_v59  ;;  %v2737_v3 = vadd.f32 %v2736_v38, %v2648_v19 }
 0x1ee   : > { %v1885_v14 = vpop.permute.xlu2 %1884  ;;  %v1805_v61 = vpop.permute.xlu0 %1804 }
 0x1ef   : > { %v2826_v57 = vadd.f32 %v10776_v51, %v2737_v3  ;;  %v1837_v20 = vpop.permute.xlu1 %1836  ;;  %v2096_v49 = vsel %vm2072_vm12, %v10826_v34, %v1805_v61  ;;  %v3296_v51 = vsel %vm9661_vm6, %v3251_v17, 0  ;;  %v2568_v55 = vpop.f32.mrf.mxu1 }
 0x1f0   : > { %v2129_v6 = vsel %vm2105_vm13, %v2096_v49, %v1837_v20 }
 0x1f1   : > { %v2898_v54 = vmax.f32 %v2826_v57, 0.0  ;;  %v2173_v28 = vsel %vm2138_vm14, %v2129_v6, %v1885_v14  ;;  %v2567_v6 = vadd.f32 %v10634_v39, %v2566_v45 }
 0x1f2   : > { %2773 = vmatmul.bf16.gmra.mxu3 %v2252_v9 }
 0x1f3   : > { %v2930_v47 = vpack.c.bf16 %v2898_v54, %v2898_v54  ;;  %v2652_v58 = vpop.f32.mrf.mxu2 }
 0x1f4   : > { %4003 = vrot.lane.b32.xlu2 %v3296_v51, %s9545_s29  ;;  %v2653_v59 = vadd.f32 %v2652_v58, %v2564_v1  ;;  %v10962_v40 = vpop.f32.mrf.mxu0 }
 0x1f5   : > { %2963 = vst.msk [vmem:[#allocation3 + $0x1c] sm:$0xf] %vm340_vm1, %v2930_v47  ;;  %v2739_v36 = vpop.f32.mrf.mxu3 }
 0x1f6   : > { %v2740_v34 = vadd.f32 %v2739_v36, %v2651_v37  ;;  %v10937_v50 = vpop.permute.xlu2 %1838  ;;  %v10949_v16 = vpop.permute.xlu0 %1758 }
 0x1f7   : > { %v1965_v18 = vpop.permute.xlu1 %1964 }
 0x1f8   : > { %8457 = vmatmul.msk.bf16.gmra.mxu0 %vm1974_vm10, %v1684_v29  ;;  %v2829_v26 = vadd.f32 %v10833_v22, %v2740_v34 }
 0x1f9   : > { %2689 = vmatmul.bf16.gmra.mxu2 %v2173_v28 }
 0x1fa   : > { %v2899_v19 = vmax.f32 %v2829_v26, 0.0 }
 0x1fc   : > { %v2931_v5 = vpack.c.bf16 %v2899_v19, %v2899_v19  ;;  %v9301_v27 = vld [vmem:[#allocation3 + $0x18] sm:$0xff]  ;;  %v2655_v22 = vpop.f32.mrf.mxu2 }
 0x1fd   : > { %v9316_v0 = vld [vmem:[#allocation3 + $0x18] sm:$0xff]  ;;  %v2741_v3 = vpop.f32.mrf.mxu3  ;;  %3957 = vrot.lane.b32.xlu1 %v9301_v27, %s9544_s24  ;;  %v3124_v8 = vshrl.u32 %v9301_v27, 16  ;;  %v3127_v54 = vshll.u32 %v9301_v27, 16  ;;  %v2656_v26 = vadd.f32 %v2655_v22, %v2567_v6 }
 0x1fe   : > { %v10955_v38 = vld [vmem:[#allocation3 + $0x18] sm:$0xff]  ;;  %2964 = vst.msk [vmem:[#allocation3 + $0x20] sm:$0xf] %vm340_vm1, %v2931_v5  ;;  %v2742_v56 = vadd.f32 %v2741_v3, %v2653_v59  ;;  %v10958_v10 = vpop.permute.xlu2 %1966  ;;  %v3437_v57 = vshrl.u32 %v9316_v0, 16  ;;  %v3440_v61 = vshll.u32 %v9316_v0, 16  ;;  %v1933_v20 = vpop.permute.xlu0 %1932  ;;  %v974_v0 = vsel %vm9689_vm9, 0, %v10313_v30 }
 0x1ff   : > { %v1807_v17 = vpop.permute.xlu1 %1806  ;;  %v13634_v9 = vshll.u32 %v10955_v38, 16  ;;  %v2211_v4 = vsel %vm2187_vm15, %v1885_v14, %v1933_v20  ;;  %v3126_v37 = vrot.slane %v3124_v8, 7  ;;  %v3252_v58 = vrot.slane %v3127_v54, 1  ;;  %v10973_v14 = vpop.f32.mrf.mxu1 }
 0x200   : > { %v2831_v49 = vadd.f32 %v10869_v12, %v2742_v56  ;;  %v3439_v47 = vrot.slane %v3437_v57, 7  ;;  %v2255_v51 = vsel %vm2220_vm0, %v2211_v4, %v1965_v18  ;;  %v3570_v29 = vrot.slane %v3440_v61, 1  ;;  %v10999_v20 = vpop.f32.mrf.mxu0 }
 0x201   : > { %v3253_v15 = vor.u32 %v3252_v58, %v3124_v8  ;;  %v10968_v48 = vor.u32 %v3127_v54, %v3126_v37  ;;  %v13635_v32 = vshrl.u32 %v10955_v38, 16  ;;  %v3889_v12 = vrot.slane %v13634_v9, 1 }
 0x202   : > { %v2900_v36 = vmax.f32 %v2831_v49, 0.0  ;;  %2778 = vmatmul.bf16.gmra.mxu3 %v2255_v51  ;;  %v3442_v34 = vor.u32 %v3440_v61, %v3439_v47  ;;  %v10977_v45 = vor.u32 %v3570_v29, %v3437_v57  ;;  %v2569_v54 = vadd.f32 %v10634_v39, %v2568_v55 }
 0x203   : > { %v3297_v19 = vsel %vm9661_vm6, %v3253_v15, 0  ;;  %v10984_v59 = vor.u32 %v3889_v12, %v13635_v32  ;;  %v2098_v30 = vsel %vm2072_vm12, %v10949_v16, %v1807_v17 }
 0x204   : > { %v2932_v18 = vpack.c.bf16 %v2900_v36, %v2900_v36  ;;  %v3552_v28 = vsel %vm9689_vm9, 0, %v3442_v34  ;;  %4005 = vrot.lane.b32.xlu2 %v3297_v19, %s9545_s29  ;;  %v2657_v61 = vpop.f32.mrf.mxu2 }
 0x205   : > { %v2744_v1 = vpop.f32.mrf.mxu3  ;;  %4051 = vrot.lane.b32.xlu0 %v3552_v28, %s9549_s14  ;;  %13659 = vst [vmem:[#allocation5_spill] sm:$0xff] %v10984_v59  ;;  %v2658_v4 = vadd.f32 %v2657_v61, %v2569_v54 }
 0x206   : > { %2965 = vst.msk [vmem:[#allocation3 + $0x24] sm:$0xf] %vm340_vm1, %v2932_v18  ;;  %v2745_v5 = vadd.f32 %v2744_v1, %v2656_v26  ;;  %v10987_v27 = vpop.permute.xlu2 %1808  ;;  %v1711_v3 = vpop.permute.xlu0 %1710 }
 0x207   : > { %v10993_v22 = vpop.permute.xlu1 %1760  ;;  %v2013_v57 = vsel %vm1974_vm10, %v974_v0, %v1711_v3  ;;  %v11004_v58 = vpop.f32.mrf.mxu1 }
 0x208   : > { %v2834_v56 = vadd.f32 %v10912_v63, %v2745_v5  ;;  %v2061_v8 = vsel %vm2023_vm11, %v2013_v57, %v10949_v16  ;;  %v2131_v16 = vsel %vm2105_vm13, %v2098_v30, %v10937_v50 }
 0x209   : > { %2605 = vmatmul.bf16.gmra.mxu1 %v2061_v8 }
 0x20a   : > { %v2901_v49 = vmax.f32 %v2834_v56, 0.0 }
 0x20c   : > { %v2933_v47 = vpack.c.bf16 %v2901_v49, %v2901_v49  ;;  %v11021_v49 = vpop.f32.mrf.mxu0 }
 0x20d   : > { %v2746_v51 = vpop.f32.mrf.mxu3  ;;  %v9302_v37 = vld [vmem:[#allocation3 + $0x20] sm:$0xff]  ;;  %v2660_v19 = vpop.f32.mrf.mxu2 }
 0x20e   : > { %v9317_v63 = vld [vmem:[#allocation3 + $0x20] sm:$0xff]  ;;  %2966 = vst.msk [vmem:[#allocation3 + $0x28] sm:$0xf] %vm340_vm1, %v2933_v47  ;;  %v2747_v6 = vadd.f32 %v2746_v51, %v2658_v4  ;;  %v1937_v36 = vpop.permute.xlu2 %1936  ;;  %v1887_v29 = vpop.permute.xlu0 %1886  ;;  %3959 = vrot.lane.b32.xlu1 %v9302_v37, %s9544_s24  ;;  %v3131_v12 = vshrl.u32 %v9302_v37, 16  ;;  %v3134_v1 = vshll.u32 %v9302_v37, 16 }
 0x20f   : > { %v11007_v34 = vld [vmem:[#allocation3 + $0x20] sm:$0xff]  ;;  %v1935_v55 = vpop.permute.xlu1 %1934  ;;  %v3444_v17 = vshrl.u32 %v9317_v63, 16  ;;  %v3447_v15 = vshll.u32 %v9317_v63, 16  ;;  %v2176_v28 = vsel %vm2138_vm14, %v2131_v16, %v1887_v29  ;;  %v11030_v37 = vpop.f32.mrf.mxu1  ;;  %v9347_v16 = vld [vmem:[%s13619_s5 + $0x8] sm:$0xff] }
 0x210   : > { %v2836_v26 = vadd.f32 %v10933_v13, %v2747_v6  ;;  %v2213_v18 = vsel %vm2187_vm15, %v1887_v29, %v1935_v55  ;;  %2694 = vmatmul.bf16.gmra.mxu2 %v2176_v28  ;;  %v3133_v3 = vrot.slane %v3131_v12, 7  ;;  %v3254_v50 = vrot.slane %v3134_v1, 1  ;;  %v9355_v29 = vld [vmem:[%s13619_s5 + $0x48] sm:$0xff]  ;;  %5001 = vmatpush.bf16.msrb.mxu1 %v9347_v16 }
 0x211   : > { %v2258_v5 = vsel %vm2220_vm0, %v2213_v18, %v10958_v10  ;;  %v3446_v0 = vrot.slane %v3444_v17, 7  ;;  %v13630_v57 = vshll.u32 %v11007_v34, 16  ;;  %v3572_v61 = vrot.slane %v3447_v15, 1  ;;  %v9363_v55 = vld [vmem:[%s13619_s5 + $0x88] sm:$0xff]  ;;  %5090 = vmatpush.bf16.msrb.mxu2 %v9355_v29 }
 0x212   : > { %v2902_v56 = vmax.f32 %v2836_v26, 0.0  ;;  %2783 = vmatmul.bf16.gmra.mxu3 %v2258_v5  ;;  %v11018_v13 = vor.u32 %v3134_v1, %v3133_v3  ;;  %v13633_v54 = vshrl.u32 %v11007_v34, 16  ;;  %v3255_v4 = vor.u32 %v3254_v50, %v3131_v12 }
 0x213   : > { %v3449_v8 = vor.u32 %v3447_v15, %v3446_v0  ;;  %v11023_v47 = vor.u32 %v3572_v61, %v3444_v17  ;;  %v3891_v10 = vrot.slane %v13630_v57, 1  ;;  %5179 = vmatpush.bf16.msrb.mxu3 %v9363_v55  ;;  %v2572_v26 = vadd.f32 %v10634_v39, %v10973_v14 }
 0x214   : > { %v2934_v30 = vpack.c.bf16 %v2902_v56, %v2902_v56  ;;  %v3298_v6 = vsel %vm9661_vm6, %v3255_v4, 0  ;;  %v2100_v18 = vsel %vm2072_vm12, %v10993_v22, %v10987_v27  ;;  %v11057_v61 = vpop.f32.mrf.mxu0  ;;  %v975_v14 = vsel %vm9689_vm9, 0, %v10373_v53 }
 0x215   : > { %v3553_v51 = vsel %vm9689_vm9, 0, %v3449_v8  ;;  %v11048_v17 = vor.u32 %v3891_v10, %v13633_v54  ;;  %4007 = vrot.lane.b32.xlu2 %v3298_v6, %s9545_s29  ;;  %v2661_v28 = vadd.f32 %v2660_v19, %v2572_v26  ;;  %v2662_v1 = vpop.f32.mrf.mxu2  ;;  %v2574_v53 = vadd.f32 %v10634_v39, %v11004_v58 }
 0x216   : > { %2967 = vst.msk [vmem:[#allocation3 + $0x2c] sm:$0xf] %vm340_vm1, %v2934_v30  ;;  %v11032_v63 = vpop.permute.xlu2 %1762  ;;  %4053 = vrot.lane.b32.xlu0 %v3553_v51, %s9549_s14  ;;  %v1841_v15 = vpop.permute.xlu0 %1840 }
 0x217   : > { %13660 = vst [vmem:[#allocation6_spill] sm:$0xff] %v11048_v17  ;;  %v1889_v12 = vpop.permute.xlu1 %1888  ;;  %v2133_v5 = vsel %vm2105_vm13, %v2100_v18, %v1841_v15  ;;  %v11072_v15 = vpop.f32.mrf.mxu1 }
 0x218   : > { %v2215_v8 = vsel %vm2187_vm15, %v1889_v12, %v1937_v36  ;;  %v2179_v10 = vsel %vm2138_vm14, %v2133_v5, %v1889_v12 }
 0x21c   : > { %v2749_v0 = vpop.f32.mrf.mxu3 }
 0x21d   : > { %v2750_v3 = vadd.f32 %v2749_v0, %v2661_v28  ;;  %v9303_v56 = vld [vmem:[#allocation3 + $0x28] sm:$0xff] }
 0x21e   : > { %v9318_v50 = vld [vmem:[#allocation3 + $0x28] sm:$0xff]  ;;  %v1969_v19 = vpop.permute.xlu0 %1968  ;;  %3961 = vrot.lane.b32.xlu1 %v9303_v56, %s9544_s24  ;;  %v3138_v55 = vshrl.u32 %v9303_v56, 16  ;;  %v3141_v16 = vshll.u32 %v9303_v56, 16  ;;  %v1891_v26 = vpop.permute.xlu2 %1890  ;;  %v2663_v56 = vadd.f32 %v2662_v1, %v2574_v53 }
 0x21f   : > { %v11063_v30 = vld [vmem:[#allocation3 + $0x28] sm:$0xff]  ;;  %v2839_v27 = vadd.f32 %v10962_v40, %v2750_v3  ;;  %v1713_v4 = vpop.permute.xlu1 %1712  ;;  %v3451_v51 = vshrl.u32 %v9318_v50, 16  ;;  %v3454_v6 = vshll.u32 %v9318_v50, 16  ;;  %v2261_v36 = vsel %vm2220_vm0, %v2215_v8, %v1969_v19  ;;  %v2581_v46 = vpop.f32.mrf.mxu1 }
 0x220   : > { %v2016_v29 = vsel %vm1974_vm10, %v975_v14, %v1713_v4  ;;  %2699 = vmatmul.bf16.gmra.mxu2 %v2179_v10  ;;  %v3140_v28 = vrot.slane %v3138_v55, 7  ;;  %v3256_v5 = vrot.slane %v3141_v16, 1  ;;  %v13628_v0 = vshll.u32 %v11063_v30, 16 }
 0x221   : > { %v2903_v40 = vmax.f32 %v2839_v27, 0.0  ;;  %v2064_v18 = vsel %vm2023_vm11, %v2016_v29, %v10993_v22  ;;  %v3453_v12 = vrot.slane %v3451_v51, 7  ;;  %v3574_v3 = vrot.slane %v3454_v6, 1 }
 0x222   : > { %2610 = vmatmul.bf16.gmra.mxu1 %v2064_v18  ;;  %2788 = vmatmul.bf16.gmra.mxu3 %v2261_v36  ;;  %v3257_v19 = vor.u32 %v3256_v5, %v3138_v55  ;;  %v11077_v27 = vor.u32 %v3141_v16, %v3140_v28  ;;  %v1652_v29 = vrot.slane %v1587_v33, 1 }
 0x223   : > { %v2935_v50 = vpack.c.bf16 %v2903_v40, %v2903_v40  ;;  %v2665_v8 = vpop.f32.mrf.mxu2  ;;  %v3456_v58 = vor.u32 %v3454_v6, %v3453_v12  ;;  %v11079_v4 = vor.u32 %v3574_v3, %v3451_v51  ;;  %v13629_v6 = vshrl.u32 %v11063_v30, 16  ;;  %v11100_v40 = vpop.f32.mrf.mxu0 }
 0x224   : > { %v2751_v14 = vpop.f32.mrf.mxu3  ;;  %v3299_v1 = vsel %vm9661_vm6, %v3257_v19, 0  ;;  %v3893_v51 = vrot.slane %v13628_v0, 1  ;;  %v1653_v53 = vor.u32 %v1652_v29, %v1584_v25 }
 0x225   : > { %2968 = vst.msk [vmem:[#allocation3 + $0x30] sm:$0xf] %vm340_vm1, %v2935_v50  ;;  %v2752_v22 = vadd.f32 %v2751_v14, %v2663_v56  ;;  %v3554_v10 = vsel %vm9689_vm9, 0, %v3456_v58  ;;  %4009 = vrot.lane.b32.xlu2 %v3299_v1, %s9545_s29  ;;  %v976_v50 = vsel %vm9689_vm9, 0, %v10453_v35 }
 0x226   : > { %4055 = vrot.lane.b32.xlu0 %v3554_v10, %s9549_s14  ;;  %v1811_v55 = vpop.permute.xlu0 %1810  ;;  %v11098_v33 = vor.u32 %v3893_v51, %v13629_v6  ;;  %v1685_v12 = vsel %vm9661_vm6, %v1653_v53, 0  ;;  %v1715_v5 = vpop.permute.xlu2 %1714 }
 0x227   : > { %v2841_v36 = vadd.f32 %v10999_v20, %v2752_v22  ;;  %v1843_v16 = vpop.permute.xlu1 %1842  ;;  %v2577_v20 = vadd.f32 %v10634_v39, %v11030_v37  ;;  %v2102_v28 = vsel %vm2072_vm12, %v11032_v63, %v1811_v55  ;;  %8458 = vmatmul.msk.bf16.gmra.mxu0 %vm1974_vm10, %v1685_v12  ;;  %v2019_v37 = vsel %vm1974_vm10, %v976_v50, %v1715_v5  ;;  %v9354_v22 = vld [vmem:[%s13619_s5 + $0x40] sm:$0xff] }
 0x228   : > { %13661 = vst [vmem:[#allocation7_spill] sm:$0xff] %v11098_v33  ;;  %v2135_v58 = vsel %vm2105_vm13, %v2102_v28, %v1843_v16  ;;  %5091 = vmatpush.bf16.msrb.mxu2 %v9354_v22  ;;  %v2579_v16 = vadd.f32 %v10634_v39, %v11072_v15  ;;  %v11530_v33 = vld [vmem:[%s13620_s6] ss:$0 sm:$0xff] }
 0x229   : > { %v2904_v18 = vmax.f32 %v2841_v36, 0.0  ;;  %v2666_v3 = vadd.f32 %v2665_v8, %v2577_v20  ;;  %v9362_v8 = vld [vmem:[%s13619_s5 + $0x80] sm:$0xff]  ;;  %v2182_v51 = vsel %vm2138_vm14, %v2135_v58, %v1891_v26  ;;  %v2067_v36 = vsel %vm2023_vm11, %v2019_v37, %v11032_v63 }
 0x22a   : > { %5180 = vmatpush.bf16.msrb.mxu3 %v9362_v8 }
 0x22b   : > { %v2936_v25 = vpack.c.bf16 %v2904_v18, %v2904_v18  ;;  %v2667_v56 = vpop.f32.mrf.mxu2  ;;  %v11132_v18 = vpop.f32.mrf.mxu0 }
 0x22c   : > { %5440 = vmatpush.bf16.msra.mxu2 %v9393_v21 }
 0x22d   : > { %2969 = vst.msk [vmem:[#allocation3 + $0x34] sm:$0xf] %vm340_vm1, %v2936_v25  ;;  %v2754_v14 = vpop.f32.mrf.mxu3  ;;  %v2583_v25 = vpop.f32.mrf.mxu1 }
 0x22e   : > { %v2755_v19 = vadd.f32 %v2754_v14, %v2666_v3  ;;  %v1939_v10 = vpop.permute.xlu0 %1938  ;;  %v1845_v39 = vpop.permute.xlu2 %1844 }
 0x22f   : > { %v1971_v29 = vpop.permute.xlu1 %1970  ;;  %v2217_v35 = vsel %vm2187_vm15, %v1891_v26, %v1939_v10  ;;  %v2668_v26 = vadd.f32 %v2667_v56, %v2579_v16 }
 0x230   : > { %v2844_v1 = vadd.f32 %v11021_v49, %v2755_v19  ;;  %2704 = vmatmul.bf16.gmra.mxu2 %v2182_v51  ;;  %v2264_v55 = vsel %vm2220_vm0, %v2217_v35, %v1971_v29  ;;  %v9346_v49 = vld [vmem:[%s13619_s5] sm:$0xff] }
 0x231   : > { %5002 = vmatpush.bf16.msrb.mxu1 %v9346_v49 }
 0x232   : > { %v2905_v53 = vmax.f32 %v2844_v1, 0.0  ;;  %2615 = vmatmul.bf16.gmra.mxu1 %v2067_v36  ;;  %2793 = vmatmul.bf16.gmra.mxu3 %v2264_v55  ;;  %v11145_v1 = vld [vmem:[%s13618_s4] ss:$0 sm:$0xff] }
 0x233   : > { %v2582_v35 = vadd.f32 %v11145_v1, %v2581_v46 }
 0x234   : > { %v2937_v12 = vpack.c.bf16 %v2905_v53, %v2905_v53  ;;  %v9304_v20 = vld [vmem:[#allocation3 + $0x30] sm:$0xff]  ;;  %v2670_v15 = vpop.f32.mrf.mxu2 }
 0x235   : > { %v9319_v28 = vld [vmem:[#allocation3 + $0x30] sm:$0xff]  ;;  %v2756_v5 = vpop.f32.mrf.mxu3  ;;  %3963 = vrot.lane.b32.xlu1 %v9304_v20, %s9544_s24  ;;  %v3145_v14 = vshrl.u32 %v9304_v20, 16  ;;  %v3148_v19 = vshll.u32 %v9304_v20, 16  ;;  %v2671_v49 = vadd.f32 %v2670_v15, %v2582_v35 }
 0x236   : > { %v11134_v63 = vld [vmem:[#allocation3 + $0x30] sm:$0xff]  ;;  %2970 = vst.msk [vmem:[#allocation3 + $0x38] sm:$0xf] %vm340_vm1, %v2937_v12  ;;  %v2757_v3 = vadd.f32 %v2756_v5, %v2668_v26  ;;  %v3458_v50 = vshrl.u32 %v9319_v28, 16  ;;  %v3461_v58 = vshll.u32 %v9319_v28, 16  ;;  %v11138_v37 = vpop.permute.xlu0 %1764 }
 0x237   : > { %v1813_v56 = vpop.permute.xlu1 %1812  ;;  %v13626_v22 = vshll.u32 %v11134_v63, 16  ;;  %v3147_v8 = vrot.slane %v3145_v14, 7  ;;  %v3258_v51 = vrot.slane %v3148_v19, 1  ;;  %v13627_v12 = vshrl.u32 %v11134_v63, 16 }
 0x238   : > { %v2846_v10 = vadd.f32 %v11057_v61, %v2757_v3  ;;  %v3460_v29 = vrot.slane %v3458_v50, 7  ;;  %v3576_v53 = vrot.slane %v3461_v58, 1  ;;  %v2104_v28 = vsel %vm2072_vm12, %v11138_v37, %v1813_v56  ;;  %v11159_v3 = vpop.f32.mrf.mxu0 }
 0x239   : > { %v11148_v16 = vor.u32 %v3148_v19, %v3147_v8  ;;  %v3259_v26 = vor.u32 %v3258_v51, %v3145_v14  ;;  %v3895_v61 = vrot.slane %v13626_v22, 1  ;;  %v1973_v8 = vpop.permute.xlu2 %1972 }
 0x23a   : > { %v2906_v36 = vmax.f32 %v2846_v10, 0.0  ;;  %v3463_v55 = vor.u32 %v3461_v58, %v3460_v29  ;;  %v11157_v5 = vor.u32 %v3576_v53, %v3458_v50  ;;  %v2137_v10 = vsel %vm2105_vm13, %v2104_v28, %v1845_v39  ;;  %v2586_v29 = vpop.f32.mrf.mxu1 }
 0x23b   : > { %v3300_v15 = vsel %vm9661_vm6, %v3259_v26, 0  ;;  %v11166_v58 = vor.u32 %v3895_v61, %v13627_v12 }
 0x23c   : > { %v2938_v20 = vpack.c.bf16 %v2906_v36, %v2906_v36  ;;  %v3555_v46 = vsel %vm9689_vm9, 0, %v3463_v55  ;;  %4011 = vrot.lane.b32.xlu2 %v3300_v15, %s9545_s29  ;;  %v2672_v55 = vpop.f32.mrf.mxu2  ;;  %v977_v15 = vsel %vm9689_vm9, 0, %v10534_v42 }
 0x23d   : > { %v2759_v19 = vpop.f32.mrf.mxu3  ;;  %4057 = vrot.lane.b32.xlu0 %v3555_v46, %s9549_s14  ;;  %13662 = vst [vmem:[#allocation8_spill] sm:$0xff] %v11166_v58 }
 0x23e   : > { %2971 = vst.msk [vmem:[#allocation3 + $0x3c] sm:$0xf] %vm340_vm1, %v2938_v20  ;;  %v2760_v14 = vadd.f32 %v2759_v19, %v2671_v49  ;;  %v1893_v56 = vpop.permute.xlu0 %1892  ;;  %v2584_v49 = vadd.f32 %v11145_v1, %v2583_v25 }
 0x23f   : > { %v1941_v50 = vpop.permute.xlu1 %1940  ;;  %v2185_v36 = vsel %vm2138_vm14, %v2137_v10, %v1893_v56 }
 0x240   : > { %v2849_v35 = vadd.f32 %v11100_v40, %v2760_v14  ;;  %v2219_v51 = vsel %vm2187_vm15, %v1893_v56, %v1941_v50  ;;  %2709 = vmatmul.bf16.gmra.mxu2 %v2185_v36  ;;  %v2673_v61 = vadd.f32 %v2672_v55, %v2584_v49  ;;  %v11177_v19 = vpop.f32.mrf.mxu0 }
 0x241   : > { %v2267_v53 = vsel %vm2220_vm0, %v2219_v51, %v1973_v8 }
 0x242   : > { %v2907_v26 = vmax.f32 %v2849_v35, 0.0  ;;  %2798 = vmatmul.bf16.gmra.mxu3 %v2267_v53  ;;  %v2588_v53 = vpop.f32.mrf.mxu1 }
 0x244   : > { %v2939_v20 = vpack.c.bf16 %v2907_v26, %v2907_v26 }
 0x245   : > { %v2761_v46 = vpop.f32.mrf.mxu3  ;;  %v9305_v39 = vld [vmem:[#allocation3 + $0x38] sm:$0xff]  ;;  %v2675_v42 = vpop.f32.mrf.mxu2 }
 0x246   : > { %v9320_v28 = vld [vmem:[#allocation3 + $0x38] sm:$0xff]  ;;  %2972 = vst.msk [vmem:[#allocation3 + $0x40] sm:$0xf] %vm340_vm1, %v2939_v20  ;;  %v2762_v40 = vadd.f32 %v2761_v46, %v2673_v61  ;;  %v1717_v14 = vpop.permute.xlu0 %1716  ;;  %3965 = vrot.lane.b32.xlu1 %v9305_v39, %s9544_s24  ;;  %v3152_v35 = vshrl.u32 %v9305_v39, 16  ;;  %v3155_v51 = vshll.u32 %v9305_v39, 16 }
 0x247   : > { %v3465_v25 = vshrl.u32 %v9320_v28, 16  ;;  %v3468_v56 = vshll.u32 %v9320_v28, 16  ;;  %v11183_v50 = vld [vmem:[#allocation3 + $0x38] sm:$0xff]  ;;  %v2022_v8 = vsel %vm1974_vm10, %v977_v15, %v1717_v14  ;;  %v4000_v14 = vpop.permute.xlu2 %3999 }
 0x248   : > { %v2851_v10 = vadd.f32 %v11132_v18, %v2762_v40  ;;  %v2070_v36 = vsel %vm2023_vm11, %v2022_v8, %v11138_v37  ;;  %v3154_v26 = vrot.slane %v3152_v35, 7  ;;  %v3260_v61 = vrot.slane %v3155_v51, 1  ;;  %v3952_v37 = vpop.permute.xlu1 %3951 }
 0x249   : > { %v3467_v55 = vrot.slane %v3465_v25, 7  ;;  %2620 = vmatmul.bf16.gmra.mxu1 %v2070_v36  ;;  %v13624_v46 = vshll.u32 %v11183_v50, 16  ;;  %v3578_v28 = vrot.slane %v3468_v56, 1  ;;  %v3105_v18 = vrot.slane %v3103_v31, 7 }
 0x24a   : > { %v2908_v49 = vmax.f32 %v2851_v10, 0.0  ;;  %v3261_v15 = vor.u32 %v3260_v61, %v3152_v35  ;;  %v11192_v39 = vor.u32 %v3155_v51, %v3154_v26  ;;  %v13625_v8 = vshrl.u32 %v11183_v50, 16  ;;  %v11214_v26 = vpop.f32.mrf.mxu0 }
 0x24b   : > { %v3470_v20 = vor.u32 %v3468_v56, %v3467_v55  ;;  %v11197_v36 = vor.u32 %v3578_v28, %v3465_v25  ;;  %v3897_v55 = vrot.slane %v13624_v46, 1  ;;  %v4272_v56 = vsel %vm2105_vm13, %v3952_v37, %v4000_v14 }
 0x24c   : > { %v2940_v40 = vpack.c.bf16 %v2908_v49, %v2908_v49  ;;  %v3301_v31 = vsel %vm9661_vm6, %v3261_v15, 0  ;;  %v3108_v49 = vor.u32 %v3106_v62, %v3105_v18  ;;  %v2587_v61 = vadd.f32 %v11145_v1, %v2586_v29  ;;  %v9377_v62 = vld [vmem:[%s13619_s5 + $0xf8] sm:$0xff]  ;;  %v9399_v29 = vld [vmem:[%s13619_s5 + $0x1a8] sm:$0xff] }
 0x24d   : > { %v3556_v10 = vsel %vm9689_vm9, 0, %v3470_v20  ;;  %4013 = vrot.lane.b32.xlu2 %v3301_v31, %s9545_s29  ;;  %v11209_v51 = vor.u32 %v3897_v55, %v13625_v8  ;;  %v2591_v20 = vpop.f32.mrf.mxu1  ;;  %5262 = vmatpush.bf16.msra.mxu0 %v9377_v62 }
 0x24e   : > { %2973 = vst.msk [vmem:[#allocation3 + $0x44] sm:$0xf] %vm340_vm1, %v2940_v40  ;;  %4059 = vrot.lane.b32.xlu0 %v3556_v10, %s9549_s14  ;;  %v4048_v35 = vpop.permute.xlu0 %4047  ;;  %v2676_v28 = vadd.f32 %v2675_v42, %v2587_v61  ;;  %v2677_v40 = vpop.f32.mrf.mxu2  ;;  %v3230_v15 = vsel %vm9689_vm9, 0, %v3108_v49  ;;  %5531 = vmatpush.bf16.msra.mxu3 %v9399_v29 }
 0x24f   : > { %13663 = vst [vmem:[#allocation9_spill] sm:$0xff] %v11209_v51  ;;  %v4320_v25 = vsel %vm2187_vm15, %v4000_v14, %v4048_v35  ;;  %v4209_v42 = vsel %vm2023_vm11, %v3230_v15, %v3952_v37  ;;  %v2589_v37 = vadd.f32 %v11145_v1, %v2588_v53 }
 0x250   : > { %5092 = vmatmul.bf16.vlgmr.msrb.gmra.mxu2 %v4272_v56 }
 0x252   : > { %5181 = vmatmul.bf16.vlgmr.msrb.gmra.mxu3 %v4320_v25  ;;  %v9385_v25 = vld [vmem:[%s13619_s5 + $0x138] sm:$0xff]  ;;  %v2860_v22 = vpop.f32.mrf.mxu0 }
 0x253   : > { %5351 = vmatpush.bf16.msra.mxu1 %v9385_v25  ;;  %v3954_v25 = vpop.permute.xlu1 %3953 }
 0x254   : > { %v2764_v10 = vpop.f32.mrf.mxu3 }
 0x255   : > { %v9306_v55 = vld [vmem:[#allocation3 + $0x40] sm:$0xff]  ;;  %v2765_v14 = vadd.f32 %v2764_v10, %v2676_v28 }
 0x256   : > { %v9321_v31 = vld [vmem:[#allocation3 + $0x40] sm:$0xff]  ;;  %3967 = vrot.lane.b32.xlu1 %v9306_v55, %s9544_s24  ;;  %v3159_v35 = vshrl.u32 %v9306_v55, 16  ;;  %v3162_v61 = vshll.u32 %v9306_v55, 16  ;;  %v2593_v55 = vpop.f32.mrf.mxu1 }
 0x257   : > { %v11219_v46 = vld [vmem:[#allocation3 + $0x40] sm:$0xff]  ;;  %v3472_v18 = vshrl.u32 %v9321_v31, 16  ;;  %v3475_v56 = vshll.u32 %v9321_v31, 16  ;;  %v2854_v49 = vadd.f32 %v11159_v3, %v2765_v14  ;;  %v2678_v14 = vadd.f32 %v2677_v40, %v2589_v37 }
 0x258   : > { %v13631_v28 = vshll.u32 %v11219_v46, 16  ;;  %v3161_v8 = vrot.slane %v3159_v35, 7  ;;  %v3262_v31 = vrot.slane %v3162_v61, 1  ;;  %v13632_v29 = vshrl.u32 %v11219_v46, 16 }
 0x259   : > { %v3474_v10 = vrot.slane %v3472_v18, 7  ;;  %v2909_v15 = vmax.f32 %v2854_v49, 0.0  ;;  %5003 = vmatmul.bf16.vlgmr.msrb.gmra.mxu1 %v4209_v42  ;;  %v3580_v6 = vrot.slane %v3475_v56, 1 }
 0x25a   : > { %v11238_v0 = vor.u32 %v3162_v61, %v3161_v8  ;;  %v3899_v3 = vrot.slane %v13631_v28, 1  ;;  %v3263_v57 = vor.u32 %v3262_v31, %v3159_v35  ;;  %v4050_v8 = vpop.permute.xlu0 %4049  ;;  %v4002_v61 = vpop.permute.xlu2 %4001 }
 0x25b   : > { %v3477_v12 = vor.u32 %v3475_v56, %v3474_v10  ;;  %v2941_v21 = vpack.c.bf16 %v2909_v15, %v2909_v15  ;;  %v2680_v62 = vpop.f32.mrf.mxu2  ;;  %v11245_v49 = vor.u32 %v3580_v6, %v3472_v18  ;;  %v4275_v6 = vsel %vm2105_vm13, %v3954_v25, %v4002_v61 }
 0x25c   : > { %v2766_v53 = vpop.f32.mrf.mxu3  ;;  %v3302_v40 = vsel %vm9661_vm6, %v3263_v57, 0  ;;  %v11253_v35 = vor.u32 %v3899_v3, %v13632_v29  ;;  %v4323_v18 = vsel %vm2187_vm15, %v4002_v61, %v4050_v8  ;;  %v2592_v10 = vadd.f32 %v11145_v1, %v2591_v20  ;;  %v2863_v3 = vpop.f32.mrf.mxu0 }
 0x25d   : > { %v3557_v42 = vsel %vm9689_vm9, 0, %v3477_v12  ;;  %2974 = vst.msk [vmem:[#allocation3 + $0x48] sm:$0xf] %vm340_vm1, %v2941_v21  ;;  %v2767_v56 = vadd.f32 %v2766_v53, %v2678_v14  ;;  %4015 = vrot.lane.b32.xlu2 %v3302_v40, %s9545_s29  ;;  %v2594_v20 = vadd.f32 %v11145_v1, %v2593_v55 }
 0x25e   : > { %4061 = vrot.lane.b32.xlu0 %v3557_v42, %s9549_s14  ;;  %13664 = vst [vmem:[#allocation10_spill] sm:$0xff] %v11253_v35  ;;  %v2681_v15 = vadd.f32 %v2680_v62, %v2592_v10  ;;  %v2596_v53 = vpop.f32.mrf.mxu1  ;;  %v3231_v42 = vsel %vm9689_vm9, 0, %v10819_v7 }
 0x25f   : > { %v2856_v12 = vadd.f32 %v11177_v19, %v2767_v56  ;;  %v4213_v8 = vsel %vm2023_vm11, %v3231_v42, %v3954_v25 }
 0x260   : > { %5097 = vmatmul.bf16.gmra.mxu2 %v4275_v6 }
 0x261   : > { %v2910_v37 = vmax.f32 %v2856_v12, 0.0  ;;  %v3956_v12 = vpop.permute.xlu1 %3955 }
 0x262   : > { %5186 = vmatmul.bf16.gmra.mxu3 %v4323_v18 }
 0x263   : > { %v2942_v57 = vpack.c.bf16 %v2910_v37, %v2910_v37  ;;  %v2682_v31 = vpop.f32.mrf.mxu2 }
 0x264   : > { %v2683_v62 = vadd.f32 %v2682_v31, %v2594_v20 }
 0x265   : > { %v2769_v14 = vpop.f32.mrf.mxu3  ;;  %2975 = vst.msk [vmem:[#allocation3 + $0x4c] sm:$0xf] %vm340_vm1, %v2942_v57  ;;  %v11271_v57 = vpop.f32.mrf.mxu0 }
 0x266   : > { %v2770_v21 = vadd.f32 %v2769_v14, %v2681_v15  ;;  %v4004_v15 = vpop.permute.xlu2 %4003  ;;  %v2598_v42 = vpop.f32.mrf.mxu1 }
 0x267   : > { %v4278_v14 = vsel %vm2105_vm13, %v3956_v12, %v4004_v15 }
 0x268   : > { %v2859_v19 = vadd.f32 %v11214_v26, %v2770_v21 }
 0x269   : > { %5008 = vmatmul.bf16.gmra.mxu1 %v4213_v8 }
 0x26a   : > { %v2911_v56 = vmax.f32 %v2859_v19, 0.0 }
 0x26c   : > { %v2943_v40 = vpack.c.bf16 %v2911_v56, %v2911_v56  ;;  %v2685_v61 = vpop.f32.mrf.mxu2  ;;  %v9307_v18 = vld [vmem:[#allocation3 + $0x48] sm:$0xff]  ;;  %v2597_v56 = vadd.f32 %v11145_v1, %v2596_v53 }
 0x26d   : > { %v2771_v6 = vpop.f32.mrf.mxu3  ;;  %v9322_v10 = vld [vmem:[#allocation3 + $0x48] sm:$0xff]  ;;  %3969 = vrot.lane.b32.xlu1 %v9307_v18, %s9544_s24  ;;  %v3166_v55 = vshrl.u32 %v9307_v18, 16  ;;  %v3169_v21 = vshll.u32 %v9307_v18, 16 }
 0x26e   : > { %v11267_v37 = vld [vmem:[#allocation3 + $0x48] sm:$0xff]  ;;  %2976 = vst.msk [vmem:[#allocation3 + $0x50] sm:$0xf] %vm340_vm1, %v2943_v40  ;;  %v2772_v26 = vadd.f32 %v2771_v6, %v2683_v62  ;;  %v3479_v7 = vshrl.u32 %v9322_v10, 16  ;;  %v3482_v25 = vshll.u32 %v9322_v10, 16  ;;  %v2686_v18 = vadd.f32 %v2685_v61, %v2597_v56  ;;  %v2868_v56 = vpop.f32.mrf.mxu0 }
 0x26f   : > { %v13636_v19 = vshll.u32 %v11267_v37, 16  ;;  %v3168_v20 = vrot.slane %v3166_v55, 7  ;;  %v3264_v40 = vrot.slane %v3169_v21, 1  ;;  %v13637_v29 = vshrl.u32 %v11267_v37, 16 }
 0x270   : > { %v2861_v31 = vadd.f32 %v2860_v22, %v2772_v26  ;;  %5102 = vmatmul.bf16.gmra.mxu2 %v4278_v14  ;;  %v3481_v8 = vrot.slane %v3479_v7, 7  ;;  %v3582_v6 = vrot.slane %v3482_v25, 1 }
 0x271   : > { %v11276_v10 = vor.u32 %v3169_v21, %v3168_v20  ;;  %v3901_v22 = vrot.slane %v13636_v19, 1  ;;  %v3265_v54 = vor.u32 %v3264_v40, %v3166_v55  ;;  %v9384_v55 = vld [vmem:[%s13619_s5 + $0x130] sm:$0xff] }
 0x272   : > { %v2912_v62 = vmax.f32 %v2861_v31, 0.0  ;;  %v3484_v28 = vor.u32 %v3482_v25, %v3481_v8  ;;  %v11281_v9 = vor.u32 %v3582_v6, %v3479_v7  ;;  %v9392_v7 = vld [vmem:[%s13619_s5 + $0x170] sm:$0xff]  ;;  %5352 = vmatpush.bf16.msra.mxu1 %v9384_v55  ;;  %v2601_v6 = vpop.f32.mrf.mxu1 }
 0x273   : > { %v11287_v25 = vor.u32 %v3901_v22, %v13637_v29  ;;  %v3303_v61 = vsel %vm9661_vm6, %v3265_v54, 0  ;;  %v3232_v54 = vsel %vm9689_vm9, 0, %v10886_v60  ;;  %5441 = vmatpush.bf16.msra.mxu2 %v9392_v7 }
 0x274   : > { %v2944_v26 = vpack.c.bf16 %v2912_v62, %v2912_v62  ;;  %v2687_v14 = vpop.f32.mrf.mxu2  ;;  %v3558_v53 = vsel %vm9689_vm9, 0, %v3484_v28  ;;  %v9376_v28 = vld [vmem:[%s13619_s5 + $0xf0] sm:$0xff]  ;;  %4017 = vrot.lane.b32.xlu2 %v3303_v61, %s9545_s29  ;;  %v4217_v20 = vsel %vm2023_vm11, %v3232_v54, %v3956_v12  ;;  %v2599_v62 = vadd.f32 %v11145_v1, %v2598_v42  ;;  %v4006_v12 = vpop.permute.xlu2 %4005 }
 0x275   : > { %v2774_v32 = vpop.f32.mrf.mxu3  ;;  %13665 = vst [vmem:[#allocation11_spill] sm:$0xff] %v11287_v25  ;;  %4063 = vrot.lane.b32.xlu0 %v3558_v53, %s9549_s14  ;;  %5263 = vmatpush.bf16.msra.mxu0 %v9376_v28 }
 0x276   : > { %2977 = vst.msk [vmem:[#allocation3 + $0x54] sm:$0xf] %vm340_vm1, %v2944_v26  ;;  %v2775_v31 = vadd.f32 %v2774_v32, %v2686_v18  ;;  %v2688_v22 = vadd.f32 %v2687_v14, %v2599_v62  ;;  %v3958_v18 = vpop.permute.xlu1 %3957  ;;  %v9398_v14 = vld [vmem:[%s13619_s5 + $0x1a0] sm:$0xff] }
 0x277   : > { %v4052_v32 = vpop.permute.xlu0 %4051  ;;  %5532 = vmatpush.bf16.msra.mxu3 %v9398_v14 }
 0x278   : > { %v2864_v21 = vadd.f32 %v2863_v3, %v2775_v31  ;;  %v4326_v8 = vsel %vm2187_vm15, %v4004_v15, %v4052_v32 }
 0x279   : > { %5191 = vmatmul.bf16.gmra.mxu3 %v4326_v8  ;;  %5013 = vmatmul.bf16.gmra.mxu1 %v4217_v20 }
 0x27a   : > { %v2913_v40 = vmax.f32 %v2864_v21, 0.0  ;;  %v4281_v21 = vsel %vm2105_vm13, %v3958_v18, %v4006_v12  ;;  %v2603_v44 = vpop.f32.mrf.mxu1 }
 0x27c   : > { %v2945_v3 = vpack.c.bf16 %v2913_v40, %v2913_v40  ;;  %v2690_v61 = vpop.f32.mrf.mxu2 }
 0x27d   : > { %v2776_v26 = vpop.f32.mrf.mxu3  ;;  %v9308_v53 = vld [vmem:[#allocation3 + $0x50] sm:$0xff] }
 0x27e   : > { %v9323_v60 = vld [vmem:[#allocation3 + $0x50] sm:$0xff]  ;;  %2978 = vst.msk [vmem:[#allocation3 + $0x58] sm:$0xf] %vm340_vm1, %v2945_v3  ;;  %v2777_v15 = vadd.f32 %v2776_v26, %v2688_v22  ;;  %3971 = vrot.lane.b32.xlu1 %v9308_v53, %s9544_s24  ;;  %v3173_v28 = vshrl.u32 %v9308_v53, 16  ;;  %v3176_v55 = vshll.u32 %v9308_v53, 16  ;;  %v2602_v22 = vadd.f32 %v11145_v1, %v2601_v6 }
 0x27f   : > { %v11309_v31 = vld [vmem:[#allocation3 + $0x50] sm:$0xff]  ;;  %v3486_v7 = vshrl.u32 %v9323_v60, 16  ;;  %v3489_v42 = vshll.u32 %v9323_v60, 16 }
 0x280   : > { %v2866_v32 = vadd.f32 %v11271_v57, %v2777_v15  ;;  %v13640_v54 = vshll.u32 %v11309_v31, 16  ;;  %5107 = vmatmul.bf16.gmra.mxu2 %v4281_v21  ;;  %v3175_v20 = vrot.slane %v3173_v28, 7  ;;  %v3266_v62 = vrot.slane %v3176_v55, 1  ;;  %v2870_v57 = vpop.f32.mrf.mxu0 }
 0x281   : > { %v3488_v8 = vrot.slane %v3486_v7, 7  ;;  %v3584_v40 = vrot.slane %v3489_v42, 1  ;;  %v2691_v15 = vadd.f32 %v2690_v61, %v2602_v22  ;;  %v13641_v43 = vshrl.u32 %v11309_v31, 16  ;;  %v3960_v22 = vpop.permute.xlu1 %3959 }
 0x282   : > { %v2914_v3 = vmax.f32 %v2866_v32, 0.0  ;;  %v3267_v53 = vor.u32 %v3266_v62, %v3173_v28  ;;  %v11320_v60 = vor.u32 %v3176_v55, %v3175_v20  ;;  %v3903_v21 = vrot.slane %v13640_v54, 1 }
 0x283   : > { %v3491_v26 = vor.u32 %v3489_v42, %v3488_v8  ;;  %v11322_v19 = vor.u32 %v3584_v40, %v3486_v7  ;;  %v3233_v32 = vsel %vm9689_vm9, 0, %v10968_v48  ;;  %v2604_v62 = vadd.f32 %v11145_v1, %v2603_v44 }
 0x284   : > { %v2946_v29 = vpack.c.bf16 %v2914_v3, %v2914_v3  ;;  %v3304_v42 = vsel %vm9661_vm6, %v3267_v53, 0  ;;  %v11336_v61 = vor.u32 %v3903_v21, %v13641_v43  ;;  %v2692_v8 = vpop.f32.mrf.mxu2  ;;  %v4221_v20 = vsel %vm2023_vm11, %v3233_v32, %v3958_v18 }
 0x285   : > { %v2779_v14 = vpop.f32.mrf.mxu3  ;;  %v3559_v6 = vsel %vm9689_vm9, 0, %v3491_v26  ;;  %4019 = vrot.lane.b32.xlu2 %v3304_v42, %s9545_s29  ;;  %v2693_v3 = vadd.f32 %v2692_v8, %v2604_v62 }
 0x286   : > { %2979 = vst.msk [vmem:[#allocation3 + $0x5c] sm:$0xf] %vm340_vm1, %v2946_v29  ;;  %v2780_v7 = vadd.f32 %v2779_v14, %v2691_v15  ;;  %4065 = vrot.lane.b32.xlu0 %v3559_v6, %s9549_s14  ;;  %v2606_v53 = vpop.f32.mrf.mxu1  ;;  %v4008_v6 = vpop.permute.xlu2 %4007 }
 0x287   : > { %13666 = vst [vmem:[#allocation12_spill] sm:$0xff] %v11336_v61 }
 0x288   : > { %v2869_v28 = vadd.f32 %v2868_v56, %v2780_v7  ;;  %v4054_v55 = vpop.permute.xlu0 %4053  ;;  %v2873_v48 = vpop.f32.mrf.mxu0 }
 0x289   : > { %v4329_v29 = vsel %vm2187_vm15, %v4006_v12, %v4054_v55  ;;  %5018 = vmatmul.bf16.gmra.mxu1 %v4221_v20  ;;  %v4284_v55 = vsel %vm2105_vm13, %v3960_v22, %v4008_v6 }
 0x28a   : > { %v2915_v40 = vmax.f32 %v2869_v28, 0.0  ;;  %5196 = vmatmul.bf16.gmra.mxu3 %v4329_v29 }
 0x28c   : > { %v2947_v26 = vpack.c.bf16 %v2915_v40, %v2915_v40  ;;  %v2607_v40 = vadd.f32 %v11145_v1, %v2606_v53 }
 0x28d   : > { %v2781_v56 = vpop.f32.mrf.mxu3  ;;  %v9309_v15 = vld [vmem:[#allocation3 + $0x58] sm:$0xff] }
 0x28e   : > { %v9324_v21 = vld [vmem:[#allocation3 + $0x58] sm:$0xff]  ;;  %2980 = vst.msk [vmem:[#allocation3 + $0x60] sm:$0xf] %vm340_vm1, %v2947_v26  ;;  %v2782_v18 = vadd.f32 %v2781_v56, %v2693_v3  ;;  %3973 = vrot.lane.b32.xlu1 %v9309_v15, %s9544_s24  ;;  %v3180_v42 = vshrl.u32 %v9309_v15, 16  ;;  %v3183_v7 = vshll.u32 %v9309_v15, 16 }
 0x28f   : > { %v11344_v14 = vld [vmem:[#allocation3 + $0x58] sm:$0xff]  ;;  %v3493_v44 = vshrl.u32 %v9324_v21, 16  ;;  %v3496_v12 = vshll.u32 %v9324_v21, 16 }
 0x290   : > { %v2871_v28 = vadd.f32 %v2870_v57, %v2782_v18  ;;  %v13642_v32 = vshll.u32 %v11344_v14, 16  ;;  %5112 = vmatmul.bf16.gmra.mxu2 %v4284_v55  ;;  %v3182_v20 = vrot.slane %v3180_v42, 7  ;;  %v3268_v29 = vrot.slane %v3183_v7, 1 }
 0x291   : > { %v3495_v8 = vrot.slane %v3493_v44, 7  ;;  %v3586_v62 = vrot.slane %v3496_v12, 1  ;;  %v13643_v18 = vshrl.u32 %v11344_v14, 16 }
 0x292   : > { %v2916_v3 = vmax.f32 %v2871_v28, 0.0  ;;  %v3269_v56 = vor.u32 %v3268_v29, %v3180_v42  ;;  %v11351_v54 = vor.u32 %v3183_v7, %v3182_v20  ;;  %v3905_v55 = vrot.slane %v13642_v32, 1  ;;  %v9391_v7 = vld [vmem:[%s13619_s5 + $0x168] sm:$0xff] }
 0x293   : > { %v3498_v26 = vor.u32 %v3496_v12, %v3495_v8  ;;  %v11353_v21 = vor.u32 %v3586_v62, %v3493_v44  ;;  %v2695_v57 = vpop.f32.mrf.mxu2  ;;  %v2608_v12 = vpop.f32.mrf.mxu1  ;;  %v9375_v28 = vld [vmem:[%s13619_s5 + $0xe8] sm:$0xff]  ;;  %v3234_v29 = vsel %vm9689_vm9, 0, %v11018_v13  ;;  %5442 = vmatpush.bf16.msra.mxu2 %v9391_v7 }
 0x294   : > { %v2948_v15 = vpack.c.bf16 %v2916_v3, %v2916_v3  ;;  %v2696_v43 = vadd.f32 %v2695_v57, %v2607_v40  ;;  %v3305_v53 = vsel %vm9661_vm6, %v3269_v56, 0  ;;  %v11367_v44 = vor.u32 %v3905_v55, %v13643_v18  ;;  %v2875_v8 = vpop.f32.mrf.mxu0  ;;  %5264 = vmatpush.bf16.msra.mxu0 %v9375_v28  ;;  %v3962_v56 = vpop.permute.xlu1 %3961 }
 0x295   : > { %v2784_v61 = vpop.f32.mrf.mxu3  ;;  %v3560_v25 = vsel %vm9689_vm9, 0, %v3498_v26  ;;  %4021 = vrot.lane.b32.xlu2 %v3305_v53, %s9545_s29  ;;  %v2609_v40 = vadd.f32 %v11145_v1, %v2608_v12 }
 0x296   : > { %2981 = vst.msk [vmem:[#allocation3 + $0x64] sm:$0xf] %vm340_vm1, %v2948_v15  ;;  %4067 = vrot.lane.b32.xlu0 %v3560_v25, %s9549_s14  ;;  %v2785_v42 = vadd.f32 %v2784_v61, %v2696_v43  ;;  %v9383_v25 = vld [vmem:[%s13619_s5 + $0x128] sm:$0xff]  ;;  %v4225_v43 = vsel %vm2023_vm11, %v3234_v29, %v3960_v22  ;;  %v4010_v22 = vpop.permute.xlu2 %4009 }
 0x297   : > { %13667 = vst [vmem:[#allocation13_spill] sm:$0xff] %v11367_v44  ;;  %5353 = vmatpush.bf16.msra.mxu1 %v9383_v25  ;;  %v4287_v25 = vsel %vm2105_vm13, %v3962_v56, %v4010_v22 }
 0x298   : > { %v4056_v20 = vpop.permute.xlu0 %4055  ;;  %v2874_v62 = vadd.f32 %v2873_v48, %v2785_v42 }
 0x299   : > { %v4332_v61 = vsel %vm2187_vm15, %v4008_v6, %v4056_v20  ;;  %5023 = vmatmul.bf16.gmra.mxu1 %v4225_v43 }
 0x29a   : > { %5201 = vmatmul.bf16.gmra.mxu3 %v4332_v61  ;;  %v2917_v3 = vmax.f32 %v2874_v62, 0.0 }
 0x29b   : > { %v2697_v26 = vpop.f32.mrf.mxu2 }
 0x29c   : > { %v2949_v15 = vpack.c.bf16 %v2917_v3, %v2917_v3  ;;  %v2698_v57 = vadd.f32 %v2697_v26, %v2609_v40  ;;  %v2878_v3 = vpop.f32.mrf.mxu0 }
 0x29d   : > { %v2786_v55 = vpop.f32.mrf.mxu3  ;;  %v9310_v53 = vld [vmem:[#allocation3 + $0x60] sm:$0xff] }
 0x29e   : > { %v9325_v13 = vld [vmem:[#allocation3 + $0x60] sm:$0xff]  ;;  %2982 = vst.msk [vmem:[#allocation3 + $0x68] sm:$0xf] %vm340_vm1, %v2949_v15  ;;  %v2787_v6 = vadd.f32 %v2786_v55, %v2698_v57  ;;  %3975 = vrot.lane.b32.xlu1 %v9310_v53, %s9544_s24  ;;  %v3187_v28 = vshrl.u32 %v9310_v53, 16  ;;  %v3190_v20 = vshll.u32 %v9310_v53, 16 }
 0x29f   : > { %v11384_v48 = vld [vmem:[#allocation3 + $0x60] sm:$0xff]  ;;  %v2611_v42 = vpop.f32.mrf.mxu1  ;;  %v3500_v7 = vshrl.u32 %v9325_v13, 16  ;;  %v3503_v12 = vshll.u32 %v9325_v13, 16 }
 0x2a0   : > { %v13644_v29 = vshll.u32 %v11384_v48, 16  ;;  %v2876_v62 = vadd.f32 %v2875_v8, %v2787_v6  ;;  %5117 = vmatmul.bf16.gmra.mxu2 %v4287_v25  ;;  %v3189_v61 = vrot.slane %v3187_v28, 7  ;;  %v2612_v26 = vadd.f32 %v11145_v1, %v2611_v42 }
 0x2a1   : > { %v3502_v43 = vrot.slane %v3500_v7, 7  ;;  %v3588_v40 = vrot.slane %v3503_v12, 1  ;;  %v3270_v15 = vrot.slane %v3190_v20, 1  ;;  %v13645_v57 = vshrl.u32 %v11384_v48, 16 }
 0x2a2   : > { %v3907_v55 = vrot.slane %v13644_v29, 1  ;;  %v2918_v13 = vmax.f32 %v2876_v62, 0.0  ;;  %v11394_v18 = vor.u32 %v3190_v20, %v3189_v61 }
 0x2a3   : > { %v3505_v32 = vor.u32 %v3503_v12, %v3502_v43  ;;  %v11396_v53 = vor.u32 %v3588_v40, %v3500_v7  ;;  %v2700_v8 = vpop.f32.mrf.mxu2  ;;  %v3271_v6 = vor.u32 %v3270_v15, %v3187_v28  ;;  %v3235_v28 = vsel %vm9689_vm9, 0, %v11077_v27 }
 0x2a4   : > { %v11400_v25 = vor.u32 %v3907_v55, %v13645_v57  ;;  %v2950_v44 = vpack.c.bf16 %v2918_v13, %v2918_v13  ;;  %v2701_v42 = vadd.f32 %v2700_v8, %v2612_v26  ;;  %v4229_v43 = vsel %vm2023_vm11, %v3235_v28, %v3962_v56  ;;  %v2880_v61 = vpop.f32.mrf.mxu0  ;;  %v11414_v55 = vpop.permute.xlu2 %4011 }
 0x2a5   : > { %v2789_v35 = vpop.f32.mrf.mxu3  ;;  %v3561_v51 = vsel %vm9689_vm9, 0, %v3505_v32  ;;  %v3306_v12 = vsel %vm9661_vm6, %v3271_v6, 0 }
 0x2a6   : > { %13668 = vst [vmem:[#allocation14_spill] sm:$0xff] %v11400_v25  ;;  %4069 = vrot.lane.b32.xlu0 %v3561_v51, %s9549_s14  ;;  %v2790_v7 = vadd.f32 %v2789_v35, %v2701_v42  ;;  %4023 = vrot.lane.b32.xlu2 %v3306_v12, %s9545_s29 }
 0x2a7   : > { %2983 = vst.msk [vmem:[#allocation3 + $0x6c] sm:$0xf] %vm340_vm1, %v2950_v44  ;;  %v2613_v20 = vpop.f32.mrf.mxu1  ;;  %v3964_v15 = vpop.permute.xlu1 %3963 }
 0x2a8   : > { %v2879_v62 = vadd.f32 %v2878_v3, %v2790_v7  ;;  %v2614_v51 = vadd.f32 %v11145_v1, %v2613_v20  ;;  %v4290_v42 = vsel %vm2105_vm13, %v3964_v15, %v11414_v55 }
 0x2a9   : > { %5028 = vmatmul.bf16.gmra.mxu1 %v4229_v43 }
 0x2aa   : > { %v2919_v32 = vmax.f32 %v2879_v62, 0.0 }
 0x2ab   : > { %v2702_v40 = vpop.f32.mrf.mxu2 }
 0x2ac   : > { %v2951_v26 = vpack.c.bf16 %v2919_v32, %v2919_v32  ;;  %v2703_v44 = vadd.f32 %v2702_v40, %v2614_v51 }
 0x2ad   : > { %v2791_v35 = vpop.f32.mrf.mxu3 }
 0x2ae   : > { %v9311_v13 = vld [vmem:[#allocation3 + $0x68] sm:$0xff]  ;;  %2984 = vst.msk [vmem:[#allocation3 + $0x70] sm:$0xf] %vm340_vm1, %v2951_v26  ;;  %v2792_v27 = vadd.f32 %v2791_v35, %v2703_v44 }
 0x2af   : > { %v9326_v8 = vld [vmem:[#allocation3 + $0x68] sm:$0xff]  ;;  %v2616_v56 = vpop.f32.mrf.mxu1  ;;  %v4058_v3 = vpop.permute.xlu0 %4057  ;;  %3977 = vrot.lane.b32.xlu1 %v9311_v13, %s9544_s24  ;;  %v3194_v62 = vshrl.u32 %v9311_v13, 16  ;;  %v3197_v43 = vshll.u32 %v9311_v13, 16 }
 0x2b0   : > { %v11416_v6 = vld [vmem:[#allocation3 + $0x68] sm:$0xff]  ;;  %v4335_v12 = vsel %vm2187_vm15, %v4010_v22, %v4058_v3  ;;  %v3507_v7 = vshrl.u32 %v9326_v8, 16  ;;  %v3510_v20 = vshll.u32 %v9326_v8, 16  ;;  %v2881_v28 = vadd.f32 %v2880_v61, %v2792_v27  ;;  %5122 = vmatmul.bf16.gmra.mxu2 %v4290_v42 }
 0x2b1   : > { %5206 = vmatmul.bf16.gmra.mxu3 %v4335_v12  ;;  %v13646_v51 = vshll.u32 %v11416_v6, 16  ;;  %v2617_v44 = vadd.f32 %v11145_v1, %v2616_v56  ;;  %v3272_v35 = vrot.slane %v3197_v43, 1  ;;  %v3196_v29 = vrot.slane %v3194_v62, 7  ;;  %v9397_v22 = vld [vmem:[%s13619_s5 + $0x198] sm:$0xff] }
 0x2b2   : > { %v3509_v32 = vrot.slane %v3507_v7, 7  ;;  %v3590_v40 = vrot.slane %v3510_v20, 1  ;;  %v2920_v26 = vmax.f32 %v2881_v28, 0.0  ;;  %v13647_v61 = vshrl.u32 %v11416_v6, 16  ;;  %v2883_v28 = vpop.f32.mrf.mxu0  ;;  %5533 = vmatpush.bf16.msra.mxu3 %v9397_v22  ;;  %v9390_v22 = vld [vmem:[%s13619_s5 + $0x160] sm:$0xff] }
 0x2b3   : > { %v2705_v57 = vpop.f32.mrf.mxu2  ;;  %v3909_v13 = vrot.slane %v13646_v51, 1  ;;  %v3273_v12 = vor.u32 %v3272_v35, %v3194_v62  ;;  %v11433_v56 = vor.u32 %v3197_v43, %v3196_v29  ;;  %v3236_v29 = vsel %vm9689_vm9, 0, %v11148_v16  ;;  %v9382_v16 = vld [vmem:[%s13619_s5 + $0x120] sm:$0xff]  ;;  %5443 = vmatpush.bf16.msra.mxu2 %v9390_v22 }
 0x2b4   : > { %v3512_v25 = vor.u32 %v3510_v20, %v3509_v32  ;;  %v11429_v8 = vor.u32 %v3590_v40, %v3507_v7  ;;  %v2952_v27 = vpack.c.bf16 %v2920_v26, %v2920_v26  ;;  %v2706_v3 = vadd.f32 %v2705_v57, %v2617_v44  ;;  %5354 = vmatpush.bf16.msra.mxu1 %v9382_v16 }
 0x2b5   : > { %v2794_v42 = vpop.f32.mrf.mxu3  ;;  %v11439_v32 = vor.u32 %v3909_v13, %v13647_v61  ;;  %v3307_v57 = vsel %vm9661_vm6, %v3273_v12, 0  ;;  %v4233_v43 = vsel %vm2023_vm11, %v3236_v29, %v3964_v15  ;;  %v9374_v13 = vld [vmem:[%s13619_s5 + $0xe0] sm:$0xff] }
 0x2b6   : > { %v3562_v20 = vsel %vm9689_vm9, 0, %v3512_v25  ;;  %2985 = vst.msk [vmem:[#allocation3 + $0x74] sm:$0xf] %vm340_vm1, %v2952_v27  ;;  %v2795_v7 = vadd.f32 %v2794_v42, %v2706_v3  ;;  %4025 = vrot.lane.b32.xlu2 %v3307_v57, %s9545_s29  ;;  %v11460_v42 = vpop.permute.xlu2 %4013  ;;  %5265 = vmatpush.bf16.msra.mxu0 %v9374_v13 }
 0x2b7   : > { %13669 = vst [vmem:[#allocation15_spill] sm:$0xff] %v11439_v32  ;;  %4071 = vrot.lane.b32.xlu0 %v3562_v20, %s9549_s14  ;;  %v2618_v62 = vpop.f32.mrf.mxu1 }
 0x2b8   : > { %v2884_v25 = vadd.f32 %v2883_v28, %v2795_v7  ;;  %v2619_v26 = vadd.f32 %v11145_v1, %v2618_v62  ;;  %v3966_v44 = vpop.permute.xlu1 %3965 }
 0x2b9   : > { %5033 = vmatmul.bf16.gmra.mxu1 %v4233_v43  ;;  %v4293_v57 = vsel %vm2105_vm13, %v3966_v44, %v11460_v42 }
 0x2ba   : > { %v2921_v40 = vmax.f32 %v2884_v25, 0.0  ;;  %v2885_v62 = vpop.f32.mrf.mxu0 }
 0x2bb   : > { %v2707_v35 = vpop.f32.mrf.mxu2 }
 0x2bc   : > { %v2953_v27 = vpack.c.bf16 %v2921_v40, %v2921_v40  ;;  %v2708_v15 = vadd.f32 %v2707_v35, %v2619_v26 }
 0x2bd   : > { %v2796_v3 = vpop.f32.mrf.mxu3  ;;  %v9312_v12 = vld [vmem:[#allocation3 + $0x70] sm:$0xff] }
 0x2be   : > { %v9327_v28 = vld [vmem:[#allocation3 + $0x70] sm:$0xff]  ;;  %2986 = vst.msk [vmem:[#allocation3 + $0x78] sm:$0xf] %vm340_vm1, %v2953_v27  ;;  %v2797_v7 = vadd.f32 %v2796_v3, %v2708_v15  ;;  %3979 = vrot.lane.b32.xlu1 %v9312_v12, %s9544_s24  ;;  %v3201_v40 = vshrl.u32 %v9312_v12, 16  ;;  %v3204_v26 = vshll.u32 %v9312_v12, 16 }
 0x2bf   : > { %v11462_v20 = vld [vmem:[#allocation3 + $0x70] sm:$0xff]  ;;  %v3514_v25 = vshrl.u32 %v9327_v28, 16  ;;  %v3517_v43 = vshll.u32 %v9327_v28, 16 }
 0x2c0   : > { %v4060_v29 = vpop.permute.xlu0 %4059  ;;  %v2886_v35 = vadd.f32 %v2885_v62, %v2797_v7  ;;  %5127 = vmatmul.bf16.gmra.mxu2 %v4293_v57  ;;  %v13648_v13 = vshll.u32 %v11462_v20, 16  ;;  %v3274_v15 = vrot.slane %v3204_v26, 1  ;;  %v3203_v3 = vrot.slane %v3201_v40, 7 }
 0x2c1   : > { %v4338_v22 = vsel %vm2187_vm15, %v11414_v55, %v4060_v29  ;;  %v3516_v27 = vrot.slane %v3514_v25, 7  ;;  %v3592_v16 = vrot.slane %v3517_v43, 1  ;;  %v13649_v61 = vshrl.u32 %v11462_v20, 16 }
 0x2c2   : > { %5211 = vmatmul.bf16.gmra.mxu3 %v4338_v22  ;;  %v2922_v51 = vmax.f32 %v2886_v35, 0.0  ;;  %v3911_v28 = vrot.slane %v13648_v13, 1  ;;  %v3275_v7 = vor.u32 %v3274_v15, %v3201_v40  ;;  %v11474_v57 = vor.u32 %v3204_v26, %v3203_v3 }
 0x2c3   : > { %v2710_v32 = vpop.f32.mrf.mxu2  ;;  %v3519_v12 = vor.u32 %v3517_v43, %v3516_v27  ;;  %v11476_v62 = vor.u32 %v3592_v16, %v3514_v25  ;;  %v3237_v25 = vsel %vm9689_vm9, 0, %v11192_v39  ;;  %v2888_v27 = vpop.f32.mrf.mxu0 }
 0x2c4   : > { %v2954_v55 = vpack.c.bf16 %v2922_v51, %v2922_v51  ;;  %v11480_v22 = vor.u32 %v3911_v28, %v13649_v61  ;;  %v3308_v58 = vsel %vm9661_vm6, %v3275_v7, 0  ;;  %v4237_v40 = vsel %vm2023_vm11, %v3237_v25, %v3966_v44 }
 0x2c5   : > { %13670 = vst [vmem:[#allocation16_spill] sm:$0xff] %v11476_v62  ;;  %v2799_v29 = vpop.f32.mrf.mxu3  ;;  %v3563_v35 = vsel %vm9689_vm9, 0, %v3519_v12  ;;  %4027 = vrot.lane.b32.xlu2 %v3308_v58, %s9545_s29  ;;  %v11496_v12 = vpop.permute.xlu2 %4015 }
 0x2c6   : > { %13671 = vst [vmem:[#allocation17_spill] sm:$0xff] %v11480_v22  ;;  %v2621_v43 = vpop.f32.mrf.mxu1  ;;  %4073 = vrot.lane.b32.xlu0 %v3563_v35, %s9549_s14 }
 0x2c7   : > { %2987 = vst.msk [vmem:[#allocation3 + $0x7c] sm:$0xf] %vm340_vm1, %v2954_v55  ;;  %v2622_v51 = vadd.f32 %v11145_v1, %v2621_v43  ;;  %v9506_v43 = vld [vmem:[%s13618_s4] ss:$0 sm:$0xff] }
 0x2c8   : > { %v11494_v3 = vpop.permute.xlu1 %3967 }
 0x2c9   : > { %v2711_v26 = vadd.f32 %v2710_v32, %v2622_v51  ;;  %5038 = vmatmul.bf16.gmra.mxu1 %v4237_v40  ;;  %v4296_v39 = vsel %vm2105_vm13, %v11494_v3, %v11496_v12  ;;  %v13672_v32 = vshrl.u32 %v10857_v24, 16 }
 0x2cb   : > { %v2800_v15 = vadd.f32 %v2799_v29, %v2711_v26  ;;  %v2712_v16 = vpop.f32.mrf.mxu2  ;;  %v3746_v44 = vrot.slane %v13672_v32, 7  ;;  %v9389_v32 = vld [vmem:[%s13619_s5 + $0x158] sm:$0xff]  ;;  %v2890_v17 = vpop.f32.mrf.mxu0 }
 0x2cc   : > { %5444 = vmatpush.bf16.msra.mxu2 %v9389_v32 }
 0x2cd   : > { %v2801_v28 = vpop.f32.mrf.mxu3  ;;  %v2889_v7 = vadd.f32 %v2888_v27, %v2800_v15 }
 0x2ce   : > { %v9313_v58 = vld [vmem:[#allocation3 + $0x78] sm:$0xff]  ;;  %v2623_v35 = vpop.f32.mrf.mxu1 }
 0x2cf   : > { %v9328_v55 = vld [vmem:[#allocation3 + $0x78] sm:$0xff]  ;;  %v2923_v29 = vmax.f32 %v2889_v7, 0.0  ;;  %v2624_v51 = vadd.f32 %v9506_v43, %v2623_v35  ;;  %3981 = vrot.lane.b32.xlu1 %v9313_v58, %s9544_s24  ;;  %v3208_v15 = vshrl.u32 %v9313_v58, 16  ;;  %v3211_v13 = vshll.u32 %v9313_v58, 16  ;;  %v9373_v35 = vld [vmem:[%s13619_s5 + $0xd8] sm:$0xff] }
 0x2d0   : > { %v11498_v1 = vld [vmem:[#allocation3 + $0x78] sm:$0xff]  ;;  %v4062_v25 = vpop.permute.xlu0 %4061  ;;  %v3521_v40 = vshrl.u32 %v9328_v55, 16  ;;  %v3524_v26 = vshll.u32 %v9328_v55, 16  ;;  %5132 = vmatmul.bf16.gmra.mxu2 %v4296_v39  ;;  %v9396_v55 = vld [vmem:[%s13619_s5 + $0x190] sm:$0xff]  ;;  %v13673_v58 = vshll.u32 %v10857_v24, 16  ;;  %5266 = vmatpush.bf16.msra.mxu0 %v9373_v35 }
 0x2d1   : > { %v4341_v27 = vsel %vm2187_vm15, %v11460_v42, %v4062_v25  ;;  %v2955_v61 = vpack.c.bf16 %v2923_v29, %v2923_v29  ;;  %v2713_v22 = vadd.f32 %v2712_v16, %v2624_v51  ;;  %v3276_v39 = vrot.slane %v3211_v13, 1  ;;  %v9381_v29 = vld [vmem:[%s13619_s5 + $0x118] sm:$0xff]  ;;  %5534 = vmatpush.bf16.msra.mxu3 %v9396_v55 }
 0x2d2   : > { %5216 = vmatmul.bf16.gmra.mxu3 %v4341_v27  ;;  %v3523_v7 = vrot.slane %v3521_v40, 7  ;;  %v3749_v16 = vor.u32 %v13673_v58, %v3746_v44  ;;  %v3210_v43 = vrot.slane %v3208_v15, 7  ;;  %v3594_v51 = vrot.slane %v3524_v26, 1  ;;  %5355 = vmatpush.bf16.msra.mxu1 %v9381_v29 }
 0x2d3   : > { %2988 = vst.msk [vmem:[#allocation3 + $0x80] sm:$0xf] %vm340_vm1, %v2955_v61  ;;  %v2802_v25 = vadd.f32 %v2801_v28, %v2713_v22  ;;  %v5093_v27 = vpop.f32.mrf.mxu2  ;;  %v3835_v24 = vshrl.u32 %v11498_v1, 16  ;;  %v13674_v44 = vshll.u32 %v11498_v1, 16  ;;  %v3277_v59 = vor.u32 %v3276_v39, %v3208_v15 }
 0x2d4   : > { %v3526_v42 = vor.u32 %v3524_v26, %v3523_v7  ;;  %v11535_v61 = vor.u32 %v3211_v13, %v3210_v43  ;;  %v11539_v62 = vor.u32 %v3594_v51, %v3521_v40  ;;  %v3871_v13 = vsel %vm9689_vm9, 0, %v3749_v16 }
 0x2d5   : > { %v3913_v58 = vrot.slane %v13674_v44, 1  ;;  %v2891_v22 = vadd.f32 %v2890_v17, %v2802_v25  ;;  %v5182_v28 = vpop.f32.mrf.mxu3  ;;  %v3309_v15 = vsel %vm9661_vm6, %v3277_v59, 0  ;;  %v13675_v17 = vshrl.u32 %v10955_v38, 16 }
 0x2d6   : > { %v3564_v11 = vsel %vm9689_vm9, 0, %v3526_v42  ;;  %v5004_v7 = vpop.f32.mrf.mxu1  ;;  %4029 = vrot.lane.b32.xlu2 %v3309_v15, %s9545_s29  ;;  %v13676_v39 = vshll.u32 %v10955_v38, 16  ;;  %v13677_v51 = vshrl.u32 %v11007_v34, 16  ;;  %v11574_v38 = vpop.permute.xlu2 %4017  ;;  %v13678_v15 = vshll.u32 %v11007_v34, 16 }
 0x2d7   : > { %v11543_v26 = vor.u32 %v3913_v58, %v3835_v24  ;;  %4075 = vrot.lane.b32.xlu0 %v3564_v11, %s9549_s14  ;;  %v3753_v32 = vrot.slane %v13675_v17, 7  ;;  %v2924_v35 = vmax.f32 %v2891_v22, 0.0  ;;  %v5005_v40 = vadd.f32 %v11530_v33, %v5004_v7  ;;  %4143 = vrot.lane.b32.xlu1 %v3871_v13, %s9545_s29 }
 0x2d8   : > { %v3238_v11 = vsel %vm9689_vm9, 0, %v11238_v0  ;;  %v3760_v25 = vrot.slane %v13677_v51, 7 }
 0x2d9   : > { %v4241_v59 = vsel %vm2023_vm11, %v3238_v11, %v11494_v3  ;;  %v2956_v55 = vpack.c.bf16 %v2924_v35, %v2924_v35  ;;  %v5094_v42 = vadd.f32 %v5093_v27, %v5005_v40  ;;  %v3756_v16 = vor.u32 %v13676_v39, %v3753_v32  ;;  %v9507_v27 = vld [vmem:[#allocation3 + $0x10] sm:$0xff] }
 0x2da   : > { %5043 = vmatmul.bf16.gmra.mxu1 %v4241_v59  ;;  %v3763_v13 = vor.u32 %v13678_v15, %v3760_v25 }
 0x2db   : > { %2989 = vst.msk [vmem:[#allocation3 + $0x84] sm:$0xf] %vm340_vm1, %v2956_v55  ;;  %v5095_v29 = vpop.f32.mrf.mxu2  ;;  %v11563_v43 = vadd.f32 %v5182_v28, %v5094_v42  ;;  %v3872_v0 = vsel %vm9689_vm9, 0, %v3756_v16  ;;  %v13679_v16 = vshrl.u32 %v11063_v30, 16 }
 0x2dc   : > { %v3873_v55 = vsel %vm9689_vm9, 0, %v3763_v13 }
 0x2dd   : > { %v11569_v58 = vpop.f32.mrf.mxu3 }
 0x2de   : > { %v5006_v44 = vpop.f32.mrf.mxu1  ;;  %4175 = vrot.lane.b32.xlu2 %v9507_v27, %s9549_s14 }
 0x2df   : > { %v5007_v3 = vadd.f32 %v11530_v33, %v5006_v44  ;;  %4145 = vrot.lane.b32.xlu1 %v3872_v0, %s9545_s29  ;;  %v3970_v22 = vpop.permute.xlu1 %3969  ;;  %v9508_v44 = vld [vmem:[#allocation3 + $0x18] sm:$0xff] }
 0x2e0   : > { %v4299_v7 = vsel %vm2105_vm13, %v3970_v22, %v11574_v38 }
 0x2e1   : > { %v11576_v28 = vadd.f32 %v5095_v29, %v5007_v3  ;;  %5137 = vmatmul.bf16.gmra.mxu2 %v4299_v7  ;;  %v3767_v29 = vrot.slane %v13679_v16, 7  ;;  %v3239_v3 = vsel %vm9689_vm9, 0, %v11276_v10 }
 0x2e2   : > { %v9329_v17 = vld [vmem:[#allocation3 + $0x80] sm:$0xff]  ;;  %v4245_v7 = vsel %vm2023_vm11, %v3239_v3, %v3970_v22 }
 0x2e3   : > { %v11582_v32 = vld [vmem:[#allocation3 + $0x80] sm:$0xff]  ;;  %v5098_v35 = vpop.f32.mrf.mxu2  ;;  %v3528_v40 = vshrl.u32 %v9329_v17, 16  ;;  %v3531_v11 = vshll.u32 %v9329_v17, 16 }
 0x2e4   : > { %v3845_v59 = vshll.u32 %v11582_v32, 16  ;;  %v3842_v27 = vshrl.u32 %v11582_v32, 16 }
 0x2e5   : > { %v3530_v39 = vrot.slane %v3528_v40, 7  ;;  %v3596_v51 = vrot.slane %v3531_v11, 1 }
 0x2e6   : > { %v5009_v42 = vpop.f32.mrf.mxu1  ;;  %v3915_v34 = vrot.slane %v3845_v59, 1  ;;  %4177 = vrot.lane.b32.xlu2 %v9508_v44, %s9549_s14  ;;  %v13680_v44 = vshll.u32 %v11063_v30, 16  ;;  %v9388_v30 = vld [vmem:[%s13619_s5 + $0x150] sm:$0xff] }
 0x2e7   : > { %v5010_v25 = vadd.f32 %v11530_v33, %v5009_v42  ;;  %v4064_v0 = vpop.permute.xlu0 %4063  ;;  %4147 = vrot.lane.b32.xlu1 %v3873_v55, %s9545_s29  ;;  %v3533_v13 = vor.u32 %v3531_v11, %v3530_v39  ;;  %v11601_v17 = vor.u32 %v3596_v51, %v3528_v40  ;;  %v5187_v42 = vpop.f32.mrf.mxu3  ;;  %v13681_v11 = vshrl.u32 %v11134_v63, 16  ;;  %5445 = vmatpush.bf16.msra.mxu2 %v9388_v30 }
 0x2e8   : > { %v4344_v15 = vsel %vm2187_vm15, %v11496_v12, %v4064_v0  ;;  %v11605_v55 = vor.u32 %v3915_v34, %v3842_v27  ;;  %v3770_v22 = vor.u32 %v13680_v44, %v3767_v29  ;;  %v9509_v34 = vld [vmem:[#allocation3 + $0x20] sm:$0xff] }
 0x2e9   : > { %v5099_v16 = vadd.f32 %v5098_v35, %v5010_v25  ;;  %5221 = vmatmul.bf16.gmra.mxu3 %v4344_v15  ;;  %v3565_v10 = vsel %vm9689_vm9, 0, %v3533_v13  ;;  %v3774_v39 = vrot.slane %v13681_v11, 7  ;;  %v9372_v29 = vld [vmem:[%s13619_s5 + $0xd0] sm:$0xff]  ;;  %v11627_v25 = vpop.permute.xlu2 %4019 }
 0x2ea   : > { %5048 = vmatmul.bf16.gmra.mxu1 %v4245_v7  ;;  %4077 = vrot.lane.b32.xlu0 %v3565_v10, %s9549_s14  ;;  %v3874_v35 = vsel %vm9689_vm9, 0, %v3770_v22  ;;  %v9380_v13 = vld [vmem:[%s13619_s5 + $0x110] sm:$0xff] }
 0x2eb   : > { %v5100_v3 = vpop.f32.mrf.mxu2  ;;  %v11612_v12 = vadd.f32 %v5187_v42, %v5099_v16  ;;  %5267 = vmatpush.bf16.msra.mxu0 %v9372_v29  ;;  %v3614_v42 = vsel %vm9661_vm6, %v10805_v2, 0  ;;  %v13682_v16 = vshll.u32 %v11134_v63, 16  ;;  %5356 = vmatpush.bf16.msra.mxu1 %v9380_v13  ;;  %v3240_v63 = vsel %vm9689_vm9, 0, %v11320_v60  ;;  %v9395_v60 = vld [vmem:[%s13619_s5 + $0x188] sm:$0xff] }
 0x2ec   : > { %v13684_v13 = vshll.u32 %v11183_v50, 16  ;;  %5535 = vmatpush.bf16.msra.mxu3 %v9395_v60  ;;  %v9512_v60 = vld [vmem:[#allocation3 + $0x38] sm:$0xff] }
 0x2ed   : > { %v3777_v10 = vor.u32 %v13682_v16, %v3774_v39 }
 0x2ee   : > { %v5011_v40 = vpop.f32.mrf.mxu1  ;;  %4179 = vrot.lane.b32.xlu2 %v9509_v34, %s9549_s14  ;;  %v9510_v34 = vld [vmem:[#allocation3 + $0x28] sm:$0xff] }
 0x2ef   : > { %v5012_v51 = vadd.f32 %v11530_v33, %v5011_v40  ;;  %4149 = vrot.lane.b32.xlu1 %v3874_v35, %s9545_s29  ;;  %v11641_v44 = vpop.f32.mrf.mxu3  ;;  %v3875_v40 = vsel %vm9689_vm9, 0, %v3777_v10  ;;  %v13683_v35 = vshrl.u32 %v11183_v50, 16 }
 0x2f0   : > { %v3972_v0 = vpop.permute.xlu1 %3971 }
 0x2f1   : > { %v11629_v7 = vadd.f32 %v5100_v3, %v5012_v51  ;;  %v4302_v15 = vsel %vm2105_vm13, %v3972_v0, %v11627_v25  ;;  %v3781_v11 = vrot.slane %v13683_v35, 7  ;;  %v4249_v39 = vsel %vm2023_vm11, %v3240_v63, %v3972_v0  ;;  %v11675_v35 = vpop.permute.xlu2 %4021 }
 0x2f2   : > { %5142 = vmatmul.bf16.gmra.mxu2 %v4302_v15  ;;  %4095 = vrot.lane.b32.xlu0 %v3614_v42, %s9544_s24  ;;  %v3615_v15 = vsel %vm9661_vm6, %v10877_v41, 0  ;;  %v13685_v41 = vshrl.u32 %v11219_v46, 16  ;;  %v13686_v63 = vshll.u32 %v11219_v46, 16  ;;  %v3241_v46 = vsel %vm9689_vm9, 0, %v11351_v54 }
 0x2f3   : > { %v5103_v22 = vpop.f32.mrf.mxu2  ;;  %v3784_v42 = vor.u32 %v13684_v13, %v3781_v11 }
 0x2f6   : > { %v5014_v3 = vpop.f32.mrf.mxu1  ;;  %4181 = vrot.lane.b32.xlu2 %v9510_v34, %s9549_s14 }
 0x2f7   : > { %v5015_v51 = vadd.f32 %v11530_v33, %v5014_v3  ;;  %4151 = vrot.lane.b32.xlu1 %v3875_v40, %s9545_s29  ;;  %v3788_v3 = vrot.slane %v13685_v41, 7  ;;  %v9511_v40 = vld [vmem:[#allocation3 + $0x30] sm:$0xff] }
 0x2f8   : > { %v4066_v2 = vpop.permute.xlu0 %4065 }
 0x2f9   : > { %v4347_v30 = vsel %vm2187_vm15, %v11574_v38, %v4066_v2  ;;  %v5104_v29 = vadd.f32 %v5103_v22, %v5015_v51  ;;  %v3876_v22 = vsel %vm9689_vm9, 0, %v3784_v42  ;;  %v3616_v2 = vsel %vm9661_vm6, %v10977_v45, 0 }
 0x2fa   : > { %5053 = vmatmul.bf16.gmra.mxu1 %v4249_v39  ;;  %5226 = vmatmul.bf16.gmra.mxu3 %v4347_v30  ;;  %v3791_v39 = vor.u32 %v13686_v63, %v3788_v3  ;;  %v13687_v42 = vshrl.u32 %v11267_v37, 16  ;;  %v3617_v3 = vsel %vm9661_vm6, %v11023_v47, 0  ;;  %v13689_v63 = vshrl.u32 %v11309_v31, 16  ;;  %v9387_v47 = vld [vmem:[%s13619_s5 + $0x148] sm:$0xff] }
 0x2fb   : > { %v5105_v16 = vpop.f32.mrf.mxu2  ;;  %4097 = vrot.lane.b32.xlu0 %v3615_v15, %s9544_s24  ;;  %5446 = vmatpush.bf16.msra.mxu2 %v9387_v47 }
 0x2fc   : > { %v5192_v10 = vpop.f32.mrf.mxu3  ;;  %v3877_v13 = vsel %vm9689_vm9, 0, %v3791_v39  ;;  %v3802_v39 = vrot.slane %v13689_v63, 7 }
 0x2fd   : > { %v11666_v0 = vadd.f32 %v5192_v10, %v5104_v29 }
 0x2fe   : > { %v5016_v38 = vpop.f32.mrf.mxu1  ;;  %4183 = vrot.lane.b32.xlu2 %v9511_v40, %s9549_s14 }
 0x2ff   : > { %v5017_v50 = vadd.f32 %v11530_v33, %v5016_v38  ;;  %4153 = vrot.lane.b32.xlu1 %v3876_v22, %s9545_s29 }
 0x300   : > { %v3974_v11 = vpop.permute.xlu1 %3973 }
 0x301   : > { %v4305_v51 = vsel %vm2105_vm13, %v3974_v11, %v11675_v35  ;;  %v11679_v34 = vadd.f32 %v5105_v16, %v5017_v50  ;;  %v3795_v16 = vrot.slane %v13687_v42, 7  ;;  %v4253_v38 = vsel %vm2023_vm11, %v3241_v46, %v3974_v11 }
 0x302   : > { %5147 = vmatmul.bf16.gmra.mxu2 %v4305_v51  ;;  %v13688_v50 = vshll.u32 %v11267_v37, 16  ;;  %v9371_v37 = vld [vmem:[%s13619_s5 + $0xc8] sm:$0xff]  ;;  %v13690_v46 = vshll.u32 %v11309_v31, 16  ;;  %v3242_v31 = vsel %vm9689_vm9, 0, %v11394_v18 }
 0x303   : > { %v5108_v30 = vpop.f32.mrf.mxu2  ;;  %4099 = vrot.lane.b32.xlu0 %v3616_v2, %s9544_s24  ;;  %5268 = vmatpush.bf16.msra.mxu0 %v9371_v37 }
 0x304   : > { %v11687_v29 = vpop.f32.mrf.mxu3  ;;  %v3798_v40 = vor.u32 %v13688_v50, %v3795_v16 }
 0x306   : > { %v5019_v15 = vpop.f32.mrf.mxu1  ;;  %4185 = vrot.lane.b32.xlu2 %v9512_v60, %s9549_s14  ;;  %v9379_v60 = vld [vmem:[%s13619_s5 + $0x108] sm:$0xff] }
 0x307   : > { %v5020_v10 = vadd.f32 %v11530_v33, %v5019_v15  ;;  %4155 = vrot.lane.b32.xlu1 %v3877_v13, %s9545_s29  ;;  %v9513_v15 = vld [vmem:[#allocation3 + $0x40] sm:$0xff]  ;;  %v4024_v13 = vpop.permute.xlu2 %4023  ;;  %5357 = vmatpush.bf16.msra.mxu1 %v9379_v60  ;;  %v13693_v60 = vshrl.u32 %v11384_v48, 16 }
 0x308   : > { %v4068_v45 = vpop.permute.xlu0 %4067 }
 0x309   : > { %v4350_v22 = vsel %vm2187_vm15, %v11627_v25, %v4068_v45  ;;  %v5109_v41 = vadd.f32 %v5108_v30, %v5020_v10  ;;  %v3878_v25 = vsel %vm9689_vm9, 0, %v3798_v40  ;;  %v3618_v45 = vsel %vm9661_vm6, %v11079_v4, 0 }
 0x30a   : > { %5058 = vmatmul.bf16.gmra.mxu1 %v4253_v38  ;;  %5231 = vmatmul.bf16.gmra.mxu3 %v4350_v22  ;;  %v3805_v38 = vor.u32 %v13690_v46, %v3802_v39  ;;  %v13691_v40 = vshrl.u32 %v11344_v14, 16  ;;  %v9515_v46 = vld [vmem:[#allocation3 + $0x50] sm:$0xff] }
 0x30b   : > { %v5110_v51 = vpop.f32.mrf.mxu2  ;;  %4101 = vrot.lane.b32.xlu0 %v3617_v3, %s9544_s24 }
 0x30c   : > { %v3879_v50 = vsel %vm9689_vm9, 0, %v3805_v38 }
 0x30d   : > { %v5197_v2 = vpop.f32.mrf.mxu3 }
 0x30e   : > { %v11708_v54 = vadd.f32 %v5197_v2, %v5109_v41  ;;  %v5021_v11 = vpop.f32.mrf.mxu1  ;;  %4187 = vrot.lane.b32.xlu2 %v9513_v15, %s9549_s14  ;;  %v13692_v15 = vshll.u32 %v11344_v14, 16 }
 0x30f   : > { %v5022_v30 = vadd.f32 %v11530_v33, %v5021_v11  ;;  %4157 = vrot.lane.b32.xlu1 %v3878_v25, %s9545_s29  ;;  %v9514_v11 = vld [vmem:[#allocation3 + $0x48] sm:$0xff] }
 0x310   : > { %v3976_v42 = vpop.permute.xlu1 %3975 }
 0x311   : > { %v4308_v16 = vsel %vm2105_vm13, %v3976_v42, %v4024_v13  ;;  %v11724_v10 = vadd.f32 %v5110_v51, %v5022_v30  ;;  %v3809_v51 = vrot.slane %v13691_v40, 7  ;;  %v4257_v25 = vsel %vm2023_vm11, %v3242_v31, %v3976_v42 }
 0x312   : > { %5152 = vmatmul.bf16.gmra.mxu2 %v4308_v16  ;;  %v3619_v30 = vsel %vm9661_vm6, %v11157_v5, 0  ;;  %v4026_v5 = vpop.permute.xlu2 %4025 }
 0x313   : > { %v5113_v22 = vpop.f32.mrf.mxu2  ;;  %4103 = vrot.lane.b32.xlu0 %v3618_v45, %s9544_s24  ;;  %v3812_v47 = vor.u32 %v13692_v15, %v3809_v51  ;;  %v3816_v45 = vrot.slane %v13693_v60, 7 }
 0x315   : > { %v11735_v41 = vpop.f32.mrf.mxu3 }
 0x316   : > { %v5024_v3 = vpop.f32.mrf.mxu1  ;;  %4189 = vrot.lane.b32.xlu2 %v9514_v11, %s9549_s14 }
 0x317   : > { %v5025_v2 = vadd.f32 %v11530_v33, %v5024_v3  ;;  %4159 = vrot.lane.b32.xlu1 %v3879_v50, %s9545_s29  ;;  %v13694_v50 = vshll.u32 %v11384_v48, 16 }
 0x318   : > { %v4070_v4 = vpop.permute.xlu0 %4069 }
 0x319   : > { %v4353_v63 = vsel %vm2187_vm15, %v11675_v35, %v4070_v4  ;;  %v5114_v39 = vadd.f32 %v5113_v22, %v5025_v2  ;;  %v3880_v35 = vsel %vm9689_vm9, 0, %v3812_v47  ;;  %v3620_v22 = vsel %vm9661_vm6, %v11197_v36, 0 }
 0x31a   : > { %5063 = vmatmul.bf16.gmra.mxu1 %v4257_v25  ;;  %5236 = vmatmul.bf16.gmra.mxu3 %v4353_v63  ;;  %v3819_v40 = vor.u32 %v13694_v50, %v3816_v45  ;;  %v13695_v4 = vshrl.u32 %v11416_v6, 16  ;;  %v3243_v36 = vsel %vm9689_vm9, 0, %v11433_v56  ;;  %v9394_v63 = vld [vmem:[%s13619_s5 + $0x180] sm:$0xff] }
 0x31b   : > { %v11755_v37 = vpop.f32.mrf.mxu2  ;;  %4105 = vrot.lane.b32.xlu0 %v3619_v30, %s9544_s24  ;;  %5536 = vmatpush.bf16.msra.mxu3 %v9394_v63 }
 0x31c   : > { %v3881_v11 = vsel %vm9689_vm9, 0, %v3819_v40  ;;  %v3823_v31 = vrot.slane %v13695_v4, 7  ;;  %v9378_v40 = vld [vmem:[%s13619_s5 + $0x100] sm:$0xff] }
 0x31d   : > { %v5202_v18 = vpop.f32.mrf.mxu3  ;;  %5358 = vmatpush.bf16.msra.mxu1 %v9378_v40 }
 0x31e   : > { %v11758_v16 = vadd.f32 %v5202_v18, %v5114_v39  ;;  %v11760_v42 = vpop.f32.mrf.mxu1  ;;  %4191 = vrot.lane.b32.xlu2 %v9515_v46, %s9549_s14  ;;  %v13696_v18 = vshll.u32 %v11416_v6, 16  ;;  %v13697_v46 = vshrl.u32 %v11462_v20, 16 }
 0x31f   : > { %4161 = vrot.lane.b32.xlu1 %v3880_v35, %s9545_s29 }
 0x320   : > { %v3826_v56 = vor.u32 %v13696_v18, %v3823_v31 }
 0x321   : > { %v3978_v38 = vpop.permute.xlu1 %3977 }
 0x322   : > { %v4311_v3 = vsel %vm2105_vm13, %v3978_v38, %v4026_v5  ;;  %v4261_v30 = vsel %vm2023_vm11, %v3243_v36, %v3978_v38  ;;  %v3830_v38 = vrot.slane %v13697_v46, 7  ;;  %v11828_v36 = vld [vmem:[#allocation3 + $0x88] sm:$0xff] }
 0x323   : > { %v5118_v51 = vpop.f32.mrf.mxu2  ;;  %4107 = vrot.lane.b32.xlu0 %v3620_v22, %s9544_s24  ;;  %5157 = vmatmul.bf16.gmra.mxu2 %v4311_v3  ;;  %v9370_v22 = vld [vmem:[%s13619_s5 + $0xc0] sm:$0xff]  ;;  %v4028_v3 = vpop.permute.xlu2 %4027  ;;  %v13650_v18 = vshrl.u32 %v11828_v36, 16 }
 0x324   : > { %5269 = vmatpush.bf16.msra.mxu0 %v9370_v22 }
 0x325   : > { %v11796_v35 = vpop.f32.mrf.mxu3 }
 0x326   : > { %v5029_v2 = vpop.f32.mrf.mxu1  ;;  %4193 = vrot.lane.b32.xlu2 %v11344_v14, %s9549_s14  ;;  %v3621_v14 = vsel %vm9661_vm6, %v11245_v49, 0  ;;  %v9386_v49 = vld [vmem:[%s13619_s5 + $0x140] sm:$0xff] }
 0x327   : > { %v5030_v25 = vadd.f32 %v11530_v33, %v5029_v2  ;;  %4163 = vrot.lane.b32.xlu1 %v3881_v11, %s9545_s29  ;;  %5447 = vmatpush.bf16.msra.mxu2 %v9386_v49  ;;  %v13698_v2 = vshll.u32 %v11462_v20, 16  ;;  %v3851_v49 = vrot.slane %v13650_v18, 7 }
 0x329   : > { %v4072_v39 = vpop.permute.xlu0 %4071  ;;  %v5119_v47 = vadd.f32 %v5118_v51, %v5030_v25  ;;  %v3833_v11 = vor.u32 %v13698_v2, %v3830_v38 }
 0x32a   : > { %5068 = vmatmul.bf16.gmra.mxu1 %v4261_v30  ;;  %v4356_v15 = vsel %vm2187_vm15, %v4024_v13, %v4072_v39  ;;  %v3882_v13 = vsel %vm9689_vm9, 0, %v3826_v56 }
 0x32b   : > { %5241 = vmatmul.bf16.gmra.mxu3 %v4356_v15  ;;  %v11798_v60 = vpop.f32.mrf.mxu2  ;;  %4109 = vrot.lane.b32.xlu0 %v3621_v14, %s9544_s24  ;;  %v3883_v39 = vsel %vm9689_vm9, 0, %v3833_v11  ;;  %v3244_v15 = vsel %vm9689_vm9, 0, %v11474_v57 }
 0x32e   : > { %v11801_v45 = vpop.f32.mrf.mxu1  ;;  %4195 = vrot.lane.b32.xlu2 %v11384_v48, %s9549_s14  ;;  %v3622_v48 = vsel %vm9661_vm6, %v11281_v9, 0  ;;  %v3837_v9 = vrot.slane %v3835_v24, 7 }
 0x32f   : > { %4165 = vrot.lane.b32.xlu1 %v3882_v13, %s9545_s29  ;;  %v13699_v13 = vshll.u32 %v11498_v1, 16 }
 0x330   : > { %v3980_v50 = vpop.permute.xlu1 %3979  ;;  %v4030_v40 = vpop.permute.xlu2 %4029 }
 0x331   : > { %v4314_v51 = vsel %vm2105_vm13, %v3980_v50, %v4028_v3  ;;  %v4265_v14 = vsel %vm2023_vm11, %v3244_v15, %v3980_v50  ;;  %v3840_v46 = vor.u32 %v13699_v13, %v3837_v9 }
 0x333   : > { %v5123_v4 = vpop.f32.mrf.mxu2  ;;  %4111 = vrot.lane.b32.xlu0 %v3622_v48, %s9544_s24  ;;  %5162 = vmatmul.bf16.gmra.mxu2 %v4314_v51  ;;  %v3884_v50 = vsel %vm9689_vm9, 0, %v3840_v46  ;;  %v3624_v51 = vsel %vm9661_vm6, %v11353_v21, 0  ;;  %v3245_v21 = vsel %vm9689_vm9, 0, %v11535_v61  ;;  %v3626_v46 = vsel %vm9661_vm6, %v11429_v8, 0 }
 0x334   : > { %v5207_v31 = vpop.f32.mrf.mxu3 }
 0x335   : > { %v11826_v25 = vadd.f32 %v5207_v31, %v5119_v47 }
 0x336   : > { %v5034_v63 = vpop.f32.mrf.mxu1  ;;  %4197 = vrot.lane.b32.xlu2 %v11416_v6, %s9549_s14  ;;  %v3623_v6 = vsel %vm9661_vm6, %v11322_v19, 0 }
 0x337   : > { %v5035_v30 = vadd.f32 %v11530_v33, %v5034_v63  ;;  %4167 = vrot.lane.b32.xlu1 %v3883_v39, %s9545_s29 }
 0x338   : > { %v4074_v47 = vpop.permute.xlu0 %4073 }
 0x339   : > { %v4359_v56 = vsel %vm2187_vm15, %v4026_v5, %v4074_v47  ;;  %v5124_v24 = vadd.f32 %v5123_v4, %v5035_v30  ;;  %v13651_v5 = vshll.u32 %v11828_v36, 16 }
 0x33a   : > { %5073 = vmatmul.bf16.gmra.mxu1 %v4265_v14  ;;  %v3625_v14 = vsel %vm9661_vm6, %v11396_v53, 0  ;;  %v4176_v53 = vpop.permute.xlu2 %4175 }
 0x33b   : > { %5246 = vmatmul.bf16.gmra.mxu3 %v4359_v56  ;;  %v11849_v38 = vpop.f32.mrf.mxu2  ;;  %4113 = vrot.lane.b32.xlu0 %v3623_v6, %s9544_s24  ;;  %v3854_v19 = vor.u32 %v13651_v5, %v3851_v49  ;;  %v3844_v6 = vrot.slane %v3842_v27, 7 }
 0x33c   : > { %v11852_v57 = vpop.f32.mrf.mxu3 }
 0x33d   : > { %v3847_v49 = vor.u32 %v3845_v59, %v3844_v6  ;;  %v9516_v6 = vld [vmem:[#allocation3 + $0x8] sm:$0xff] }
 0x33e   : > { %v11857_v22 = vpop.f32.mrf.mxu1  ;;  %4199 = vrot.lane.b32.xlu2 %v11462_v20, %s9549_s14  ;;  %v3886_v20 = vsel %vm9689_vm9, 0, %v3854_v19 }
 0x33f   : > { %4169 = vrot.lane.b32.xlu1 %v3884_v50, %s9545_s29 }
 0x341   : > { %v3982_v48 = vpop.permute.xlu1 %3981 }
 0x342   : > { %v4317_v2 = vsel %vm2105_vm13, %v3982_v48, %v4030_v40  ;;  %v4269_v30 = vsel %vm2023_vm11, %v3245_v21, %v3982_v48  ;;  %v4178_v21 = vpop.permute.xlu2 %4177 }
 0x343   : > { %v5128_v11 = vpop.f32.mrf.mxu2  ;;  %4115 = vrot.lane.b32.xlu0 %v3624_v51, %s9544_s24  ;;  %5167 = vmatmul.bf16.gmra.mxu2 %v4317_v2  ;;  %v3885_v51 = vsel %vm9689_vm9, 0, %v3847_v49  ;;  %v3629_v49 = vsel %vm9661_vm6, %v11601_v17, 0 }
 0x345   : > { %v5212_v4 = vpop.f32.mrf.mxu3 }
 0x346   : > { %v11873_v31 = vadd.f32 %v5212_v4, %v5124_v24  ;;  %v5039_v63 = vpop.f32.mrf.mxu1  ;;  %4201 = vrot.lane.b32.xlu2 %v11498_v1, %s9549_s14  ;;  %v11890_v1 = vld [vmem:[#allocation2] sm:$0xff] }
 0x347   : > { %v5040_v39 = vadd.f32 %v11530_v33, %v5039_v63  ;;  %4173 = vrot.lane.b32.xlu1 %v3886_v20, %s9545_s29 }
 0x349   : > { %v4076_v9 = vpop.permute.xlu0 %4075  ;;  %v5129_v47 = vadd.f32 %v5128_v11, %v5040_v39 }
 0x34a   : > { %5078 = vmatmul.bf16.gmra.mxu1 %v4269_v30  ;;  %v4362_v15 = vsel %vm2187_vm15, %v4028_v3, %v4076_v9  ;;  %v4144_v3 = vpop.permute.xlu1 %4143  ;;  %v3628_v9 = vsel %vm9661_vm6, %v11539_v62, 0 }
 0x34b   : > { %5251 = vmatmul.bf16.gmra.mxu3 %v4362_v15  ;;  %v11887_v56 = vpop.f32.mrf.mxu2  ;;  %4117 = vrot.lane.b32.xlu0 %v3625_v14, %s9544_s24  ;;  %v4464_v13 = vsel %vm2187_vm15, %v4144_v3, %v4176_v53 }
 0x34d   : > { %v11892_v24 = vpop.f32.mrf.mxu3 }
 0x34e   : > { %v11894_v61 = vpop.f32.mrf.mxu1  ;;  %4203 = vrot.lane.b32.xlu2 %v11582_v32, %s9549_s14  ;;  %v13700_v32 = vld [vmem:[#allocation16_spill] sm:$0xff] }
 0x34f   : > { %6674 = vrot.lane.b32.xlu1 %v11890_v1, %s9543_s23  ;;  %v3627_v59 = vsel %vm9661_vm6, %v13700_v32, 0 }
 0x352   : > { %v4146_v39 = vpop.permute.xlu1 %4145 }
 0x353   : > { %v5133_v50 = vpop.f32.mrf.mxu2  ;;  %4119 = vrot.lane.b32.xlu0 %v3626_v46, %s9544_s24  ;;  %5448 = vmatmul.bf16.vlgmr.msra.gmra.mxu2 %v4464_v13  ;;  %v4467_v30 = vsel %vm2187_vm15, %v4146_v39, %v4178_v21 }
 0x355   : > { %v5217_v27 = vpop.f32.mrf.mxu3 }
 0x356   : > { %v11909_v19 = vadd.f32 %v5217_v27, %v5129_v47  ;;  %4205 = vrot.lane.b32.xlu2 %v11828_v36, %s9549_s14 }
 0x357   : > { %v5044_v48 = vpop.f32.mrf.mxu1  ;;  %4171 = vrot.lane.b32.xlu1 %v3885_v51, %s9545_s29 }
 0x358   : > { %v5045_v2 = vadd.f32 %v11530_v33, %v5044_v48 }
 0x35a   : > { %v5134_v8 = vadd.f32 %v5133_v50, %v5045_v2  ;;  %v13701_v2 = vld [vmem:[#allocation4_spill] sm:$0xff]  ;;  %v4148_v32 = vpop.permute.xlu1 %4147 }
 0x35b   : > { %4121 = vrot.lane.b32.xlu0 %v3627_v59, %s9544_s24  ;;  %v5135_v11 = vpop.f32.mrf.mxu2 }
 0x35c   : > { %v4078_v4 = vpop.permute.xlu0 %4077 }
 0x35d   : > { %v4365_v63 = vsel %vm2187_vm15, %v4030_v40, %v4078_v4  ;;  %v11927_v15 = vpop.f32.mrf.mxu3  ;;  %v4180_v4 = vpop.permute.xlu2 %4179 }
 0x35e   : > { %5256 = vmatmul.bf16.gmra.mxu3 %v4365_v63  ;;  %v4470_v63 = vsel %vm2187_vm15, %v4148_v32, %v4180_v4 }
 0x35f   : > { %v5046_v20 = vpop.f32.mrf.mxu1 }
 0x360   : > { %v5047_v59 = vadd.f32 %v11530_v33, %v5046_v20 }
 0x362   : > { %v5136_v21 = vadd.f32 %v5135_v11, %v5047_v59 }
 0x363   : > { %4123 = vrot.lane.b32.xlu0 %v3628_v9, %s9544_s24  ;;  %5453 = vmatmul.bf16.gmra.mxu2 %v4467_v30 }
 0x364   : > { %v4096_v47 = vpop.permute.xlu0 %4095  ;;  %v5138_v14 = vpop.f32.mrf.mxu2 }
 0x365   : > { %v4368_v53 = vsel %vm2023_vm11, %v9516_v6, %v4096_v47  ;;  %v4416_v40 = vsel %vm2105_vm13, %v4096_v47, %v4144_v3  ;;  %v3935_v3 = vsel %vm9661_vm6, %v13701_v2, 0 }
 0x366   : > { %5270 = vmatmul.bf16.vlgmr.msra.gmra.mxu0 %v4368_v53  ;;  %5359 = vmatmul.bf16.vlgmr.msra.gmra.mxu1 %v4416_v40 }
 0x367   : > { %v5049_v13 = vpop.f32.mrf.mxu1 }
 0x368   : > { %v5050_v46 = vadd.f32 %v11530_v33, %v5049_v13 }
 0x36a   : > { %v5139_v62 = vadd.f32 %v5138_v14, %v5050_v46  ;;  %v9517_v14 = vld [vmem:[#allocation3 + $0x10] sm:$0xff] }
 0x36b   : > { %4125 = vrot.lane.b32.xlu0 %v3629_v49, %s9544_s24 }
 0x36c   : > { %v5222_v50 = vpop.f32.mrf.mxu3  ;;  %v5140_v48 = vpop.f32.mrf.mxu2 }
 0x36d   : > { %v11936_v27 = vadd.f32 %v5222_v50, %v5134_v8  ;;  %v4098_v17 = vpop.permute.xlu0 %4097  ;;  %v13702_v50 = vld [vmem:[#allocation5_spill] sm:$0xff] }
 0x36e   : > { %8867 = vmatmul.msk.bf16.vlgmr.msra.gmra.mxu3 %vm2023_vm11, %v3935_v3  ;;  %v4371_v6 = vsel %vm2023_vm11, %v9517_v14, %v4098_v17  ;;  %v4419_v53 = vsel %vm2105_vm13, %v4098_v17, %v4146_v39  ;;  %v3936_v2 = vsel %vm9661_vm6, %v13702_v50, 0  ;;  %v4150_v3 = vpop.permute.xlu1 %4149  ;;  %v4182_v39 = vpop.permute.xlu2 %4181 }
 0x36f   : > { %v5051_v51 = vpop.f32.mrf.mxu1  ;;  %v4473_v4 = vsel %vm2187_vm15, %v4150_v3, %v4182_v39 }
 0x370   : > { %v5052_v59 = vadd.f32 %v11530_v33, %v5051_v51 }
 0x373   : > { %5458 = vmatmul.bf16.gmra.mxu2 %v4470_v63  ;;  %v5141_v63 = vadd.f32 %v5140_v48, %v5052_v59 }
 0x374   : > { %v5224_v9 = vpop.f32.mrf.mxu3 }
 0x375   : > { %v11944_v8 = vadd.f32 %v5224_v9, %v5136_v21  ;;  %v5143_v30 = vpop.f32.mrf.mxu2  ;;  %v4100_v17 = vpop.permute.xlu0 %4099 }
 0x376   : > { %5275 = vmatmul.bf16.gmra.mxu0 %v4371_v6  ;;  %5364 = vmatmul.bf16.gmra.mxu1 %v4419_v53  ;;  %v4422_v6 = vsel %vm2105_vm13, %v4100_v17, %v4148_v32  ;;  %v4152_v39 = vpop.permute.xlu1 %4151  ;;  %v4184_v32 = vpop.permute.xlu2 %4183 }
 0x377   : > { %v5054_v47 = vpop.f32.mrf.mxu1 }
 0x378   : > { %v5055_v20 = vadd.f32 %v11530_v33, %v5054_v47  ;;  %v9518_v47 = vld [vmem:[#allocation3 + $0x18] sm:$0xff] }
 0x379   : > { %v4374_v14 = vsel %vm2023_vm11, %v9518_v47, %v4100_v17 }
 0x37a   : > { %v5144_v40 = vadd.f32 %v5143_v30, %v5055_v20 }
 0x37d   : > { %v5227_v13 = vpop.f32.mrf.mxu3  ;;  %v5145_v49 = vpop.f32.mrf.mxu2 }
 0x37e   : > { %v11949_v46 = vadd.f32 %v5227_v13, %v5139_v62  ;;  %8868 = vmatmul.msk.bf16.gmra.mxu3 %vm2023_vm11, %v3936_v2  ;;  %v13703_v2 = vld [vmem:[#allocation6_spill] sm:$0xff]  ;;  %v4102_v17 = vpop.permute.xlu0 %4101 }
 0x37f   : > { %v5056_v11 = vpop.f32.mrf.mxu1  ;;  %v3937_v59 = vsel %vm9661_vm6, %v13703_v2, 0  ;;  %v9455_v2 = vld [vmem:[%s13621_s7 + $0x38] sm:$0xff] }
 0x380   : > { %7518 = vmatpush.bf16.msrb.mxu0 %v9455_v2  ;;  %v13653_v2 = vshll.u32 %v11890_v1, 16 }
 0x383   : > { %5463 = vmatmul.bf16.gmra.mxu2 %v4473_v4  ;;  %v5057_v4 = vadd.f32 %v11530_v33, %v5056_v11 }
 0x385   : > { %v5229_v21 = vpop.f32.mrf.mxu3  ;;  %v5148_v9 = vpop.f32.mrf.mxu2 }
 0x386   : > { %v11957_v62 = vadd.f32 %v5229_v21, %v5141_v63  ;;  %5280 = vmatmul.bf16.gmra.mxu0 %v4374_v14  ;;  %5369 = vmatmul.bf16.gmra.mxu1 %v4422_v6  ;;  %v4476_v63 = vsel %vm2187_vm15, %v4152_v39, %v4184_v32  ;;  %v5146_v21 = vadd.f32 %v5145_v49, %v5057_v4  ;;  %v9519_v6 = vld [vmem:[#allocation3 + $0x20] sm:$0xff]  ;;  %v9463_v4 = vld [vmem:[%s13621_s7 + $0x78] sm:$0xff] }
 0x387   : > { %v5059_v30 = vpop.f32.mrf.mxu1  ;;  %v4377_v11 = vsel %vm2023_vm11, %v9519_v6, %v4102_v17  ;;  %7607 = vmatpush.bf16.msrb.mxu1 %v9463_v4  ;;  %v13652_v6 = vshrl.u32 %v11890_v1, 16 }
 0x388   : > { %v5060_v51 = vadd.f32 %v11530_v33, %v5059_v30 }
 0x38a   : > { %v5149_v53 = vadd.f32 %v5148_v9, %v5060_v51  ;;  %v4425_v51 = vsel %vm2105_vm13, %v4102_v17, %v4150_v3 }
 0x38d   : > { %v5232_v20 = vpop.f32.mrf.mxu3  ;;  %v5150_v48 = vpop.f32.mrf.mxu2 }
 0x38e   : > { %v11962_v13 = vadd.f32 %v5232_v20, %v5144_v40  ;;  %8869 = vmatmul.msk.bf16.gmra.mxu3 %vm2023_vm11, %v3937_v59  ;;  %v9471_v40 = vld [vmem:[%s13621_s7 + $0xb8] sm:$0xff]  ;;  %v9474_v59 = vld [vmem:[%s13621_s7 + $0xd0] sm:$0xff] }
 0x38f   : > { %v5061_v50 = vpop.f32.mrf.mxu1  ;;  %7696 = vmatpush.bf16.msrb.mxu2 %v9471_v40  ;;  %7790 = vmatpush.bf16.msrb.mxu3 %v9474_v59 }
 0x393   : > { %5468 = vmatmul.bf16.gmra.mxu2 %v4476_v63 }
 0x395   : > { %v5234_v9 = vpop.f32.mrf.mxu3  ;;  %v5153_v47 = vpop.f32.mrf.mxu2 }
 0x396   : > { %v11973_v30 = vadd.f32 %v5234_v9, %v5146_v21  ;;  %5285 = vmatmul.bf16.gmra.mxu0 %v4377_v11  ;;  %5374 = vmatmul.bf16.gmra.mxu1 %v4425_v51  ;;  %v13706_v21 = vld [vmem:[#allocation7_spill] sm:$0xff]  ;;  %v4154_v9 = vpop.permute.xlu1 %4153  ;;  %v4104_v51 = vpop.permute.xlu0 %4103 }
 0x397   : > { %v5064_v14 = vpop.f32.mrf.mxu1  ;;  %v3938_v40 = vsel %vm9661_vm6, %v13706_v21, 0 }
 0x398   : > { %13704 = vst [vmem:[#allocation16_spill] sm:$0xff] %v11973_v30  ;;  %v5065_v20 = vadd.f32 %v11530_v33, %v5064_v14  ;;  %v4186_v14 = vpop.permute.xlu2 %4185  ;;  %v5200_v30 = vadd.f32 %v11735_v41, %v11724_v10 }
 0x399   : > { %v4479_v11 = vsel %vm2187_vm15, %v4154_v9, %v4186_v14 }
 0x39a   : > { %v5154_v49 = vadd.f32 %v5153_v47, %v5065_v20  ;;  %v5062_v47 = vadd.f32 %v11530_v33, %v5061_v50 }
 0x39c   : > { %v5151_v20 = vadd.f32 %v5150_v48, %v5062_v47  ;;  %v4428_v48 = vsel %vm2105_vm13, %v4104_v51, %v4152_v39 }
 0x39d   : > { %v5237_v3 = vpop.f32.mrf.mxu3  ;;  %v5155_v63 = vpop.f32.mrf.mxu2 }
 0x39e   : > { %v11987_v32 = vadd.f32 %v5237_v3, %v5149_v53  ;;  %8870 = vmatmul.msk.bf16.gmra.mxu3 %vm2023_vm11, %v3938_v40  ;;  %v5829_v53 = vrot.slane %v13652_v6, 7  ;;  %v9520_v40 = vld [vmem:[#allocation3 + $0x28] sm:$0xff]  ;;  %v13709_v6 = vld [vmem:[#allocation8_spill] sm:$0xff] }
 0x39f   : > { %v5066_v17 = vpop.f32.mrf.mxu1  ;;  %v4380_v14 = vsel %vm2023_vm11, %v9520_v40, %v4104_v51 }
 0x3a0   : > { %13705 = vst [vmem:[#allocation4_spill] sm:$0xff] %v11987_v32  ;;  %v12003_v50 = vor.u32 %v13653_v2, %v5829_v53  ;;  %v3939_v53 = vsel %vm9661_vm6, %v13709_v6, 0  ;;  %v4156_v2 = vpop.permute.xlu1 %4155  ;;  %v5067_v40 = vadd.f32 %v11530_v33, %v5066_v17  ;;  %v4188_v39 = vpop.permute.xlu2 %4187 }
 0x3a1   : > { %v4482_v51 = vsel %vm2187_vm15, %v4156_v2, %v4188_v39  ;;  %v9454_v39 = vld [vmem:[%s13621_s7 + $0x30] sm:$0xff] }
 0x3a2   : > { %7519 = vmatpush.bf16.msrb.mxu0 %v9454_v39 }
 0x3a3   : > { %5473 = vmatmul.bf16.gmra.mxu2 %v4479_v11 }
 0x3a5   : > { %v5239_v59 = vpop.f32.mrf.mxu3 }
 0x3a6   : > { %v11999_v4 = vadd.f32 %v5239_v59, %v5151_v20  ;;  %v5158_v21 = vpop.f32.mrf.mxu2  ;;  %5290 = vmatmul.bf16.gmra.mxu0 %v4380_v14  ;;  %5379 = vmatmul.bf16.gmra.mxu1 %v4428_v48 }
 0x3a7   : > { %v5069_v3 = vpop.f32.mrf.mxu1 }
 0x3a8   : > { %13707 = vst [vmem:[#allocation5_spill] sm:$0xff] %v11999_v4  ;;  %v5070_v47 = vadd.f32 %v11530_v33, %v5069_v3  ;;  %v4106_v3 = vpop.permute.xlu0 %4105 }
 0x3a9   : > { %v4431_v17 = vsel %vm2105_vm13, %v4106_v3, %v4154_v9 }
 0x3aa   : > { %v5159_v11 = vadd.f32 %v5158_v21, %v5070_v47  ;;  %v9521_v47 = vld [vmem:[#allocation3 + $0x30] sm:$0xff] }
 0x3ae   : > { %v5242_v18 = vpop.f32.mrf.mxu3  ;;  %v5160_v59 = vpop.f32.mrf.mxu2  ;;  %8871 = vmatmul.msk.bf16.gmra.mxu3 %vm2023_vm11, %v3939_v53  ;;  %v4383_v53 = vsel %vm2023_vm11, %v9521_v47, %v4106_v3  ;;  %v13712_v3 = vld [vmem:[#allocation9_spill] sm:$0xff] }
 0x3af   : > { %v5071_v5 = vpop.f32.mrf.mxu1  ;;  %v12008_v20 = vadd.f32 %v5242_v18, %v5154_v49  ;;  %v9470_v18 = vld [vmem:[%s13621_s7 + $0xb0] sm:$0xff]  ;;  %v5156_v49 = vadd.f32 %v5155_v63, %v5067_v40  ;;  %v3940_v47 = vsel %vm9661_vm6, %v13712_v3, 0 }
 0x3b0   : > { %7697 = vmatpush.bf16.msrb.mxu2 %v9470_v18  ;;  %v9462_v63 = vld [vmem:[%s13621_s7 + $0x70] sm:$0xff]  ;;  %v4108_v39 = vpop.permute.xlu0 %4107 }
 0x3b1   : > { %13708 = vst [vmem:[#allocation6_spill] sm:$0xff] %v12008_v20  ;;  %7608 = vmatpush.bf16.msrb.mxu1 %v9462_v63  ;;  %v4434_v3 = vsel %vm2105_vm13, %v4108_v39, %v4156_v2  ;;  %v12052_v2 = vld [vmem:[%s13620_s6] ss:$0 sm:$0xff] }
 0x3b3   : > { %5478 = vmatmul.bf16.gmra.mxu2 %v4482_v51 }
 0x3b6   : > { %v5244_v21 = vpop.f32.mrf.mxu3  ;;  %v5163_v6 = vpop.f32.mrf.mxu2  ;;  %5295 = vmatmul.bf16.gmra.mxu0 %v4383_v53  ;;  %5384 = vmatmul.bf16.gmra.mxu1 %v4431_v17 }
 0x3b7   : > { %v5074_v14 = vpop.f32.mrf.mxu1  ;;  %v12019_v48 = vadd.f32 %v5244_v21, %v5156_v49  ;;  %v4190_v53 = vpop.permute.xlu2 %4189 }
 0x3b8   : > { %v5075_v51 = vadd.f32 %v11530_v33, %v5074_v14  ;;  %v5072_v14 = vadd.f32 %v11530_v33, %v5071_v5 }
 0x3b9   : > { %13710 = vst [vmem:[#allocation7_spill] sm:$0xff] %v12019_v48  ;;  %v4158_v48 = vpop.permute.xlu1 %4157 }
 0x3ba   : > { %v5164_v40 = vadd.f32 %v5163_v6, %v5075_v51  ;;  %v4485_v17 = vsel %vm2187_vm15, %v4158_v48, %v4190_v53  ;;  %v5161_v6 = vadd.f32 %v5160_v59, %v5072_v14  ;;  %v13715_v59 = vld [vmem:[#allocation10_spill] sm:$0xff] }
 0x3bb   : > { %v3941_v14 = vsel %vm9661_vm6, %v13715_v59, 0  ;;  %v9453_v59 = vld [vmem:[%s13621_s7 + $0x28] sm:$0xff] }
 0x3bc   : > { %7520 = vmatpush.bf16.msrb.mxu0 %v9453_v59  ;;  %v13720_v59 = vshrl.u32 %v11890_v1, 16 }
 0x3be   : > { %v5247_v18 = vpop.f32.mrf.mxu3  ;;  %v5165_v9 = vpop.f32.mrf.mxu2  ;;  %8872 = vmatmul.msk.bf16.gmra.mxu3 %vm2023_vm11, %v3940_v47 }
 0x3bf   : > { %v5076_v49 = vpop.f32.mrf.mxu1  ;;  %v12030_v21 = vadd.f32 %v5247_v18, %v5159_v11 }
 0x3c1   : > { %13711 = vst [vmem:[#allocation8_spill] sm:$0xff] %v12030_v21  ;;  %v9522_v21 = vld [vmem:[#allocation3 + $0x38] sm:$0xff] }
 0x3c2   : > { %v4386_v20 = vsel %vm2023_vm11, %v9522_v21, %v4108_v39 }
 0x3c3   : > { %5483 = vmatmul.bf16.gmra.mxu2 %v4485_v17 }
 0x3c6   : > { %v5249_v51 = vpop.f32.mrf.mxu3  ;;  %v5168_v18 = vpop.f32.mrf.mxu2  ;;  %5300 = vmatmul.bf16.gmra.mxu0 %v4386_v20  ;;  %5389 = vmatmul.bf16.gmra.mxu1 %v4434_v3 }
 0x3c7   : > { %v5079_v63 = vpop.f32.mrf.mxu1  ;;  %v12038_v11 = vadd.f32 %v5249_v51, %v5161_v6  ;;  %v4160_v6 = vpop.permute.xlu1 %4159 }
 0x3c8   : > { %v5080_v47 = vadd.f32 %v11530_v33, %v5079_v63  ;;  %v5077_v33 = vadd.f32 %v12052_v2, %v5076_v49  ;;  %v4192_v20 = vpop.permute.xlu2 %4191  ;;  %v9469_v49 = vld [vmem:[%s13621_s7 + $0xa8] sm:$0xff] }
 0x3c9   : > { %13713 = vst [vmem:[#allocation9_spill] sm:$0xff] %v12038_v11  ;;  %v4488_v21 = vsel %vm2187_vm15, %v4160_v6, %v4192_v20  ;;  %7698 = vmatpush.bf16.msrb.mxu2 %v9469_v49 }
 0x3ca   : > { %v5169_v5 = vadd.f32 %v5168_v18, %v5080_v47  ;;  %v9524_v18 = vld [vmem:[#allocation3 + $0x40] sm:$0xff] }
 0x3ce   : > { %v5252_v4 = vpop.f32.mrf.mxu3  ;;  %v5170_v17 = vpop.f32.mrf.mxu2  ;;  %8873 = vmatmul.msk.bf16.gmra.mxu3 %vm2023_vm11, %v3941_v14 }
 0x3cf   : > { %v12043_v53 = vadd.f32 %v5252_v4, %v5164_v40  ;;  %v4110_v4 = vpop.permute.xlu0 %4109  ;;  %v5166_v40 = vadd.f32 %v5165_v9, %v5077_v33  ;;  %v9461_v9 = vld [vmem:[%s13621_s7 + $0x68] sm:$0xff]  ;;  %v5081_v14 = vpop.f32.mrf.mxu1 }
 0x3d0   : > { %v4389_v3 = vsel %vm2023_vm11, %v9524_v18, %v4110_v4  ;;  %v4437_v47 = vsel %vm2105_vm13, %v4110_v4, %v4158_v48  ;;  %7609 = vmatpush.bf16.msrb.mxu1 %v9461_v9  ;;  %v13717_v48 = vld [vmem:[#allocation11_spill] sm:$0xff]  ;;  %v4194_v4 = vpop.permute.xlu2 %4193 }
 0x3d1   : > { %13714 = vst [vmem:[#allocation18_spill] sm:$0xff] %v12043_v53  ;;  %v3942_v20 = vsel %vm9661_vm6, %v13717_v48, 0  ;;  %v5082_v48 = vadd.f32 %v12052_v2, %v5081_v14 }
 0x3d3   : > { %5488 = vmatmul.bf16.gmra.mxu2 %v4488_v21  ;;  %v4162_v21 = vpop.permute.xlu1 %4161 }
 0x3d6   : > { %v5254_v39 = vpop.f32.mrf.mxu3  ;;  %v5449_v63 = vpop.f32.mrf.mxu2  ;;  %5305 = vmatmul.bf16.gmra.mxu0 %v4389_v3  ;;  %5394 = vmatmul.bf16.gmra.mxu1 %v4437_v47  ;;  %v4491_v3 = vsel %vm2187_vm15, %v4162_v21, %v4194_v4 }
 0x3d7   : > { %v12056_v51 = vadd.f32 %v5254_v39, %v5166_v40  ;;  %v13718_v40 = vshll.u32 %v11890_v1, 16  ;;  %v4112_v47 = vpop.permute.xlu0 %4111  ;;  %v5171_v1 = vadd.f32 %v5170_v17, %v5082_v48 }
 0x3d8   : > { %v4440_v4 = vsel %vm2105_vm13, %v4112_v47, %v4160_v6  ;;  %v4196_v17 = vpop.permute.xlu2 %4195 }
 0x3d9   : > { %13716 = vst [vmem:[#allocation10_spill] sm:$0xff] %v12056_v51  ;;  %v5970_v39 = vrot.slane %v13718_v40, 1  ;;  %v9525_v40 = vld [vmem:[#allocation3 + $0x48] sm:$0xff] }
 0x3da   : > { %v4392_v32 = vsel %vm2023_vm11, %v9525_v40, %v4112_v47  ;;  %v9473_v47 = vld [vmem:[%s13621_s7 + $0xc8] sm:$0xff] }
 0x3db   : > { %v5971_v9 = vor.u32 %v5970_v39, %v13720_v59  ;;  %v4164_v6 = vpop.permute.xlu1 %4163  ;;  %7791 = vmatpush.bf16.msrb.mxu3 %v9473_v47 }
 0x3dc   : > { %v4494_v48 = vsel %vm2187_vm15, %v4164_v6, %v4196_v17  ;;  %v9452_v17 = vld [vmem:[%s13621_s7 + $0x20] sm:$0xff] }
 0x3dd   : > { %7521 = vmatpush.bf16.msrb.mxu0 %v9452_v17 }
 0x3de   : > { %v5451_v33 = vpop.f32.mrf.mxu2  ;;  %8874 = vmatmul.msk.bf16.gmra.mxu3 %vm2023_vm11, %v3942_v20  ;;  %v6018_v20 = vsel %vm9661_vm6, %v5971_v9, 0 }
 0x3df   : > { %6722 = vrot.lane.b32.xlu2 %v6018_v20, %s9544_s24  ;;  %v4114_v20 = vpop.permute.xlu0 %4113 }
 0x3e1   : > { %v5257_v18 = vpop.f32.mrf.mxu3 }
 0x3e2   : > { %v12076_v49 = vadd.f32 %v5257_v18, %v5169_v5 }
 0x3e3   : > { %5493 = vmatmul.bf16.gmra.mxu2 %v4491_v3  ;;  %v5271_v51 = vpop.f32.mrf.mxu0  ;;  %v5360_v53 = vpop.f32.mrf.mxu1 }
 0x3e4   : > { %13719 = vst [vmem:[#allocation11_spill] sm:$0xff] %v12076_v49  ;;  %v5272_v5 = vadd.f32 %v5271_v51, %v11563_v43  ;;  %v13722_v49 = vld [vmem:[#allocation12_spill] sm:$0xff] }
 0x3e5   : > { %v3943_v40 = vsel %vm9661_vm6, %v13722_v49, 0 }
 0x3e6   : > { %v12083_v11 = vpop.f32.mrf.mxu2  ;;  %5310 = vmatmul.bf16.gmra.mxu0 %v4392_v32  ;;  %5399 = vmatmul.bf16.gmra.mxu1 %v4440_v4  ;;  %v5361_v59 = vadd.f32 %v5360_v53, %v5272_v5  ;;  %v5185_v32 = vadd.f32 %v11569_v58, %v11576_v28 }
 0x3e8   : > { %v5450_v51 = vadd.f32 %v5449_v63, %v5361_v59 }
 0x3e9   : > { %v5259_v39 = vpop.f32.mrf.mxu3 }
 0x3ea   : > { %v12089_v18 = vadd.f32 %v5259_v39, %v5171_v1  ;;  %v9526_v39 = vld [vmem:[#allocation3 + $0x50] sm:$0xff] }
 0x3eb   : > { %v5273_v14 = vpop.f32.mrf.mxu0  ;;  %v5362_v3 = vpop.f32.mrf.mxu1  ;;  %v4395_v63 = vsel %vm2023_vm11, %v9526_v39, %v4114_v20 }
 0x3ec   : > { %13721 = vst [vmem:[#allocation19_spill] sm:$0xff] %v12089_v18  ;;  %v5274_v43 = vadd.f32 %v5273_v14, %v5185_v32  ;;  %v4443_v14 = vsel %vm2105_vm13, %v4114_v20, %v4162_v21  ;;  %v9460_v21 = vld [vmem:[%s13621_s7 + $0x60] sm:$0xff]  ;;  %v4198_v39 = vpop.permute.xlu2 %4197 }
 0x3ed   : > { %7610 = vmatpush.bf16.msrb.mxu1 %v9460_v21 }
 0x3ee   : > { %v12091_v9 = vpop.f32.mrf.mxu2  ;;  %8875 = vmatmul.msk.bf16.gmra.mxu3 %vm2023_vm11, %v3943_v40  ;;  %v5363_v5 = vadd.f32 %v5362_v3, %v5274_v43  ;;  %v9468_v3 = vld [vmem:[%s13621_s7 + $0xa0] sm:$0xff] }
 0x3ef   : > { %7699 = vmatpush.bf16.msrb.mxu2 %v9468_v3 }
 0x3f0   : > { %v5452_v32 = vadd.f32 %v5451_v33, %v5363_v5 }
 0x3f1   : > { %v5538_v53 = vpop.f32.mrf.mxu3 }
 0x3f2   : > { %v5539_v4 = vadd.f32 %v5538_v53, %v5450_v51 }
 0x3f3   : > { %5498 = vmatmul.bf16.gmra.mxu2 %v4494_v48  ;;  %v5276_v49 = vpop.f32.mrf.mxu0  ;;  %v5365_v1 = vpop.f32.mrf.mxu1 }
 0x3f4   : > { %v5618_v58 = vmax.f32 %v5539_v4, 0.0  ;;  %v5277_v40 = vadd.f32 %v5276_v49, %v11612_v12  ;;  %v12118_v12 = vpop.permute.xlu1 %4165  ;;  %v13723_v4 = vld [vmem:[#allocation13_spill] sm:$0xff] }
 0x3f5   : > { %v3944_v49 = vsel %vm9661_vm6, %v13723_v4, 0 }
 0x3f6   : > { %v12103_v28 = vpop.f32.mrf.mxu2  ;;  %v5650_v59 = vpack.c.bf16 %v5618_v58, %v5618_v58  ;;  %5315 = vmatmul.bf16.gmra.mxu0 %v4395_v63  ;;  %5404 = vmatmul.bf16.gmra.mxu1 %v4443_v14  ;;  %v5366_v33 = vadd.f32 %v5365_v1, %v5277_v40  ;;  %v5190_v58 = vadd.f32 %v11641_v44, %v11629_v7  ;;  %v4116_v40 = vpop.permute.xlu0 %4115  ;;  %v9527_v44 = vld [vmem:[#allocation3 + $0x58] sm:$0xff] }
 0x3f8   : > { %5682 = vst.msk [vmem:[#allocation2 + $0x8] sm:$0xf] %vm334_vm3, %v5650_v59  ;;  %v5455_v14 = vadd.f32 %v12083_v11, %v5366_v33  ;;  %v4497_v59 = vsel %vm2187_vm15, %v12118_v12, %v4198_v39 }
 0x3f9   : > { %v5540_v43 = vpop.f32.mrf.mxu3 }
 0x3fa   : > { %v5541_v51 = vadd.f32 %v5540_v43, %v5452_v32 }
 0x3fb   : > { %v5278_v47 = vpop.f32.mrf.mxu0  ;;  %v5367_v53 = vpop.f32.mrf.mxu1 }
 0x3fc   : > { %v5619_v48 = vmax.f32 %v5541_v51, 0.0  ;;  %v5279_v63 = vadd.f32 %v5278_v47, %v5190_v58  ;;  %v4398_v51 = vsel %vm2023_vm11, %v9527_v44, %v4116_v40  ;;  %v4446_v47 = vsel %vm2105_vm13, %v4116_v40, %v4164_v6 }
 0x3fe   : > { %v12120_v20 = vpop.f32.mrf.mxu2  ;;  %v5651_v5 = vpack.c.bf16 %v5619_v48, %v5619_v48  ;;  %8876 = vmatmul.msk.bf16.gmra.mxu3 %vm2023_vm11, %v3944_v49  ;;  %v5368_v21 = vadd.f32 %v5367_v53, %v5279_v63  ;;  %v12136_v48 = vpop.permute.xlu1 %4167 }
 0x400   : > { %5683 = vst.msk [vmem:[#allocation2 + $0xc] sm:$0xf] %vm334_vm3, %v5651_v5  ;;  %v5457_v53 = vadd.f32 %v12091_v9, %v5368_v21  ;;  %v13724_v9 = vld [vmem:[#allocation14_spill] sm:$0xff] }
 0x401   : > { %v5543_v1 = vpop.f32.mrf.mxu3 }
 0x402   : > { %v5544_v32 = vadd.f32 %v5543_v1, %v5455_v14 }
 0x403   : > { %5503 = vmatmul.bf16.gmra.mxu2 %v4497_v59  ;;  %v5281_v3 = vpop.f32.mrf.mxu0  ;;  %v5370_v17 = vpop.f32.mrf.mxu1 }
 0x404   : > { %v5620_v43 = vmax.f32 %v5544_v32, 0.0  ;;  %v5282_v49 = vadd.f32 %v5281_v3, %v11666_v0  ;;  %v3945_v3 = vsel %vm9661_vm6, %v13724_v9, 0 }
 0x406   : > { %v12132_v7 = vpop.f32.mrf.mxu2  ;;  %v5652_v11 = vpack.c.bf16 %v5620_v43, %v5620_v43  ;;  %5320 = vmatmul.bf16.gmra.mxu0 %v4398_v51  ;;  %5409 = vmatmul.bf16.gmra.mxu1 %v4446_v47  ;;  %v5371_v44 = vadd.f32 %v5370_v17, %v5282_v49 }
 0x407   : > { %v9416_v33 = vld [vmem:[#allocation2 + $0x8] sm:$0xff] }
 0x408   : > { %v9401_v4 = vld [vmem:[#allocation2 + $0x8] sm:$0xff]  ;;  %5684 = vst.msk [vmem:[#allocation2 + $0x10] sm:$0xf] %vm334_vm3, %v5652_v11  ;;  %6802 = vrot.lane.b32.xlu1 %v9416_v33, %s9545_s29  ;;  %v6147_v58 = vshrl.u32 %v9416_v33, 16  ;;  %v6150_v6 = vshll.u32 %v9416_v33, 16  ;;  %v5195_v33 = vadd.f32 %v11687_v29, %v11679_v34 }
 0x409   : > { %v5545_v5 = vpop.f32.mrf.mxu3  ;;  %6676 = vrot.lane.b32.xlu2 %v9401_v4, %s9543_s23  ;;  %v5834_v39 = vshrl.u32 %v9401_v4, 16  ;;  %v5837_v32 = vshll.u32 %v9401_v4, 16 }
 0x40a   : > { %v5546_v63 = vadd.f32 %v5545_v5, %v5457_v53  ;;  %v6149_v59 = vrot.slane %v6147_v58, 7  ;;  %v6290_v40 = vrot.slane %v6150_v6, 1  ;;  %v4200_v5 = vpop.permute.xlu2 %4199 }
 0x40b   : > { %v5283_v14 = vpop.f32.mrf.mxu0  ;;  %v5372_v1 = vpop.f32.mrf.mxu1  ;;  %v5836_v43 = vrot.slane %v5834_v39, 7  ;;  %v5972_v49 = vrot.slane %v5837_v32, 1  ;;  %v4500_v29 = vsel %vm2187_vm15, %v12136_v48, %v4200_v5  ;;  %v9459_v5 = vld [vmem:[%s13621_s7 + $0x58] sm:$0xff] }
 0x40c   : > { %v5621_v51 = vmax.f32 %v5546_v63, 0.0  ;;  %v6152_v21 = vor.u32 %v6150_v6, %v6149_v59  ;;  %v6291_v47 = vor.u32 %v6290_v40, %v6147_v58  ;;  %v12157_v63 = vpop.permute.xlu1 %4169  ;;  %v5284_v58 = vadd.f32 %v5283_v14, %v5195_v33  ;;  %v4118_v59 = vpop.permute.xlu0 %4117  ;;  %v9528_v14 = vld [vmem:[#allocation3 + $0x60] sm:$0xff]  ;;  %7611 = vmatpush.bf16.msrb.mxu1 %v9459_v5 }
 0x40d   : > { %v12148_v11 = vor.u32 %v5837_v32, %v5836_v43  ;;  %v5460_v6 = vadd.f32 %v12103_v28, %v5371_v44  ;;  %v4401_v28 = vsel %vm2023_vm11, %v9528_v14, %v4118_v59  ;;  %v4449_v44 = vsel %vm2105_vm13, %v4118_v59, %v12118_v12  ;;  %v9467_v12 = vld [vmem:[%s13621_s7 + $0x98] sm:$0xff] }
 0x40e   : > { %v12143_v0 = vpop.f32.mrf.mxu2  ;;  %v5653_v53 = vpack.c.bf16 %v5621_v51, %v5621_v51  ;;  %8877 = vmatmul.msk.bf16.gmra.mxu3 %vm2023_vm11, %v3945_v3  ;;  %v6274_v17 = vsel %vm9689_vm9, 0, %v6152_v21  ;;  %v6338_v4 = vsel %vm9661_vm6, %v6291_v47, 0  ;;  %v5973_v51 = vor.u32 %v5972_v49, %v5834_v39  ;;  %v9451_v49 = vld [vmem:[%s13621_s7 + $0x18] sm:$0xff]  ;;  %7700 = vmatpush.bf16.msrb.mxu2 %v9467_v12 }
 0x40f   : > { %13725 = vst [vmem:[#allocation12_spill] sm:$0xff] %v12148_v11  ;;  %6770 = vrot.lane.b32.xlu0 %v6274_v17, %s9546_s11  ;;  %v5373_v9 = vadd.f32 %v5372_v1, %v5284_v58  ;;  %7522 = vmatpush.bf16.msrb.mxu0 %v9451_v49 }
 0x410   : > { %5685 = vst.msk [vmem:[#allocation2 + $0x14] sm:$0xf] %vm334_vm3, %v5653_v53  ;;  %6850 = vrot.lane.b32.xlu1 %v6338_v4, %s9548_s13  ;;  %v6019_v33 = vsel %vm9661_vm6, %v5973_v51, 0 }
 0x411   : > { %v5548_v34 = vpop.f32.mrf.mxu3  ;;  %v5462_v4 = vadd.f32 %v12120_v20, %v5373_v9 }
 0x412   : > { %v5549_v40 = vadd.f32 %v5548_v34, %v5460_v6 }
 0x413   : > { %5508 = vmatmul.bf16.gmra.mxu2 %v4500_v29  ;;  %v5286_v32 = vpop.f32.mrf.mxu0  ;;  %v5375_v43 = vpop.f32.mrf.mxu1 }
 0x414   : > { %v5622_v3 = vmax.f32 %v5549_v40, 0.0  ;;  %v5287_v1 = vadd.f32 %v5286_v32, %v11708_v54  ;;  %v12192_v34 = vpop.permute.xlu1 %4173 }
 0x416   : > { %v12165_v21 = vpop.f32.mrf.mxu2  ;;  %v5654_v47 = vpack.c.bf16 %v5622_v3, %v5622_v3  ;;  %5325 = vmatmul.bf16.gmra.mxu0 %v4401_v28  ;;  %5414 = vmatmul.bf16.gmra.mxu1 %v4449_v44  ;;  %v5376_v44 = vadd.f32 %v5375_v43, %v5287_v1 }
 0x417   : > { %v12172_v53 = vld [vmem:[#allocation2 + $0x10] sm:$0xff]  ;;  %6724 = vrot.lane.b32.xlu0 %v6019_v33, %s9544_s24 }
 0x418   : > { %v9432_v17 = vld [vmem:[#allocation2 + $0x10] sm:$0xff]  ;;  %5686 = vst.msk [vmem:[#allocation2 + $0x18] sm:$0xf] %vm334_vm3, %v5654_v47  ;;  %6804 = vrot.lane.b32.xlu2 %v12172_v53, %s9545_s29  ;;  %v6154_v54 = vshrl.u32 %v12172_v53, 16  ;;  %v6157_v59 = vshll.u32 %v12172_v53, 16 }
 0x419   : > { %v12174_v39 = vld [vmem:[#allocation2 + $0x10] sm:$0xff]  ;;  %v5550_v58 = vpop.f32.mrf.mxu3  ;;  %v6467_v20 = vshrl.u32 %v9432_v17, 16  ;;  %v6470_v6 = vshll.u32 %v9432_v17, 16 }
 0x41a   : > { %v5551_v29 = vadd.f32 %v5550_v58, %v5462_v4  ;;  %v5841_v40 = vshrl.u32 %v12174_v39, 16  ;;  %v6156_v9 = vrot.slane %v6154_v54, 7  ;;  %v5844_v28 = vshll.u32 %v12174_v39, 16  ;;  %v13726_v4 = vld [vmem:[#allocation15_spill] sm:$0xff] }
 0x41b   : > { %v5288_v32 = vpop.f32.mrf.mxu0  ;;  %v5377_v51 = vpop.f32.mrf.mxu1  ;;  %v6469_v3 = vrot.slane %v6467_v20, 7  ;;  %v6610_v14 = vrot.slane %v6470_v6, 1  ;;  %v3946_v53 = vsel %vm9661_vm6, %v13726_v4, 0  ;;  %v6292_v10 = vrot.slane %v6157_v59, 1 }
 0x41c   : > { %v5623_v47 = vmax.f32 %v5551_v29, 0.0  ;;  %v5843_v33 = vrot.slane %v5841_v40, 7  ;;  %v6159_v58 = vor.u32 %v6157_v59, %v6156_v9  ;;  %v5974_v29 = vrot.slane %v5844_v28, 1  ;;  %v4202_v4 = vpop.permute.xlu2 %4201 }
 0x41d   : > { %v6472_v12 = vor.u32 %v6470_v6, %v6469_v3  ;;  %v12202_v49 = vor.u32 %v6610_v14, %v6467_v20  ;;  %v5289_v20 = vadd.f32 %v5288_v32, %v5200_v30  ;;  %v5465_v6 = vadd.f32 %v12132_v7, %v5376_v44  ;;  %v4120_v3 = vpop.permute.xlu0 %4119  ;;  %v12220_v30 = vpop.permute.xlu1 %6674 }
 0x41e   : > { %v12197_v18 = vpop.f32.mrf.mxu2  ;;  %v5655_v11 = vpack.c.bf16 %v5623_v47, %v5623_v47  ;;  %8878 = vmatmul.msk.bf16.gmra.mxu3 %vm2023_vm11, %v3946_v53  ;;  %v12207_v5 = vor.u32 %v5844_v28, %v5843_v33  ;;  %v6275_v43 = vsel %vm9689_vm9, 0, %v6159_v58  ;;  %v4503_v9 = vsel %vm2187_vm15, %v12157_v63, %v4202_v4 }
 0x41f   : > { %v6594_v1 = vsel %vm9689_vm9, 0, %v6472_v12  ;;  %6772 = vrot.lane.b32.xlu1 %v6275_v43, %s9546_s11  ;;  %6930 = vrot.lane.b32.xlu0 %v9432_v17, %s9547_s12  ;;  %v5378_v7 = vadd.f32 %v5377_v51, %v5289_v20  ;;  %v6293_v44 = vor.u32 %v6292_v10, %v6154_v54  ;;  %v9529_v17 = vld [vmem:[#allocation3 + $0x68] sm:$0xff]  ;;  %v4452_v53 = vsel %vm2105_vm13, %v4120_v3, %v12136_v48 }
 0x420   : > { %5687 = vst.msk [vmem:[#allocation2 + $0x1c] sm:$0xf] %vm334_vm3, %v5655_v11  ;;  %6898 = vrot.lane.b32.xlu2 %v6594_v1, %s9549_s14  ;;  %v5975_v11 = vor.u32 %v5974_v29, %v5841_v40  ;;  %v4404_v59 = vsel %vm2023_vm11, %v9529_v17, %v4120_v3  ;;  %v5027_v58 = vadd.f32 %v12052_v2, %v11760_v42 }
 0x421   : > { %v5553_v41 = vpop.f32.mrf.mxu3  ;;  %v5467_v48 = vadd.f32 %v12143_v0, %v5378_v7  ;;  %v6339_v42 = vsel %vm9661_vm6, %v6293_v44, 0 }
 0x422   : > { %v5554_v14 = vadd.f32 %v5553_v41, %v5465_v6  ;;  %v6020_v40 = vsel %vm9661_vm6, %v5975_v11, 0  ;;  %v5116_v6 = vadd.f32 %v11755_v37, %v5027_v58  ;;  %v13727_v37 = vld [vmem:[#allocation17_spill] sm:$0xff] }
 0x423   : > { %5513 = vmatmul.bf16.gmra.mxu2 %v4503_v9  ;;  %v5291_v28 = vpop.f32.mrf.mxu0  ;;  %v5380_v47 = vpop.f32.mrf.mxu1  ;;  %v3947_v17 = vsel %vm9661_vm6, %v13727_v37, 0 }
 0x424   : > { %v5624_v32 = vmax.f32 %v5554_v14, 0.0  ;;  %v5292_v1 = vadd.f32 %v5291_v28, %v11758_v16  ;;  %v5205_v58 = vadd.f32 %v11796_v35, %v5116_v6 }
 0x426   : > { %v12222_v33 = vpop.f32.mrf.mxu2  ;;  %v5656_v12 = vpack.c.bf16 %v5624_v32, %v5624_v32  ;;  %5330 = vmatmul.bf16.gmra.mxu0 %v4404_v59  ;;  %5419 = vmatmul.bf16.gmra.mxu1 %v4452_v53  ;;  %v5381_v28 = vadd.f32 %v5380_v47, %v5292_v1 }
 0x427   : > { %v9433_v51 = vld [vmem:[#allocation2 + $0x18] sm:$0xff]  ;;  %6726 = vrot.lane.b32.xlu1 %v6020_v40, %s9544_s24  ;;  %6678 = vrot.lane.b32.xlu0 %v12174_v39, %s9543_s23 }
 0x428   : > { %v12231_v43 = vld [vmem:[#allocation2 + $0x18] sm:$0xff]  ;;  %5688 = vst.msk [vmem:[#allocation2 + $0x20] sm:$0xf] %vm334_vm3, %v5656_v12  ;;  %6852 = vrot.lane.b32.xlu2 %v6339_v42, %s9548_s13  ;;  %v6477_v20 = vshll.u32 %v9433_v51, 16  ;;  %v6474_v3 = vshrl.u32 %v9433_v51, 16  ;;  %v12259_v12 = vpop.permute.xlu1 %4171  ;;  %v4204_v42 = vpop.permute.xlu2 %4203 }
 0x429   : > { %v12233_v54 = vld [vmem:[#allocation2 + $0x18] sm:$0xff]  ;;  %v5555_v29 = vpop.f32.mrf.mxu3  ;;  %v6161_v4 = vshrl.u32 %v12231_v43, 16  ;;  %v6164_v39 = vshll.u32 %v12231_v43, 16 }
 0x42a   : > { %v5556_v10 = vadd.f32 %v5555_v29, %v5467_v48  ;;  %v5848_v16 = vshrl.u32 %v12233_v54, 16  ;;  %v6612_v14 = vrot.slane %v6477_v20, 1  ;;  %v5851_v7 = vshll.u32 %v12233_v54, 16 }
 0x42b   : > { %v5293_v0 = vpop.f32.mrf.mxu0  ;;  %v5382_v41 = vpop.f32.mrf.mxu1  ;;  %v6163_v9 = vrot.slane %v6161_v4, 7  ;;  %v6476_v48 = vrot.slane %v6474_v3, 7 }
 0x42c   : > { %v5625_v11 = vmax.f32 %v5556_v10, 0.0  ;;  %v5850_v32 = vrot.slane %v5848_v16, 7  ;;  %v12256_v53 = vor.u32 %v6612_v14, %v6474_v3  ;;  %v5294_v29 = vadd.f32 %v5293_v0, %v5205_v58  ;;  %v4122_v14 = vpop.permute.xlu0 %4121 }
 0x42d   : > { %v6166_v59 = vor.u32 %v6164_v39, %v6163_v9  ;;  %v5470_v10 = vadd.f32 %v12165_v21, %v5381_v28  ;;  %v5976_v35 = vrot.slane %v5851_v7, 1  ;;  %v4506_v9 = vsel %vm2187_vm15, %v12259_v12, %v4204_v42 }
 0x42e   : > { %v12251_v44 = vpop.f32.mrf.mxu2  ;;  %v5657_v40 = vpack.c.bf16 %v5625_v11, %v5625_v11  ;;  %8879 = vmatmul.msk.bf16.gmra.mxu3 %vm2023_vm11, %v3947_v17  ;;  %v12262_v47 = vor.u32 %v5851_v7, %v5850_v32  ;;  %v6479_v0 = vor.u32 %v6477_v20, %v6476_v48  ;;  %v5383_v37 = vadd.f32 %v5382_v41, %v5294_v29  ;;  %v9530_v17 = vld [vmem:[#allocation3 + $0x70] sm:$0xff]  ;;  %v9450_v29 = vld [vmem:[%s13621_s7 + $0x10] sm:$0xff] }
 0x42f   : > { %v6276_v1 = vsel %vm9689_vm9, 0, %v6166_v59  ;;  %6932 = vrot.lane.b32.xlu1 %v9433_v51, %s9547_s12  ;;  %6806 = vrot.lane.b32.xlu0 %v12231_v43, %s9545_s29  ;;  %v5977_v28 = vor.u32 %v5976_v35, %v5848_v16  ;;  %v4407_v7 = vsel %vm2023_vm11, %v9530_v17, %v4122_v14  ;;  %v4455_v59 = vsel %vm2105_vm13, %v4122_v14, %v12157_v63 }
 0x430   : > { %5689 = vst.msk [vmem:[#allocation2 + $0x24] sm:$0xf] %vm334_vm3, %v5657_v40  ;;  %6774 = vrot.lane.b32.xlu2 %v6276_v1, %s9546_s11  ;;  %v6294_v40 = vrot.slane %v6164_v39, 1  ;;  %v5032_v1 = vadd.f32 %v12052_v2, %v11801_v45  ;;  %v6595_v20 = vsel %vm9689_vm9, 0, %v6479_v0  ;;  %v5472_v63 = vadd.f32 %v12197_v18, %v5383_v37  ;;  %v9466_v39 = vld [vmem:[%s13621_s7 + $0x90] sm:$0xff]  ;;  %7523 = vmatpush.bf16.msrb.mxu0 %v9450_v29  ;;  %v4206_v17 = vpop.permute.xlu2 %4205 }
 0x431   : > { %v5558_v6 = vpop.f32.mrf.mxu3  ;;  %v6021_v45 = vsel %vm9661_vm6, %v5977_v28, 0  ;;  %v9458_v18 = vld [vmem:[%s13621_s7 + $0x50] sm:$0xff]  ;;  %7701 = vmatpush.bf16.msrb.mxu2 %v9466_v39  ;;  %v3948_v43 = vsel %vm9661_vm6, %v11543_v26, 0  ;;  %v4509_v26 = vsel %vm2187_vm15, %v12192_v34, %v4206_v17 }
 0x432   : > { %v5559_v3 = vadd.f32 %v5558_v6, %v5470_v10  ;;  %v6295_v35 = vor.u32 %v6294_v40, %v6161_v4  ;;  %7612 = vmatpush.bf16.msrb.mxu1 %v9458_v18  ;;  %v5121_v37 = vadd.f32 %v11798_v60, %v5032_v1 }
 0x433   : > { %5518 = vmatmul.bf16.gmra.mxu2 %v4506_v9  ;;  %v5296_v11 = vpop.f32.mrf.mxu0  ;;  %v5385_v32 = vpop.f32.mrf.mxu1 }
 0x434   : > { %v5626_v21 = vmax.f32 %v5559_v3, 0.0  ;;  %v5297_v42 = vadd.f32 %v5296_v11, %v11826_v25  ;;  %v6340_v60 = vsel %vm9661_vm6, %v6295_v35, 0 }
 0x436   : > { %v12274_v51 = vpop.f32.mrf.mxu2  ;;  %v5658_v58 = vpack.c.bf16 %v5626_v21, %v5626_v21  ;;  %5335 = vmatmul.bf16.gmra.mxu0 %v4407_v7  ;;  %5424 = vmatmul.bf16.gmra.mxu1 %v4455_v59  ;;  %v5386_v21 = vadd.f32 %v5385_v32, %v5297_v42 }
 0x437   : > { %v12283_v41 = vld [vmem:[#allocation2 + $0x20] sm:$0xff]  ;;  %6900 = vrot.lane.b32.xlu0 %v6595_v20, %s9549_s14  ;;  %6680 = vrot.lane.b32.xlu1 %v12233_v54, %s9543_s23 }
 0x438   : > { %v9434_v16 = vld [vmem:[#allocation2 + $0x20] sm:$0xff]  ;;  %5690 = vst.msk [vmem:[#allocation2 + $0x28] sm:$0xf] %vm334_vm3, %v5658_v58  ;;  %6728 = vrot.lane.b32.xlu2 %v6021_v45, %s9544_s24  ;;  %v6168_v3 = vshrl.u32 %v12283_v41, 16  ;;  %v5210_v58 = vadd.f32 %v11852_v57, %v5121_v37  ;;  %v5475_v57 = vadd.f32 %v12222_v33, %v5386_v21  ;;  %v6171_v29 = vshll.u32 %v12283_v41, 16  ;;  %v4124_v33 = vpop.permute.xlu0 %4123 }
 0x439   : > { %v12285_v48 = vld [vmem:[#allocation2 + $0x20] sm:$0xff]  ;;  %v5560_v10 = vpop.f32.mrf.mxu3  ;;  %v6484_v25 = vshll.u32 %v9434_v16, 16  ;;  %v6481_v11 = vshrl.u32 %v9434_v16, 16  ;;  %v4458_v17 = vsel %vm2105_vm13, %v4124_v33, %v12259_v12 }
 0x43a   : > { %v5561_v54 = vadd.f32 %v5560_v10, %v5472_v63  ;;  %v5855_v6 = vshrl.u32 %v12285_v48, 16  ;;  %v6170_v32 = vrot.slane %v6168_v3, 7  ;;  %v5858_v20 = vshll.u32 %v12285_v48, 16  ;;  %v9449_v63 = vld [vmem:[%s13621_s7 + $0x8] sm:$0xff]  ;;  %v9472_v45 = vld [vmem:[%s13621_s7 + $0xc0] sm:$0xff] }
 0x43b   : > { %v5298_v9 = vpop.f32.mrf.mxu0  ;;  %v5387_v14 = vpop.f32.mrf.mxu1  ;;  %v6614_v0 = vrot.slane %v6484_v25, 1  ;;  %v6483_v1 = vrot.slane %v6481_v11, 7  ;;  %7524 = vmatpush.bf16.msrb.mxu0 %v9449_v63  ;;  %7792 = vmatpush.bf16.msrb.mxu3 %v9472_v45 }
 0x43c   : > { %v5627_v28 = vmax.f32 %v5561_v54, 0.0  ;;  %v5857_v59 = vrot.slane %v5855_v6, 7  ;;  %v5299_v42 = vadd.f32 %v5298_v9, %v5210_v58  ;;  %v6173_v9 = vor.u32 %v6171_v29, %v6170_v32 }
 0x43d   : > { %v12315_v4 = vor.u32 %v6614_v0, %v6481_v11  ;;  %v6486_v11 = vor.u32 %v6484_v25, %v6483_v1  ;;  %v6296_v58 = vrot.slane %v6171_v29, 1  ;;  %v9448_v25 = vld [vmem:[%s13621_s7] sm:$0xff] }
 0x43e   : > { %v12310_v7 = vpop.f32.mrf.mxu2  ;;  %v5659_v40 = vpack.c.bf16 %v5627_v28, %v5627_v28  ;;  %8880 = vmatmul.msk.bf16.gmra.mxu3 %vm2023_vm11, %v3948_v43  ;;  %v12341_v10 = vor.u32 %v5858_v20, %v5857_v59  ;;  %v5388_v0 = vadd.f32 %v5387_v14, %v5299_v42  ;;  %v9531_v28 = vld [vmem:[#allocation3 + $0x78] sm:$0xff]  ;;  %v5037_v43 = vadd.f32 %v12052_v2, %v11857_v22 }
 0x43f   : > { %6854 = vrot.lane.b32.xlu0 %v6340_v60, %s9548_s13  ;;  %6808 = vrot.lane.b32.xlu1 %v12283_v41, %s9545_s29  ;;  %v6277_v14 = vsel %vm9689_vm9, 0, %v6173_v9  ;;  %v5978_v60 = vrot.slane %v5858_v20, 1  ;;  %v6297_v45 = vor.u32 %v6296_v58, %v6168_v3 }
 0x440   : > { %5691 = vst.msk [vmem:[#allocation2 + $0x2c] sm:$0xf] %vm334_vm3, %v5659_v40  ;;  %6934 = vrot.lane.b32.xlu2 %v9434_v16, %s9547_s12  ;;  %v4410_v16 = vsel %vm2023_vm11, %v9531_v28, %v4124_v33  ;;  %v6596_v40 = vsel %vm9689_vm9, 0, %v6486_v11  ;;  %7525 = vmatpush.bf16.msrb.mxu0 %v9448_v25  ;;  %v4126_v25 = vpop.permute.xlu0 %4125 }
 0x441   : > { %v5563_v39 = vpop.f32.mrf.mxu3  ;;  %v5979_v29 = vor.u32 %v5978_v60, %v5855_v6 }
 0x442   : > { %v5564_v18 = vadd.f32 %v5563_v39, %v5475_v57  ;;  %v5126_v57 = vadd.f32 %v11849_v38, %v5037_v43 }
 0x443   : > { %5523 = vmatmul.bf16.gmra.mxu2 %v4509_v26  ;;  %v5301_v54 = vpop.f32.mrf.mxu0  ;;  %v5390_v35 = vpop.f32.mrf.mxu1  ;;  %v5477_v26 = vadd.f32 %v12251_v44, %v5388_v0  ;;  %v3949_v0 = vsel %vm9661_vm6, %v11605_v55, 0  ;;  %v6022_v28 = vsel %vm9661_vm6, %v5979_v29, 0 }
 0x444   : > { %v5628_v37 = vmax.f32 %v5564_v18, 0.0  ;;  %v5302_v1 = vadd.f32 %v5301_v54, %v11873_v31  ;;  %v5215_v6 = vadd.f32 %v11892_v24, %v5126_v57 }
 0x446   : > { %v12343_v21 = vpop.f32.mrf.mxu2  ;;  %v5660_v59 = vpack.c.bf16 %v5628_v37, %v5628_v37  ;;  %5340 = vmatmul.bf16.gmra.mxu0 %v4410_v16  ;;  %5429 = vmatmul.bf16.gmra.mxu1 %v4458_v17  ;;  %v5391_v9 = vadd.f32 %v5390_v35, %v5302_v1  ;;  %v6341_v16 = vsel %vm9661_vm6, %v6297_v45, 0 }
 0x447   : > { %v12357_v32 = vld [vmem:[#allocation2 + $0x28] sm:$0xff]  ;;  %6776 = vrot.lane.b32.xlu0 %v6277_v14, %s9546_s11  ;;  %6902 = vrot.lane.b32.xlu1 %v6596_v40, %s9549_s14  ;;  %v13728_v40 = vshll.u32 %v11828_v36, 16 }
 0x448   : > { %v12359_v12 = vld [vmem:[#allocation2 + $0x28] sm:$0xff]  ;;  %5692 = vst.msk [vmem:[#allocation2 + $0x30] sm:$0xf] %vm334_vm3, %v5660_v59  ;;  %6682 = vrot.lane.b32.xlu2 %v12285_v48, %s9543_s23  ;;  %v6175_v33 = vshrl.u32 %v12357_v32, 16  ;;  %v5480_v43 = vadd.f32 %v12274_v51, %v5391_v9  ;;  %v6178_v58 = vshll.u32 %v12357_v32, 16 }
 0x449   : > { %v12361_v22 = vld [vmem:[#allocation2 + $0x28] sm:$0xff]  ;;  %v5565_v42 = vpop.f32.mrf.mxu3  ;;  %v6491_v20 = vshll.u32 %v12359_v12, 16  ;;  %v6488_v18 = vshrl.u32 %v12359_v12, 16  ;;  %v3917_v60 = vrot.slane %v13728_v40, 1 }
 0x44a   : > { %v5566_v63 = vadd.f32 %v5565_v42, %v5477_v26  ;;  %v5862_v31 = vshrl.u32 %v12361_v22, 16  ;;  %v5865_v38 = vshll.u32 %v12361_v22, 16  ;;  %v6177_v17 = vrot.slane %v6175_v33, 7 }
 0x44b   : > { %v5303_v44 = vpop.f32.mrf.mxu0  ;;  %v5392_v39 = vpop.f32.mrf.mxu1  ;;  %v6616_v54 = vrot.slane %v6491_v20, 1  ;;  %v6490_v24 = vrot.slane %v6488_v18, 7 }
 0x44c   : > { %v5629_v11 = vmax.f32 %v5566_v63, 0.0  ;;  %v5864_v41 = vrot.slane %v5862_v31, 7  ;;  %v5304_v55 = vadd.f32 %v5303_v44, %v5215_v6  ;;  %v6180_v42 = vor.u32 %v6178_v58, %v6177_v17  ;;  %v9532_v44 = vld [vmem:[#allocation3 + $0x80] sm:$0xff] }
 0x44d   : > { %v12387_v48 = vor.u32 %v6616_v54, %v6488_v18  ;;  %v6493_v63 = vor.u32 %v6491_v20, %v6490_v24  ;;  %v4413_v29 = vsel %vm2023_vm11, %v9532_v44, %v4126_v25  ;;  %v4461_v18 = vsel %vm2105_vm13, %v4126_v25, %v12192_v34  ;;  %v12475_v44 = vpop.permute.xlu2 %6722 }
 0x44e   : > { %v12382_v3 = vpop.f32.mrf.mxu2  ;;  %v5661_v37 = vpack.c.bf16 %v5629_v11, %v5629_v11  ;;  %8881 = vmatmul.msk.bf16.gmra.mxu3 %vm2023_vm11, %v3949_v0  ;;  %v12391_v35 = vor.u32 %v5865_v38, %v5864_v41  ;;  %v5393_v51 = vadd.f32 %v5392_v39, %v5304_v55  ;;  %v5042_v54 = vadd.f32 %v12052_v2, %v11894_v61  ;;  %v9457_v2 = vld [vmem:[%s13621_s7 + $0x48] sm:$0xff] }
 0x44f   : > { %6730 = vrot.lane.b32.xlu0 %v6022_v28, %s9544_s24  ;;  %6856 = vrot.lane.b32.xlu1 %v6341_v16, %s9548_s13  ;;  %v13729_v11 = vshrl.u32 %v11828_v36, 16  ;;  %v6278_v20 = vsel %vm9689_vm9, 0, %v6180_v42  ;;  %v5980_v0 = vrot.slane %v5865_v38, 1  ;;  %v6298_v6 = vrot.slane %v6178_v58, 1 }
 0x450   : > { %5693 = vst.msk [vmem:[#allocation2 + $0x34] sm:$0xf] %vm334_vm3, %v5661_v37  ;;  %6810 = vrot.lane.b32.xlu2 %v12357_v32, %s9545_s29  ;;  %v5482_v34 = vadd.f32 %v12310_v7, %v5393_v51  ;;  %v6597_v36 = vsel %vm9689_vm9, 0, %v6493_v63  ;;  %v5131_v7 = vadd.f32 %v11887_v56, %v5042_v54  ;;  %7613 = vmatpush.bf16.msrb.mxu1 %v9457_v2  ;;  %v5954_v32 = vsel %vm9689_vm9, 0, %v12003_v50 }
 0x451   : > { %v5568_v59 = vpop.f32.mrf.mxu3  ;;  %v3918_v41 = vor.u32 %v3917_v60, %v13729_v11  ;;  %v5981_v24 = vor.u32 %v5980_v0, %v5862_v31  ;;  %v6964_v63 = vsel %vm1974_vm10, %v5954_v32, %v12220_v30  ;;  %v9456_v30 = vld [vmem:[%s13621_s7 + $0x40] sm:$0xff] }
 0x452   : > { %v5569_v14 = vadd.f32 %v5568_v59, %v5480_v43  ;;  %v6299_v59 = vor.u32 %v6298_v6, %v6175_v33  ;;  %v5220_v60 = vadd.f32 %v11927_v15, %v5131_v7 }
 0x453   : > { %v5306_v1 = vpop.f32.mrf.mxu0  ;;  %v5395_v26 = vpop.f32.mrf.mxu1  ;;  %v3950_v43 = vsel %vm9661_vm6, %v3918_v41, 0  ;;  %v6023_v31 = vsel %vm9661_vm6, %v5981_v24, 0 }
 0x454   : > { %v5630_v57 = vmax.f32 %v5569_v14, 0.0  ;;  %v5307_v39 = vadd.f32 %v5306_v1, %v11909_v19  ;;  %v9465_v19 = vld [vmem:[%s13621_s7 + $0x88] sm:$0xff]  ;;  %v6342_v15 = vsel %vm9661_vm6, %v6299_v59, 0  ;;  %7614 = vmatpush.bf16.msrb.mxu1 %v9456_v30 }
 0x455   : > { %7702 = vmatpush.bf16.msrb.mxu2 %v9465_v19 }
 0x456   : > { %v12408_v45 = vpop.f32.mrf.mxu2  ;;  %v5662_v9 = vpack.c.bf16 %v5630_v57, %v5630_v57  ;;  %5345 = vmatmul.bf16.gmra.mxu0 %v4413_v29  ;;  %5434 = vmatmul.bf16.gmra.mxu1 %v4461_v18  ;;  %v5396_v16 = vadd.f32 %v5395_v26, %v5307_v39  ;;  %v7011_v39 = vsel %vm2023_vm11, %v6964_v63, %v12475_v44 }
 0x457   : > { %v12420_v37 = vld [vmem:[#allocation2 + $0x30] sm:$0xff]  ;;  %6936 = vrot.lane.b32.xlu0 %v12359_v12, %s9547_s12  ;;  %6778 = vrot.lane.b32.xlu1 %v6278_v20, %s9546_s11 }
 0x458   : > { %5694 = vst.msk [vmem:[#allocation2 + $0x38] sm:$0xf] %vm334_vm3, %v5662_v9  ;;  %v12429_v61 = vld [vmem:[#allocation2 + $0x30] sm:$0xff]  ;;  %6904 = vrot.lane.b32.xlu2 %v6597_v36, %s9549_s14  ;;  %v5869_v28 = vshrl.u32 %v12420_v37, 16  ;;  %v5872_v25 = vshll.u32 %v12420_v37, 16  ;;  %v5485_v51 = vadd.f32 %v12343_v21, %v5396_v16 }
 0x459   : > { %v5570_v38 = vpop.f32.mrf.mxu3  ;;  %v6182_v56 = vshrl.u32 %v12429_v61, 16  ;;  %v12461_v33 = vld [vmem:[#allocation2 + $0x30] sm:$0xff]  ;;  %v6185_v29 = vshll.u32 %v12429_v61, 16 }
 0x45a   : > { %v5571_v12 = vadd.f32 %v5570_v38, %v5482_v34  ;;  %v5871_v14 = vrot.slane %v5869_v28, 7  ;;  %v6495_v54 = vshrl.u32 %v12461_v33, 16  ;;  %v5982_v34 = vrot.slane %v5872_v25, 1 }
 0x45b   : > { %v5308_v17 = vpop.f32.mrf.mxu0  ;;  %v5397_v55 = vpop.f32.mrf.mxu1  ;;  %v6184_v50 = vrot.slane %v6182_v56, 7 }
 0x45c   : > { %v5631_v58 = vmax.f32 %v5571_v12, 0.0  ;;  %v12454_v26 = vor.u32 %v5872_v25, %v5871_v14  ;;  %v5309_v42 = vadd.f32 %v5308_v17, %v5220_v60  ;;  %v6497_v6 = vrot.slane %v6495_v54, 7 }
 0x45d   : > { %v6187_v41 = vor.u32 %v6185_v29, %v6184_v50  ;;  %v6498_v12 = vshll.u32 %v12461_v33, 16  ;;  %v6658_v60 = vsel %vm9661_vm6, %v12202_v49, 0 }
 0x45e   : > { %v12450_v40 = vpop.f32.mrf.mxu2  ;;  %v5663_v1 = vpack.c.bf16 %v5631_v58, %v5631_v58  ;;  %8882 = vmatmul.msk.bf16.gmra.mxu3 %vm2023_vm11, %v3950_v43  ;;  %v5398_v9 = vadd.f32 %v5397_v55, %v5309_v42  ;;  %v5983_v43 = vor.u32 %v5982_v34, %v5869_v28  ;;  %v6300_v42 = vrot.slane %v6185_v29, 1 }
 0x45f   : > { %6684 = vrot.lane.b32.xlu0 %v12361_v22, %s9543_s23  ;;  %6732 = vrot.lane.b32.xlu1 %v6023_v31, %s9544_s24  ;;  %v6279_v38 = vsel %vm9689_vm9, 0, %v6187_v41  ;;  %v6500_v55 = vor.u32 %v6498_v12, %v6497_v6 }
 0x460   : > { %5695 = vst.msk [vmem:[#allocation2 + $0x3c] sm:$0xf] %vm334_vm3, %v5663_v1  ;;  %6858 = vrot.lane.b32.xlu2 %v6342_v15, %s9548_s13  ;;  %v5487_v2 = vadd.f32 %v12382_v3, %v5398_v9 }
 0x461   : > { %v5573_v57 = vpop.f32.mrf.mxu3  ;;  %v6598_v31 = vsel %vm9689_vm9, 0, %v6500_v55 }
 0x462   : > { %v5574_v21 = vadd.f32 %v5573_v57, %v5485_v51  ;;  %v6024_v57 = vsel %vm9661_vm6, %v5983_v43, 0 }
 0x463   : > { %v5311_v22 = vpop.f32.mrf.mxu0  ;;  %v5400_v18 = vpop.f32.mrf.mxu1 }
 0x464   : > { %v5632_v11 = vmax.f32 %v5574_v21, 0.0  ;;  %v5312_v19 = vadd.f32 %v5311_v22, %v11936_v27  ;;  %v12506_v59 = vpop.permute.xlu2 %6676 }
 0x466   : > { %v12481_v20 = vpop.f32.mrf.mxu2  ;;  %v5664_v0 = vpack.c.bf16 %v5632_v11, %v5632_v11  ;;  %7526 = vmatmul.bf16.vlgmr.msrb.gmra.mxu0 %v7011_v39  ;;  %v5401_v24 = vadd.f32 %v5400_v18, %v5312_v19  ;;  %v6301_v18 = vor.u32 %v6300_v42, %v6182_v56 }
 0x467   : > { %v12488_v36 = vld [vmem:[#allocation2 + $0x38] sm:$0xff]  ;;  %6812 = vrot.lane.b32.xlu0 %v12429_v61, %s9545_s29  ;;  %6938 = vrot.lane.b32.xlu1 %v12461_v33, %s9547_s12 }
 0x468   : > { %5696 = vst.msk [vmem:[#allocation2 + $0x40] sm:$0xf] %vm334_vm3, %v5664_v0  ;;  %6780 = vrot.lane.b32.xlu2 %v6279_v38, %s9546_s11  ;;  %v5876_v27 = vshrl.u32 %v12488_v36, 16  ;;  %v5879_v25 = vshll.u32 %v12488_v36, 16  ;;  %v12523_v51 = vld [vmem:[#allocation2 + $0x38] sm:$0xff]  ;;  %v5490_v50 = vadd.f32 %v12408_v45, %v5401_v24  ;;  %v6343_v0 = vsel %vm9661_vm6, %v6301_v18, 0 }
 0x469   : > { %v5575_v7 = vpop.f32.mrf.mxu3  ;;  %v12525_v15 = vld [vmem:[#allocation2 + $0x38] sm:$0xff]  ;;  %v6192_v38 = vshll.u32 %v12523_v51, 16 }
 0x46a   : > { %v5576_v16 = vadd.f32 %v5575_v7, %v5487_v2  ;;  %v5878_v14 = vrot.slane %v5876_v27, 7  ;;  %v6502_v45 = vshrl.u32 %v12525_v15, 16  ;;  %v6505_v7 = vshll.u32 %v12525_v15, 16 }
 0x46b   : > { %v5313_v17 = vpop.f32.mrf.mxu0  ;;  %v5402_v3 = vpop.f32.mrf.mxu1 }
 0x46c   : > { %v5633_v58 = vmax.f32 %v5576_v16, 0.0  ;;  %v12519_v28 = vor.u32 %v5879_v25, %v5878_v14  ;;  %v5314_v49 = vadd.f32 %v5313_v17, %v11944_v8  ;;  %v6189_v8 = vshrl.u32 %v12523_v51, 16 }
 0x46d   : > { %v6504_v61 = vrot.slane %v6502_v45, 7 }
 0x46e   : > { %v5665_v1 = vpack.c.bf16 %v5633_v58, %v5633_v58  ;;  %v12514_v32 = vpop.f32.mrf.mxu2  ;;  %9183 = vmatmul.msk.bf16.vlgmr.msrb.gmra.mxu3 %vm1974_vm10, %v6658_v60  ;;  %v5403_v9 = vadd.f32 %v5402_v3, %v5314_v49  ;;  %v6191_v30 = vrot.slane %v6189_v8, 7 }
 0x46f   : > { %6906 = vrot.lane.b32.xlu0 %v6598_v31, %s9549_s14  ;;  %6686 = vrot.lane.b32.xlu1 %v12420_v37, %s9543_s23  ;;  %v9464_v37 = vld [vmem:[%s13621_s7 + $0x80] sm:$0xff]  ;;  %v6659_v31 = vsel %vm9661_vm6, %v12256_v53, 0 }
 0x470   : > { %5697 = vst.msk [vmem:[#allocation2 + $0x44] sm:$0xf] %vm334_vm3, %v5665_v1  ;;  %6734 = vrot.lane.b32.xlu2 %v6024_v57, %s9544_s24  ;;  %7703 = vmatpush.bf16.msrb.mxu2 %v9464_v37  ;;  %v5492_v19 = vadd.f32 %v12450_v40, %v5403_v9  ;;  %v6194_v55 = vor.u32 %v6192_v38, %v6191_v30  ;;  %v5984_v57 = vrot.slane %v5879_v25, 1 }
 0x471   : > { %v5578_v63 = vpop.f32.mrf.mxu3  ;;  %v6507_v40 = vor.u32 %v6505_v7, %v6504_v61 }
 0x472   : > { %v5579_v21 = vadd.f32 %v5578_v63, %v5490_v50  ;;  %v12540_v41 = vpop.permute.xlu2 %6804  ;;  %v6280_v49 = vsel %vm9689_vm9, 0, %v6194_v55  ;;  %v6302_v63 = vrot.slane %v6192_v38, 1 }
 0x473   : > { %v5316_v29 = vpop.f32.mrf.mxu0  ;;  %v5405_v22 = vpop.f32.mrf.mxu1  ;;  %v6599_v50 = vsel %vm9689_vm9, 0, %v6507_v40 }
 0x474   : > { %v5634_v11 = vmax.f32 %v5579_v21, 0.0  ;;  %v5317_v6 = vadd.f32 %v5316_v29, %v11949_v46 }
 0x476   : > { %v5666_v39 = vpack.c.bf16 %v5634_v11, %v5634_v11  ;;  %v12553_v34 = vpop.f32.mrf.mxu2  ;;  %v5406_v43 = vadd.f32 %v5405_v22, %v5317_v6 }
 0x477   : > { %v12549_v56 = vld [vmem:[#allocation2 + $0x40] sm:$0xff]  ;;  %6860 = vrot.lane.b32.xlu0 %v6343_v0, %s9548_s13  ;;  %6814 = vrot.lane.b32.xlu1 %v12523_v51, %s9545_s29  ;;  %v6303_v0 = vor.u32 %v6302_v63, %v6189_v8 }
 0x478   : > { %5698 = vst.msk [vmem:[#allocation2 + $0x48] sm:$0xf] %vm334_vm3, %v5666_v39  ;;  %6940 = vrot.lane.b32.xlu2 %v12525_v15, %s9547_s12  ;;  %v5883_v46 = vshrl.u32 %v12549_v56, 16  ;;  %v5886_v60 = vshll.u32 %v12549_v56, 16  ;;  %v12585_v21 = vld [vmem:[#allocation2 + $0x40] sm:$0xff]  ;;  %v5495_v29 = vadd.f32 %v12481_v20, %v5406_v43  ;;  %v5985_v20 = vor.u32 %v5984_v57, %v5876_v27 }
 0x479   : > { %v5580_v2 = vpop.f32.mrf.mxu3  ;;  %v12592_v22 = vld [vmem:[#allocation2 + $0x40] sm:$0xff]  ;;  %v6196_v30 = vshrl.u32 %v12585_v21, 16 }
 0x47a   : > { %v5581_v16 = vadd.f32 %v5580_v2, %v5492_v19  ;;  %v6803_v58 = vpop.permute.xlu1 %6802  ;;  %v12566_v14 = vpop.permute.xlu2 %6898  ;;  %v5885_v1 = vrot.slane %v5883_v46, 7 }
 0x47b   : > { %v5318_v17 = vpop.f32.mrf.mxu0  ;;  %v5407_v3 = vpop.f32.mrf.mxu1  ;;  %v6198_v27 = vrot.slane %v6196_v30, 7 }
 0x47c   : > { %v5635_v24 = vmax.f32 %v5581_v16, 0.0  ;;  %v12577_v51 = vor.u32 %v5886_v60, %v5885_v1  ;;  %v5319_v53 = vadd.f32 %v5318_v17, %v11957_v62  ;;  %v6509_v16 = vshrl.u32 %v12592_v22, 16 }
 0x47e   : > { %v5667_v42 = vpack.c.bf16 %v5635_v24, %v5635_v24  ;;  %9184 = vmatmul.msk.bf16.gmra.mxu3 %vm1974_vm10, %v6659_v31  ;;  %v12596_v25 = vpop.f32.mrf.mxu2  ;;  %v5408_v61 = vadd.f32 %v5407_v3, %v5319_v53  ;;  %v6511_v43 = vrot.slane %v6509_v16, 7  ;;  %v13730_v24 = vld [vmem:[#allocation12_spill] sm:$0xff]  ;;  %v6199_v31 = vshll.u32 %v12585_v21, 16 }
 0x47f   : > { %6782 = vrot.lane.b32.xlu0 %v6280_v49, %s9546_s11  ;;  %6908 = vrot.lane.b32.xlu1 %v6599_v50, %s9549_s14  ;;  %v6512_v49 = vshll.u32 %v12592_v22, 16 }
 0x480   : > { %5699 = vst.msk [vmem:[#allocation2 + $0x4c] sm:$0xf] %vm334_vm3, %v5667_v42  ;;  %6688 = vrot.lane.b32.xlu2 %v12488_v36, %s9543_s23  ;;  %v6344_v36 = vsel %vm9661_vm6, %v6303_v0, 0  ;;  %v5497_v40 = vadd.f32 %v12514_v32, %v5408_v61 }
 0x481   : > { %v5583_v18 = vpop.f32.mrf.mxu3  ;;  %v6771_v11 = vpop.permute.xlu0 %6770 }
 0x482   : > { %v5584_v9 = vadd.f32 %v5583_v18, %v5495_v29  ;;  %v7059_v62 = vsel %vm2072_vm12, %v12475_v44, %v6771_v11  ;;  %v6851_v19 = vpop.permute.xlu1 %6850  ;;  %v12604_v38 = vpop.permute.xlu2 %6852  ;;  %v6025_v44 = vsel %vm9661_vm6, %v5985_v20, 0  ;;  %v6201_v29 = vor.u32 %v6199_v31, %v6198_v27 }
 0x483   : > { %v5321_v37 = vpop.f32.mrf.mxu0  ;;  %v5410_v39 = vpop.f32.mrf.mxu1  ;;  %v7091_v2 = vsel %vm2105_vm13, %v7059_v62, %v6803_v58  ;;  %v5955_v58 = vsel %vm9689_vm9, 0, %v13730_v24  ;;  %v6660_v62 = vsel %vm9661_vm6, %v12315_v4, 0  ;;  %v13731_v4 = vld [vmem:[#allocation16_spill] sm:$0xff] }
 0x484   : > { %v5636_v6 = vmax.f32 %v5584_v9, 0.0  ;;  %v7123_v17 = vsel %vm2138_vm14, %v7091_v2, %v6851_v19  ;;  %v5322_v3 = vadd.f32 %v5321_v37, %v11962_v13  ;;  %v6967_v13 = vsel %vm1974_vm10, %v5955_v58, %v12506_v59 }
 0x485   : > { %7615 = vmatmul.bf16.vlgmr.msrb.gmra.mxu1 %v7123_v17  ;;  %v6514_v37 = vor.u32 %v6512_v49, %v6511_v43 }
 0x486   : > { %v5668_v55 = vpack.c.bf16 %v5636_v6, %v5636_v6  ;;  %v5411_v18 = vadd.f32 %v5410_v39, %v5322_v3  ;;  %v12638_v59 = vpop.f32.mrf.mxu2  ;;  %v6281_v39 = vsel %vm9689_vm9, 0, %v6201_v29  ;;  %v5986_v6 = vrot.slane %v5886_v60, 1 }
 0x487   : > { %v12614_v8 = vld [vmem:[#allocation2 + $0x48] sm:$0xff]  ;;  %6736 = vrot.lane.b32.xlu0 %v6025_v44, %s9544_s24  ;;  %6862 = vrot.lane.b32.xlu1 %v6344_v36, %s9548_s13  ;;  %v6600_v60 = vsel %vm9689_vm9, 0, %v6514_v37  ;;  %v6304_v36 = vrot.slane %v6199_v31, 1  ;;  %v7171_v3 = vsel %vm2187_vm15, %v6851_v19, %v12566_v14 }
 0x488   : > { %5700 = vst.msk [vmem:[#allocation2 + $0x50] sm:$0xf] %vm334_vm3, %v5668_v55  ;;  %6816 = vrot.lane.b32.xlu2 %v12585_v21, %s9545_s29  ;;  %v5890_v50 = vshrl.u32 %v12614_v8, 16  ;;  %v5893_v20 = vshll.u32 %v12614_v8, 16  ;;  %v12651_v2 = vld [vmem:[#allocation2 + $0x48] sm:$0xff]  ;;  %v5500_v44 = vadd.f32 %v12553_v34, %v5411_v18 }
 0x489   : > { %v5585_v1 = vpop.f32.mrf.mxu3  ;;  %v6725_v42 = vpop.permute.xlu0 %6724  ;;  %v6203_v31 = vshrl.u32 %v12651_v2, 16  ;;  %v6305_v19 = vor.u32 %v6304_v36, %v6196_v30 }
 0x48a   : > { %v5586_v32 = vadd.f32 %v5585_v1, %v5497_v40  ;;  %v7014_v53 = vsel %vm2023_vm11, %v6967_v13, %v6725_v42  ;;  %v12634_v11 = vpop.permute.xlu2 %6774  ;;  %v5892_v0 = vrot.slane %v5890_v50, 7 }
 0x48b   : > { %v5323_v57 = vpop.f32.mrf.mxu0  ;;  %v5412_v63 = vpop.f32.mrf.mxu1  ;;  %7531 = vmatmul.bf16.gmra.mxu0 %v7014_v53  ;;  %v6205_v37 = vrot.slane %v6203_v31, 7 }
 0x48c   : > { %v5637_v9 = vmax.f32 %v5586_v32, 0.0  ;;  %v12655_v17 = vor.u32 %v5893_v20, %v5892_v0  ;;  %v5324_v55 = vadd.f32 %v5323_v57, %v13731_v4  ;;  %v5987_v32 = vor.u32 %v5986_v6, %v5883_v46 }
 0x48d   : > { %v6345_v0 = vsel %vm9661_vm6, %v6305_v19, 0 }
 0x48e   : > { %v5669_v61 = vpack.c.bf16 %v5637_v9, %v5637_v9  ;;  %9185 = vmatmul.msk.bf16.gmra.mxu3 %vm1974_vm10, %v6660_v62  ;;  %v5413_v57 = vadd.f32 %v5412_v63, %v5324_v55  ;;  %v12681_v9 = vpop.f32.mrf.mxu2  ;;  %v6026_v46 = vsel %vm9661_vm6, %v5987_v32, 0  ;;  %v12685_v63 = vld [vmem:[#allocation2 + $0x48] sm:$0xff] }
 0x48f   : > { %6942 = vrot.lane.b32.xlu0 %v12592_v22, %s9547_s12  ;;  %6784 = vrot.lane.b32.xlu1 %v6281_v39, %s9546_s11  ;;  %v6206_v39 = vshll.u32 %v12651_v2, 16 }
 0x490   : > { %5701 = vst.msk [vmem:[#allocation2 + $0x54] sm:$0xf] %vm334_vm3, %v5669_v61  ;;  %6910 = vrot.lane.b32.xlu2 %v6600_v60, %s9549_s14  ;;  %v5502_v30 = vadd.f32 %v12596_v25, %v5413_v57  ;;  %v5956_v25 = vsel %vm9689_vm9, 0, %v12207_v5  ;;  %v6661_v5 = vsel %vm9661_vm6, %v12387_v48, 0  ;;  %v13733_v48 = vld [vmem:[#allocation5_spill] sm:$0xff] }
 0x491   : > { %v5588_v27 = vpop.f32.mrf.mxu3  ;;  %v6773_v43 = vpop.permute.xlu1 %6772 }
 0x492   : > { %v5589_v40 = vadd.f32 %v5588_v27, %v5500_v44  ;;  %v6931_v24 = vpop.permute.xlu0 %6930  ;;  %v7061_v1 = vsel %vm2072_vm12, %v6725_v42, %v6773_v43  ;;  %v12673_v29 = vpop.permute.xlu2 %6728  ;;  %v6208_v27 = vor.u32 %v6206_v39, %v6205_v37 }
 0x493   : > { %v5326_v58 = vpop.f32.mrf.mxu0  ;;  %v5415_v34 = vpop.f32.mrf.mxu1  ;;  %v7203_v13 = vsel %vm2220_vm0, %v7171_v3, %v6931_v24  ;;  %v7093_v14 = vsel %vm2105_vm13, %v7061_v1, %v12540_v41  ;;  %v13732_v41 = vld [vmem:[#allocation4_spill] sm:$0xff]  ;;  %v6516_v3 = vshrl.u32 %v12685_v63, 16 }
 0x494   : > { %v5638_v53 = vmax.f32 %v5589_v40, 0.0  ;;  %7704 = vmatmul.bf16.vlgmr.msrb.gmra.mxu2 %v7203_v13  ;;  %v7126_v42 = vsel %vm2138_vm14, %v7093_v14, %v12604_v38  ;;  %v5327_v21 = vadd.f32 %v5326_v58, %v13732_v41 }
 0x495   : > { %7620 = vmatmul.bf16.gmra.mxu1 %v7126_v42  ;;  %v6518_v57 = vrot.slane %v6516_v3, 7 }
 0x496   : > { %v5670_v18 = vpack.c.bf16 %v5638_v53, %v5638_v53  ;;  %v5416_v40 = vadd.f32 %v5415_v34, %v5327_v21  ;;  %v6282_v34 = vsel %vm9689_vm9, 0, %v6208_v27  ;;  %v5988_v53 = vrot.slane %v5893_v20, 1 }
 0x497   : > { %v12689_v62 = vld [vmem:[#allocation2 + $0x50] sm:$0xff]  ;;  %6690 = vrot.lane.b32.xlu0 %v12549_v56, %s9543_s23  ;;  %6738 = vrot.lane.b32.xlu1 %v6026_v46, %s9544_s24  ;;  %v6519_v20 = vshll.u32 %v12685_v63, 16  ;;  %v6306_v27 = vrot.slane %v6206_v39, 1 }
 0x498   : > { %5702 = vst.msk [vmem:[#allocation2 + $0x58] sm:$0xf] %vm334_vm3, %v5670_v18  ;;  %6864 = vrot.lane.b32.xlu2 %v6345_v0, %s9548_s13  ;;  %v5897_v56 = vshrl.u32 %v12689_v62, 16  ;;  %v5900_v13 = vshll.u32 %v12689_v62, 16  ;;  %v5505_v19 = vadd.f32 %v12638_v59, %v5416_v40  ;;  %v5509_v18 = vpop.f32.mrf.mxu2 }
 0x499   : > { %v5590_v61 = vpop.f32.mrf.mxu3  ;;  %v12701_v4 = vpop.permute.xlu1 %6726  ;;  %v6521_v0 = vor.u32 %v6519_v20, %v6518_v57 }
 0x49a   : > { %v5591_v6 = vadd.f32 %v5590_v61, %v5502_v30  ;;  %v6679_v55 = vpop.permute.xlu0 %6678  ;;  %v12709_v24 = vpop.permute.xlu2 %6934  ;;  %v5899_v32 = vrot.slane %v5897_v56, 7 }
 0x49b   : > { %v5328_v44 = vpop.f32.mrf.mxu0  ;;  %v5417_v60 = vpop.f32.mrf.mxu1  ;;  %v6970_v36 = vsel %vm1974_vm10, %v5956_v25, %v6679_v55  ;;  %v5989_v55 = vor.u32 %v5988_v53, %v5890_v50  ;;  %v6601_v40 = vsel %vm9689_vm9, 0, %v6521_v0 }
 0x49c   : > { %v5639_v43 = vmax.f32 %v5591_v6, 0.0  ;;  %v7017_v58 = vsel %vm2023_vm11, %v6970_v36, %v12701_v4  ;;  %v5329_v14 = vadd.f32 %v5328_v44, %v13733_v48  ;;  %v12735_v42 = vor.u32 %v5900_v13, %v5899_v32 }
 0x49d   : > { %7536 = vmatmul.bf16.gmra.mxu0 %v7017_v58  ;;  %v6618_v44 = vrot.slane %v6498_v12, 1  ;;  %v12753_v58 = vld [vmem:[#allocation2 + $0x50] sm:$0xff]  ;;  %v6027_v12 = vsel %vm9661_vm6, %v5989_v55, 0  ;;  %v6307_v48 = vor.u32 %v6306_v27, %v6203_v31 }
 0x49e   : > { %v5671_v1 = vpack.c.bf16 %v5639_v43, %v5639_v43  ;;  %9186 = vmatmul.msk.bf16.gmra.mxu3 %vm1974_vm10, %v6661_v5  ;;  %v5418_v61 = vadd.f32 %v5417_v60, %v5329_v14  ;;  %v12751_v43 = vld [vmem:[#allocation2 + $0x50] sm:$0xff] }
 0x49f   : > { %6818 = vrot.lane.b32.xlu0 %v12651_v2, %s9545_s29  ;;  %6944 = vrot.lane.b32.xlu1 %v12685_v63, %s9547_s12  ;;  %v13734_v60 = vld [vmem:[#allocation6_spill] sm:$0xff]  ;;  %v6619_v32 = vor.u32 %v6618_v44, %v6495_v54  ;;  %v6210_v54 = vshrl.u32 %v12751_v43, 16  ;;  %v6346_v44 = vsel %vm9661_vm6, %v6307_v48, 0 }
 0x4a0   : > { %5703 = vst.msk [vmem:[#allocation2 + $0x5c] sm:$0xf] %vm334_vm3, %v5671_v1  ;;  %6786 = vrot.lane.b32.xlu2 %v6282_v34, %s9546_s11  ;;  %v5507_v50 = vadd.f32 %v12681_v9, %v5418_v61  ;;  %v5957_v9 = vsel %vm9689_vm9, 0, %v12262_v47  ;;  %v5511_v31 = vpop.f32.mrf.mxu2 }
 0x4a1   : > { %v5593_v46 = vpop.f32.mrf.mxu3  ;;  %v6933_v41 = vpop.permute.xlu1 %6932 }
 0x4a2   : > { %v5594_v37 = vadd.f32 %v5593_v46, %v5505_v19  ;;  %v12739_v21 = vpop.permute.xlu0 %6806  ;;  %v12743_v25 = vpop.permute.xlu2 %6682 }
 0x4a3   : > { %v5331_v59 = vpop.f32.mrf.mxu0  ;;  %v5420_v30 = vpop.f32.mrf.mxu1 }
 0x4a4   : > { %v5640_v6 = vmax.f32 %v5594_v37, 0.0  ;;  %v5332_v1 = vadd.f32 %v5331_v59, %v13734_v60  ;;  %v6523_v37 = vshrl.u32 %v12753_v58, 16 }
 0x4a6   : > { %v5672_v36 = vpack.c.bf16 %v5640_v6, %v5640_v6  ;;  %v5421_v59 = vadd.f32 %v5420_v30, %v5332_v1 }
 0x4a7   : > { %v12755_v5 = vld [vmem:[#allocation2 + $0x58] sm:$0xff]  ;;  %6912 = vrot.lane.b32.xlu0 %v6601_v40, %s9549_s14  ;;  %6692 = vrot.lane.b32.xlu1 %v12614_v8, %s9543_s23 }
 0x4a8   : > { %5704 = vst.msk [vmem:[#allocation2 + $0x60] sm:$0xf] %vm334_vm3, %v5672_v36  ;;  %6740 = vrot.lane.b32.xlu2 %v6027_v12, %s9544_s24  ;;  %v5904_v8 = vshrl.u32 %v12755_v5, 16  ;;  %v5907_v55 = vshll.u32 %v12755_v5, 16  ;;  %v6525_v36 = vrot.slane %v6523_v37, 7  ;;  %v12796_v27 = vld [vmem:[#allocation2 + $0x58] sm:$0xff]  ;;  %v5510_v1 = vadd.f32 %v5509_v18, %v5421_v59 }
 0x4a9   : > { %v5595_v39 = vpop.f32.mrf.mxu3  ;;  %v6681_v53 = vpop.permute.xlu1 %6680  ;;  %v13735_v40 = vld [vmem:[#allocation7_spill] sm:$0xff]  ;;  %v7063_v12 = vsel %vm2072_vm12, %v12701_v4, %v12634_v11  ;;  %v6526_v18 = vshll.u32 %v12753_v58, 16 }
 0x4aa   : > { %v5596_v34 = vadd.f32 %v5595_v39, %v5507_v50  ;;  %v6901_v57 = vpop.permute.xlu0 %6900  ;;  %v6973_v33 = vsel %vm1974_vm10, %v5957_v9, %v6681_v53  ;;  %v12779_v61 = vpop.permute.xlu2 %6810  ;;  %v5906_v30 = vrot.slane %v5904_v8, 7 }
 0x4ab   : > { %v5333_v14 = vpop.f32.mrf.mxu0  ;;  %v5422_v19 = vpop.f32.mrf.mxu1  ;;  %v7173_v46 = vsel %vm2187_vm15, %v12604_v38, %v6901_v57  ;;  %v7020_v47 = vsel %vm2023_vm11, %v6973_v33, %v12673_v29  ;;  %v6662_v38 = vsel %vm9661_vm6, %v6619_v32, 0  ;;  %v6213_v32 = vshll.u32 %v12751_v43, 16 }
 0x4ac   : > { %v5641_v0 = vmax.f32 %v5596_v34, 0.0  ;;  %v7206_v2 = vsel %vm2220_vm0, %v7173_v46, %v6933_v41  ;;  %v6212_v41 = vrot.slane %v6210_v54, 7  ;;  %v5334_v60 = vadd.f32 %v5333_v14, %v13735_v40 }
 0x4ad   : > { %7541 = vmatmul.bf16.gmra.mxu0 %v7020_v47  ;;  %7709 = vmatmul.bf16.gmra.mxu2 %v7206_v2  ;;  %v12805_v50 = vor.u32 %v5907_v55, %v5906_v30  ;;  %v7095_v34 = vsel %vm2105_vm13, %v7063_v12, %v12739_v21  ;;  %v6528_v4 = vor.u32 %v6526_v18, %v6525_v36  ;;  %v6530_v33 = vshrl.u32 %v12796_v27, 16  ;;  %v12834_v36 = vld [vmem:[#allocation2 + $0x58] sm:$0xff] }
 0x4ae   : > { %v5673_v6 = vpack.c.bf16 %v5641_v0, %v5641_v0  ;;  %9187 = vmatmul.msk.bf16.gmra.mxu3 %vm1974_vm10, %v6662_v38  ;;  %v6215_v11 = vor.u32 %v6213_v32, %v6212_v41  ;;  %v5423_v59 = vadd.f32 %v5422_v19, %v5334_v60  ;;  %v6620_v21 = vrot.slane %v6505_v7, 1  ;;  %v13736_v7 = vld [vmem:[#allocation8_spill] sm:$0xff] }
 0x4af   : > { %6866 = vrot.lane.b32.xlu0 %v6346_v44, %s9548_s13  ;;  %6820 = vrot.lane.b32.xlu1 %v12751_v43, %s9545_s29  ;;  %v5990_v38 = vrot.slane %v5900_v13, 1  ;;  %v6602_v44 = vsel %vm9689_vm9, 0, %v6528_v4  ;;  %v6308_v41 = vrot.slane %v6213_v32, 1  ;;  %v6532_v19 = vrot.slane %v6530_v33, 7 }
 0x4b0   : > { %5705 = vst.msk [vmem:[#allocation2 + $0x64] sm:$0xf] %vm334_vm3, %v5673_v6  ;;  %6946 = vrot.lane.b32.xlu2 %v12753_v58, %s9547_s12  ;;  %v5514_v6 = vpop.f32.mrf.mxu2  ;;  %v6283_v30 = vsel %vm9689_vm9, 0, %v6215_v11  ;;  %v5512_v13 = vadd.f32 %v5511_v31, %v5423_v59  ;;  %v6621_v12 = vor.u32 %v6620_v21, %v6502_v45  ;;  %v6217_v45 = vshrl.u32 %v12834_v36, 16 }
 0x4b1   : > { %v5598_v39 = vpop.f32.mrf.mxu3  ;;  %v12816_v9 = vpop.permute.xlu1 %6808  ;;  %v6309_v59 = vor.u32 %v6308_v41, %v6210_v54  ;;  %v13737_v41 = vld [vmem:[#allocation9_spill] sm:$0xff] }
 0x4b2   : > { %v5599_v57 = vadd.f32 %v5598_v39, %v5510_v1  ;;  %v6855_v53 = vpop.permute.xlu0 %6854  ;;  %v12822_v47 = vpop.permute.xlu2 %6904  ;;  %v6533_v39 = vshll.u32 %v12796_v27, 16 }
 0x4b3   : > { %v5336_v48 = vpop.f32.mrf.mxu0  ;;  %v5425_v14 = vpop.f32.mrf.mxu1  ;;  %v7129_v46 = vsel %vm2138_vm14, %v7095_v34, %v6855_v53 }
 0x4b4   : > { %v5642_v0 = vmax.f32 %v5599_v57, 0.0  ;;  %7625 = vmatmul.bf16.gmra.mxu1 %v7129_v46  ;;  %v5337_v60 = vadd.f32 %v5336_v48, %v13736_v7  ;;  %v5991_v48 = vor.u32 %v5990_v38, %v5897_v56  ;;  %v6535_v15 = vor.u32 %v6533_v39, %v6532_v19 }
 0x4b5   : > { %v6663_v56 = vsel %vm9661_vm6, %v6621_v12, 0  ;;  %v6220_v12 = vshll.u32 %v12834_v36, 16 }
 0x4b6   : > { %v5674_v2 = vpack.c.bf16 %v5642_v0, %v5642_v0  ;;  %v5426_v0 = vadd.f32 %v5425_v14, %v5337_v60  ;;  %v6028_v43 = vsel %vm9661_vm6, %v5991_v48, 0  ;;  %v5958_v60 = vsel %vm9689_vm9, 0, %v12341_v10 }
 0x4b7   : > { %v12836_v40 = vld [vmem:[#allocation2 + $0x60] sm:$0xff]  ;;  %6788 = vrot.lane.b32.xlu0 %v6283_v30, %s9546_s11  ;;  %6914 = vrot.lane.b32.xlu1 %v6602_v44, %s9549_s14  ;;  %v6603_v30 = vsel %vm9689_vm9, 0, %v6535_v15  ;;  %v6219_v44 = vrot.slane %v6217_v45, 7 }
 0x4b8   : > { %5706 = vst.msk [vmem:[#allocation2 + $0x68] sm:$0xf] %vm334_vm3, %v5674_v2  ;;  %6694 = vrot.lane.b32.xlu2 %v12689_v62, %s9543_s23  ;;  %v5911_v31 = vshrl.u32 %v12836_v40, 16  ;;  %v5914_v54 = vshll.u32 %v12836_v40, 16  ;;  %v5515_v7 = vadd.f32 %v5514_v6, %v5426_v0  ;;  %v6976_v6 = vsel %vm1974_vm10, %v5958_v60, %v12743_v25 }
 0x4b9   : > { %v5600_v1 = vpop.f32.mrf.mxu3  ;;  %v6903_v57 = vpop.permute.xlu1 %6902  ;;  %v6622_v25 = vrot.slane %v6512_v49, 1 }
 0x4ba   : > { %v5601_v32 = vadd.f32 %v5600_v1, %v5512_v13  ;;  %v6777_v34 = vpop.permute.xlu0 %6776  ;;  %v7175_v4 = vsel %vm2187_vm15, %v6855_v53, %v6903_v57  ;;  %v12856_v2 = vpop.permute.xlu2 %6858  ;;  %v5913_v14 = vrot.slane %v5911_v31, 7 }
 0x4bb   : > { %v5338_v46 = vpop.f32.mrf.mxu0  ;;  %v5427_v11 = vpop.f32.mrf.mxu1  ;;  %v7209_v62 = vsel %vm2220_vm0, %v7175_v4, %v12709_v24  ;;  %v7065_v38 = vsel %vm2072_vm12, %v12673_v29, %v6777_v34  ;;  %v6347_v24 = vsel %vm9661_vm6, %v6309_v59, 0  ;;  %v6222_v59 = vor.u32 %v6220_v12, %v6219_v44 }
 0x4bc   : > { %v5643_v21 = vmax.f32 %v5601_v32, 0.0  ;;  %v5339_v19 = vadd.f32 %v5338_v46, %v13737_v41  ;;  %v12882_v29 = vor.u32 %v5914_v54, %v5913_v14  ;;  %v5516_v13 = vpop.f32.mrf.mxu2  ;;  %v7097_v48 = vsel %vm2105_vm13, %v7065_v38, %v12816_v9  ;;  %v12903_v14 = vld [vmem:[#allocation2 + $0x60] sm:$0xff]  ;;  %v13738_v38 = vld [vmem:[#allocation18_spill] sm:$0xff] }
 0x4bd   : > { %7714 = vmatmul.bf16.gmra.mxu2 %v7209_v62  ;;  %v5992_v9 = vrot.slane %v5907_v55, 1  ;;  %v6623_v44 = vor.u32 %v6622_v25, %v6509_v16  ;;  %v13739_v25 = vld [vmem:[#allocation10_spill] sm:$0xff] }
 0x4be   : > { %v5675_v53 = vpack.c.bf16 %v5643_v21, %v5643_v21  ;;  %9188 = vmatmul.msk.bf16.gmra.mxu3 %vm1974_vm10, %v6663_v56  ;;  %v5428_v15 = vadd.f32 %v5427_v11, %v5339_v19  ;;  %v12905_v11 = vld [vmem:[#allocation2 + $0x60] sm:$0xff] }
 0x4bf   : > { %6742 = vrot.lane.b32.xlu0 %v6028_v43, %s9544_s24  ;;  %6868 = vrot.lane.b32.xlu1 %v6347_v24, %s9548_s13  ;;  %v6284_v43 = vsel %vm9689_vm9, 0, %v6222_v59  ;;  %v6224_v22 = vshrl.u32 %v12905_v11, 16 }
 0x4c0   : > { %5707 = vst.msk [vmem:[#allocation2 + $0x6c] sm:$0xf] %vm334_vm3, %v5675_v53  ;;  %6916 = vrot.lane.b32.xlu2 %v6603_v30, %s9549_s14  ;;  %v6310_v53 = vrot.slane %v6220_v12, 1  ;;  %v5517_v30 = vadd.f32 %v5516_v13, %v5428_v15  ;;  %v5993_v13 = vor.u32 %v5992_v9, %v5904_v8  ;;  %v6664_v8 = vsel %vm9661_vm6, %v6623_v44, 0 }
 0x4c1   : > { %v5603_v1 = vpop.f32.mrf.mxu3  ;;  %v6857_v57 = vpop.permute.xlu1 %6856 }
 0x4c2   : > { %v5604_v32 = vadd.f32 %v5603_v1, %v5515_v7  ;;  %v6731_v34 = vpop.permute.xlu0 %6730  ;;  %v7132_v10 = vsel %vm2138_vm14, %v7097_v48, %v6857_v57  ;;  %v12895_v21 = vpop.permute.xlu2 %6780  ;;  %v7177_v41 = vsel %vm2187_vm15, %v6857_v57, %v12822_v47  ;;  %v6311_v1 = vor.u32 %v6310_v53, %v6217_v45 }
 0x4c3   : > { %v5341_v46 = vpop.f32.mrf.mxu0  ;;  %v7023_v4 = vsel %vm2023_vm11, %v6976_v6, %v6731_v34  ;;  %v5430_v62 = vpop.f32.mrf.mxu1  ;;  %v6537_v48 = vshrl.u32 %v12903_v14, 16  ;;  %v6029_v45 = vsel %vm9661_vm6, %v5993_v13, 0 }
 0x4c4   : > { %v5644_v0 = vmax.f32 %v5604_v32, 0.0  ;;  %7546 = vmatmul.bf16.gmra.mxu0 %v7023_v4  ;;  %7630 = vmatmul.bf16.gmra.mxu1 %v7132_v10  ;;  %v5342_v24 = vadd.f32 %v5341_v46, %v13738_v38  ;;  %v5519_v12 = vpop.f32.mrf.mxu2  ;;  %v6348_v10 = vsel %vm9661_vm6, %v6311_v1, 0  ;;  %v6540_v38 = vshll.u32 %v12903_v14, 16 }
 0x4c5   : > { %v6539_v15 = vrot.slane %v6537_v48, 7 }
 0x4c6   : > { %v5676_v56 = vpack.c.bf16 %v5644_v0, %v5644_v0  ;;  %v5431_v47 = vadd.f32 %v5430_v62, %v5342_v24 }
 0x4c7   : > { %6948 = vrot.lane.b32.xlu0 %v12796_v27, %s9547_s12  ;;  %6790 = vrot.lane.b32.xlu1 %v6284_v43, %s9546_s11  ;;  %v12912_v49 = vld [vmem:[#allocation2 + $0x68] sm:$0xff] }
 0x4c8   : > { %5708 = vst.msk [vmem:[#allocation2 + $0x70] sm:$0xf] %vm334_vm3, %v5676_v56  ;;  %6822 = vrot.lane.b32.xlu2 %v12834_v36, %s9545_s29  ;;  %v5918_v16 = vshrl.u32 %v12912_v49, 16  ;;  %v5921_v0 = vshll.u32 %v12912_v49, 16  ;;  %v5520_v9 = vadd.f32 %v5519_v12, %v5431_v47  ;;  %v6624_v47 = vrot.slane %v6519_v20, 1 }
 0x4c9   : > { %v5605_v55 = vpop.f32.mrf.mxu3  ;;  %v6779_v60 = vpop.permute.xlu1 %6778 }
 0x4ca   : > { %v5606_v19 = vadd.f32 %v5605_v55, %v5517_v30  ;;  %v6937_v7 = vpop.permute.xlu0 %6936  ;;  %v12928_v46 = vpop.permute.xlu2 %6734  ;;  %v7067_v4 = vsel %vm2072_vm12, %v6731_v34, %v6779_v60  ;;  %v6226_v34 = vrot.slane %v6224_v22, 7  ;;  %v5920_v62 = vrot.slane %v5918_v16, 7 }
 0x4cb   : > { %v5343_v6 = vpop.f32.mrf.mxu0  ;;  %v7212_v32 = vsel %vm2220_vm0, %v7177_v41, %v6937_v7  ;;  %v5432_v59 = vpop.f32.mrf.mxu1  ;;  %v7099_v53 = vsel %vm2105_vm13, %v7067_v4, %v12779_v61  ;;  %v5959_v55 = vsel %vm9689_vm9, 0, %v12391_v35  ;;  %v6227_v41 = vshll.u32 %v12905_v11, 16 }
 0x4cc   : > { %v5645_v57 = vmax.f32 %v5606_v19, 0.0  ;;  %v5344_v56 = vadd.f32 %v5343_v6, %v13739_v25  ;;  %v12956_v24 = vor.u32 %v5921_v0, %v5920_v62  ;;  %v7135_v7 = vsel %vm2138_vm14, %v7099_v53, %v12856_v2 }
 0x4cd   : > { %7719 = vmatmul.bf16.gmra.mxu2 %v7212_v32  ;;  %v6542_v60 = vor.u32 %v6540_v38, %v6539_v15  ;;  %v6229_v6 = vor.u32 %v6227_v41, %v6226_v34  ;;  %v5521_v32 = vpop.f32.mrf.mxu2  ;;  %v6625_v62 = vor.u32 %v6624_v47, %v6516_v3  ;;  %v6312_v63 = vrot.slane %v6227_v41, 1  ;;  %v13741_v47 = vld [vmem:[#allocation19_spill] sm:$0xff] }
 0x4ce   : > { %v5677_v36 = vpack.c.bf16 %v5645_v57, %v5645_v57  ;;  %9189 = vmatmul.msk.bf16.gmra.mxu3 %vm1974_vm10, %v6664_v8  ;;  %v5433_v13 = vadd.f32 %v5432_v59, %v5344_v56  ;;  %v12977_v8 = vld [vmem:[#allocation2 + $0x68] sm:$0xff]  ;;  %v5994_v3 = vrot.slane %v5914_v54, 1 }
 0x4cf   : > { %6696 = vrot.lane.b32.xlu0 %v12755_v5, %s9543_s23  ;;  %6744 = vrot.lane.b32.xlu1 %v6029_v45, %s9544_s24  ;;  %v6604_v4 = vsel %vm9689_vm9, 0, %v6542_v60  ;;  %v13740_v45 = vld [vmem:[#allocation11_spill] sm:$0xff]  ;;  %v6285_v20 = vsel %vm9689_vm9, 0, %v6229_v6  ;;  %v6544_v53 = vshrl.u32 %v12977_v8, 16 }
 0x4d0   : > { %5709 = vst.msk [vmem:[#allocation2 + $0x74] sm:$0xf] %vm334_vm3, %v5677_v36  ;;  %6870 = vrot.lane.b32.xlu2 %v6348_v10, %s9548_s13  ;;  %v5522_v59 = vadd.f32 %v5521_v32, %v5433_v13  ;;  %v13002_v13 = vld [vmem:[#allocation2 + $0x68] sm:$0xff] }
 0x4d1   : > { %v5608_v43 = vpop.f32.mrf.mxu3  ;;  %v12961_v44 = vpop.permute.xlu1 %6732 }
 0x4d2   : > { %v5609_v30 = vadd.f32 %v5608_v43, %v5520_v9  ;;  %v6685_v5 = vpop.permute.xlu0 %6684  ;;  %v12969_v12 = vpop.permute.xlu2 %6940 }
 0x4d3   : > { %v5346_v61 = vpop.f32.mrf.mxu0  ;;  %v6979_v19 = vsel %vm1974_vm10, %v5959_v55, %v6685_v5  ;;  %v5435_v15 = vpop.f32.mrf.mxu1 }
 0x4d4   : > { %v5646_v1 = vmax.f32 %v5609_v30, 0.0  ;;  %7635 = vmatmul.bf16.gmra.mxu1 %v7135_v7  ;;  %v7026_v35 = vsel %vm2023_vm11, %v6979_v19, %v12961_v44  ;;  %v5347_v10 = vadd.f32 %v5346_v61, %v13740_v45  ;;  %v6665_v7 = vsel %vm9661_vm6, %v6625_v62, 0 }
 0x4d5   : > { %7551 = vmatmul.bf16.gmra.mxu0 %v7026_v35  ;;  %v5524_v61 = vpop.f32.mrf.mxu2  ;;  %v6547_v45 = vshll.u32 %v12977_v8, 16  ;;  %v5995_v62 = vor.u32 %v5994_v3, %v5911_v31 }
 0x4d6   : > { %v5678_v57 = vpack.c.bf16 %v5646_v1, %v5646_v1  ;;  %v5436_v30 = vadd.f32 %v5435_v15, %v5347_v10  ;;  %v6546_v1 = vrot.slane %v6544_v53, 7 }
 0x4d7   : > { %v12979_v36 = vld [vmem:[#allocation2 + $0x70] sm:$0xff]  ;;  %6918 = vrot.lane.b32.xlu0 %v6604_v4, %s9549_s14  ;;  %6950 = vrot.lane.b32.xlu1 %v12903_v14, %s9547_s12  ;;  %v5960_v4 = vsel %vm9689_vm9, 0, %v12454_v26 }
 0x4d8   : > { %5710 = vst.msk [vmem:[#allocation2 + $0x78] sm:$0xf] %vm334_vm3, %v5678_v57  ;;  %6792 = vrot.lane.b32.xlu2 %v6285_v20, %s9546_s11  ;;  %v5925_v43 = vshrl.u32 %v12979_v36, 16  ;;  %v13006_v35 = vld [vmem:[#allocation2 + $0x70] sm:$0xff]  ;;  %v5928_v6 = vshll.u32 %v12979_v36, 16  ;;  %v5525_v41 = vadd.f32 %v5524_v61, %v5436_v30  ;;  %v6549_v61 = vor.u32 %v6547_v45, %v6546_v1 }
 0x4d9   : > { %v5610_v34 = vpop.f32.mrf.mxu3  ;;  %v6939_v9 = vpop.permute.xlu1 %6938 }
 0x4da   : > { %v5611_v25 = vadd.f32 %v5610_v34, %v5522_v59  ;;  %v12991_v56 = vpop.permute.xlu0 %6812  ;;  %v12995_v5 = vpop.permute.xlu2 %6688  ;;  %v5927_v32 = vrot.slane %v5925_v43, 7  ;;  %v6313_v34 = vor.u32 %v6312_v63, %v6224_v22  ;;  %v6605_v1 = vsel %vm9689_vm9, 0, %v6549_v61 }
 0x4db   : > { %v5348_v19 = vpop.f32.mrf.mxu0  ;;  %v5437_v30 = vpop.f32.mrf.mxu1 }
 0x4dc   : > { %v5647_v55 = vmax.f32 %v5611_v25, 0.0  ;;  %v5349_v57 = vadd.f32 %v5348_v19, %v13741_v47  ;;  %v13025_v10 = vor.u32 %v5928_v6, %v5927_v32  ;;  %v6231_v25 = vshrl.u32 %v13002_v13, 16 }
 0x4dd   : > { %v6551_v19 = vshrl.u32 %v13006_v35, 16  ;;  %v5526_v63 = vpop.f32.mrf.mxu2  ;;  %v6349_v3 = vsel %vm9661_vm6, %v6313_v34, 0 }
 0x4de   : > { %v5679_v60 = vpack.c.bf16 %v5647_v55, %v5647_v55  ;;  %9190 = vmatmul.msk.bf16.gmra.mxu3 %vm1974_vm10, %v6665_v7  ;;  %v5438_v7 = vadd.f32 %v5437_v30, %v5349_v57  ;;  %v6233_v32 = vrot.slane %v6231_v25, 7  ;;  %v6554_v30 = vshll.u32 %v13006_v35, 16 }
 0x4df   : > { %6824 = vrot.lane.b32.xlu0 %v12905_v11, %s9545_s29  ;;  %6698 = vrot.lane.b32.xlu1 %v12836_v40, %s9543_s23 }
 0x4e0   : > { %5711 = vst.msk [vmem:[#allocation2 + $0x7c] sm:$0xf] %vm334_vm3, %v5679_v60  ;;  %6952 = vrot.lane.b32.xlu2 %v12977_v8, %s9547_s12  ;;  %v5527_v57 = vadd.f32 %v5526_v63, %v5438_v7 }
 0x4e1   : > { %v5613_v54 = vpop.f32.mrf.mxu3  ;;  %v6687_v15 = vpop.permute.xlu1 %6686 }
 0x4e2   : > { %v5614_v59 = vadd.f32 %v5613_v54, %v5525_v41  ;;  %v6907_v20 = vpop.permute.xlu0 %6906  ;;  %v6982_v55 = vsel %vm1974_vm10, %v5960_v4, %v6687_v15  ;;  %v13038_v11 = vpop.permute.xlu2 %6816  ;;  %v7069_v41 = vsel %vm2072_vm12, %v12961_v44, %v12895_v21 }
 0x4e3   : > { %v7179_v26 = vsel %vm2187_vm15, %v12856_v2, %v6907_v20  ;;  %v7029_v40 = vsel %vm2023_vm11, %v6982_v55, %v12928_v46  ;;  %v6626_v2 = vrot.slane %v6526_v18, 1  ;;  %v6030_v18 = vsel %vm9661_vm6, %v5995_v62, 0 }
 0x4e4   : > { %v5648_v60 = vmax.f32 %v5614_v59, 0.0  ;;  %v7215_v31 = vsel %vm2220_vm0, %v7179_v26, %v6939_v9  ;;  %v6553_v9 = vrot.slane %v6551_v19, 7  ;;  %v6234_v59 = vshll.u32 %v13002_v13, 16 }
 0x4e5   : > { %7556 = vmatmul.bf16.gmra.mxu0 %v7029_v40  ;;  %7724 = vmatmul.bf16.gmra.mxu2 %v7215_v31  ;;  %v6627_v4 = vor.u32 %v6626_v2, %v6523_v37  ;;  %v7101_v20 = vsel %vm2105_vm13, %v7069_v41, %v12991_v56  ;;  %v13082_v2 = vld [vmem:[#allocation2 + $0x70] sm:$0xff] }
 0x4e6   : > { %v5680_v22 = vpack.c.bf16 %v5648_v60, %v5648_v60  ;;  %v6236_v44 = vor.u32 %v6234_v59, %v6233_v32  ;;  %v6556_v58 = vor.u32 %v6554_v30, %v6553_v9  ;;  %v6314_v31 = vrot.slane %v6234_v59, 1 }
 0x4e7   : > { %v13049_v47 = vld [vmem:[#allocation2 + $0x78] sm:$0xff]  ;;  %6872 = vrot.lane.b32.xlu0 %v6349_v3, %s9548_s13  ;;  %6920 = vrot.lane.b32.xlu1 %v6605_v1, %s9549_s14  ;;  %v6666_v37 = vsel %vm9661_vm6, %v6627_v4, 0  ;;  %v5996_v4 = vrot.slane %v5921_v0, 1 }
 0x4e8   : > { %5712 = vst.msk [vmem:[#allocation2 + $0x80] sm:$0xf] %vm334_vm3, %v5680_v22  ;;  %6746 = vrot.lane.b32.xlu2 %v6030_v18, %s9544_s24  ;;  %v5932_v26 = vshrl.u32 %v13049_v47, 16  ;;  %v5935_v56 = vshll.u32 %v13049_v47, 16  ;;  %v6286_v40 = vsel %vm9689_vm9, 0, %v6236_v44  ;;  %v6606_v63 = vsel %vm9689_vm9, 0, %v6556_v58 }
 0x4e9   : > { %v5615_v54 = vpop.f32.mrf.mxu3  ;;  %v6815_v62 = vpop.permute.xlu1 %6814  ;;  %v6238_v18 = vshrl.u32 %v13082_v2, 16  ;;  %v5997_v58 = vor.u32 %v5996_v4, %v5918_v16 }
 0x4ea   : > { %v5616_v15 = vadd.f32 %v5615_v54, %v5527_v57  ;;  %v6861_v34 = vpop.permute.xlu0 %6860  ;;  %v13070_v61 = vpop.permute.xlu2 %6910  ;;  %v5934_v7 = vrot.slane %v5932_v26, 7  ;;  %v6315_v57 = vor.u32 %v6314_v31, %v6231_v25  ;;  %v6241_v54 = vshll.u32 %v13082_v2, 16 }
 0x4eb   : > { %v7138_v21 = vsel %vm2138_vm14, %v7101_v20, %v6861_v34  ;;  %v6240_v20 = vrot.slane %v6238_v18, 7 }
 0x4ec   : > { %v5649_v55 = vmax.f32 %v5616_v15, 0.0  ;;  %7640 = vmatmul.bf16.gmra.mxu1 %v7138_v21  ;;  %v13086_v22 = vor.u32 %v5935_v56, %v5934_v7  ;;  %v6350_v25 = vsel %vm9661_vm6, %v6315_v57, 0  ;;  %v13110_v15 = vld [vmem:[#allocation2 + $0x78] sm:$0xff] }
 0x4ed   : > { %v6558_v27 = vshrl.u32 %v13110_v15, 16 }
 0x4ee   : > { %v5681_v60 = vpack.c.bf16 %v5649_v55, %v5649_v55  ;;  %9191 = vmatmul.msk.bf16.gmra.mxu3 %vm1974_vm10, %v6666_v37  ;;  %v13129_v37 = vpop.f32.mrf.mxu0 }
 0x4ef   : > { %6794 = vrot.lane.b32.xlu0 %v6286_v40, %s9546_s11  ;;  %6826 = vrot.lane.b32.xlu1 %v13002_v13, %s9545_s29  ;;  %v6628_v13 = vrot.slane %v6533_v39, 1  ;;  %v5961_v39 = vsel %vm9689_vm9, 0, %v12519_v28  ;;  %v6560_v40 = vrot.slane %v6558_v27, 7 }
 0x4f0   : > { %5713 = vst.msk [vmem:[#allocation2 + $0x84] sm:$0xf] %vm334_vm3, %v5681_v60  ;;  %6922 = vrot.lane.b32.xlu2 %v6606_v63, %s9549_s14  ;;  %v6243_v60 = vor.u32 %v6241_v54, %v6240_v20  ;;  %v6561_v63 = vshll.u32 %v13110_v15, 16 }
 0x4f1   : > { %v6909_v1 = vpop.permute.xlu1 %6908  ;;  %v13118_v0 = vpop.f32.mrf.mxu3 }
 0x4f2   : > { %v6783_v3 = vpop.permute.xlu0 %6782  ;;  %v7181_v32 = vsel %vm2187_vm15, %v6861_v34, %v6909_v1  ;;  %v13097_v9 = vpop.permute.xlu2 %6864  ;;  %v6985_v34 = vsel %vm1974_vm10, %v5961_v39, %v12995_v5  ;;  %v6287_v16 = vsel %vm9689_vm9, 0, %v6243_v60  ;;  %v13208_v60 = vld [vmem:[#allocation2 + $0x88] sm:$0xff] }
 0x4f3   : > { %v7218_v41 = vsel %vm2220_vm0, %v7181_v32, %v12969_v12  ;;  %v7071_v59 = vsel %vm2072_vm12, %v12928_v46, %v6783_v3  ;;  %v6316_v12 = vrot.slane %v6241_v54, 1  ;;  %v6629_v46 = vor.u32 %v6628_v13, %v6530_v33 }
 0x4f4   : > { %v7103_v55 = vsel %vm2105_vm13, %v7071_v59, %v6815_v62  ;;  %v6630_v59 = vrot.slane %v6540_v38, 1 }
 0x4f5   : > { %7729 = vmatmul.bf16.gmra.mxu2 %v7218_v41  ;;  %v6317_v5 = vor.u32 %v6316_v12, %v6238_v18  ;;  %v6667_v62 = vsel %vm9661_vm6, %v6629_v46, 0  ;;  %v6563_v18 = vor.u32 %v6561_v63, %v6560_v40  ;;  %v13171_v12 = vld [vmem:[#allocation2 + $0x78] sm:$0xff] }
 0x4f6   : > { %v13160_v13 = vpop.f32.mrf.mxu0  ;;  %v6631_v38 = vor.u32 %v6630_v59, %v6537_v48  ;;  %v6248_v14 = vshll.u32 %v13171_v12, 16  ;;  %v6632_v59 = vrot.slane %v6547_v45, 1 }
 0x4f7   : > { %6954 = vrot.lane.b32.xlu0 %v13006_v35, %s9547_s12  ;;  %6874 = vrot.lane.b32.xlu1 %v6350_v25, %s9548_s13  ;;  %v6351_v31 = vsel %vm9661_vm6, %v6317_v5, 0  ;;  %v6607_v25 = vsel %vm9689_vm9, 0, %v6563_v18  ;;  %v13169_v20 = vld [vmem:[#allocation2 + $0x80] sm:$0xff] }
 0x4f8   : > { %6700 = vrot.lane.b32.xlu2 %v12912_v49, %s9543_s23  ;;  %v6031_v49 = vsel %vm9661_vm6, %v5997_v58, 0  ;;  %v6565_v48 = vshrl.u32 %v13169_v20, 16  ;;  %v6245_v58 = vshrl.u32 %v13171_v12, 16  ;;  %v6568_v40 = vshll.u32 %v13169_v20, 16 }
 0x4f9   : > { %v6863_v44 = vpop.permute.xlu1 %6862  ;;  %v13156_v41 = vpop.f32.mrf.mxu3 }
 0x4fa   : > { %v6737_v21 = vpop.permute.xlu0 %6736  ;;  %v7141_v7 = vsel %vm2138_vm14, %v7103_v55, %v6863_v44  ;;  %v13134_v33 = vpop.permute.xlu2 %6786  ;;  %v7183_v3 = vsel %vm2187_vm15, %v6863_v44, %v13070_v61  ;;  %v5998_v61 = vrot.slane %v5928_v6, 1  ;;  %v5962_v6 = vsel %vm9689_vm9, 0, %v12577_v51 }
 0x4fb   : > { %v7032_v28 = vsel %vm2023_vm11, %v6985_v34, %v6737_v21 }
 0x4fc   : > { %7561 = vmatmul.bf16.gmra.mxu0 %v7032_v28  ;;  %7645 = vmatmul.bf16.gmra.mxu1 %v7141_v7  ;;  %v6668_v28 = vsel %vm9661_vm6, %v6631_v38, 0 }
 0x4fe   : > { %9192 = vmatmul.msk.bf16.gmra.mxu3 %vm1974_vm10, %v6667_v62  ;;  %v6318_v62 = vrot.slane %v6248_v14, 1 }
 0x4ff   : > { %6748 = vrot.lane.b32.xlu0 %v6031_v49, %s9544_s24  ;;  %6796 = vrot.lane.b32.xlu1 %v6287_v16, %s9546_s11  ;;  %v6567_v49 = vrot.slane %v6565_v48, 7  ;;  %v6247_v16 = vrot.slane %v6245_v58, 7 }
 0x500   : > { %6876 = vrot.lane.b32.xlu2 %v6351_v31, %s9548_s13 }
 0x501   : > { %v6785_v32 = vpop.permute.xlu1 %6784  ;;  %v13205_v7 = vpop.f32.mrf.mxu3 }
 0x502   : > { %v6943_v1 = vpop.permute.xlu0 %6942  ;;  %v13158_v54 = vpop.permute.xlu2 %6740  ;;  %v7073_v4 = vsel %vm2072_vm12, %v6737_v21, %v6785_v32  ;;  %v5999_v21 = vor.u32 %v5998_v61, %v5925_v43  ;;  %v6319_v32 = vor.u32 %v6318_v62, %v6245_v58  ;;  %v5963_v58 = vsel %vm9689_vm9, 0, %v12655_v17 }
 0x503   : > { %v7221_v57 = vsel %vm2220_vm0, %v7183_v3, %v6943_v1  ;;  %v7105_v39 = vsel %vm2105_vm13, %v7073_v4, %v13038_v11  ;;  %v13189_v44 = vpop.f32.mrf.mxu1  ;;  %v6572_v1 = vshrl.u32 %v13208_v60, 16  ;;  %v6250_v4 = vor.u32 %v6248_v14, %v6247_v16 }
 0x504   : > { %v6032_v5 = vsel %vm9661_vm6, %v5999_v21, 0  ;;  %v6352_v38 = vsel %vm9661_vm6, %v6319_v32, 0 }
 0x505   : > { %7734 = vmatmul.bf16.gmra.mxu2 %v7221_v57  ;;  %v6570_v57 = vor.u32 %v6568_v40, %v6567_v49  ;;  %v6574_v61 = vrot.slane %v6572_v1, 7  ;;  %v6288_v45 = vsel %vm9689_vm9, 0, %v6250_v4 }
 0x507   : > { %6924 = vrot.lane.b32.xlu0 %v6607_v25, %s9549_s14  ;;  %6956 = vrot.lane.b32.xlu1 %v13110_v15, %s9547_s12  ;;  %v6575_v25 = vshll.u32 %v13208_v60, 16 }
 0x508   : > { %6828 = vrot.lane.b32.xlu2 %v13082_v2, %s9545_s29  ;;  %v7144_v2 = vsel %vm2138_vm14, %v7105_v39, %v13097_v9  ;;  %v13201_v43 = vpop.f32.mrf.mxu0 }
 0x509   : > { %v13185_v34 = vpop.permute.xlu1 %6738  ;;  %v13240_v21 = vpop.f32.mrf.mxu3  ;;  %v6577_v14 = vor.u32 %v6575_v25, %v6574_v61 }
 0x50a   : > { %v6691_v46 = vpop.permute.xlu0 %6690  ;;  %v13196_v55 = vpop.permute.xlu2 %6946  ;;  %v7075_v4 = vsel %vm2072_vm12, %v13185_v34, %v13134_v33 }
 0x50b   : > { %v6988_v11 = vsel %vm1974_vm10, %v5962_v6, %v6691_v46  ;;  %v6608_v6 = vsel %vm9689_vm9, 0, %v6570_v57  ;;  %v13238_v46 = vld [vmem:[#allocation2 + $0x80] sm:$0xff]  ;;  %v6609_v17 = vsel %vm9689_vm9, 0, %v6577_v14 }
 0x50c   : > { %7650 = vmatmul.bf16.gmra.mxu1 %v7144_v2  ;;  %v7035_v51 = vsel %vm2023_vm11, %v6988_v11, %v13185_v34  ;;  %v6633_v11 = vor.u32 %v6632_v59, %v6544_v53  ;;  %v6252_v61 = vshrl.u32 %v13238_v46, 16  ;;  %v6634_v34 = vrot.slane %v6554_v30, 1 }
 0x50d   : > { %7566 = vmatmul.bf16.gmra.mxu0 %v7035_v51 }
 0x50e   : > { %9193 = vmatmul.msk.bf16.gmra.mxu3 %vm1974_vm10, %v6668_v28 }
 0x50f   : > { %6702 = vrot.lane.b32.xlu0 %v12979_v36, %s9543_s23  ;;  %6750 = vrot.lane.b32.xlu1 %v6032_v5, %s9544_s24  ;;  %v13225_v36 = vpop.f32.mrf.mxu1  ;;  %v6255_v5 = vshll.u32 %v13238_v46, 16 }
 0x510   : > { %6958 = vrot.lane.b32.xlu2 %v13169_v20, %s9547_s12  ;;  %v13232_v39 = vpop.f32.mrf.mxu0 }
 0x511   : > { %v6945_v3 = vpop.permute.xlu1 %6944  ;;  %v6320_v57 = vrot.slane %v6255_v5, 1 }
 0x512   : > { %v6819_v31 = vpop.permute.xlu0 %6818  ;;  %v13223_v18 = vpop.permute.xlu2 %6694 }
 0x517   : > { %6878 = vrot.lane.b32.xlu0 %v6352_v38, %s9548_s13  ;;  %6926 = vrot.lane.b32.xlu1 %v6608_v6, %s9549_s14  ;;  %v13265_v16 = vpop.f32.mrf.mxu2  ;;  %v13270_v32 = vpop.f32.mrf.mxu1 }
 0x518   : > { %6798 = vrot.lane.b32.xlu2 %v6288_v45, %s9546_s11  ;;  %v13285_v38 = vpop.f32.mrf.mxu3 }
 0x519   : > { %v6693_v28 = vpop.permute.xlu1 %6692 }
 0x51a   : > { %v6913_v2 = vpop.permute.xlu0 %6912  ;;  %v6991_v62 = vsel %vm1974_vm10, %v5963_v58, %v6693_v28  ;;  %v13258_v49 = vpop.permute.xlu2 %6916 }
 0x51b   : > { %v7185_v51 = vsel %vm2187_vm15, %v13097_v9, %v6913_v2  ;;  %v7038_v53 = vsel %vm2023_vm11, %v6991_v62, %v13158_v54  ;;  %v6669_v9 = vsel %vm9661_vm6, %v6633_v11, 0  ;;  %v13281_v59 = vpop.f32.mrf.mxu0  ;;  %v6321_v2 = vor.u32 %v6320_v57, %v6252_v61 }
 0x51c   : > { %v7224_v8 = vsel %vm2220_vm0, %v7185_v51, %v6945_v3  ;;  %v6000_v3 = vrot.slane %v5935_v56, 1  ;;  %v6254_v51 = vrot.slane %v6252_v61, 7 }
 0x51d   : > { %7739 = vmatmul.bf16.gmra.mxu2 %v7224_v8  ;;  %7571 = vmatmul.bf16.gmra.mxu0 %v7038_v53  ;;  %v6353_v14 = vsel %vm9661_vm6, %v6321_v2, 0 }
 0x51e   : > { %9194 = vmatmul.msk.bf16.gmra.mxu3 %vm1974_vm10, %v6669_v9  ;;  %v6001_v33 = vor.u32 %v6000_v3, %v5932_v26  ;;  %v6257_v8 = vor.u32 %v6255_v5, %v6254_v51 }
 0x51f   : > { %6830 = vrot.lane.b32.xlu0 %v13171_v12, %s9545_s29  ;;  %6704 = vrot.lane.b32.xlu1 %v13049_v47, %s9543_s23  ;;  %v7107_v12 = vsel %vm2105_vm13, %v7075_v4, %v6819_v31  ;;  %v13295_v58 = vpop.f32.mrf.mxu2  ;;  %v13302_v28 = vpop.f32.mrf.mxu1  ;;  %v6635_v47 = vor.u32 %v6634_v34, %v6551_v19 }
 0x520   : > { %6928 = vrot.lane.b32.xlu2 %v6609_v17, %s9549_s14  ;;  %v6033_v31 = vsel %vm9661_vm6, %v6001_v33, 0  ;;  %v13309_v53 = vpop.f32.mrf.mxu3  ;;  %v6289_v35 = vsel %vm9689_vm9, 0, %v6257_v8 }
 0x521   : > { %v6821_v45 = vpop.permute.xlu1 %6820  ;;  %v6670_v3 = vsel %vm9661_vm6, %v6635_v47, 0 }
 0x522   : > { %v6867_v6 = vpop.permute.xlu0 %6866  ;;  %v6823_v56 = vpop.permute.xlu2 %6822 }
 0x523   : > { %v7147_v11 = vsel %vm2138_vm14, %v7107_v12, %v6867_v6  ;;  %v13307_v26 = vpop.f32.mrf.mxu0 }
 0x524   : > { %7655 = vmatmul.bf16.gmra.mxu1 %v7147_v11 }
 0x527   : > { %6960 = vrot.lane.b32.xlu0 %v13208_v60, %s9547_s12  ;;  %6880 = vrot.lane.b32.xlu1 %v6353_v14, %s9548_s13 }
 0x528   : > { %6752 = vrot.lane.b32.xlu2 %v6033_v31, %s9544_s24  ;;  %v13342_v34 = vpop.f32.mrf.mxu3 }
 0x529   : > { %v6915_v62 = vpop.permute.xlu1 %6914 }
 0x52a   : > { %v6789_v30 = vpop.permute.xlu0 %6788  ;;  %v7187_v9 = vsel %vm2187_vm15, %v6867_v6, %v6915_v62  ;;  %v6871_v17 = vpop.permute.xlu2 %6870 }
 0x52b   : > { %v7227_v57 = vsel %vm2220_vm0, %v7187_v9, %v13196_v55  ;;  %v7077_v19 = vsel %vm2072_vm12, %v13158_v54, %v6789_v30  ;;  %v5964_v55 = vsel %vm9689_vm9, 0, %v12735_v42  ;;  %v13338_v33 = vpop.f32.mrf.mxu0  ;;  %v6636_v42 = vrot.slane %v6561_v63, 1 }
 0x52c   : > { %v6994_v61 = vsel %vm1974_vm10, %v5964_v55, %v13223_v18  ;;  %v7109_v11 = vsel %vm2105_vm13, %v7077_v19, %v6821_v45 }
 0x52d   : > { %7744 = vmatmul.bf16.gmra.mxu2 %v7227_v57  ;;  %v6637_v45 = vor.u32 %v6636_v42, %v6558_v27  ;;  %v13366_v27 = vld [vmem:[%s13622_s8] ss:$0 sm:$0xff] }
 0x52e   : > { %9195 = vmatmul.msk.bf16.gmra.mxu3 %vm1974_vm10, %v6670_v3  ;;  %v5965_v3 = vsel %vm9689_vm9, 0, %v12805_v50  ;;  %v6638_v50 = vrot.slane %v6568_v40, 1 }
 0x52f   : > { %6800 = vrot.lane.b32.xlu0 %v6289_v35, %s9546_s11  ;;  %6832 = vrot.lane.b32.xlu1 %v13238_v46, %s9545_s29  ;;  %v6671_v63 = vsel %vm9661_vm6, %v6637_v45, 0  ;;  %s9204_s29 = sshll.u32 %s13743_s10, 4 }
 0x530   : > { %v13321_v5 = vpop.f32.mrf.mxu2  ;;  %v13361_v15 = vpop.f32.mrf.mxu3  ;;  %v6639_v45 = vor.u32 %v6638_v50, %v6565_v48  ;;  %s332_s13 = scalar_lea.vmem %s13623_s9, %s9204_s29 }
 0x531   : > { %v13329_v4 = vpop.f32.mrf.mxu1  ;;  %v6869_v6 = vpop.permute.xlu1 %6868 }
 0x532   : > { %v6743_v12 = vpop.permute.xlu0 %6742  ;;  %v13335_v2 = vpop.permute.xlu2 %6792  ;;  %v7150_v46 = vsel %vm2138_vm14, %v7109_v11, %v6869_v6  ;;  %v7189_v51 = vsel %vm2187_vm15, %v6869_v6, %v13258_v49  ;;  %v6672_v20 = vsel %vm9661_vm6, %v6639_v45, 0 }
 0x533   : > { %v7041_v54 = vsel %vm2023_vm11, %v6994_v61, %v6743_v12  ;;  %v13359_v9 = vpop.f32.mrf.mxu0 }
 0x534   : > { %7576 = vmatmul.bf16.gmra.mxu0 %v7041_v54  ;;  %7660 = vmatmul.bf16.gmra.mxu1 %v7150_v46 }
 0x538   : > { %v13344_v18 = vpop.f32.mrf.mxu2 }
 0x539   : > { %v13346_v14 = vpop.f32.mrf.mxu1  ;;  %v6791_v47 = vpop.permute.xlu1 %6790 }
 0x53a   : > { %v6949_v31 = vpop.permute.xlu0 %6948  ;;  %v13353_v62 = vpop.permute.xlu2 %6952  ;;  %v7079_v8 = vsel %vm2072_vm12, %v6743_v12, %v6791_v47 }
 0x53b   : > { %v7230_v30 = vsel %vm2220_vm0, %v7189_v51, %v6949_v31  ;;  %v7111_v49 = vsel %vm2105_vm13, %v7079_v8, %v6823_v56  ;;  %v7528_v56 = vadd.f32 %v13366_v27, %v13129_v37  ;;  %v13391_v51 = vpop.f32.mrf.mxu3 }
 0x53c   : > { %v7153_v6 = vsel %vm2138_vm14, %v7111_v49, %v6871_v17 }
 0x53d   : > { %7749 = vmatmul.bf16.gmra.mxu2 %v7230_v30  ;;  %v7617_v11 = vadd.f32 %v13189_v44, %v7528_v56  ;;  %v7530_v44 = vadd.f32 %v13366_v27, %v13160_v13 }
 0x53e   : > { %9196 = vmatmul.msk.bf16.gmra.mxu3 %vm1974_vm10, %v6671_v63 }
 0x53f   : > { %v7706_v42 = vadd.f32 %v13265_v16, %v7617_v11  ;;  %v7619_v16 = vadd.f32 %v13225_v36, %v7530_v44 }
 0x540   : > { %v13369_v57 = vpop.f32.mrf.mxu2 }
 0x541   : > { %v13374_v19 = vpop.f32.mrf.mxu1  ;;  %v6745_v61 = vpop.permute.xlu1 %6744  ;;  %v7795_v40 = vadd.f32 %v13118_v0, %v7706_v42  ;;  %v5966_v0 = vsel %vm9689_vm9, 0, %v12882_v29 }
 0x542   : > { %v6697_v35 = vpop.permute.xlu0 %6696  ;;  %v13377_v12 = vpop.permute.xlu2 %6746  ;;  %v7081_v42 = vsel %vm2072_vm12, %v6745_v61, %v13335_v2 }
 0x543   : > { %v6997_v55 = vsel %vm1974_vm10, %v5965_v3, %v6697_v35  ;;  %v13386_v46 = vpop.f32.mrf.mxu0  ;;  %v13412_v35 = vpop.f32.mrf.mxu3 }
 0x544   : > { %v7044_v54 = vsel %vm2023_vm11, %v6997_v55, %v6745_v61  ;;  %7665 = vmatmul.bf16.gmra.mxu1 %v7153_v6  ;;  %v7533_v6 = vadd.f32 %v13366_v27, %v13201_v43  ;;  %v7548_v23 = vadd.f32 %v13366_v27, %v13386_v46 }
 0x545   : > { %7581 = vmatmul.bf16.gmra.mxu0 %v7044_v54 }
 0x546   : > { %v7622_v56 = vadd.f32 %v13270_v32, %v7533_v6  ;;  %v7535_v32 = vadd.f32 %v13366_v27, %v13232_v39 }
 0x548   : > { %v13394_v30 = vpop.f32.mrf.mxu2  ;;  %v7711_v11 = vadd.f32 %v13321_v5, %v7622_v56  ;;  %v7624_v61 = vadd.f32 %v13302_v28, %v7535_v32 }
 0x549   : > { %v6951_v37 = vpop.permute.xlu1 %6950  ;;  %v13400_v8 = vpop.f32.mrf.mxu1 }
 0x54a   : > { %v6919_v31 = vpop.permute.xlu0 %6918  ;;  %v6923_v48 = vpop.permute.xlu2 %6922 }
 0x54b   : > { %v7191_v47 = vsel %vm2187_vm15, %v6871_v17, %v6919_v31  ;;  %v7708_v17 = vadd.f32 %v13295_v58, %v7619_v16  ;;  %v13407_v49 = vpop.f32.mrf.mxu0  ;;  %v13438_v2 = vpop.f32.mrf.mxu3 }
 0x54c   : > { %v7233_v63 = vsel %vm2220_vm0, %v7191_v47, %v6951_v37 }
 0x54d   : > { %7754 = vmatmul.bf16.gmra.mxu2 %v7233_v63  ;;  %v7797_v36 = vadd.f32 %v13156_v41, %v7708_v17  ;;  %v7800_v63 = vadd.f32 %v13205_v7, %v7711_v11  ;;  %v7538_v7 = vadd.f32 %v13366_v27, %v13281_v59  ;;  %v7540_v11 = vadd.f32 %v13366_v27, %v13307_v26 }
 0x54e   : > { %9197 = vmatmul.msk.bf16.gmra.mxu3 %vm1974_vm10, %v6672_v20  ;;  %7874 = vxpose.xlu2.b32.start [1/16] (narrow) %v7795_v40, 8  ;;  %v7713_v40 = vadd.f32 %v13344_v18, %v7624_v61 }
 0x550   : > { %v13420_v54 = vpop.f32.mrf.mxu2 }
 0x551   : > { %v6699_v13 = vpop.permute.xlu1 %6698  ;;  %v13423_v50 = vpop.f32.mrf.mxu1 }
 0x552   : > { %v6825_v3 = vpop.permute.xlu0 %6824  ;;  %v7000_v55 = vsel %vm1974_vm10, %v5966_v0, %v6699_v13  ;;  %v6701_v29 = vpop.permute.xlu2 %6700  ;;  %v7627_v0 = vadd.f32 %v13329_v4, %v7538_v7 }
 0x553   : > { %v7047_v58 = vsel %vm2023_vm11, %v7000_v55, %v13377_v12  ;;  %v7113_v43 = vsel %vm2105_vm13, %v7081_v42, %v6825_v3  ;;  %v13429_v45 = vpop.f32.mrf.mxu0  ;;  %v13452_v28 = vpop.f32.mrf.mxu3 }
 0x554   : > { %v7716_v55 = vadd.f32 %v13369_v57, %v7627_v0  ;;  %v7629_v57 = vadd.f32 %v13346_v14, %v7540_v11 }
 0x555   : > { %7586 = vmatmul.bf16.gmra.mxu0 %v7047_v58 }
 0x556   : > { %7875 = vxpose.xlu2.b32.cont [2/16] (narrow) %v7797_v36, 8 }
 0x558   : > { %v13441_v44 = vpop.f32.mrf.mxu2 }
 0x559   : > { %v6921_v31 = vpop.permute.xlu1 %6920  ;;  %v13444_v20 = vpop.f32.mrf.mxu1 }
 0x55a   : > { %v6873_v41 = vpop.permute.xlu0 %6872  ;;  %v6877_v16 = vpop.permute.xlu2 %6876 }
 0x55b   : > { %v7156_v47 = vsel %vm2138_vm14, %v7113_v43, %v6873_v41  ;;  %v7193_v37 = vsel %vm2187_vm15, %v6873_v41, %v6921_v31  ;;  %v13449_v3 = vpop.f32.mrf.mxu0  ;;  %v5967_v31 = vsel %vm9689_vm9, 0, %v12956_v24 }
 0x55c   : > { %7670 = vmatmul.bf16.gmra.mxu1 %v7156_v47  ;;  %v7236_v5 = vsel %vm2220_vm0, %v7193_v37, %v13353_v62  ;;  %v7802_v62 = vadd.f32 %v13240_v21, %v7713_v40  ;;  %v7003_v47 = vsel %vm1974_vm10, %v5967_v31, %v6701_v29 }
 0x55d   : > { %7759 = vmatmul.bf16.gmra.mxu2 %v7236_v5 }
 0x55e   : > { %7876 = vxpose.xlu2.b32.cont [3/16] (narrow) %v7800_v63, 8  ;;  %v7543_v63 = vadd.f32 %v13366_v27, %v13338_v33 }
 0x560   : > { %v7632_v24 = vadd.f32 %v13374_v19, %v7543_v63 }
 0x561   : > { %v6827_v39 = vpop.permute.xlu1 %6826 }
 0x562   : > { %v6795_v17 = vpop.permute.xlu0 %6794  ;;  %v6829_v58 = vpop.permute.xlu2 %6828  ;;  %v7721_v40 = vadd.f32 %v13420_v54, %v7632_v24  ;;  %v6640_v54 = vrot.slane %v6575_v25, 1 }
 0x563   : > { %v7083_v18 = vsel %vm2072_vm12, %v13377_v12, %v6795_v17  ;;  %v7805_v12 = vadd.f32 %v13285_v38, %v7716_v55  ;;  %v13469_v43 = vpop.f32.mrf.mxu0  ;;  %v13479_v38 = vpop.f32.mrf.mxu3  ;;  %v7545_v55 = vadd.f32 %v13366_v27, %v13359_v9 }
 0x564   : > { %v7115_v59 = vsel %vm2105_vm13, %v7083_v18, %v6827_v39 }
 0x566   : > { %7877 = vxpose.xlu2.b32.cont [4/16] (narrow) %v7802_v62, 8 }
 0x568   : > { %v13456_v13 = vpop.f32.mrf.mxu2 }
 0x569   : > { %v13459_v6 = vpop.f32.mrf.mxu1  ;;  %v6875_v21 = vpop.permute.xlu1 %6874 }
 0x56a   : > { %v6955_v36 = vpop.permute.xlu0 %6954  ;;  %v7195_v56 = vsel %vm2187_vm15, %v6875_v21, %v6923_v48  ;;  %v7159_v4 = vsel %vm2138_vm14, %v7115_v59, %v6875_v21  ;;  %v7718_v48 = vadd.f32 %v13394_v30, %v7629_v57  ;;  %v6959_v5 = vpop.permute.xlu2 %6958  ;;  %v6641_v59 = vor.u32 %v6640_v54, %v6572_v1 }
 0x56b   : > { %v7239_v42 = vsel %vm2220_vm0, %v7195_v56, %v6955_v36  ;;  %v13489_v17 = vpop.f32.mrf.mxu0  ;;  %v13497_v0 = vpop.f32.mrf.mxu3  ;;  %v7810_v36 = vadd.f32 %v13342_v34, %v7721_v40  ;;  %v7634_v21 = vadd.f32 %v13400_v8, %v7545_v55  ;;  %v5968_v34 = vsel %vm9689_vm9, 0, %v13025_v10 }
 0x56c   : > { %7675 = vmatmul.bf16.gmra.mxu1 %v7159_v4  ;;  %v7807_v30 = vadd.f32 %v13309_v53, %v7718_v48 }
 0x56d   : > { %7764 = vmatmul.bf16.gmra.mxu2 %v7239_v42  ;;  %v7723_v56 = vadd.f32 %v13441_v44, %v7634_v21  ;;  %v7637_v42 = vadd.f32 %v13423_v50, %v7548_v23 }
 0x56e   : > { %7878 = vxpose.xlu2.b32.cont [5/16] (narrow) %v7805_v12, 8 }
 0x56f   : > { %v7812_v44 = vadd.f32 %v13361_v15, %v7723_v56  ;;  %v7726_v10 = vadd.f32 %v13456_v13, %v7637_v42  ;;  %v7550_v15 = vadd.f32 %v13366_v27, %v13407_v49 }
 0x570   : > { %v13471_v41 = vpop.f32.mrf.mxu2 }
 0x571   : > { %v13477_v26 = vpop.f32.mrf.mxu1  ;;  %v6797_v32 = vpop.permute.xlu1 %6796  ;;  %v7815_v46 = vadd.f32 %v13391_v51, %v7726_v10  ;;  %v7639_v50 = vadd.f32 %v13444_v20, %v7550_v15  ;;  %v5969_v51 = vsel %vm9689_vm9, 0, %v13086_v22 }
 0x572   : > { %v6749_v37 = vpop.permute.xlu0 %6748 }
 0x573   : > { %v7050_v14 = vsel %vm2023_vm11, %v7003_v47, %v6749_v37  ;;  %v7085_v61 = vsel %vm2072_vm12, %v6749_v37, %v6797_v32  ;;  %v13525_v12 = vpop.f32.mrf.mxu3 }
 0x574   : > { %7591 = vmatmul.bf16.gmra.mxu0 %v7050_v14  ;;  %v7117_v29 = vsel %vm2105_vm13, %v7085_v61, %v6829_v58  ;;  %v6799_v58 = vpop.permute.xlu2 %6798 }
 0x575   : > { %v7162_v18 = vsel %vm2138_vm14, %v7117_v29, %v6877_v16 }
 0x576   : > { %7879 = vxpose.xlu2.b32.cont [6/16] (narrow) %v7807_v30, 8  ;;  %v7728_v30 = vadd.f32 %v13471_v41, %v7639_v50 }
 0x578   : > { %v13492_v39 = vpop.f32.mrf.mxu2  ;;  %v7817_v41 = vadd.f32 %v13412_v35, %v7728_v30  ;;  %v7555_v35 = vadd.f32 %v13366_v27, %v13449_v3 }
 0x579   : > { %v13494_v62 = vpop.f32.mrf.mxu1  ;;  %v6957_v53 = vpop.permute.xlu1 %6956 }
 0x57a   : > { %v6925_v7 = vpop.permute.xlu0 %6924  ;;  %v13512_v25 = vpop.f32.mrf.mxu0 }
 0x57b   : > { %v7197_v33 = vsel %vm2187_vm15, %v6877_v16, %v6925_v7  ;;  %v6673_v16 = vsel %vm9661_vm6, %v6641_v59, 0  ;;  %v13539_v13 = vpop.f32.mrf.mxu3  ;;  %v7553_v7 = vadd.f32 %v13366_v27, %v13429_v45  ;;  %v7563_v30 = vadd.f32 %v13366_v27, %v13512_v25 }
 0x57c   : > { %v7242_v19 = vsel %vm2220_vm0, %v7197_v33, %v6957_v53  ;;  %7680 = vmatmul.bf16.gmra.mxu1 %v7162_v18  ;;  %9198 = vmatmul.msk.bf16.gmra.mxu3 %vm1974_vm10, %v6673_v16  ;;  %v6929_v57 = vpop.permute.xlu2 %6928 }
 0x57d   : > { %7769 = vmatmul.bf16.gmra.mxu2 %v7242_v19  ;;  %v7642_v18 = vadd.f32 %v13459_v6, %v7553_v7  ;;  %v7644_v6 = vadd.f32 %v13477_v26, %v7555_v35 }
 0x57e   : > { %7880 = vxpose.xlu2.b32.cont [7/16] (narrow) %v7810_v36, 8 }
 0x57f   : > { %v7731_v22 = vadd.f32 %v13492_v39, %v7642_v18 }
 0x580   : > { %v7732_v8 = vpop.f32.mrf.mxu2 }
 0x581   : > { %v6751_v1 = vpop.permute.xlu1 %6750  ;;  %v13523_v11 = vpop.f32.mrf.mxu1  ;;  %v7820_v45 = vadd.f32 %v13438_v2, %v7731_v22  ;;  %v7733_v39 = vadd.f32 %v7732_v8, %v7644_v6  ;;  %v7558_v2 = vadd.f32 %v13366_v27, %v13469_v43 }
 0x582   : > { %v6703_v9 = vpop.permute.xlu0 %6702  ;;  %v13529_v31 = vpop.f32.mrf.mxu0  ;;  %v7087_v61 = vsel %vm2072_vm12, %v6751_v1, %v6799_v58 }
 0x583   : > { %v7006_v60 = vsel %vm1974_vm10, %v5968_v34, %v6703_v9  ;;  %v7834_v54 = vpop.f32.mrf.mxu3  ;;  %v7822_v3 = vadd.f32 %v13452_v28, %v7733_v39  ;;  %v7647_v26 = vadd.f32 %v13494_v62, %v7558_v2 }
 0x584   : > { %v7053_v4 = vsel %vm2023_vm11, %v7006_v60, %v6751_v1  ;;  %v6753_v40 = vpop.permute.xlu2 %6752 }
 0x585   : > { %7596 = vmatmul.bf16.gmra.mxu0 %v7053_v4 }
 0x586   : > { %7881 = vxpose.xlu2.b32.cont [8/16] (narrow) %v7812_v44, 8 }
 0x588   : > { %v7735_v14 = vpop.f32.mrf.mxu2 }
 0x589   : > { %v6927_v47 = vpop.permute.xlu1 %6926  ;;  %v13537_v63 = vpop.f32.mrf.mxu1  ;;  %v7736_v44 = vadd.f32 %v7735_v14, %v7647_v26 }
 0x58a   : > { %v6879_v48 = vpop.permute.xlu0 %6878  ;;  %v7567_v33 = vpop.f32.mrf.mxu0 }
 0x58b   : > { %v7199_v37 = vsel %vm2187_vm15, %v6879_v48, %v6927_v47  ;;  %v7836_v1 = vpop.f32.mrf.mxu3  ;;  %v7568_v43 = vadd.f32 %v13366_v27, %v7567_v33 }
 0x58c   : > { %v7245_v32 = vsel %vm2220_vm0, %v7199_v37, %v6959_v5 }
 0x58d   : > { %7774 = vmatmul.bf16.gmra.mxu2 %v7245_v32 }
 0x58e   : > { %7882 = vxpose.xlu2.b32.cont [9/16] (narrow) %v7815_v46, 8 }
 0x590   : > { %v7737_v52 = vpop.f32.mrf.mxu2 }
 0x591   : > { %v6705_v5 = vpop.permute.xlu1 %6704  ;;  %v7653_v19 = vpop.f32.mrf.mxu1 }
 0x592   : > { %v6831_v24 = vpop.permute.xlu0 %6830  ;;  %v7009_v20 = vsel %vm1974_vm10, %v5969_v51, %v6705_v5  ;;  %v7569_v58 = vpop.f32.mrf.mxu0 }
 0x593   : > { %v7119_v49 = vsel %vm2105_vm13, %v7087_v61, %v6831_v24  ;;  %v7056_v53 = vsel %vm2023_vm11, %v7009_v20, %v6753_v40  ;;  %v7839_v47 = vpop.f32.mrf.mxu3  ;;  %v7652_v61 = vadd.f32 %v13537_v63, %v7563_v30 }
 0x594   : > { %v7165_v29 = vsel %vm2138_vm14, %v7119_v49, %v6879_v48  ;;  %v7825_v48 = vadd.f32 %v13479_v38, %v7736_v44  ;;  %v7570_v38 = vadd.f32 %v13366_v27, %v7569_v58 }
 0x595   : > { %7685 = vmatmul.bf16.gmra.mxu1 %v7165_v29  ;;  %7601 = vmatmul.bf16.gmra.mxu0 %v7056_v53  ;;  %v7565_v29 = vadd.f32 %v13366_v27, %v13529_v31 }
 0x596   : > { %7883 = vxpose.xlu2.b32.cont [10/16] (narrow) %v7817_v41, 8 }
 0x597   : > { %v7654_v41 = vadd.f32 %v7653_v19, %v7565_v29 }
 0x599   : > { %v6881_v36 = vpop.permute.xlu1 %6880 }
 0x59a   : > { %v6961_v55 = vpop.permute.xlu0 %6960  ;;  %v7201_v59 = vsel %vm2187_vm15, %v6881_v36, %v6929_v57  ;;  %v7572_v42 = vpop.f32.mrf.mxu0  ;;  %v7560_v57 = vadd.f32 %v13366_v27, %v13489_v17 }
 0x59b   : > { %v7248_v21 = vsel %vm2220_vm0, %v7201_v59, %v6961_v55 }
 0x59c   : > { %v7649_v28 = vadd.f32 %v13523_v11, %v7560_v57  ;;  %v7841_v11 = vpop.f32.mrf.mxu3 }
 0x59d   : > { %7779 = vmatmul.bf16.gmra.mxu2 %v7248_v21 }
 0x59e   : > { %7884 = vxpose.xlu2.b32.cont [11/16] (narrow) %v7820_v45, 8  ;;  %v7738_v15 = vadd.f32 %v7737_v52, %v7649_v28 }
 0x5a0   : > { %v7740_v16 = vpop.f32.mrf.mxu2  ;;  %v7827_v17 = vadd.f32 %v13497_v0, %v7738_v15  ;;  %v7573_v0 = vadd.f32 %v13366_v27, %v7572_v42 }
 0x5a1   : > { %v7656_v56 = vpop.f32.mrf.mxu1  ;;  %v6833_v60 = vpop.permute.xlu1 %6832  ;;  %v7741_v49 = vadd.f32 %v7740_v16, %v7652_v61 }
 0x5a2   : > { %v6801_v34 = vpop.permute.xlu0 %6800  ;;  %v7657_v37 = vadd.f32 %v7656_v56, %v7568_v43  ;;  %v7574_v32 = vpop.f32.mrf.mxu0 }
 0x5a3   : > { %v7089_v9 = vsel %vm2072_vm12, %v6753_v40, %v6801_v34  ;;  %v7830_v25 = vadd.f32 %v13525_v12, %v7741_v49 }
 0x5a4   : > { %v7121_v4 = vsel %vm2105_vm13, %v7089_v9, %v6833_v60  ;;  %v7844_v18 = vpop.f32.mrf.mxu3 }
 0x5a5   : > { %v7168_v23 = vsel %vm2138_vm14, %v7121_v4, %v6881_v36  ;;  %v7575_v36 = vadd.f32 %v13366_v27, %v7574_v32 }
 0x5a6   : > { %7690 = vmatmul.bf16.gmra.mxu1 %v7168_v23  ;;  %7885 = vxpose.xlu2.b32.cont [12/16] (narrow) %v7822_v3, 8 }
 0x5a8   : > { %v7742_v8 = vpop.f32.mrf.mxu2 }
 0x5a9   : > { %v7658_v10 = vpop.f32.mrf.mxu1  ;;  %v7743_v33 = vadd.f32 %v7742_v8, %v7654_v41 }
 0x5aa   : > { %v7659_v24 = vadd.f32 %v7658_v10, %v7570_v38 }
 0x5ac   : > { %v7846_v45 = vpop.f32.mrf.mxu3 }
 0x5ae   : > { %7886 = vxpose.xlu2.b32.cont [13/16] (narrow) %v7825_v48, 8 }
 0x5b0   : > { %v7745_v46 = vpop.f32.mrf.mxu2 }
 0x5b1   : > { %v7746_v62 = vadd.f32 %v7745_v46, %v7657_v37  ;;  %v7661_v14 = vpop.f32.mrf.mxu1  ;;  %v7577_v40 = vpop.f32.mrf.mxu0 }
 0x5b2   : > { %v7662_v63 = vadd.f32 %v7661_v14, %v7573_v0  ;;  %v7578_v21 = vadd.f32 %v13366_v27, %v7577_v40 }
 0x5b3   : > { %v7835_v50 = vadd.f32 %v7834_v54, %v7746_v62  ;;  %v7832_v54 = vadd.f32 %v13539_v13, %v7743_v33 }
 0x5b4   : > { %v7849_v34 = vpop.f32.mrf.mxu3 }
 0x5b5   : > { %7906 = vxpose.xlu0.b32.start [1/16] (narrow) %v7835_v50, 8 }
 0x5b6   : > { %7887 = vxpose.xlu2.b32.cont [14/16] (narrow) %v7827_v17, 8 }
 0x5b8   : > { %v7747_v51 = vpop.f32.mrf.mxu2 }
 0x5b9   : > { %v7748_v5 = vadd.f32 %v7747_v51, %v7659_v24  ;;  %v7663_v7 = vpop.f32.mrf.mxu1  ;;  %v7579_v55 = vpop.f32.mrf.mxu0 }
 0x5ba   : > { %v7664_v12 = vadd.f32 %v7663_v7, %v7575_v36  ;;  %v7580_v9 = vadd.f32 %v13366_v27, %v7579_v55 }
 0x5bb   : > { %v7837_v20 = vadd.f32 %v7836_v1, %v7748_v5 }
 0x5bc   : > { %v7851_v8 = vpop.f32.mrf.mxu3 }
 0x5bd   : > { %7907 = vxpose.xlu0.b32.cont [2/16] (narrow) %v7837_v20, 8 }
 0x5be   : > { %7888 = vxpose.xlu2.b32.cont [15/16] (narrow) %v7830_v25, 8 }
 0x5c0   : > { %v7750_v53 = vpop.f32.mrf.mxu2 }
 0x5c1   : > { %v7751_v52 = vadd.f32 %v7750_v53, %v7662_v63  ;;  %v7666_v31 = vpop.f32.mrf.mxu1 }
 0x5c2   : > { %v7582_v6 = vpop.f32.mrf.mxu0  ;;  %v7667_v58 = vadd.f32 %v7666_v31, %v7578_v21  ;;  %v7938_v21 = vlaneseq }
 0x5c3   : > { %v7840_v22 = vadd.f32 %v7839_v47, %v7751_v52  ;;  %v7583_v26 = vadd.f32 %v13366_v27, %v7582_v6 }
 0x5c4   : > { %v7854_v15 = vpop.f32.mrf.mxu3 }
 0x5c5   : > { %7908 = vxpose.xlu0.b32.cont [3/16] (narrow) %v7840_v22, 8 }
 0x5c6   : > { %7889 = vxpose.xlu2.b32.end [16/16] (narrow) %v7832_v54, 8 }
 0x5c8   : > { %v7752_v59 = vpop.f32.mrf.mxu2 }
 0x5c9   : > { %v7753_v35 = vadd.f32 %v7752_v59, %v7664_v12  ;;  %v7668_v39 = vpop.f32.mrf.mxu1 }
 0x5ca   : > { %v7669_v60 = vadd.f32 %v7668_v39, %v7580_v9  ;;  %v7584_v1 = vpop.f32.mrf.mxu0 }
 0x5cb   : > { %v7842_v19 = vadd.f32 %v7841_v11, %v7753_v35  ;;  %v7585_v43 = vadd.f32 %v13366_v27, %v7584_v1 }
 0x5cc   : > { %v7856_v11 = vpop.f32.mrf.mxu3 }
 0x5cd   : > { %7909 = vxpose.xlu0.b32.cont [4/16] (narrow) %v7842_v19, 8 }
 0x5d0   : > { %v7755_v16 = vpop.f32.mrf.mxu2 }
 0x5d1   : > { %v7756_v56 = vadd.f32 %v7755_v16, %v7667_v58 }
 0x5d2   : > { %v7587_v48 = vpop.f32.mrf.mxu0 }
 0x5d3   : > { %v7845_v13 = vadd.f32 %v7844_v18, %v7756_v56  ;;  %v7588_v14 = vadd.f32 %v13366_v27, %v7587_v48 }
 0x5d4   : > { %v7859_v0 = vpop.f32.mrf.mxu3 }
 0x5d5   : > { %7910 = vxpose.xlu0.b32.cont [5/16] (narrow) %v7845_v13, 8  ;;  %v13593_v13 = vshrl.u32 %v7938_v21, 7 }
 0x5d7   : > { %vm7940_vm2 = vcmp.lt.s32.totalorder %v13593_v13, 4 }
 0x5d8   : > { %v7757_v4 = vpop.f32.mrf.mxu2 }
 0x5d9   : > { %v7758_v2 = vadd.f32 %v7757_v4, %v7669_v60  ;;  %v7671_v3 = vpop.f32.mrf.mxu1 }
 0x5da   : > { %v7672_v44 = vadd.f32 %v7671_v3, %v7583_v26  ;;  %v7589_v50 = vpop.f32.mrf.mxu0 }
 0x5db   : > { %v7847_v23 = vadd.f32 %v7846_v45, %v7758_v2  ;;  %v7590_v51 = vadd.f32 %v13366_v27, %v7589_v50 }
 0x5dc   : > { %v7861_v54 = vpop.f32.mrf.mxu3 }
 0x5dd   : > { %7911 = vxpose.xlu0.b32.cont [6/16] (narrow) %v7847_v23, 8 }
 0x5e0   : > { %v7760_v42 = vpop.f32.mrf.mxu2 }
 0x5e1   : > { %v7761_v10 = vadd.f32 %v7760_v42, %v7672_v44  ;;  %v7673_v57 = vpop.f32.mrf.mxu1 }
 0x5e2   : > { %v7674_v28 = vadd.f32 %v7673_v57, %v7585_v43 }
 0x5e3   : > { %v7850_v47 = vadd.f32 %v7849_v34, %v7761_v10 }
 0x5e4   : > { %v7864_v58 = vpop.f32.mrf.mxu3 }
 0x5e5   : > { %7912 = vxpose.xlu0.b32.cont [7/16] (narrow) %v7850_v47, 8 }
 0x5e7   : > { %v7890_v6 = vpop.trf.xlu2 }
 0x5e8   : > { %v7762_v37 = vpop.f32.mrf.mxu2  ;;  %v7941_v56 = vmul.f32 2.0, %v7890_v6 }
 0x5e9   : > { %v7763_v46 = vadd.f32 %v7762_v37, %v7674_v28  ;;  %v7676_v62 = vpop.f32.mrf.mxu1 }
 0x5ea   : > { %v7677_v30 = vadd.f32 %v7676_v62, %v7588_v14  ;;  %v7943_v60 = vsel %vm7940_vm2, %v7890_v6, %v7941_v56 }
 0x5eb   : > { %v7852_v32 = vadd.f32 %v7851_v8, %v7763_v46  ;;  %v7945_v1 = vsub.f32 0.0, %v7943_v60 }
 0x5ec   : > { %v7866_v8 = vpop.f32.mrf.mxu3 }
 0x5ed   : > { %7913 = vxpose.xlu0.b32.cont [8/16] (narrow) %v7852_v32, 8  ;;  %v7947_v23 = vmul.f32 1.442695, %v7945_v1 }
 0x5ef   : > { %9496 = vpow2.f32 %v7947_v23 }
 0x5f0   : > { %v7765_v17 = vpop.f32.mrf.mxu2 }
 0x5f1   : > { %v7766_v38 = vadd.f32 %v7765_v17, %v7677_v30  ;;  %v7678_v61 = vpop.f32.mrf.mxu1  ;;  %v7592_v49 = vpop.f32.mrf.mxu0 }
 0x5f2   : > { %v7679_v5 = vadd.f32 %v7678_v61, %v7590_v51  ;;  %v7593_v7 = vadd.f32 %v13366_v27, %v7592_v49 }
 0x5f3   : > { %v7855_v24 = vadd.f32 %v7854_v15, %v7766_v38 }
 0x5f5   : > { %7914 = vxpose.xlu0.b32.cont [9/16] (narrow) %v7855_v24, 8  ;;  %v9497_v57 = vpop.eup %9496 }
 0x5f6   : > { %v7951_v28 = vadd.f32 1.0, %v9497_v57 }
 0x5f8   : > { %v7767_v40 = vpop.f32.mrf.mxu2  ;;  %9498 = vrcp.f32 %v7951_v28  ;;  %vm7958_vm3 = vweird.f32 %v7951_v28  ;;  %v7962_v51 = vand.u32 2147483647, %v7951_v28 }
 0x5f9   : > { %v7768_v20 = vadd.f32 %v7767_v40, %v7679_v5  ;;  %v7681_v29 = vpop.f32.mrf.mxu1  ;;  %v7594_v41 = vpop.f32.mrf.mxu0 }
 0x5fa   : > { %v7682_v63 = vadd.f32 %v7681_v29, %v7593_v7  ;;  %v7595_v22 = vadd.f32 %v13366_v27, %v7594_v41  ;;  %vm7963_vm6 = vcmp.eq.f32.partialorder %v7962_v51, 8.507059e+37 }
 0x5fb   : > { %v7857_v25 = vadd.f32 %v7856_v11, %v7768_v20  ;;  %v7964_v11 = vand.u32 2147483648, %v7951_v28 }
 0x5fd   : > { %7915 = vxpose.xlu0.b32.cont [10/16] (narrow) %v7857_v25, 8  ;;  %v7965_v29 = vor.u32 1.1754944e-38, %v7964_v11 }
 0x5fe   : > { %v9499_v14 = vpop.eup %9498 }
 0x5ff   : > { %v7869_v15 = vpop.f32.mrf.mxu3  ;;  %v7954_v38 = vmul.f32 %v9499_v14, %v7951_v28  ;;  %vm7959_vm4 = vweird.f32 %v9499_v14 }
 0x600   : > { %v7770_v33 = vpop.f32.mrf.mxu2  ;;  %vm7960_vm5 = vmor %vm7958_vm3, %vm7959_vm4 }
 0x601   : > { %v7771_v53 = vadd.f32 %v7770_v33, %v7682_v63  ;;  %v7683_v52 = vpop.f32.mrf.mxu1  ;;  %v7955_v49 = vsub.f32 1.0, %v7954_v38 }
 0x602   : > { %v7684_v55 = vadd.f32 %v7683_v52, %v7595_v22  ;;  %v7597_v36 = vpop.f32.mrf.mxu0 }
 0x603   : > { %v7860_v18 = vadd.f32 %v7859_v0, %v7771_v53  ;;  %v7598_v35 = vadd.f32 %v13366_v27, %v7597_v36  ;;  %v7956_v20 = vmul.f32 %v9499_v14, %v7955_v49 }
 0x605   : > { %7916 = vxpose.xlu0.b32.cont [11/16] (narrow) %v7860_v18, 8 }
 0x607   : > { %v7871_v5 = vpop.f32.mrf.mxu3 }
 0x608   : > { %v7772_v12 = vpop.f32.mrf.mxu2 }
 0x609   : > { %v7773_v31 = vadd.f32 %v7772_v12, %v7684_v55 }
 0x60a   : > { %v7599_v16 = vpop.f32.mrf.mxu0 }
 0x60b   : > { %v7862_v59 = vadd.f32 %v7861_v54, %v7773_v31  ;;  %v7600_v4 = vadd.f32 %v13366_v27, %v7599_v16 }
 0x60d   : > { %7917 = vxpose.xlu0.b32.cont [12/16] (narrow) %v7862_v59, 8 }
 0x610   : > { %v7775_v45 = vpop.f32.mrf.mxu2 }
 0x612   : > { %v7686_v19 = vpop.f32.mrf.mxu1  ;;  %v7602_v44 = vpop.f32.mrf.mxu0 }
 0x613   : > { %v7687_v39 = vadd.f32 %v7686_v19, %v7598_v35  ;;  %v7603_v48 = vadd.f32 %v13366_v27, %v7602_v44 }
 0x615   : > { %v7776_v34 = vadd.f32 %v7775_v45, %v7687_v39 }
 0x617   : > { %v7865_v9 = vadd.f32 %v7864_v58, %v7776_v34 }
 0x618   : > { %v7777_v2 = vpop.f32.mrf.mxu2 }
 0x619   : > { %7918 = vxpose.xlu0.b32.cont [13/16] (narrow) %v7865_v9, 8 }
 0x61a   : > { %v7688_v3 = vpop.f32.mrf.mxu1  ;;  %v7604_v62 = vpop.f32.mrf.mxu0 }
 0x61b   : > { %v7689_v26 = vadd.f32 %v7688_v3, %v7600_v4  ;;  %v7605_v50 = vadd.f32 %v13366_v27, %v7604_v62  ;;  %v7957_v27 = vadd.f32 %v9499_v14, %v7956_v20 }
 0x61d   : > { %v7778_v42 = vadd.f32 %v7777_v2, %v7689_v26  ;;  %v7961_v25 = vsel %vm7960_vm5, %v9499_v14, %v7957_v27 }
 0x61e   : > { %v7966_v0 = vsel %vm7963_vm6, %v7965_v29, %v7961_v25 }
 0x61f   : > { %v7867_v10 = vadd.f32 %v7866_v8, %v7778_v42  ;;  %v7983_v7 = vmul.f32 2.0, %v7966_v0 }
 0x620   : > { %v7780_v47 = vpop.f32.mrf.mxu2 }
 0x621   : > { %7919 = vxpose.xlu0.b32.cont [14/16] (narrow) %v7867_v10, 8  ;;  %v9199_v41 = vadd.f32 -1.0, %v7983_v7 }
 0x623   : > { %v7691_v43 = vpop.f32.mrf.mxu1  ;;  %v7987_v63 = vsel %vm7940_vm2, %v7966_v0, %v9199_v41 }
 0x624   : > { %v7692_v37 = vadd.f32 %v7691_v43, %v7603_v48  ;;  %7989 = vst [vmem:[%s332_s13] sm:$0xff] %v7987_v63 }
 0x626   : > { %v7781_v46 = vadd.f32 %v7780_v47, %v7692_v37 }
 0x628   : > { %v7870_v32 = vadd.f32 %v7869_v15, %v7781_v46  ;;  %v7782_v61 = vpop.f32.mrf.mxu2 }
 0x62a   : > { %7920 = vxpose.xlu0.b32.cont [15/16] (narrow) %v7870_v32, 8 }
 0x62b   : > { %v7693_v30 = vpop.f32.mrf.mxu1 }
 0x62c   : > { %v7694_v17 = vadd.f32 %v7693_v30, %v7605_v50 }
 0x62e   : > { %v7783_v24 = vadd.f32 %v7782_v61, %v7694_v17 }
 0x630   : > { %v7872_v40 = vadd.f32 %v7871_v5, %v7783_v24 }
 0x632   : > { %7921 = vxpose.xlu0.b32.end [16/16] (narrow) %v7872_v40, 8 }
 0x65e   : > { %v7922_v33 = vpop.trf.xlu0 }
 0x65f   : > { %v7942_v53 = vmul.f32 2.0, %v7922_v33 }
 0x661   : > { %v7944_v18 = vsel %vm7940_vm2, %v7922_v33, %v7942_v53 }
 0x662   : > { %v7946_v52 = vsub.f32 0.0, %v7944_v18 }
 0x664   : > { %v7949_v22 = vmul.f32 1.442695, %v7946_v52 }
 0x666   : > { %9500 = vpow2.f32 %v7949_v22 }
 0x66c   : > { %v9501_v54 = vpop.eup %9500 }
 0x66d   : > { %v7952_v55 = vadd.f32 1.0, %v9501_v54 }
 0x66f   : > { %9502 = vrcp.f32 %v7952_v55  ;;  %v7979_v59 = vand.u32 2147483648, %v7952_v55  ;;  %v7977_v45 = vand.u32 2147483647, %v7952_v55  ;;  %vm7973_vm8 = vweird.f32 %v7952_v55 }
 0x671   : > { %v7980_v21 = vor.u32 1.1754944e-38, %v7979_v59  ;;  %vm7978_vm10 = vcmp.eq.f32.partialorder %v7977_v45, 8.507059e+37 }
 0x675   : > { %v9503_v36 = vpop.eup %9502 }
 0x676   : > { %v7969_v12 = vmul.f32 %v9503_v36, %v7952_v55  ;;  %vm7974_vm7 = vweird.f32 %v9503_v36 }
 0x677   : > { %vm7975_vm9 = vmor %vm7973_vm8, %vm7974_vm7 }
 0x678   : > { %v7970_v31 = vsub.f32 1.0, %v7969_v12 }
 0x67a   : > { %v7971_v35 = vmul.f32 %v9503_v36, %v7970_v31 }
 0x67c   : > { %v7972_v19 = vadd.f32 %v9503_v36, %v7971_v35 }
 0x67e   : > { %v7976_v6 = vsel %vm7975_vm9, %v9503_v36, %v7972_v19 }
 0x67f   : > { %v7981_v58 = vsel %vm7978_vm10, %v7980_v21, %v7976_v6 }
 0x680   : > { %v7984_v16 = vmul.f32 2.0, %v7981_v58 }
 0x682   : > { %v9200_v39 = vadd.f32 -1.0, %v7984_v16 }
 0x684   : > { %v7988_v56 = vsel %vm7940_vm2, %v7981_v58, %v9200_v39 }
 0x685   : > { %7990 = vst [vmem:[%s332_s13 + $0x8] sm:$0xff] %v7988_v56 }
 0x686 PF: > { %s19_s30 = sadd.s32 1, %s9539_s30  }
 0x687   : > { %p16_p4 = scmp.ge.s32.totalorder %s19_s30, 4  }
 0x689   :  { %18 = sbr.rel (!%p16_p4) target bundleno = 1 (0x1), region = 92 }

</bundles_post_ra>
